<compile_context>
chip_gen: v5e
topology: v5e:2x2
jax: 0.10.0
libtpu: 0.0.40
codegen_flags: <defaults>
</compile_context>

<pallas_src>
import functools

import jax
import jax.numpy as jnp
from jax.experimental import pallas as pl
from jax.experimental.pallas import tpu as pltpu

LANE = 128
_BN_EPS = 1e-5
_FUSED_M_MAX = 2048     # above this M the M-tiled (parallel-grid) path is preferred


def _round_up(n, m):
    return ((n + m - 1) // m) * m


def _vmem_capacity_bytes():
    """Per-core VMEM capacity (generation-aware); conservative 64 MiB fallback (v7x)."""
    fn = getattr(pltpu, "get_tpu_info", None)
    if fn is not None:
        try:
            cap = getattr(fn(), "vmem_capacity_bytes", None)
            if cap:
                return int(cap)
        except Exception:
            pass
    return 64 * 1024 * 1024


def _vmem_limit_bytes(footprint):
    cap = _vmem_capacity_bytes()
    return int(min(int(cap * 0.9),
                   max(32 * 1024 * 1024, int(footprint * 1.5) + (4 << 20))))


# ----------------------------------------------------------------------------- Pallas kernels

def _fused_mm_bn_act_kernel(x_ref, w_ref, *rest, relu, has_add, inv_m):
    """Single block: y = x@w (+ s@w2); one-pass batch-stats BatchNorm; optional ReLU."""
    if has_add:
        s_ref, w2_ref, g_ref, b_ref, o_ref = rest
    else:
        g_ref, b_ref, o_ref = rest
    y = jnp.dot(x_ref[...], w_ref[...], preferred_element_type=jnp.float32)
    if has_add:
        y = y + jnp.dot(s_ref[...], w2_ref[...], preferred_element_type=jnp.float32)
    mean = jnp.sum(y, axis=0, keepdims=True) * inv_m
    var = jnp.maximum(jnp.sum(y * y, axis=0, keepdims=True) * inv_m - mean * mean, 0.0)
    scale = jax.lax.rsqrt(var + _BN_EPS) * g_ref[...]
    shift = b_ref[...] - mean * scale
    y = y * scale + shift
    if relu:
        y = jnp.maximum(y, 0.0)
    o_ref[...] = y


def _fused_conv3x3_bn_act_kernel(xh_ref, w_ref, s_ref, w2_ref, g_ref, b_ref, o_ref, *,
                                 relu, batch, hw, row_stride, w_cols, inv_m):
    """Single-block 3x3 conv: xh is the horizontally (kw) im2col'ed, row-haloed slab.
    The 3 vertical (kh) taps are row-shifted views of the same VMEM buffer; spectral add,
    one-pass BN stats, then in-place normalize + act."""
    c3 = w_ref.shape[0] // 3                     # = 3 * C (kw, c) rows per kh tap
    npad = o_ref.shape[1]
    sum_acc = jnp.zeros((1, npad), jnp.float32)
    ssq_acc = jnp.zeros((1, npad), jnp.float32)
    for b in range(batch):                       # static unroll; B is small
        acc = jnp.dot(s_ref[pl.ds(b * hw, hw), :], w2_ref[...],
                      preferred_element_type=jnp.float32)
        for kh in range(3):
            acc += jnp.dot(xh_ref[pl.ds(b * row_stride + kh * w_cols, hw), :],
                           w_ref[pl.ds(kh * c3, c3), :],
                           preferred_element_type=jnp.float32)
        o_ref[pl.ds(b * hw, hw), :] = acc
        sum_acc = sum_acc + jnp.sum(acc, axis=0, keepdims=True)
        ssq_acc = ssq_acc + jnp.sum(acc * acc, axis=0, keepdims=True)
    mean = sum_acc * inv_m
    var = jnp.maximum(ssq_acc * inv_m - mean * mean, 0.0)
    scale = jax.lax.rsqrt(var + _BN_EPS) * g_ref[...]
    shift = b_ref[...] - mean * scale
    for b in range(batch):
        y = o_ref[pl.ds(b * hw, hw), :] * scale + shift
        if relu:
            y = jnp.maximum(y, 0.0)
        o_ref[pl.ds(b * hw, hw), :] = y


def _mm_stats_kernel(x_ref, w_ref, *rest, has_add):
    """Tiled pass 1: y = x@w (+ s@w2) and per-block partial BN stats (sum, sumsq)."""
    if has_add:
        s_ref, w2_ref, y_ref, part_ref = rest
    else:
        y_ref, part_ref = rest
    y = jnp.dot(x_ref[...], w_ref[...], preferred_element_type=jnp.float32)
    if has_add:
        y = y + jnp.dot(s_ref[...], w2_ref[...], preferred_element_type=jnp.float32)
    y_ref[...] = y
    part_ref[0:1, :] = jnp.sum(y, axis=0, keepdims=True)
    part_ref[1:2, :] = jnp.sum(y * y, axis=0, keepdims=True)
    part_ref[2:8, :] = jnp.zeros((6, y.shape[1]), jnp.float32)


def _bn_apply_kernel(y_ref, stats_ref, g_ref, b_ref, o_ref, *, relu, inv_m):
    """Tiled pass 2: normalize with the global batch statistics; optional ReLU."""
    mean = stats_ref[0:1, :] * inv_m
    var = jnp.maximum(stats_ref[1:2, :] * inv_m - mean * mean, 0.0)
    scale = jax.lax.rsqrt(var + _BN_EPS) * g_ref[...]
    shift = b_ref[...] - mean * scale
    y = y_ref[...] * scale + shift
    if relu:
        y = jnp.maximum(y, 0.0)
    o_ref[...] = y


# ----------------------------------------------------------------------------- Pallas wrappers

def _pick_tm(m, k, npad, c_add, tile_budget):
    """Largest row tile whose (double-buffered) working set fits the generation budget."""
    for tm in (2048, 1024, 512, 256, 128):
        if tm > _round_up(max(m, 128), 128):
            continue
        blk = (tm * k * 2 + k * npad * 2 + tm * c_add * 2 + c_add * npad * 2
               + tm * npad * 4 + 8 * npad * 4)
        if 2 * blk <= tile_budget:
            return tm
    return 128


def _tiled_matmul_bn_act(x_bf, w, gamma, beta, relu, add_x, add_w, tm_override=None):
    """Two-pass path for slabs too big for one VMEM block.

    Pass 1: M-tiled matmul with fused per-block BN partial stats ("parallel" grid so v7x's
    two TensorCores split M and DMA is pipelined).  Tiny partial reduction runs in XLA.
    Pass 2: normalize + act.  Ragged M is zero-padded; zero rows add nothing to the stats,
    which are divided by the real M."""
    M, K = x_bf.shape
    Npad = w.shape[1]
    has_add = add_x is not None
    c_add = add_x.shape[1] if has_add else 0
    cap = _vmem_capacity_bytes()
    TM = tm_override or _pick_tm(M, K, Npad, c_add, cap // 4)
    Mpad = _round_up(M, TM)
    if Mpad != M:
        x_bf = jnp.pad(x_bf, ((0, Mpad - M), (0, 0)))
        if has_add:
            add_x = jnp.pad(add_x, ((0, Mpad - M), (0, 0)))
    nblk = Mpad // TM
    blk_bytes = (TM * K * 2 + K * Npad * 2 + TM * c_add * 2 + c_add * Npad * 2
                 + TM * Npad * 4 + 8 * Npad * 4)
    params = pltpu.CompilerParams(dimension_semantics=("parallel",),
                                  vmem_limit_bytes=_vmem_limit_bytes(3 * blk_bytes))

    in_specs = [pl.BlockSpec((TM, K), lambda i: (i, 0)),
                pl.BlockSpec((K, Npad), lambda i: (0, 0))]
    args = [x_bf, w]
    if has_add:
        in_specs += [pl.BlockSpec((TM, c_add), lambda i: (i, 0)),
                     pl.BlockSpec((c_add, Npad), lambda i: (0, 0))]
        args += [add_x, add_w]
    y, partials = pl.pallas_call(
        functools.partial(_mm_stats_kernel, has_add=has_add),
        out_shape=(jax.ShapeDtypeStruct((Mpad, Npad), jnp.float32),
                   jax.ShapeDtypeStruct((nblk * 8, Npad), jnp.float32)),
        grid=(nblk,),
        in_specs=in_specs,
        out_specs=(pl.BlockSpec((TM, Npad), lambda i: (i, 0)),
                   pl.BlockSpec((8, Npad), lambda i: (i, 0))),
        compiler_params=params,
        cost_estimate=pl.CostEstimate(
            flops=2 * Mpad * Npad * (K + c_add), transcendentals=0,
            bytes_accessed=(Mpad * K * 2 + K * Npad * 2 + Mpad * c_add * 2
                            + c_add * Npad * 2 + Mpad * Npad * 4 + nblk * 8 * Npad * 4)),
    )(*args)
    stats = jnp.sum(partials.reshape(nblk, 8, Npad)[:, :2, :], axis=0)   # (2, Npad) tiny

    out = pl.pallas_call(
        functools.partial(_bn_apply_kernel, relu=relu, inv_m=1.0 / M),
        out_shape=jax.ShapeDtypeStruct((Mpad, Npad), jnp.float32),
        grid=(nblk,),
        in_specs=[pl.BlockSpec((TM, Npad), lambda i: (i, 0)),
                  pl.BlockSpec((2, Npad), lambda i: (0, 0)),
                  pl.BlockSpec((1, Npad), lambda i: (0, 0)),
                  pl.BlockSpec((1, Npad), lambda i: (0, 0))],
        out_specs=pl.BlockSpec((TM, Npad), lambda i: (i, 0)),
        compiler_params=params,
        cost_estimate=pl.CostEstimate(
            flops=4 * Mpad * Npad, transcendentals=0,
            bytes_accessed=2 * Mpad * Npad * 4 + 4 * Npad * 4),
    )(y, stats, gamma, beta)
    return out[:M] if Mpad != M else out


def fused_matmul_bn_act(x2d, w_kn, gamma, beta, *, n_out, relu, add_x=None, add_w=None,
                        force_tiled=False, tm_override=None):
    """y = x2d @ w_kn (+ add_x @ add_w) -> training-mode BatchNorm -> optional ReLU.

    w_kn: (K, Npad) bf16 lane-padded; gamma/beta: (1, Npad) f32; add_w: (c, Npad) bf16.
    Returns (M, n_out) f32.  Single fused VMEM block when it fits the per-generation
    budget and M is small; otherwise the tiled two-pass path."""
    M, K = x2d.shape
    Kw, Npad = w_kn.shape
    assert K == Kw
    x_bf = x2d.astype(jnp.bfloat16)
    has_add = add_x is not None
    c_add = add_x.shape[1] if has_add else 0
    if has_add:
        add_x = add_x.astype(jnp.bfloat16)

    cap = _vmem_capacity_bytes()
    footprint = (M * K * 2 + K * Npad * 2 + M * c_add * 2 + c_add * Npad * 2
                 + 3 * M * Npad * 4 + 4 * Npad * 4)
    if (not force_tiled) and M <= _FUSED_M_MAX and footprint <= cap // 2:
        in_specs = [pl.BlockSpec((M, K), lambda i: (0, 0)),
                    pl.BlockSpec((K, Npad), lambda i: (0, 0))]
        args = [x_bf, w_kn]
        if has_add:
            in_specs += [pl.BlockSpec((M, c_add), lambda i: (0, 0)),
                         pl.BlockSpec((c_add, Npad), lambda i: (0, 0))]
            args += [add_x, add_w]
        in_specs += [pl.BlockSpec((1, Npad), lambda i: (0, 0)),
                     pl.BlockSpec((1, Npad), lambda i: (0, 0))]
        args += [gamma, beta]
        y = pl.pallas_call(
            functools.partial(_fused_mm_bn_act_kernel, relu=relu, has_add=has_add,
                              inv_m=1.0 / M),
            out_shape=jax.ShapeDtypeStruct((M, Npad), jnp.float32),
            grid=(1,),
            in_specs=in_specs,
            out_specs=pl.BlockSpec((M, Npad), lambda i: (0, 0)),
            compiler_params=pltpu.CompilerParams(
                dimension_semantics=("arbitrary",),
                vmem_limit_bytes=_vmem_limit_bytes(footprint)),
            cost_estimate=pl.CostEstimate(
                flops=2 * M * Npad * (K + c_add), transcendentals=0,
                bytes_accessed=(M * K * 2 + K * Npad * 2 + M * c_add * 2
                                + c_add * Npad * 2 + M * Npad * 4)),
        )(*args)
    else:
        y = _tiled_matmul_bn_act(x_bf, w_kn, gamma, beta, relu, add_x, add_w, tm_override)
    return y[:, :n_out] if n_out != Npad else y


def _im2col3x3(x):
    """Full 3x3 / stride 1 / pad 1 im2col (bf16), channel ordering (kh, kw, c). Fallback only."""
    B, H, W, C = x.shape
    xp = jnp.pad(x, ((0, 0), (1, 1), (1, 1), (0, 0)))
    cols = [xp[:, kh:kh + H, kw:kw + W, :] for kh in range(3) for kw in range(3)]
    return jnp.concatenate(cols, axis=-1)


def fused_conv3x3_bn_act(x_nhwc_bf, w_kn, gamma, beta, *, n_out, relu, add_x, add_w):
    """3x3 / stride 1 / pad 1 conv + spectral add + BN + act.

    Only the horizontal (kw) taps are im2col'ed in XLA (3x expansion); the vertical (kh)
    taps are row-shifted in-kernel views of the same VMEM slab, so activation traffic is
    ~3x instead of the 9x of a full im2col."""
    B, H, W, C = x_nhwc_bf.shape
    M = B * H * W
    K, Npad = w_kn.shape                     # K = 9*C, rows ordered (kh, kw, c)
    add_x = add_x.astype(jnp.bfloat16)
    c_add = add_x.shape[1]
    xp = jnp.pad(x_nhwc_bf, ((0, 0), (1, 1), (1, 1), (0, 0)))
    xh = jnp.concatenate([xp[:, :, kw:kw + W, :] for kw in range(3)], axis=-1)
    rows = B * (H + 2) * W
    xh2d = xh.reshape(rows, 3 * C)

    cap = _vmem_capacity_bytes()
    footprint = (rows * 3 * C * 2 + K * Npad * 2 + M * c_add * 2 + c_add * Npad * 2
                 + 2 * M * Npad * 4 + 2 * H * W * Npad * 4 + 4 * Npad * 4)
    if W % 8 == 0 and B <= 8 and M <= _FUSED_M_MAX and footprint <= cap // 2:
        y = pl.pallas_call(
            functools.partial(_fused_conv3x3_bn_act_kernel, relu=relu, batch=B,
                              hw=H * W, row_stride=(H + 2) * W, w_cols=W, inv_m=1.0 / M),
            out_shape=jax.ShapeDtypeStruct((M, Npad), jnp.float32),
            grid=(1,),
            in_specs=[pl.BlockSpec((rows, 3 * C), lambda i: (0, 0)),
                      pl.BlockSpec((K, Npad), lambda i: (0, 0)),
                      pl.BlockSpec((M, c_add), lambda i: (0, 0)),
                      pl.BlockSpec((c_add, Npad), lambda i: (0, 0)),
                      pl.BlockSpec((1, Npad), lambda i: (0, 0)),
                      pl.BlockSpec((1, Npad), lambda i: (0, 0))],
            out_specs=pl.BlockSpec((M, Npad), lambda i: (0, 0)),
            compiler_params=pltpu.CompilerParams(
                dimension_semantics=("arbitrary",),
                vmem_limit_bytes=_vmem_limit_bytes(footprint)),
            cost_estimate=pl.CostEstimate(
                flops=2 * M * Npad * (K + c_add), transcendentals=0,
                bytes_accessed=(rows * 3 * C * 2 + K * Npad * 2 + M * c_add * 2
                                + c_add * Npad * 2 + M * Npad * 4)),
        )(xh2d, w_kn, add_x, add_w, gamma, beta)
        return y[:, :n_out] if n_out != Npad else y
    # TODO(synk): tiled row-halo 3x3 kernel for large feature maps; fall back to full im2col
    # feeding the generic fused / tiled matmul+BN path.
    x2 = _im2col3x3(x_nhwc_bf).reshape(M, K)
    return fused_matmul_bn_act(x2, w_kn, gamma, beta, n_out=n_out, relu=relu,
                               add_x=add_x, add_w=add_w)


# ----------------------------------------------------------------------------- FFC building blocks

def fourier_unit(x_nhwc, w_kn, gamma, beta):
    """torch FourierUnit forward (torch.fft path), NHWC. FFTs stay in XLA (no Pallas FFT)."""
    B, H, W, C = x_nhwc.shape
    f = jnp.fft.rfftn(x_nhwc, s=(H, W), axes=(1, 2), norm='ortho')
    ff = jnp.concatenate([jnp.real(f), jnp.imag(f)], axis=-1).astype(jnp.float32)
    Wf = ff.shape[2]
    y2 = fused_matmul_bn_act(ff.reshape(B * H * Wf, 2 * C), w_kn, gamma, beta,
                             n_out=2 * C, relu=True)
    y = y2.reshape(B, H, Wf, 2 * C)
    re, im = y[..., :C], y[..., C:]
    out = jnp.fft.irfftn(jax.lax.complex(re, im), s=(H, W), axes=(1, 2), norm='ortho')
    return out.astype(jnp.float32)


# ----------------------------------------------------------------------------- parameters / module

def _conv_w(key, out_c, in_c, k):
    fan_in = in_c * k * k
    std = (2.0 / fan_in) ** 0.5
    return jax.random.normal(key, (out_c, in_c, k, k), jnp.float32) * std


def _prep_bn_conv(w_oihw, gamma, beta, n_pad):
    """OIHW conv weight -> lane-padded (K, Npad) bf16 matmul weight + (1, Npad) BN params."""
    co, ci, kh, kw = w_oihw.shape
    wkn = jnp.transpose(w_oihw, (2, 3, 1, 0)).reshape(kh * kw * ci, co)
    wkn = jnp.pad(wkn, ((0, 0), (0, n_pad - co))).astype(jnp.bfloat16)
    g = jnp.pad(gamma.reshape(1, co), ((0, 0), (0, n_pad - co)),
                constant_values=1.0).astype(jnp.float32)
    b = jnp.pad(beta.reshape(1, co), ((0, 0), (0, n_pad - co)),
                constant_values=0.0).astype(jnp.float32)
    return wkn, g, b


def build_ffc_bn_act(key, in_channels, out_channels, ksize, relu,
                     ratio_gin=0.5, ratio_gout=0.5):
    """Returns (params, jitted forward) for one FFC_BN_ACT layer (stride=1, groups=1, lfu=True)."""
    assert ksize in (1, 3)
    in_cg = int(in_channels * ratio_gin)
    in_cl = in_channels - in_cg
    out_cg = int(out_channels * ratio_gout)
    out_cl = out_channels - out_cg
    assert in_cl > 0 and in_cg > 0 and out_cl > 0 and out_cg > 0
    c = out_cg // 2                       # SpectralTransform internal width
    assert c >= 4 and c % 4 == 0          # LFU folds c//4 channels back into c channels

    n_top = out_cl + out_cg
    n_pad_top = _round_up(n_top, LANE)
    n_pad_c = _round_up(c, LANE)
    n_pad_2c = _round_up(2 * c, LANE)

    ks = jax.random.split(key, 7)
    # merged [[W_l2l, W_l2g], [W_g2l, 0]] weight (output columns = [local | global]);
    # the zero block is ~25% wasted MXU FLOPs but keeps the kernel memory-bound-friendly
    # at these sizes (single lane-dense store, one fused BN over all channels).
    w_l2l = _conv_w(ks[0], out_cl, in_cl, ksize)
    w_g2l = _conv_w(ks[1], out_cl, in_cg, ksize)
    w_l2g = _conv_w(ks[2], out_cg, in_cl, ksize)
    w_main = jnp.concatenate([
        jnp.concatenate([w_l2l, w_g2l], axis=1),
        jnp.concatenate([w_l2g, jnp.zeros((out_cg, in_cg, ksize, ksize), jnp.float32)], axis=1),
    ], axis=0)
    main_w, main_g, main_b = _prep_bn_conv(
        w_main, jnp.ones((n_top,), jnp.float32), jnp.zeros((n_top,), jnp.float32), n_pad_top)

    st1_w, st1_g, st1_b = _prep_bn_conv(
        _conv_w(ks[3], c, in_cg, 1), jnp.ones((c,), jnp.float32),
        jnp.zeros((c,), jnp.float32), n_pad_c)
    fu_w, fu_g, fu_b = _prep_bn_conv(
        _conv_w(ks[4], 2 * c, 2 * c, 1), jnp.ones((2 * c,), jnp.float32),
        jnp.zeros((2 * c,), jnp.float32), n_pad_2c)
    lfu_w, lfu_g, lfu_b = _prep_bn_conv(
        _conv_w(ks[5], 2 * c, 2 * c, 1), jnp.ones((2 * c,), jnp.float32),
        jnp.zeros((2 * c,), jnp.float32), n_pad_2c)

    # SpectralTransform conv2 weight pre-placed into the global output columns of the merged
    # top-level layout: the second fused dot lands its contribution lane-dense, no add slab.
    w2 = _conv_w(ks[6], out_cg, c, 1)
    w2_kn = jnp.transpose(w2, (2, 3, 1, 0)).reshape(c, out_cg)
    st2_w = jnp.zeros((c, n_pad_top), jnp.float32).at[:, out_cl:out_cl + out_cg].set(w2_kn)
    st2_w = st2_w.astype(jnp.bfloat16)

    params = dict(main_w=main_w, main_gamma=main_g, main_beta=main_b,
                  st1_w=st1_w, st1_gamma=st1_g, st1_beta=st1_b,
                  fu_w=fu_w, fu_gamma=fu_g, fu_beta=fu_b,
                  lfu_w=lfu_w, lfu_gamma=lfu_g, lfu_beta=lfu_b,
                  st2_w=st2_w)

    def forward(p, x_l_nchw, x_g_nchw):
        # NCHW (PyTorch) -> NHWC (kernel layout); only at the module boundary.
        x_l = jnp.transpose(x_l_nchw, (0, 2, 3, 1)).astype(jnp.float32)
        x_g = jnp.transpose(x_g_nchw, (0, 2, 3, 1)).astype(jnp.float32)
        B, H, W, _ = x_l.shape
        M = B * H * W

        # ---- convg2g = SpectralTransform(x_g) (stride=1, enable_lfu=True) -------------------
        xg1 = fused_matmul_bn_act(x_g.reshape(M, in_cg), p['st1_w'], p['st1_gamma'],
                                  p['st1_beta'], n_out=c, relu=True).reshape(B, H, W, c)
        fu_out = fourier_unit(xg1, p['fu_w'], p['fu_gamma'], p['fu_beta'])
        # LFU: fold 2x2 spatial quadrants of the first c//4 channels into channels
        xs = xg1[..., :c // 4]
        xs = jnp.concatenate([xs[:, :H // 2], xs[:, H // 2:]], axis=-1)
        xs = jnp.concatenate([xs[:, :, :W // 2], xs[:, :, W // 2:]], axis=-1)
        xs = fourier_unit(xs, p['lfu_w'], p['lfu_gamma'], p['lfu_beta'])
        xs = jnp.tile(xs, (1, 2, 2, 1))                     # torch .repeat(1, 1, 2, 2)
        s2d = (xg1 + fu_out + xs).astype(jnp.bfloat16).reshape(M, c)

        # ---- merged convl2l | convg2l | convl2g (+ fused st2 matmul) + BN_l/BN_g + act ------
        x_cat = jnp.concatenate([x_l, x_g], axis=-1).astype(jnp.bfloat16)
        if ksize == 1:
            y2 = fused_matmul_bn_act(x_cat.reshape(M, in_cl + in_cg), p['main_w'],
                                     p['main_gamma'], p['main_beta'], n_out=n_top,
                                     relu=relu, add_x=s2d, add_w=p['st2_w'])
        else:
            y2 = fused_conv3x3_bn_act(x_cat, p['main_w'], p['main_gamma'], p['main_beta'],
                                      n_out=n_top, relu=relu, add_x=s2d, add_w=p['st2_w'])
        y = y2.reshape(B, H, W, n_top)

        # NHWC -> NCHW (module boundary only)
        out_l = jnp.transpose(y[..., :out_cl], (0, 3, 1, 2))
        out_g = jnp.transpose(y[..., out_cl:], (0, 3, 1, 2))
        return out_l, out_g

    return params, jax.jit(forward)


# ----------------------------------------------------------------------------- main

if __name__ == "__main__":
    B, C_in, C_out, H, W = 2, 64, 64, 16, 16
    in_cg = C_in // 2
    in_cl = C_in - in_cg
    out_cg = C_out // 2
    out_cl = C_out - out_cg

    key = jax.random.PRNGKey(0)
    kp3, kp1, kl, kg, kt1, kt2 = jax.random.split(key, 6)

    # 3x3 FFC_BN_ACT (padding=1) with ReLU activation, and a 1x1 FFC_BN_ACT with the module's
    # default Identity activation — both with ratio_gin = ratio_gout = 0.5, stride 1, lfu=True.
    params3, fwd3 = build_ffc_bn_act(kp3, C_in, C_out, ksize=3, relu=True)
    params1, fwd1 = build_ffc_bn_act(kp1, C_in, C_out, ksize=1, relu=False)

    # FFC_BN_ACT input is the tuple (x_l, x_g) — NCHW like PyTorch.
    x_l = jax.random.normal(kl, (B, in_cl, H, W), jnp.float32)
    x_g = jax.random.normal(kg, (B, in_cg, H, W), jnp.float32)

    l3, g3 = fwd3(params3, x_l, x_g)
    l1, g1 = fwd1(params1, x_l, x_g)
    jax.block_until_ready((l3, g3, l1, g1))

    assert l3.shape == (B, out_cl, H, W) and g3.shape == (B, out_cg, H, W)
    assert l1.shape == (B, out_cl, H, W) and g1.shape == (B, out_cg, H, W)
    assert l3.dtype == jnp.float32 and g3.dtype == jnp.float32
    assert bool(jnp.all(jnp.isfinite(l3))) and bool(jnp.all(jnp.isfinite(g3)))
    assert bool(jnp.all(jnp.isfinite(l1))) and bool(jnp.all(jnp.isfinite(g1)))

    # Internal consistency check: forced tiled two-pass path (ragged M, TM=128, padded rows)
    # must agree with the single-block fused path.
    xt = jax.random.normal(kt1, (520, in_cl + in_cg), jnp.float32)
    st = jax.random.normal(kt2, (520, out_cg // 2), jnp.float32)

    @jax.jit
    def _paths(xt, st):
        y_f = fused_matmul_bn_act(xt, params1['main_w'], params1['main_gamma'],
                                  params1['main_beta'], n_out=out_cl + out_cg, relu=True,
                                  add_x=st, add_w=params1['st2_w'])
        y_t = fused_matmul_bn_act(xt, params1['main_w'], params1['main_gamma'],
                                  params1['main_beta'], n_out=out_cl + out_cg, relu=True,
                                  add_x=st, add_w=params1['st2_w'],
                                  force_tiled=True, tm_override=128)
        return y_f, y_t

    y_f, y_t = _paths(xt, st)
    jax.block_until_ready((y_f, y_t))
    assert y_f.shape == (520, out_cl + out_cg) and y_t.shape == (520, out_cl + out_cg)
    assert bool(jnp.all(jnp.isfinite(y_f))) and bool(jnp.all(jnp.isfinite(y_t)))
    assert bool(jnp.max(jnp.abs(y_f - y_t)) < 2e-2)

    print("KERNEL_OK")
</pallas_src>

<mosaic_0001>
module attributes {stable_mosaic.version = 11 : i64} {
  func.func @_fused_mm_bn_act_kernel(%arg0: i32, %arg1: memref<512x32xbf16, #tpu.memory_space<vmem>>, %arg2: memref<32x128xbf16, #tpu.memory_space<vmem>>, %arg3: memref<1x128xf32, #tpu.memory_space<vmem>>, %arg4: memref<1x128xf32, #tpu.memory_space<vmem>>, %arg5: memref<512x128xf32, #tpu.memory_space<vmem>>) attributes {dimension_semantics = [#tpu.dimension_semantics<arbitrary>], iteration_bounds = array<i64: 1>, scalar_prefetch = 0 : i64, scratch_operands = 0 : i64, tpu.core_type = #tpu.core_type<tc>, window_params = [{pipeline_mode = #tpu.pipeline_mode<synchronous>, transform_indices = @transform_0, window_bounds = array<i64: 512, 32>}, {pipeline_mode = #tpu.pipeline_mode<synchronous>, transform_indices = @transform_1, window_bounds = array<i64: 32, 128>}, {pipeline_mode = #tpu.pipeline_mode<synchronous>, transform_indices = @transform_2, window_bounds = array<i64: 1, 128>}, {pipeline_mode = #tpu.pipeline_mode<synchronous>, transform_indices = @transform_3, window_bounds = array<i64: 1, 128>}, {pipeline_mode = #tpu.pipeline_mode<synchronous>, transform_indices = @transform_4, window_bounds = array<i64: 512, 128>}]} {
    %c0 = arith.constant 0 : index
    %c0_0 = arith.constant 0 : index
    %0 = vector.load %arg1[%c0, %c0_0] : memref<512x32xbf16, #tpu.memory_space<vmem>>, vector<512x32xbf16>
    %c0_1 = arith.constant 0 : index
    %c0_2 = arith.constant 0 : index
    %1 = vector.load %arg2[%c0_1, %c0_2] : memref<32x128xbf16, #tpu.memory_space<vmem>>, vector<32x128xbf16>
    %cst = arith.constant dense<0.000000e+00> : vector<512x128xf32>
    %2 = tpu.matmul %0, %1, %cst {dimension_numbers = #tpu.dot_dimension_numbers<[1], [0], [0], [1], [0, 0, 1, 1], [], []>} : vector<512x32xbf16>, vector<32x128xbf16>, vector<512x128xf32> -> vector<512x128xf32>
    %cst_3 = arith.constant dense<0.000000e+00> : vector<128xf32>
    %3 = vector.multi_reduction <add>, %2, %cst_3 [0] : vector<512x128xf32> to vector<128xf32>
    %4 = vector.shape_cast %3 : vector<128xf32> to vector<1x128xf32>
    %cst_4 = arith.constant 0.001953125 : f32
    %5 = vector.broadcast %cst_4 : f32 to vector<1x128xf32>
    %6 = arith.mulf %4, %5 : vector<1x128xf32>
    %7 = arith.mulf %2, %2 : vector<512x128xf32>
    %cst_5 = arith.constant dense<0.000000e+00> : vector<128xf32>
    %8 = vector.multi_reduction <add>, %7, %cst_5 [0] : vector<512x128xf32> to vector<128xf32>
    %9 = vector.shape_cast %8 : vector<128xf32> to vector<1x128xf32>
    %cst_6 = arith.constant 0.001953125 : f32
    %10 = vector.broadcast %cst_6 : f32 to vector<1x128xf32>
    %11 = arith.mulf %9, %10 : vector<1x128xf32>
    %12 = arith.mulf %6, %6 : vector<1x128xf32>
    %13 = arith.subf %11, %12 : vector<1x128xf32>
    %cst_7 = arith.constant 0.000000e+00 : f32
    %14 = vector.broadcast %cst_7 : f32 to vector<1x128xf32>
    %15 = arith.maximumf %13, %14 : vector<1x128xf32>
    %cst_8 = arith.constant 9.99999974E-6 : f32
    %16 = vector.broadcast %cst_8 : f32 to vector<1x128xf32>
    %17 = arith.addf %15, %16 : vector<1x128xf32>
    %18 = math.rsqrt %17 : vector<1x128xf32>
    %c0_9 = arith.constant 0 : index
    %c0_10 = arith.constant 0 : index
    %19 = vector.load %arg3[%c0_9, %c0_10] : memref<1x128xf32, #tpu.memory_space<vmem>>, vector<1x128xf32>
    %20 = arith.mulf %18, %19 : vector<1x128xf32>
    %c0_11 = arith.constant 0 : index
    %c0_12 = arith.constant 0 : index
    %21 = vector.load %arg4[%c0_11, %c0_12] : memref<1x128xf32, #tpu.memory_space<vmem>>, vector<1x128xf32>
    %22 = arith.mulf %6, %20 : vector<1x128xf32>
    %23 = arith.subf %21, %22 : vector<1x128xf32>
    %24 = vector.broadcast %20 : vector<1x128xf32> to vector<512x128xf32>
    %25 = arith.mulf %2, %24 : vector<512x128xf32>
    %26 = vector.broadcast %23 : vector<1x128xf32> to vector<512x128xf32>
    %27 = arith.addf %25, %26 : vector<512x128xf32>
    %cst_13 = arith.constant 0.000000e+00 : f32
    %28 = vector.broadcast %cst_13 : f32 to vector<512x128xf32>
    %29 = arith.maximumf %27, %28 : vector<512x128xf32>
    %c0_14 = arith.constant 0 : index
    %c0_15 = arith.constant 0 : index
    %30 = vector.load %arg5[%c0_14, %c0_15] : memref<512x128xf32, #tpu.memory_space<vmem>>, vector<512x128xf32>
    tpu.vector_store %arg5[%c0_14, %c0_15], %29 {strides = array<i32>} : memref<512x128xf32, #tpu.memory_space<vmem>>, vector<512x128xf32>,
    return
  }
  func.func @transform_0(%arg0: i32) -> (i32, i32) {
    %c0_i32 = arith.constant 0 : i32
    %c0_i32_0 = arith.constant 0 : i32
    %c0_i32_1 = arith.constant 0 : i32
    return %c0_i32, %c0_i32_0 : i32, i32
  }
  func.func @transform_1(%arg0: i32) -> (i32, i32) {
    %c0_i32 = arith.constant 0 : i32
    %c0_i32_0 = arith.constant 0 : i32
    %c0_i32_1 = arith.constant 0 : i32
    return %c0_i32, %c0_i32_0 : i32, i32
  }
  func.func @transform_2(%arg0: i32) -> (i32, i32) {
    %c0_i32 = arith.constant 0 : i32
    %c0_i32_0 = arith.constant 0 : i32
    %c0_i32_1 = arith.constant 0 : i32
    return %c0_i32, %c0_i32_0 : i32, i32
  }
  func.func @transform_3(%arg0: i32) -> (i32, i32) {
    %c0_i32 = arith.constant 0 : i32
    %c0_i32_0 = arith.constant 0 : i32
    %c0_i32_1 = arith.constant 0 : i32
    return %c0_i32, %c0_i32_0 : i32, i32
  }
  func.func @transform_4(%arg0: i32) -> (i32, i32) {
    %c0_i32 = arith.constant 0 : i32
    %c0_i32_0 = arith.constant 0 : i32
    %c0_i32_1 = arith.constant 0 : i32
    return %c0_i32, %c0_i32_0 : i32, i32
  }
}

module attributes {stable_mosaic.version = 11 : i64} {
  func.func @_fused_mm_bn_act_kernel(%arg0: i32, %arg1: memref<288x32xbf16, #tpu.memory_space<vmem>>, %arg2: memref<32x128xbf16, #tpu.memory_space<vmem>>, %arg3: memref<1x128xf32, #tpu.memory_space<vmem>>, %arg4: memref<1x128xf32, #tpu.memory_space<vmem>>, %arg5: memref<288x128xf32, #tpu.memory_space<vmem>>) attributes {dimension_semantics = [#tpu.dimension_semantics<arbitrary>], iteration_bounds = array<i64: 1>, scalar_prefetch = 0 : i64, scratch_operands = 0 : i64, tpu.core_type = #tpu.core_type<tc>, window_params = [{pipeline_mode = #tpu.pipeline_mode<synchronous>, transform_indices = @transform_0, window_bounds = array<i64: 288, 32>}, {pipeline_mode = #tpu.pipeline_mode<synchronous>, transform_indices = @transform_1, window_bounds = array<i64: 32, 128>}, {pipeline_mode = #tpu.pipeline_mode<synchronous>, transform_indices = @transform_2, window_bounds = array<i64: 1, 128>}, {pipeline_mode = #tpu.pipeline_mode<synchronous>, transform_indices = @transform_3, window_bounds = array<i64: 1, 128>}, {pipeline_mode = #tpu.pipeline_mode<synchronous>, transform_indices = @transform_4, window_bounds = array<i64: 288, 128>}]} {
    %c0 = arith.constant 0 : index
    %c0_0 = arith.constant 0 : index
    %0 = vector.load %arg1[%c0, %c0_0] : memref<288x32xbf16, #tpu.memory_space<vmem>>, vector<288x32xbf16>
    %c0_1 = arith.constant 0 : index
    %c0_2 = arith.constant 0 : index
    %1 = vector.load %arg2[%c0_1, %c0_2] : memref<32x128xbf16, #tpu.memory_space<vmem>>, vector<32x128xbf16>
    %cst = arith.constant dense<0.000000e+00> : vector<288x128xf32>
    %2 = tpu.matmul %0, %1, %cst {dimension_numbers = #tpu.dot_dimension_numbers<[1], [0], [0], [1], [0, 0, 1, 1], [], []>} : vector<288x32xbf16>, vector<32x128xbf16>, vector<288x128xf32> -> vector<288x128xf32>
    %cst_3 = arith.constant dense<0.000000e+00> : vector<128xf32>
    %3 = vector.multi_reduction <add>, %2, %cst_3 [0] : vector<288x128xf32> to vector<128xf32>
    %4 = vector.shape_cast %3 : vector<128xf32> to vector<1x128xf32>
    %cst_4 = arith.constant 0.00347222225 : f32
    %5 = vector.broadcast %cst_4 : f32 to vector<1x128xf32>
    %6 = arith.mulf %4, %5 : vector<1x128xf32>
    %7 = arith.mulf %2, %2 : vector<288x128xf32>
    %cst_5 = arith.constant dense<0.000000e+00> : vector<128xf32>
    %8 = vector.multi_reduction <add>, %7, %cst_5 [0] : vector<288x128xf32> to vector<128xf32>
    %9 = vector.shape_cast %8 : vector<128xf32> to vector<1x128xf32>
    %cst_6 = arith.constant 0.00347222225 : f32
    %10 = vector.broadcast %cst_6 : f32 to vector<1x128xf32>
    %11 = arith.mulf %9, %10 : vector<1x128xf32>
    %12 = arith.mulf %6, %6 : vector<1x128xf32>
    %13 = arith.subf %11, %12 : vector<1x128xf32>
    %cst_7 = arith.constant 0.000000e+00 : f32
    %14 = vector.broadcast %cst_7 : f32 to vector<1x128xf32>
    %15 = arith.maximumf %13, %14 : vector<1x128xf32>
    %cst_8 = arith.constant 9.99999974E-6 : f32
    %16 = vector.broadcast %cst_8 : f32 to vector<1x128xf32>
    %17 = arith.addf %15, %16 : vector<1x128xf32>
    %18 = math.rsqrt %17 : vector<1x128xf32>
    %c0_9 = arith.constant 0 : index
    %c0_10 = arith.constant 0 : index
    %19 = vector.load %arg3[%c0_9, %c0_10] : memref<1x128xf32, #tpu.memory_space<vmem>>, vector<1x128xf32>
    %20 = arith.mulf %18, %19 : vector<1x128xf32>
    %c0_11 = arith.constant 0 : index
    %c0_12 = arith.constant 0 : index
    %21 = vector.load %arg4[%c0_11, %c0_12] : memref<1x128xf32, #tpu.memory_space<vmem>>, vector<1x128xf32>
    %22 = arith.mulf %6, %20 : vector<1x128xf32>
    %23 = arith.subf %21, %22 : vector<1x128xf32>
    %24 = vector.broadcast %20 : vector<1x128xf32> to vector<288x128xf32>
    %25 = arith.mulf %2, %24 : vector<288x128xf32>
    %26 = vector.broadcast %23 : vector<1x128xf32> to vector<288x128xf32>
    %27 = arith.addf %25, %26 : vector<288x128xf32>
    %cst_13 = arith.constant 0.000000e+00 : f32
    %28 = vector.broadcast %cst_13 : f32 to vector<288x128xf32>
    %29 = arith.maximumf %27, %28 : vector<288x128xf32>
    %c0_14 = arith.constant 0 : index
    %c0_15 = arith.constant 0 : index
    %30 = vector.load %arg5[%c0_14, %c0_15] : memref<288x128xf32, #tpu.memory_space<vmem>>, vector<288x128xf32>
    tpu.vector_store %arg5[%c0_14, %c0_15], %29 {strides = array<i32>} : memref<288x128xf32, #tpu.memory_space<vmem>>, vector<288x128xf32>,
    return
  }
  func.func @transform_0(%arg0: i32) -> (i32, i32) {
    %c0_i32 = arith.constant 0 : i32
    %c0_i32_0 = arith.constant 0 : i32
    %c0_i32_1 = arith.constant 0 : i32
    return %c0_i32, %c0_i32_0 : i32, i32
  }
  func.func @transform_1(%arg0: i32) -> (i32, i32) {
    %c0_i32 = arith.constant 0 : i32
    %c0_i32_0 = arith.constant 0 : i32
    %c0_i32_1 = arith.constant 0 : i32
    return %c0_i32, %c0_i32_0 : i32, i32
  }
  func.func @transform_2(%arg0: i32) -> (i32, i32) {
    %c0_i32 = arith.constant 0 : i32
    %c0_i32_0 = arith.constant 0 : i32
    %c0_i32_1 = arith.constant 0 : i32
    return %c0_i32, %c0_i32_0 : i32, i32
  }
  func.func @transform_3(%arg0: i32) -> (i32, i32) {
    %c0_i32 = arith.constant 0 : i32
    %c0_i32_0 = arith.constant 0 : i32
    %c0_i32_1 = arith.constant 0 : i32
    return %c0_i32, %c0_i32_0 : i32, i32
  }
  func.func @transform_4(%arg0: i32) -> (i32, i32) {
    %c0_i32 = arith.constant 0 : i32
    %c0_i32_0 = arith.constant 0 : i32
    %c0_i32_1 = arith.constant 0 : i32
    return %c0_i32, %c0_i32_0 : i32, i32
  }
}

module attributes {stable_mosaic.version = 11 : i64} {
  func.func @_fused_mm_bn_act_kernel(%arg0: i32, %arg1: memref<80x32xbf16, #tpu.memory_space<vmem>>, %arg2: memref<32x128xbf16, #tpu.memory_space<vmem>>, %arg3: memref<1x128xf32, #tpu.memory_space<vmem>>, %arg4: memref<1x128xf32, #tpu.memory_space<vmem>>, %arg5: memref<80x128xf32, #tpu.memory_space<vmem>>) attributes {dimension_semantics = [#tpu.dimension_semantics<arbitrary>], iteration_bounds = array<i64: 1>, scalar_prefetch = 0 : i64, scratch_operands = 0 : i64, tpu.core_type = #tpu.core_type<tc>, window_params = [{pipeline_mode = #tpu.pipeline_mode<synchronous>, transform_indices = @transform_0, window_bounds = array<i64: 80, 32>}, {pipeline_mode = #tpu.pipeline_mode<synchronous>, transform_indices = @transform_1, window_bounds = array<i64: 32, 128>}, {pipeline_mode = #tpu.pipeline_mode<synchronous>, transform_indices = @transform_2, window_bounds = array<i64: 1, 128>}, {pipeline_mode = #tpu.pipeline_mode<synchronous>, transform_indices = @transform_3, window_bounds = array<i64: 1, 128>}, {pipeline_mode = #tpu.pipeline_mode<synchronous>, transform_indices = @transform_4, window_bounds = array<i64: 80, 128>}]} {
    %c0 = arith.constant 0 : index
    %c0_0 = arith.constant 0 : index
    %0 = vector.load %arg1[%c0, %c0_0] : memref<80x32xbf16, #tpu.memory_space<vmem>>, vector<80x32xbf16>
    %c0_1 = arith.constant 0 : index
    %c0_2 = arith.constant 0 : index
    %1 = vector.load %arg2[%c0_1, %c0_2] : memref<32x128xbf16, #tpu.memory_space<vmem>>, vector<32x128xbf16>
    %cst = arith.constant dense<0.000000e+00> : vector<80x128xf32>
    %2 = tpu.matmul %0, %1, %cst {dimension_numbers = #tpu.dot_dimension_numbers<[1], [0], [0], [1], [0, 0, 1, 1], [], []>} : vector<80x32xbf16>, vector<32x128xbf16>, vector<80x128xf32> -> vector<80x128xf32>
    %cst_3 = arith.constant dense<0.000000e+00> : vector<128xf32>
    %3 = vector.multi_reduction <add>, %2, %cst_3 [0] : vector<80x128xf32> to vector<128xf32>
    %4 = vector.shape_cast %3 : vector<128xf32> to vector<1x128xf32>
    %cst_4 = arith.constant 1.250000e-02 : f32
    %5 = vector.broadcast %cst_4 : f32 to vector<1x128xf32>
    %6 = arith.mulf %4, %5 : vector<1x128xf32>
    %7 = arith.mulf %2, %2 : vector<80x128xf32>
    %cst_5 = arith.constant dense<0.000000e+00> : vector<128xf32>
    %8 = vector.multi_reduction <add>, %7, %cst_5 [0] : vector<80x128xf32> to vector<128xf32>
    %9 = vector.shape_cast %8 : vector<128xf32> to vector<1x128xf32>
    %cst_6 = arith.constant 1.250000e-02 : f32
    %10 = vector.broadcast %cst_6 : f32 to vector<1x128xf32>
    %11 = arith.mulf %9, %10 : vector<1x128xf32>
    %12 = arith.mulf %6, %6 : vector<1x128xf32>
    %13 = arith.subf %11, %12 : vector<1x128xf32>
    %cst_7 = arith.constant 0.000000e+00 : f32
    %14 = vector.broadcast %cst_7 : f32 to vector<1x128xf32>
    %15 = arith.maximumf %13, %14 : vector<1x128xf32>
    %cst_8 = arith.constant 9.99999974E-6 : f32
    %16 = vector.broadcast %cst_8 : f32 to vector<1x128xf32>
    %17 = arith.addf %15, %16 : vector<1x128xf32>
    %18 = math.rsqrt %17 : vector<1x128xf32>
    %c0_9 = arith.constant 0 : index
    %c0_10 = arith.constant 0 : index
    %19 = vector.load %arg3[%c0_9, %c0_10] : memref<1x128xf32, #tpu.memory_space<vmem>>, vector<1x128xf32>
    %20 = arith.mulf %18, %19 : vector<1x128xf32>
    %c0_11 = arith.constant 0 : index
    %c0_12 = arith.constant 0 : index
    %21 = vector.load %arg4[%c0_11, %c0_12] : memref<1x128xf32, #tpu.memory_space<vmem>>, vector<1x128xf32>
    %22 = arith.mulf %6, %20 : vector<1x128xf32>
    %23 = arith.subf %21, %22 : vector<1x128xf32>
    %24 = vector.broadcast %20 : vector<1x128xf32> to vector<80x128xf32>
    %25 = arith.mulf %2, %24 : vector<80x128xf32>
    %26 = vector.broadcast %23 : vector<1x128xf32> to vector<80x128xf32>
    %27 = arith.addf %25, %26 : vector<80x128xf32>
    %cst_13 = arith.constant 0.000000e+00 : f32
    %28 = vector.broadcast %cst_13 : f32 to vector<80x128xf32>
    %29 = arith.maximumf %27, %28 : vector<80x128xf32>
    %c0_14 = arith.constant 0 : index
    %c0_15 = arith.constant 0 : index
    %30 = vector.load %arg5[%c0_14, %c0_15] : memref<80x128xf32, #tpu.memory_space<vmem>>, vector<80x128xf32>
    tpu.vector_store %arg5[%c0_14, %c0_15], %29 {strides = array<i32>} : memref<80x128xf32, #tpu.memory_space<vmem>>, vector<80x128xf32>,
    return
  }
  func.func @transform_0(%arg0: i32) -> (i32, i32) {
    %c0_i32 = arith.constant 0 : i32
    %c0_i32_0 = arith.constant 0 : i32
    %c0_i32_1 = arith.constant 0 : i32
    return %c0_i32, %c0_i32_0 : i32, i32
  }
  func.func @transform_1(%arg0: i32) -> (i32, i32) {
    %c0_i32 = arith.constant 0 : i32
    %c0_i32_0 = arith.constant 0 : i32
    %c0_i32_1 = arith.constant 0 : i32
    return %c0_i32, %c0_i32_0 : i32, i32
  }
  func.func @transform_2(%arg0: i32) -> (i32, i32) {
    %c0_i32 = arith.constant 0 : i32
    %c0_i32_0 = arith.constant 0 : i32
    %c0_i32_1 = arith.constant 0 : i32
    return %c0_i32, %c0_i32_0 : i32, i32
  }
  func.func @transform_3(%arg0: i32) -> (i32, i32) {
    %c0_i32 = arith.constant 0 : i32
    %c0_i32_0 = arith.constant 0 : i32
    %c0_i32_1 = arith.constant 0 : i32
    return %c0_i32, %c0_i32_0 : i32, i32
  }
  func.func @transform_4(%arg0: i32) -> (i32, i32) {
    %c0_i32 = arith.constant 0 : i32
    %c0_i32_0 = arith.constant 0 : i32
    %c0_i32_1 = arith.constant 0 : i32
    return %c0_i32, %c0_i32_0 : i32, i32
  }
}

module attributes {stable_mosaic.version = 11 : i64} {
  func.func @_fused_conv3x3_bn_act_kernel(%arg0: i32, %arg1: memref<576x192xbf16, #tpu.memory_space<vmem>>, %arg2: memref<576x128xbf16, #tpu.memory_space<vmem>>, %arg3: memref<512x16xbf16, #tpu.memory_space<vmem>>, %arg4: memref<16x128xbf16, #tpu.memory_space<vmem>>, %arg5: memref<1x128xf32, #tpu.memory_space<vmem>>, %arg6: memref<1x128xf32, #tpu.memory_space<vmem>>, %arg7: memref<512x128xf32, #tpu.memory_space<vmem>>) attributes {dimension_semantics = [#tpu.dimension_semantics<arbitrary>], iteration_bounds = array<i64: 1>, scalar_prefetch = 0 : i64, scratch_operands = 0 : i64, tpu.core_type = #tpu.core_type<tc>, window_params = [{pipeline_mode = #tpu.pipeline_mode<synchronous>, transform_indices = @transform_0, window_bounds = array<i64: 576, 192>}, {pipeline_mode = #tpu.pipeline_mode<synchronous>, transform_indices = @transform_1, window_bounds = array<i64: 576, 128>}, {pipeline_mode = #tpu.pipeline_mode<synchronous>, transform_indices = @transform_2, window_bounds = array<i64: 512, 16>}, {pipeline_mode = #tpu.pipeline_mode<synchronous>, transform_indices = @transform_3, window_bounds = array<i64: 16, 128>}, {pipeline_mode = #tpu.pipeline_mode<synchronous>, transform_indices = @transform_4, window_bounds = array<i64: 1, 128>}, {pipeline_mode = #tpu.pipeline_mode<synchronous>, transform_indices = @transform_5, window_bounds = array<i64: 1, 128>}, {pipeline_mode = #tpu.pipeline_mode<synchronous>, transform_indices = @transform_6, window_bounds = array<i64: 512, 128>}]} {
    %cst = arith.constant 0.000000e+00 : f32
    %0 = vector.broadcast %cst : f32 to vector<1x128xf32>
    %cst_0 = arith.constant 0.000000e+00 : f32
    %1 = vector.broadcast %cst_0 : f32 to vector<1x128xf32>
    %c0 = arith.constant 0 : index
    %c0_1 = arith.constant 0 : index
    %2 = vector.load %arg3[%c0, %c0_1] : memref<512x16xbf16, #tpu.memory_space<vmem>>, vector<256x16xbf16>
    %c0_2 = arith.constant 0 : index
    %c0_3 = arith.constant 0 : index
    %3 = vector.load %arg4[%c0_2, %c0_3] : memref<16x128xbf16, #tpu.memory_space<vmem>>, vector<16x128xbf16>
    %cst_4 = arith.constant dense<0.000000e+00> : vector<256x128xf32>
    %4 = tpu.matmul %2, %3, %cst_4 {dimension_numbers = #tpu.dot_dimension_numbers<[1], [0], [0], [1], [0, 0, 1, 1], [], []>} : vector<256x16xbf16>, vector<16x128xbf16>, vector<256x128xf32> -> vector<256x128xf32>
    %c0_5 = arith.constant 0 : index
    %c0_6 = arith.constant 0 : index
    %5 = vector.load %arg1[%c0_5, %c0_6] : memref<576x192xbf16, #tpu.memory_space<vmem>>, vector<256x192xbf16>
    %c0_7 = arith.constant 0 : index
    %c0_8 = arith.constant 0 : index
    %6 = vector.load %arg2[%c0_7, %c0_8] : memref<576x128xbf16, #tpu.memory_space<vmem>>, vector<192x128xbf16>
    %cst_9 = arith.constant dense<0.000000e+00> : vector<256x128xf32>
    %7 = tpu.matmul %5, %6, %cst_9 {dimension_numbers = #tpu.dot_dimension_numbers<[1], [0], [0], [1], [0, 0, 1, 1], [], []>} : vector<256x192xbf16>, vector<192x128xbf16>, vector<256x128xf32> -> vector<256x128xf32>
    %8 = arith.addf %4, %7 : vector<256x128xf32>
    %c16 = arith.constant 16 : index
    %c0_10 = arith.constant 0 : index
    %9 = vector.load %arg1[%c16, %c0_10] : memref<576x192xbf16, #tpu.memory_space<vmem>>, vector<256x192xbf16>
    %c192 = arith.constant 192 : index
    %c0_11 = arith.constant 0 : index
    %10 = vector.load %arg2[%c192, %c0_11] : memref<576x128xbf16, #tpu.memory_space<vmem>>, vector<192x128xbf16>
    %cst_12 = arith.constant dense<0.000000e+00> : vector<256x128xf32>
    %11 = tpu.matmul %9, %10, %cst_12 {dimension_numbers = #tpu.dot_dimension_numbers<[1], [0], [0], [1], [0, 0, 1, 1], [], []>} : vector<256x192xbf16>, vector<192x128xbf16>, vector<256x128xf32> -> vector<256x128xf32>
    %12 = arith.addf %8, %11 : vector<256x128xf32>
    %c32 = arith.constant 32 : index
    %c0_13 = arith.constant 0 : index
    %13 = vector.load %arg1[%c32, %c0_13] : memref<576x192xbf16, #tpu.memory_space<vmem>>, vector<256x192xbf16>
    %c384 = arith.constant 384 : index
    %c0_14 = arith.constant 0 : index
    %14 = vector.load %arg2[%c384, %c0_14] : memref<576x128xbf16, #tpu.memory_space<vmem>>, vector<192x128xbf16>
    %cst_15 = arith.constant dense<0.000000e+00> : vector<256x128xf32>
    %15 = tpu.matmul %13, %14, %cst_15 {dimension_numbers = #tpu.dot_dimension_numbers<[1], [0], [0], [1], [0, 0, 1, 1], [], []>} : vector<256x192xbf16>, vector<192x128xbf16>, vector<256x128xf32> -> vector<256x128xf32>
    %16 = arith.addf %12, %15 : vector<256x128xf32>
    %c0_16 = arith.constant 0 : index
    %c0_17 = arith.constant 0 : index
    %17 = vector.load %arg7[%c0_16, %c0_17] : memref<512x128xf32, #tpu.memory_space<vmem>>, vector<256x128xf32>
    tpu.vector_store %arg7[%c0_16, %c0_17], %16 {strides = array<i32>} : memref<512x128xf32, #tpu.memory_space<vmem>>, vector<256x128xf32>,
    %cst_18 = arith.constant dense<0.000000e+00> : vector<128xf32>
    %18 = vector.multi_reduction <add>, %16, %cst_18 [0] : vector<256x128xf32> to vector<128xf32>
    %19 = vector.shape_cast %18 : vector<128xf32> to vector<1x128xf32>
    %20 = arith.addf %0, %19 : vector<1x128xf32>
    %21 = arith.mulf %16, %16 : vector<256x128xf32>
    %cst_19 = arith.constant dense<0.000000e+00> : vector<128xf32>
    %22 = vector.multi_reduction <add>, %21, %cst_19 [0] : vector<256x128xf32> to vector<128xf32>
    %23 = vector.shape_cast %22 : vector<128xf32> to vector<1x128xf32>
    %24 = arith.addf %1, %23 : vector<1x128xf32>
    %c256 = arith.constant 256 : index
    %c0_20 = arith.constant 0 : index
    %25 = vector.load %arg3[%c256, %c0_20] : memref<512x16xbf16, #tpu.memory_space<vmem>>, vector<256x16xbf16>
    %c0_21 = arith.constant 0 : index
    %c0_22 = arith.constant 0 : index
    %26 = vector.load %arg4[%c0_21, %c0_22] : memref<16x128xbf16, #tpu.memory_space<vmem>>, vector<16x128xbf16>
    %cst_23 = arith.constant dense<0.000000e+00> : vector<256x128xf32>
    %27 = tpu.matmul %25, %26, %cst_23 {dimension_numbers = #tpu.dot_dimension_numbers<[1], [0], [0], [1], [0, 0, 1, 1], [], []>} : vector<256x16xbf16>, vector<16x128xbf16>, vector<256x128xf32> -> vector<256x128xf32>
    %c288 = arith.constant 288 : index
    %c0_24 = arith.constant 0 : index
    %28 = vector.load %arg1[%c288, %c0_24] : memref<576x192xbf16, #tpu.memory_space<vmem>>, vector<256x192xbf16>
    %c0_25 = arith.constant 0 : index
    %c0_26 = arith.constant 0 : index
    %29 = vector.load %arg2[%c0_25, %c0_26] : memref<576x128xbf16, #tpu.memory_space<vmem>>, vector<192x128xbf16>
    %cst_27 = arith.constant dense<0.000000e+00> : vector<256x128xf32>
    %30 = tpu.matmul %28, %29, %cst_27 {dimension_numbers = #tpu.dot_dimension_numbers<[1], [0], [0], [1], [0, 0, 1, 1], [], []>} : vector<256x192xbf16>, vector<192x128xbf16>, vector<256x128xf32> -> vector<256x128xf32>
    %31 = arith.addf %27, %30 : vector<256x128xf32>
    %c304 = arith.constant 304 : index
    %c0_28 = arith.constant 0 : index
    %32 = vector.load %arg1[%c304, %c0_28] : memref<576x192xbf16, #tpu.memory_space<vmem>>, vector<256x192xbf16>
    %c192_29 = arith.constant 192 : index
    %c0_30 = arith.constant 0 : index
    %33 = vector.load %arg2[%c192_29, %c0_30] : memref<576x128xbf16, #tpu.memory_space<vmem>>, vector<192x128xbf16>
    %cst_31 = arith.constant dense<0.000000e+00> : vector<256x128xf32>
    %34 = tpu.matmul %32, %33, %cst_31 {dimension_numbers = #tpu.dot_dimension_numbers<[1], [0], [0], [1], [0, 0, 1, 1], [], []>} : vector<256x192xbf16>, vector<192x128xbf16>, vector<256x128xf32> -> vector<256x128xf32>
    %35 = arith.addf %31, %34 : vector<256x128xf32>
    %c320 = arith.constant 320 : index
    %c0_32 = arith.constant 0 : index
    %36 = vector.load %arg1[%c320, %c0_32] : memref<576x192xbf16, #tpu.memory_space<vmem>>, vector<256x192xbf16>
    %c384_33 = arith.constant 384 : index
    %c0_34 = arith.constant 0 : index
    %37 = vector.load %arg2[%c384_33, %c0_34] : memref<576x128xbf16, #tpu.memory_space<vmem>>, vector<192x128xbf16>
    %cst_35 = arith.constant dense<0.000000e+00> : vector<256x128xf32>
    %38 = tpu.matmul %36, %37, %cst_35 {dimension_numbers = #tpu.dot_dimension_numbers<[1], [0], [0], [1], [0, 0, 1, 1], [], []>} : vector<256x192xbf16>, vector<192x128xbf16>, vector<256x128xf32> -> vector<256x128xf32>
    %39 = arith.addf %35, %38 : vector<256x128xf32>
    %c256_36 = arith.constant 256 : index
    %c0_37 = arith.constant 0 : index
    %40 = vector.load %arg7[%c256_36, %c0_37] : memref<512x128xf32, #tpu.memory_space<vmem>>, vector<256x128xf32>
    tpu.vector_store %arg7[%c256_36, %c0_37], %39 {strides = array<i32>} : memref<512x128xf32, #tpu.memory_space<vmem>>, vector<256x128xf32>,
    %cst_38 = arith.constant dense<0.000000e+00> : vector<128xf32>
    %41 = vector.multi_reduction <add>, %39, %cst_38 [0] : vector<256x128xf32> to vector<128xf32>
    %42 = vector.shape_cast %41 : vector<128xf32> to vector<1x128xf32>
    %43 = arith.addf %20, %42 : vector<1x128xf32>
    %44 = arith.mulf %39, %39 : vector<256x128xf32>
    %cst_39 = arith.constant dense<0.000000e+00> : vector<128xf32>
    %45 = vector.multi_reduction <add>, %44, %cst_39 [0] : vector<256x128xf32> to vector<128xf32>
    %46 = vector.shape_cast %45 : vector<128xf32> to vector<1x128xf32>
    %47 = arith.addf %24, %46 : vector<1x128xf32>
    %cst_40 = arith.constant 0.001953125 : f32
    %48 = vector.broadcast %cst_40 : f32 to vector<1x128xf32>
    %49 = arith.mulf %43, %48 : vector<1x128xf32>
    %cst_41 = arith.constant 0.001953125 : f32
    %50 = vector.broadcast %cst_41 : f32 to vector<1x128xf32>
    %51 = arith.mulf %47, %50 : vector<1x128xf32>
    %52 = arith.mulf %49, %49 : vector<1x128xf32>
    %53 = arith.subf %51, %52 : vector<1x128xf32>
    %cst_42 = arith.constant 0.000000e+00 : f32
    %54 = vector.broadcast %cst_42 : f32 to vector<1x128xf32>
    %55 = arith.maximumf %53, %54 : vector<1x128xf32>
    %cst_43 = arith.constant 9.99999974E-6 : f32
    %56 = vector.broadcast %cst_43 : f32 to vector<1x128xf32>
    %57 = arith.addf %55, %56 : vector<1x128xf32>
    %58 = math.rsqrt %57 : vector<1x128xf32>
    %c0_44 = arith.constant 0 : index
    %c0_45 = arith.constant 0 : index
    %59 = vector.load %arg5[%c0_44, %c0_45] : memref<1x128xf32, #tpu.memory_space<vmem>>, vector<1x128xf32>
    %60 = arith.mulf %58, %59 : vector<1x128xf32>
    %c0_46 = arith.constant 0 : index
    %c0_47 = arith.constant 0 : index
    %61 = vector.load %arg6[%c0_46, %c0_47] : memref<1x128xf32, #tpu.memory_space<vmem>>, vector<1x128xf32>
    %62 = arith.mulf %49, %60 : vector<1x128xf32>
    %63 = arith.subf %61, %62 : vector<1x128xf32>
    %c0_48 = arith.constant 0 : index
    %c0_49 = arith.constant 0 : index
    %64 = vector.load %arg7[%c0_48, %c0_49] : memref<512x128xf32, #tpu.memory_space<vmem>>, vector<256x128xf32>
    %65 = vector.broadcast %60 : vector<1x128xf32> to vector<256x128xf32>
    %66 = arith.mulf %64, %65 : vector<256x128xf32>
    %67 = vector.broadcast %63 : vector<1x128xf32> to vector<256x128xf32>
    %68 = arith.addf %66, %67 : vector<256x128xf32>
    %cst_50 = arith.constant 0.000000e+00 : f32
    %69 = vector.broadcast %cst_50 : f32 to vector<256x128xf32>
    %70 = arith.maximumf %68, %69 : vector<256x128xf32>
    %c0_51 = arith.constant 0 : index
    %c0_52 = arith.constant 0 : index
    %71 = vector.load %arg7[%c0_51, %c0_52] : memref<512x128xf32, #tpu.memory_space<vmem>>, vector<256x128xf32>
    tpu.vector_store %arg7[%c0_51, %c0_52], %70 {strides = array<i32>} : memref<512x128xf32, #tpu.memory_space<vmem>>, vector<256x128xf32>,
    %c256_53 = arith.constant 256 : index
    %c0_54 = arith.constant 0 : index
    %72 = vector.load %arg7[%c256_53, %c0_54] : memref<512x128xf32, #tpu.memory_space<vmem>>, vector<256x128xf32>
    %73 = vector.broadcast %60 : vector<1x128xf32> to vector<256x128xf32>
    %74 = arith.mulf %72, %73 : vector<256x128xf32>
    %75 = vector.broadcast %63 : vector<1x128xf32> to vector<256x128xf32>
    %76 = arith.addf %74, %75 : vector<256x128xf32>
    %cst_55 = arith.constant 0.000000e+00 : f32
    %77 = vector.broadcast %cst_55 : f32 to vector<256x128xf32>
    %78 = arith.maximumf %76, %77 : vector<256x128xf32>
    %c256_56 = arith.constant 256 : index
    %c0_57 = arith.constant 0 : index
    %79 = vector.load %arg7[%c256_56, %c0_57] : memref<512x128xf32, #tpu.memory_space<vmem>>, vector<256x128xf32>
    tpu.vector_store %arg7[%c256_56, %c0_57], %78 {strides = array<i32>} : memref<512x128xf32, #tpu.memory_space<vmem>>, vector<256x128xf32>,
    return
  }
  func.func @transform_0(%arg0: i32) -> (i32, i32) {
    %c0_i32 = arith.constant 0 : i32
    %c0_i32_0 = arith.constant 0 : i32
    %c0_i32_1 = arith.constant 0 : i32
    return %c0_i32, %c0_i32_0 : i32, i32
  }
  func.func @transform_1(%arg0: i32) -> (i32, i32) {
    %c0_i32 = arith.constant 0 : i32
    %c0_i32_0 = arith.constant 0 : i32
    %c0_i32_1 = arith.constant 0 : i32
    return %c0_i32, %c0_i32_0 : i32, i32
  }
  func.func @transform_2(%arg0: i32) -> (i32, i32) {
    %c0_i32 = arith.constant 0 : i32
    %c0_i32_0 = arith.constant 0 : i32
    %c0_i32_1 = arith.constant 0 : i32
    return %c0_i32, %c0_i32_0 : i32, i32
  }
  func.func @transform_3(%arg0: i32) -> (i32, i32) {
    %c0_i32 = arith.constant 0 : i32
    %c0_i32_0 = arith.constant 0 : i32
    %c0_i32_1 = arith.constant 0 : i32
    return %c0_i32, %c0_i32_0 : i32, i32
  }
  func.func @transform_4(%arg0: i32) -> (i32, i32) {
    %c0_i32 = arith.constant 0 : i32
    %c0_i32_0 = arith.constant 0 : i32
    %c0_i32_1 = arith.constant 0 : i32
    return %c0_i32, %c0_i32_0 : i32, i32
  }
  func.func @transform_5(%arg0: i32) -> (i32, i32) {
    %c0_i32 = arith.constant 0 : i32
    %c0_i32_0 = arith.constant 0 : i32
    %c0_i32_1 = arith.constant 0 : i32
    return %c0_i32, %c0_i32_0 : i32, i32
  }
  func.func @transform_6(%arg0: i32) -> (i32, i32) {
    %c0_i32 = arith.constant 0 : i32
    %c0_i32_0 = arith.constant 0 : i32
    %c0_i32_1 = arith.constant 0 : i32
    return %c0_i32, %c0_i32_0 : i32, i32
  }
}

</mosaic_0001>

<bundles_post_ra>
// kernel: forward.4
= control target key start
LH: loop header
LB: loop body
LE: loop exit
PB: predicated region body
PF: predicated region fallthrough
CT: control target
= control target key end

     0   :  { %vm258_vm0 = vcmask 261120   ;;  %s2091_s1 = inlined_call_operand.vmem [shape: bf16[32,128], index: 1, kind: input, shape index: {}]   ;;  %s2092_s0 = inlined_call_operand.vmem [shape: bf16[512,32], index: 0, kind: input, shape index: {}]   ;;  %s2093_s2 = inlined_call_operand.vmem [shape: f32[1,128], index: 2, kind: input, shape index: {}]   ;;  %s2094_s3 = inlined_call_operand.vmem [shape: f32[1,128], index: 3, kind: input, shape index: {}]   ;;  %s2095_s4 = inlined_call_operand.vmem [shape: f32[512,128], index: 4, kind: output, shape index: {}]  }
   0x1   :  { %v1212_v0 = vld [vmem:[%s2091_s1 + $0x8] sm:$0xff]  ;;  %v1211_v1 = vld [vmem:[%s2091_s1] sm:$0xff]  ;;  %v1181_v7 = vld [vmem:[%s2092_s0 + $0x10] sm:$0xff] }
   0x2   :  { %361 = vmatpush.bf16.msra.mxu0 %v1212_v0  ;;  %1213 = vmatpush.bf16.msra.mxu1 %v1212_v0  ;;  %v1179_v2 = vld [vmem:[%s2092_s0] sm:$0xff]  ;;  %v1180_v4 = vld [vmem:[%s2092_s0 + $0x8] sm:$0xff]  ;;  %v1189_v8 = vld [vmem:[%s2092_s0 + $0x50] sm:$0xff] }
   0x3   :  { %1214 = vmatpush.bf16.msra.mxu2 %v1212_v0  ;;  %1215 = vmatpush.bf16.msra.mxu3 %v1212_v0  ;;  %v1187_v3 = vld [vmem:[%s2092_s0 + $0x40] sm:$0xff]  ;;  %v1188_v5 = vld [vmem:[%s2092_s0 + $0x48] sm:$0xff]  ;;  %v1182_v10 = vld [vmem:[%s2092_s0 + $0x18] sm:$0xff] }
   0x4   :  { %v1195_v6 = vld [vmem:[%s2092_s0 + $0x80] sm:$0xff]  ;;  %v1196_v9 = vld [vmem:[%s2092_s0 + $0x88] sm:$0xff]  ;;  %v1190_v11 = vld [vmem:[%s2092_s0 + $0x58] sm:$0xff] }
   0x5   :  { %v1197_v12 = vld [vmem:[%s2092_s0 + $0x90] sm:$0xff]  ;;  %v1203_v13 = vld [vmem:[%s2092_s0 + $0xc0] sm:$0xff]  ;;  %v1198_v16 = vld [vmem:[%s2092_s0 + $0x98] sm:$0xff] }
   0x6   :  { %362 = vmatpush.bf16.msra.mxu0 %v1211_v1  ;;  %1216 = vmatpush.bf16.msra.mxu1 %v1211_v1  ;;  %v1183_v14 = vld [vmem:[%s2092_s0 + $0x20] sm:$0xff]  ;;  %v1204_v17 = vld [vmem:[%s2092_s0 + $0xc8] sm:$0xff]  ;;  %v1205_v21 = vld [vmem:[%s2092_s0 + $0xd0] sm:$0xff] }
   0x7   :  { %1217 = vmatpush.bf16.msra.mxu2 %v1211_v1  ;;  %1218 = vmatpush.bf16.msra.mxu3 %v1211_v1  ;;  %v1191_v15 = vld [vmem:[%s2092_s0 + $0x60] sm:$0xff]  ;;  %v1184_v18 = vld [vmem:[%s2092_s0 + $0x28] sm:$0xff]  ;;  %v1185_v22 = vld [vmem:[%s2092_s0 + $0x30] sm:$0xff] }
   0x8   :  { %v1192_v19 = vld [vmem:[%s2092_s0 + $0x68] sm:$0xff]  ;;  %v1199_v20 = vld [vmem:[%s2092_s0 + $0xa0] sm:$0xff]  ;;  %v1193_v23 = vld [vmem:[%s2092_s0 + $0x70] sm:$0xff] }
   0x9   :  { %1147 = vmatmul.msk.bf16.vlgmr.msra.gmra.mxu0 %vm258_vm0, %v1179_v2  ;;  %1155 = vmatmul.msk.bf16.vlgmr.msra.gmra.mxu1 %vm258_vm0, %v1187_v3  ;;  %v1200_v24 = vld [vmem:[%s2092_s0 + $0xa8] sm:$0xff]  ;;  %v1206_v25 = vld [vmem:[%s2092_s0 + $0xd8] sm:$0xff]  ;;  %v1201_v28 = vld [vmem:[%s2092_s0 + $0xb0] sm:$0xff] }
   0xa   :  { %1163 = vmatmul.msk.bf16.vlgmr.msra.gmra.mxu2 %vm258_vm0, %v1195_v6  ;;  %1171 = vmatmul.msk.bf16.vlgmr.msra.gmra.mxu3 %vm258_vm0, %v1203_v13  ;;  %v1186_v26 = vld [vmem:[%s2092_s0 + $0x38] sm:$0xff]  ;;  %v1207_v29 = vld [vmem:[%s2092_s0 + $0xe0] sm:$0xff]  ;;  %v1208_v33 = vld [vmem:[%s2092_s0 + $0xe8] sm:$0xff] }
   0xb   :  { %v1194_v27 = vld [vmem:[%s2092_s0 + $0x78] sm:$0xff]  ;;  %v1209_v37 = vld [vmem:[%s2092_s0 + $0xf0] sm:$0xff] }
   0xc   :  { %v1202_v32 = vld [vmem:[%s2092_s0 + $0xb8] sm:$0xff] }
   0xd   :  { %v1210_v43 = vld [vmem:[%s2092_s0 + $0xf8] sm:$0xff] }
  0x19   :  { %1148 = vmatmul.msk.bf16.gmra.mxu0 %vm258_vm0, %v1180_v4  ;;  %1156 = vmatmul.msk.bf16.gmra.mxu1 %vm258_vm0, %v1188_v5 }
  0x1a   :  { %1164 = vmatmul.msk.bf16.gmra.mxu2 %vm258_vm0, %v1196_v9  ;;  %1172 = vmatmul.msk.bf16.gmra.mxu3 %vm258_vm0, %v1204_v17 }
  0x29   :  { %1149 = vmatmul.msk.bf16.gmra.mxu0 %vm258_vm0, %v1181_v7  ;;  %1157 = vmatmul.msk.bf16.gmra.mxu1 %vm258_vm0, %v1189_v8 }
  0x2a   :  { %1165 = vmatmul.msk.bf16.gmra.mxu2 %vm258_vm0, %v1197_v12  ;;  %1173 = vmatmul.msk.bf16.gmra.mxu3 %vm258_vm0, %v1205_v21 }
  0x39   :  { %1150 = vmatmul.msk.bf16.gmra.mxu0 %vm258_vm0, %v1182_v10  ;;  %1158 = vmatmul.msk.bf16.gmra.mxu1 %vm258_vm0, %v1190_v11 }
  0x3a   :  { %1166 = vmatmul.msk.bf16.gmra.mxu2 %vm258_vm0, %v1198_v16  ;;  %1174 = vmatmul.msk.bf16.gmra.mxu3 %vm258_vm0, %v1206_v25 }
  0x49   :  { %1151 = vmatmul.msk.bf16.gmra.mxu0 %vm258_vm0, %v1183_v14  ;;  %1159 = vmatmul.msk.bf16.gmra.mxu1 %vm258_vm0, %v1191_v15 }
  0x4a   :  { %1167 = vmatmul.msk.bf16.gmra.mxu2 %vm258_vm0, %v1199_v20  ;;  %1175 = vmatmul.msk.bf16.gmra.mxu3 %vm258_vm0, %v1207_v29 }
  0x59   :  { %1152 = vmatmul.msk.bf16.gmra.mxu0 %vm258_vm0, %v1184_v18  ;;  %1160 = vmatmul.msk.bf16.gmra.mxu1 %vm258_vm0, %v1192_v19 }
  0x5a   :  { %1168 = vmatmul.msk.bf16.gmra.mxu2 %vm258_vm0, %v1200_v24  ;;  %1176 = vmatmul.msk.bf16.gmra.mxu3 %vm258_vm0, %v1208_v33 }
  0x69   :  { %1153 = vmatmul.msk.bf16.gmra.mxu0 %vm258_vm0, %v1185_v22  ;;  %1161 = vmatmul.msk.bf16.gmra.mxu1 %vm258_vm0, %v1193_v23 }
  0x6a   :  { %1169 = vmatmul.msk.bf16.gmra.mxu2 %vm258_vm0, %v1201_v28  ;;  %1177 = vmatmul.msk.bf16.gmra.mxu3 %vm258_vm0, %v1209_v37 }
  0x79   :  { %1154 = vmatmul.msk.bf16.gmra.mxu0 %vm258_vm0, %v1186_v26  ;;  %1162 = vmatmul.msk.bf16.gmra.mxu1 %vm258_vm0, %v1194_v27 }
  0x7a   :  { %1170 = vmatmul.msk.bf16.gmra.mxu2 %vm258_vm0, %v1202_v32  ;;  %1178 = vmatmul.msk.bf16.gmra.mxu3 %vm258_vm0, %v1210_v43 }
  0x86   :  { %v1364_v30 = vpop.f32.mrf.mxu0  ;;  %v1366_v31 = vpop.f32.mrf.mxu1 }
  0x87   :  { %v594_v3 = vmul.f32 %v1364_v30, %v1364_v30 }
  0x8d   :  { %v1394_v42 = vpop.f32.mrf.mxu2  ;;  %v1420_v54 = vpop.f32.mrf.mxu3 }
  0x8e   :  { %v1376_v34 = vpop.f32.mrf.mxu0  ;;  %v1378_v35 = vpop.f32.mrf.mxu1 }
  0x8f   :  { %v595_v1 = vmul.f32 %v1376_v34, %v1376_v34  ;;  %v524_v4 = vadd.f32 %v1376_v34, %v1364_v30 }
  0x91   :  { %v658_v7 = vadd.f32 %v595_v1, %v594_v3 }
  0x95   :  { %v1404_v46 = vpop.f32.mrf.mxu2  ;;  %v1428_v58 = vpop.f32.mrf.mxu3 }
  0x96   :  { %v1380_v36 = vpop.f32.mrf.mxu0  ;;  %v1385_v38 = vpop.f32.mrf.mxu1 }
  0x97   :  { %v596_v5 = vmul.f32 %v1380_v36, %v1380_v36  ;;  %v525_v8 = vadd.f32 %v524_v4, %v1380_v36 }
  0x99   :  { %v659_v11 = vadd.f32 %v658_v7, %v596_v5 }
  0x9d   :  { %v1410_v49 = vpop.f32.mrf.mxu2  ;;  %v1436_v62 = vpop.f32.mrf.mxu3 }
  0x9e   :  { %v1388_v39 = vpop.f32.mrf.mxu0  ;;  %v1390_v40 = vpop.f32.mrf.mxu1 }
  0x9f   :  { %v597_v9 = vmul.f32 %v1388_v39, %v1388_v39  ;;  %v526_v12 = vadd.f32 %v525_v8, %v1388_v39 }
  0xa1   :  { %v660_v14 = vadd.f32 %v659_v11, %v597_v9 }
  0xa5   :  { %v1416_v52 = vpop.f32.mrf.mxu2  ;;  %v1452_v6 = vpop.f32.mrf.mxu3 }
  0xa6   :  { %v1392_v41 = vpop.f32.mrf.mxu0  ;;  %v1402_v45 = vpop.f32.mrf.mxu1  ;;  %2119 = vst [vmem:[#allocation2_spill] sm:$0xff] %v1416_v52 }
  0xa7   :  { %2123 = vst [vmem:[#allocation6_spill] sm:$0xff] %v1452_v6  ;;  %v598_v13 = vmul.f32 %v1392_v41, %v1392_v41  ;;  %v527_v15 = vadd.f32 %v526_v12, %v1392_v41 }
  0xa9   :  { %v661_v18 = vadd.f32 %v660_v14, %v598_v13 }
  0xad   :  { %v1426_v57 = vpop.f32.mrf.mxu2  ;;  %v1477_v26 = vpop.f32.mrf.mxu3 }
  0xae   :  { %v1400_v44 = vpop.f32.mrf.mxu0  ;;  %v1408_v48 = vpop.f32.mrf.mxu1  ;;  %2120 = vst [vmem:[#allocation3_spill] sm:$0xff] %v1426_v57 }
  0xaf   :  { %v599_v16 = vmul.f32 %v1400_v44, %v1400_v44  ;;  %v528_v19 = vadd.f32 %v527_v15, %v1400_v44 }
  0xb1   :  { %v662_v22 = vadd.f32 %v661_v18, %v599_v16 }
  0xb5   :  { %v1434_v61 = vpop.f32.mrf.mxu2  ;;  %v1500_v15 = vpop.f32.mrf.mxu3 }
  0xb6   :  { %v1406_v47 = vpop.f32.mrf.mxu0  ;;  %v1414_v51 = vpop.f32.mrf.mxu1  ;;  %2126 = vst [vmem:[#allocation9_spill] sm:$0xff] %v1500_v15 }
  0xb7   :  { %v600_v20 = vmul.f32 %v1406_v47, %v1406_v47  ;;  %v529_v23 = vadd.f32 %v528_v19, %v1406_v47 }
  0xb9   :  { %v663_v27 = vadd.f32 %v662_v22, %v600_v20 }
  0xbd   :  { %v1444_v2 = vpop.f32.mrf.mxu2 }
  0xbe   :  { %v1412_v50 = vpop.f32.mrf.mxu0  ;;  %v1422_v55 = vpop.f32.mrf.mxu1 }
  0xbf   :  { %v601_v24 = vmul.f32 %v1412_v50, %v1412_v50  ;;  %v530_v28 = vadd.f32 %v529_v23, %v1412_v50 }
  0xc1   :  { %v664_v32 = vadd.f32 %v663_v27, %v601_v24 }
  0xc5   :  { %v1470_v21 = vpop.f32.mrf.mxu2 }
  0xc6   :  { %v1418_v53 = vpop.f32.mrf.mxu0  ;;  %v1432_v60 = vpop.f32.mrf.mxu1 }
  0xc7   :  { %2121 = vst [vmem:[#allocation4_spill] sm:$0xff] %v1432_v60  ;;  %v602_v29 = vmul.f32 %v1418_v53, %v1418_v53  ;;  %v531_v33 = vadd.f32 %v530_v28, %v1418_v53 }
  0xc9   :  { %v665_v43 = vadd.f32 %v664_v32, %v602_v29 }
  0xcd   :  { %v1495_v11 = vpop.f32.mrf.mxu2 }
  0xce   :  { %v1424_v56 = vpop.f32.mrf.mxu0  ;;  %v1440_v0 = vpop.f32.mrf.mxu1  ;;  %2125 = vst [vmem:[#allocation8_spill] sm:$0xff] %v1495_v11 }
  0xcf   :  { %2122 = vst [vmem:[#allocation5_spill] sm:$0xff] %v1440_v0  ;;  %v603_v37 = vmul.f32 %v1424_v56, %v1424_v56  ;;  %v532_v1 = vadd.f32 %v531_v33, %v1424_v56 }
  0xd1   :  { %v666_v5 = vadd.f32 %v665_v43, %v603_v37 }
  0xd5   :  { %v1516_v43 = vpop.f32.mrf.mxu2 }
  0xd6   :  { %v1430_v59 = vpop.f32.mrf.mxu0  ;;  %v1465_v17 = vpop.f32.mrf.mxu1  ;;  %2127 = vst [vmem:[#allocation10_spill] sm:$0xff] %v1516_v43 }
  0xd7   :  { %2124 = vst [vmem:[#allocation7_spill] sm:$0xff] %v1465_v17  ;;  %v604_v3 = vmul.f32 %v1430_v59, %v1430_v59  ;;  %v533_v7 = vadd.f32 %v532_v1, %v1430_v59  ;;  %v610_v1 = vmul.f32 %v1366_v31, %v1366_v31 }
  0xd9   :  { %v667_v12 = vadd.f32 %v666_v5, %v604_v3 }
  0xde   :  { %v1438_v63 = vpop.f32.mrf.mxu0  ;;  %v1488_v4 = vpop.f32.mrf.mxu1 }
  0xdf   :  { %v605_v8 = vmul.f32 %v1438_v63, %v1438_v63  ;;  %v534_v13 = vadd.f32 %v533_v7, %v1438_v63  ;;  %v1521_v7 = vpop.f32.mrf.mxu3 }
  0xe0   :  { %2128 = vst [vmem:[#allocation11_spill] sm:$0xff] %v1521_v7 }
  0xe1   :  { %v668_v16 = vadd.f32 %v667_v12, %v605_v8  ;;  %v611_v8 = vmul.f32 %v1378_v35, %v1378_v35 }
  0xe6   :  { %v1457_v10 = vpop.f32.mrf.mxu0  ;;  %v1511_v29 = vpop.f32.mrf.mxu1 }
  0xe7   :  { %v606_v14 = vmul.f32 %v1457_v10, %v1457_v10  ;;  %v535_v18 = vadd.f32 %v534_v13, %v1457_v10 }
  0xe9   :  { %v669_v20 = vadd.f32 %v668_v16, %v606_v14  ;;  %v612_v14 = vmul.f32 %v1385_v38, %v1385_v38 }
  0xee   :  { %v1475_v25 = vpop.f32.mrf.mxu0 }
  0xef   :  { %v607_v19 = vmul.f32 %v1475_v25, %v1475_v25  ;;  %v536_v22 = vadd.f32 %v535_v18, %v1475_v25 }
  0xf1   :  { %v670_v24 = vadd.f32 %v669_v20, %v607_v19  ;;  %v613_v19 = vmul.f32 %v1390_v40, %v1390_v40 }
  0xf6   :  { %v1493_v9 = vpop.f32.mrf.mxu0 }
  0xf7   :  { %v608_v23 = vmul.f32 %v1493_v9, %v1493_v9  ;;  %v537_v27 = vadd.f32 %v536_v22, %v1493_v9 }
  0xf9   :  { %v671_v32 = vadd.f32 %v670_v24, %v608_v23  ;;  %v1532_v23 = vpop.f32.mrf.mxu1  ;;  %v614_v24 = vmul.f32 %v1402_v45, %v1402_v45 }
  0xfa   :  { %2129 = vst [vmem:[#allocation12_spill] sm:$0xff] %v1532_v23 }
  0xfe   :  { %v1509_v28 = vpop.f32.mrf.mxu0 }
  0xff   :  { %v538_v33 = vadd.f32 %v537_v27, %v1509_v28  ;;  %v609_v37 = vmul.f32 %v1509_v28, %v1509_v28 }
 0x101   :  { %v539_v3 = vadd.f32 %v538_v33, %v1366_v31  ;;  %v672_v5 = vadd.f32 %v671_v32, %v609_v37  ;;  %v1537_v33 = vpop.f32.mrf.mxu2  ;;  %v615_v37 = vmul.f32 %v1408_v48, %v1408_v48 }
 0x103   :  { %v540_v12 = vadd.f32 %v539_v3, %v1378_v35  ;;  %v673_v13 = vadd.f32 %v672_v5, %v610_v1  ;;  %v1542_v5 = vpop.f32.mrf.mxu3 }
 0x104   :  { %2130 = vst [vmem:[#allocation13_spill] sm:$0xff] %v1542_v5 }
 0x105   :  { %v541_v16 = vadd.f32 %v540_v12, %v1385_v38  ;;  %v674_v18 = vadd.f32 %v673_v13, %v611_v8  ;;  %v616_v8 = vmul.f32 %v1414_v51, %v1414_v51 }
 0x107   :  { %v542_v20 = vadd.f32 %v541_v16, %v1390_v40  ;;  %v675_v22 = vadd.f32 %v674_v18, %v612_v14  ;;  %v617_v14 = vmul.f32 %v1422_v55, %v1422_v55 }
 0x109   :  { %v543_v27 = vadd.f32 %v542_v20, %v1402_v45  ;;  %v676_v32 = vadd.f32 %v675_v22, %v613_v19  ;;  %v618_v19 = vmul.f32 %v1432_v60, %v1432_v60 }
 0x10b   :  { %v544_v1 = vadd.f32 %v543_v27, %v1408_v48  ;;  %v677_v3 = vadd.f32 %v676_v32, %v614_v24  ;;  %v1553_v24 = vpop.f32.mrf.mxu1  ;;  %v619_v27 = vmul.f32 %v1440_v0, %v1440_v0 }
 0x10c   :  { %2131 = vst [vmem:[#allocation14_spill] sm:$0xff] %v1553_v24 }
 0x10d   :  { %v678_v12 = vadd.f32 %v677_v3, %v615_v37  ;;  %v545_v13 = vadd.f32 %v544_v1, %v1414_v51  ;;  %v1558_v1 = vpop.f32.mrf.mxu2  ;;  %v620_v3 = vmul.f32 %v1465_v17, %v1465_v17 }
 0x10f   :  { %v546_v16 = vadd.f32 %v545_v13, %v1422_v55  ;;  %v679_v18 = vadd.f32 %v678_v12, %v616_v8  ;;  %v1563_v13 = vpop.f32.mrf.mxu3 }
 0x110   :  { %2132 = vst [vmem:[#allocation15_spill] sm:$0xff] %v1563_v13 }
 0x111   :  { %v547_v20 = vadd.f32 %v546_v16, %v1432_v60  ;;  %v680_v22 = vadd.f32 %v679_v18, %v617_v14  ;;  %v621_v14 = vmul.f32 %v1488_v4, %v1488_v4 }
 0x113   :  { %v548_v32 = vadd.f32 %v547_v20, %v1440_v0  ;;  %v681_v37 = vadd.f32 %v680_v22, %v618_v19  ;;  %v622_v19 = vmul.f32 %v1511_v29, %v1511_v29 }
 0x115   :  { %v549_v8 = vadd.f32 %v548_v32, %v1465_v17  ;;  %v682_v12 = vadd.f32 %v681_v37, %v619_v27  ;;  %v623_v27 = vmul.f32 %v1532_v23, %v1532_v23  ;;  %v1574_v32 = vpop.f32.mrf.mxu1 }
 0x116   :  { %2133 = vst [vmem:[#allocation16_spill] sm:$0xff] %v1574_v32 }
 0x117   :  { %v550_v16 = vadd.f32 %v549_v8, %v1488_v4  ;;  %v683_v18 = vadd.f32 %v682_v12, %v620_v3  ;;  %v624_v3 = vmul.f32 %v1553_v24, %v1553_v24  ;;  %v1579_v8 = vpop.f32.mrf.mxu2 }
 0x119   :  { %v551_v60 = vadd.f32 %v550_v16, %v1511_v29  ;;  %v684_v20 = vadd.f32 %v683_v18, %v621_v14  ;;  %v625_v14 = vmul.f32 %v1574_v32, %v1574_v32  ;;  %v626_v18 = vmul.f32 %v1394_v42, %v1394_v42 }
 0x11b   :  { %v685_v22 = vadd.f32 %v684_v20, %v622_v19  ;;  %v552_v0 = vadd.f32 %v551_v60, %v1532_v23  ;;  %v1584_v60 = vpop.f32.mrf.mxu3 }
 0x11c   :  { %2134 = vst [vmem:[#allocation17_spill] sm:$0xff] %v1584_v60 }
 0x11d   :  { %v686_v37 = vadd.f32 %v685_v22, %v623_v27  ;;  %v553_v17 = vadd.f32 %v552_v0, %v1553_v24  ;;  %v627_v0 = vmul.f32 %v1404_v46, %v1404_v46 }
 0x11f   :  { %v687_v12 = vadd.f32 %v686_v37, %v624_v3  ;;  %v554_v16 = vadd.f32 %v553_v17, %v1574_v32  ;;  %v628_v17 = vmul.f32 %v1410_v49, %v1410_v49  ;;  %v629_v32 = vmul.f32 %v1416_v52, %v1416_v52 }
 0x121   :  { %v555_v19 = vadd.f32 %v554_v16, %v1394_v42  ;;  %v688_v20 = vadd.f32 %v687_v12, %v625_v14  ;;  %v1598_v16 = vpop.f32.mrf.mxu2  ;;  %v630_v12 = vmul.f32 %v1426_v57, %v1426_v57 }
 0x123   :  { %v556_v22 = vadd.f32 %v555_v19, %v1404_v46  ;;  %v689_v27 = vadd.f32 %v688_v20, %v626_v18  ;;  %v1603_v19 = vpop.f32.mrf.mxu3  ;;  %v631_v20 = vmul.f32 %v1434_v61, %v1434_v61 }
 0x124   :  { %2135 = vst [vmem:[#allocation18_spill] sm:$0xff] %v1603_v19 }
 0x125   :  { %v557_v37 = vadd.f32 %v556_v22, %v1410_v49  ;;  %v690_v3 = vadd.f32 %v689_v27, %v627_v0  ;;  %v632_v27 = vmul.f32 %v1444_v2, %v1444_v2 }
 0x127   :  { %v558_v24 = vadd.f32 %v557_v37, %v1416_v52  ;;  %v691_v23 = vadd.f32 %v690_v3, %v628_v17  ;;  %v633_v3 = vmul.f32 %v1470_v21, %v1470_v21 }
 0x129   :  { %v559_v14 = vadd.f32 %v558_v24, %v1426_v57  ;;  %v692_v18 = vadd.f32 %v691_v23, %v629_v32  ;;  %v634_v32 = vmul.f32 %v1495_v11, %v1495_v11 }
 0x12b   :  { %v560_v0 = vadd.f32 %v559_v14, %v1434_v61  ;;  %v693_v22 = vadd.f32 %v692_v18, %v630_v12  ;;  %v1617_v14 = vpop.f32.mrf.mxu2  ;;  %v635_v12 = vmul.f32 %v1516_v43, %v1516_v43 }
 0x12c   :  { %2136 = vst [vmem:[#allocation19_spill] sm:$0xff] %v1617_v14 }
 0x12d   :  { %v694_v17 = vadd.f32 %v693_v22, %v631_v20  ;;  %v561_v37 = vadd.f32 %v560_v0, %v1444_v2  ;;  %v1622_v0 = vpop.f32.mrf.mxu3  ;;  %v636_v22 = vmul.f32 %v1537_v33, %v1537_v33 }
 0x12e   :  { %2137 = vst [vmem:[#allocation20_spill] sm:$0xff] %v1622_v0 }
 0x12f   :  { %v562_v24 = vadd.f32 %v561_v37, %v1470_v21  ;;  %v695_v23 = vadd.f32 %v694_v17, %v632_v27 }
 0x131   :  { %v563_v57 = vadd.f32 %v562_v24, %v1495_v11  ;;  %v696_v52 = vadd.f32 %v695_v23, %v633_v3  ;;  %v637_v3 = vmul.f32 %v1558_v1, %v1558_v1 }
 0x133   :  { %v564_v18 = vadd.f32 %v563_v57, %v1516_v43  ;;  %v697_v20 = vadd.f32 %v696_v52, %v634_v32  ;;  %v638_v52 = vmul.f32 %v1579_v8, %v1579_v8  ;;  %v639_v43 = vmul.f32 %v1598_v16, %v1598_v16 }
 0x135   :  { %v565_v27 = vadd.f32 %v564_v18, %v1537_v33  ;;  %v698_v17 = vadd.f32 %v697_v20, %v635_v12  ;;  %v1636_v18 = vpop.f32.mrf.mxu2 }
 0x136   :  { %2138 = vst [vmem:[#allocation21_spill] sm:$0xff] %v1636_v18 }
 0x137   :  { %v566_v37 = vadd.f32 %v565_v27, %v1558_v1  ;;  %v699_v24 = vadd.f32 %v698_v17, %v636_v22  ;;  %v640_v22 = vmul.f32 %v1617_v14, %v1617_v14  ;;  %v1641_v27 = vpop.f32.mrf.mxu3 }
 0x138   :  { %2139 = vst [vmem:[#allocation22_spill] sm:$0xff] %v1641_v27 }
 0x139   :  { %v700_v23 = vadd.f32 %v699_v24, %v637_v3  ;;  %v567_v11 = vadd.f32 %v566_v37, %v1579_v8  ;;  %v641_v3 = vmul.f32 %v1636_v18, %v1636_v18 }
 0x13b   :  { %v701_v57 = vadd.f32 %v700_v23, %v638_v52  ;;  %v568_v32 = vadd.f32 %v567_v11, %v1598_v16  ;;  %v642_v11 = vmul.f32 %v1420_v54, %v1420_v54 }
 0x13d   :  { %v702_v12 = vadd.f32 %v701_v57, %v639_v43  ;;  %v569_v20 = vadd.f32 %v568_v32, %v1617_v14  ;;  %v643_v43 = vmul.f32 %v1428_v58, %v1428_v58  ;;  %v644_v32 = vmul.f32 %v1436_v62, %v1436_v62 }
 0x13f   :  { %v703_v17 = vadd.f32 %v702_v12, %v640_v22  ;;  %v570_v37 = vadd.f32 %v569_v20, %v1636_v18  ;;  %v645_v22 = vmul.f32 %v1452_v6, %v1452_v6 }
 0x141   :  { %v571_v24 = vadd.f32 %v570_v37, %v1420_v54  ;;  %v704_v23 = vadd.f32 %v703_v17, %v641_v3  ;;  %v1658_v37 = vpop.f32.mrf.mxu3  ;;  %v646_v17 = vmul.f32 %v1477_v26, %v1477_v26 }
 0x142   :  { %2140 = vst [vmem:[#allocation23_spill] sm:$0xff] %v1658_v37 }
 0x143   :  { %v572_v52 = vadd.f32 %v571_v24, %v1428_v58  ;;  %v705_v57 = vadd.f32 %v704_v23, %v642_v11  ;;  %v647_v24 = vmul.f32 %v1500_v15, %v1500_v15 }
 0x145   :  { %v573_v12 = vadd.f32 %v572_v52, %v1436_v62  ;;  %v706_v20 = vadd.f32 %v705_v57, %v643_v43  ;;  %v648_v52 = vmul.f32 %v1521_v7, %v1521_v7 }
 0x147   :  { %v574_v18 = vadd.f32 %v573_v12, %v1452_v6  ;;  %v707_v14 = vadd.f32 %v706_v20, %v644_v32  ;;  %v649_v12 = vmul.f32 %v1542_v5, %v1542_v5 }
 0x149   :  { %v575_v3 = vadd.f32 %v574_v18, %v1477_v26  ;;  %v708_v11 = vadd.f32 %v707_v14, %v645_v22  ;;  %v650_v14 = vmul.f32 %v1563_v13, %v1563_v13 }
 0x14b   :  { %v576_v23 = vadd.f32 %v575_v3, %v1500_v15  ;;  %v709_v43 = vadd.f32 %v708_v11, %v646_v17  ;;  %v1675_v3 = vpop.f32.mrf.mxu3  ;;  %v651_v17 = vmul.f32 %v1584_v60, %v1584_v60 }
 0x14c   :  { %2141 = vst [vmem:[#allocation24_spill] sm:$0xff] %v1675_v3 }
 0x14d   :  { %v710_v57 = vadd.f32 %v709_v43, %v647_v24  ;;  %v577_v32 = vadd.f32 %v576_v23, %v1521_v7  ;;  %v652_v23 = vmul.f32 %v1603_v19, %v1603_v19 }
 0x14f   :  { %v578_v20 = vadd.f32 %v577_v32, %v1542_v5  ;;  %v711_v6 = vadd.f32 %v710_v57, %v648_v52  ;;  %v653_v32 = vmul.f32 %v1622_v0, %v1622_v0 }
 0x151   :  { %v579_v18 = vadd.f32 %v578_v20, %v1563_v13  ;;  %v712_v22 = vadd.f32 %v711_v6, %v649_v12  ;;  %v654_v13 = vmul.f32 %v1641_v27, %v1641_v27 }
 0x153   :  { %v580_v11 = vadd.f32 %v579_v18, %v1584_v60  ;;  %v713_v24 = vadd.f32 %v712_v22, %v650_v14  ;;  %v655_v22 = vmul.f32 %v1658_v37, %v1658_v37 }
 0x155   :  { %v581_v43 = vadd.f32 %v580_v11, %v1603_v19  ;;  %v714_v52 = vadd.f32 %v713_v24, %v651_v17  ;;  %v521_v11 = vpop.f32.mrf.mxu3 }
 0x157   :  { %v582_v57 = vadd.f32 %v581_v43, %v1622_v0  ;;  %v715_v6 = vadd.f32 %v714_v52, %v652_v23  ;;  %v656_v43 = vmul.f32 %v1675_v3, %v1675_v3 }
 0x159   :  { %v716_v12 = vadd.f32 %v715_v6, %v653_v32  ;;  %v583_v20 = vadd.f32 %v582_v57, %v1641_v27  ;;  %v657_v32 = vmul.f32 %v521_v11, %v521_v11 }
 0x15b   :  { %v717_v18 = vadd.f32 %v716_v12, %v654_v13  ;;  %v584_v14 = vadd.f32 %v583_v20, %v1658_v37 }
 0x15d   :  { %v718_v17 = vadd.f32 %v717_v18, %v655_v22  ;;  %v585_v24 = vadd.f32 %v584_v14, %v1675_v3 }
 0x15f   :  { %v719_v23 = vadd.f32 %v718_v17, %v656_v43  ;;  %v586_v52 = vadd.f32 %v585_v24, %v521_v11 }
 0x161   :  { %v587_v57 = vrot.slane %v586_v52, 4  ;;  %v720_v6 = vadd.f32 %v719_v23, %v657_v32 }
 0x163   :  { %v588_v0 = vadd.f32 %v587_v57, %v586_v52  ;;  %v721_v27 = vrot.slane %v720_v6, 4 }
 0x165   :  { %v589_v13 = vrot.slane %v588_v0, 2  ;;  %v722_v12 = vadd.f32 %v721_v27, %v720_v6 }
 0x167   :  { %v590_v20 = vadd.f32 %v589_v13, %v588_v0  ;;  %v723_v19 = vrot.slane %v722_v12, 2 }
 0x169   :  { %v591_v60 = vrot.slane %v590_v20, 1  ;;  %v724_v37 = vadd.f32 %v723_v19, %v722_v12 }
 0x16b   :  { %v592_v5 = vadd.f32 %v591_v60, %v590_v20  ;;  %v725_v18 = vrot.slane %v724_v37, 1 }
 0x16d   :  { %v593_v22 = vmul.f32 0.001953125, %v592_v5  ;;  %v726_v14 = vadd.f32 %v725_v18, %v724_v37  ;;  %v742_v5 = vld [vmem:[%s2093_s2] sm:$0x1] }
 0x16f   :  { %v727_v7 = vmul.f32 0.001953125, %v726_v14  ;;  %v728_v15 = vmul.f32 %v593_v22, %v593_v22 }
 0x171   :  { %v729_v3 = vsub.f32 %v727_v7, %v728_v15  ;;  %v744_v15 = vld [vmem:[%s2094_s3] sm:$0x1] }
 0x173   :  { %v730_v17 = vmax.f32 %v729_v3, 0.0 }
 0x175   :  { %v731_v24 = vadd.f32 1e-05, %v730_v17 }
 0x177   :  { %1219 = vrsqrt.f32 %v731_v24  ;;  %vm738_vm2 = vweird.f32 %v731_v24 }
 0x17d   :  { %v1220_v43 = vpop.eup %1219 }
 0x17e   :  { %v733_v23 = vmul.f32 %v1220_v43, %v731_v24  ;;  %vm739_vm1 = vweird.f32 %v1220_v43 }
 0x17f   :  { %vm740_vm3 = vmor %vm738_vm2, %vm739_vm1 }
 0x180   :  { %v734_v52 = vmul.f32 %v1220_v43, %v733_v23 }
 0x182   :  { %v735_v32 = vmul.f32 0.5, %v734_v52 }
 0x184   :  { %v736_v57 = vsub.f32 1.5, %v735_v32 }
 0x186   :  { %v737_v27 = vmul.f32 %v1220_v43, %v736_v57 }
 0x188   :  { %v741_v19 = vsel %vm740_vm3, %v1220_v43, %v737_v27 }
 0x189   :  { %v743_v60 = vmul.f32 %v742_v5, %v741_v19 }
 0x18b   :  { %v745_v0 = vmul.f32 %v743_v60, %v593_v22  ;;  %v1701_v37 = vperm.slane %v743_v60, 0 }
 0x18d   :  { %v746_v7 = vsub.f32 %v744_v15, %v745_v0  ;;  %v748_v6 = vmul.f32 %v1701_v37, %v1364_v30  ;;  %v749_v13 = vmul.f32 %v1701_v37, %v1376_v34  ;;  %v750_v12 = vmul.f32 %v1701_v37, %v1380_v36 }
 0x18e   :  { %v751_v20 = vmul.f32 %v1701_v37, %v1388_v39  ;;  %v752_v18 = vmul.f32 %v1701_v37, %v1392_v41  ;;  %v753_v30 = vmul.f32 %v1701_v37, %v1400_v44  ;;  %v811_v34 = vmul.f32 %v1701_v37, %v521_v11 }
 0x18f   :  { %v1703_v3 = vperm.slane %v746_v7, 0  ;;  %v754_v36 = vmul.f32 %v1701_v37, %v1406_v47  ;;  %v755_v41 = vmul.f32 %v1701_v37, %v1412_v50  ;;  %v756_v43 = vmul.f32 %v1701_v37, %v1418_v53 }
 0x190   :  { %v757_v47 = vmul.f32 %v1701_v37, %v1424_v56  ;;  %v758_v50 = vmul.f32 %v1701_v37, %v1430_v59  ;;  %v759_v60 = vmul.f32 %v1701_v37, %v1438_v63  ;;  %v760_v56 = vmul.f32 %v1701_v37, %v1457_v10 }
 0x191   :  { %v815_v22 = vadd.f32 %v1703_v3, %v748_v6  ;;  %v816_v14 = vadd.f32 %v1703_v3, %v749_v13  ;;  %v817_v17 = vadd.f32 %v1703_v3, %v750_v12  ;;  %v818_v24 = vadd.f32 %v1703_v3, %v751_v20 }
 0x192   :  { %v819_v39 = vadd.f32 %v1703_v3, %v752_v18  ;;  %v820_v23 = vadd.f32 %v1703_v3, %v753_v30  ;;  %v1731_v52 = vadd.f32 %v1703_v3, %v811_v34  ;;  %v821_v44 = vadd.f32 %v1703_v3, %v754_v36 }
 0x193   :  { %v879_v11 = vmax.f32 %v815_v22, 0.0  ;;  %v880_v32 = vmax.f32 %v816_v14, 0.0  ;;  %v881_v57 = vmax.f32 %v817_v17, 0.0  ;;  %v822_v27 = vadd.f32 %v1703_v3, %v755_v41 }
 0x194   :  { %v882_v19 = vmax.f32 %v818_v24, 0.0  ;;  %v823_v53 = vadd.f32 %v1703_v3, %v756_v43  ;;  %v883_v5 = vmax.f32 %v819_v39, 0.0  ;;  %v824_v0 = vadd.f32 %v1703_v3, %v757_v47 }
 0x195   :  { %943 = vst [vmem:[%s2095_s4] sm:$0xff] %v879_v11  ;;  %v884_v15 = vmax.f32 %v820_v23, 0.0  ;;  %v825_v59 = vadd.f32 %v1703_v3, %v758_v50  ;;  %v885_v7 = vmax.f32 %v821_v44, 0.0  ;;  %v761_v63 = vmul.f32 %v1701_v37, %v1475_v25 }
 0x196   :  { %944 = vst [vmem:[%s2095_s4 + $0x8] sm:$0xff] %v880_v32  ;;  %v826_v6 = vadd.f32 %v1703_v3, %v759_v60  ;;  %v886_v13 = vmax.f32 %v822_v27, 0.0  ;;  %v762_v10 = vmul.f32 %v1701_v37, %v1493_v9  ;;  %v827_v12 = vadd.f32 %v1703_v3, %v760_v56 }
 0x197   :  { %945 = vst [vmem:[%s2095_s4 + $0x10] sm:$0xff] %v881_v57  ;;  %v887_v20 = vmax.f32 %v823_v53, 0.0  ;;  %v763_v25 = vmul.f32 %v1701_v37, %v1509_v28  ;;  %v828_v18 = vadd.f32 %v1703_v3, %v761_v63  ;;  %v888_v22 = vmax.f32 %v824_v0, 0.0 }
 0x198   :  { %946 = vst [vmem:[%s2095_s4 + $0x18] sm:$0xff] %v882_v19  ;;  %v764_v9 = vmul.f32 %v1701_v37, %v1366_v31  ;;  %v829_v14 = vadd.f32 %v1703_v3, %v762_v10  ;;  %v889_v17 = vmax.f32 %v825_v59, 0.0  ;;  %v765_v28 = vmul.f32 %v1701_v37, %v1378_v35  ;;  %v2142_v19 = vld [vmem:[#allocation4_spill] sm:$0xff] }
 0x199   :  { %947 = vst [vmem:[%s2095_s4 + $0x20] sm:$0xff] %v883_v5  ;;  %v830_v30 = vadd.f32 %v1703_v3, %v763_v25  ;;  %v890_v34 = vmax.f32 %v826_v6, 0.0  ;;  %v766_v31 = vmul.f32 %v1701_v37, %v1385_v38  ;;  %v891_v36 = vmax.f32 %v827_v12, 0.0  ;;  %v2143_v5 = vld [vmem:[#allocation5_spill] sm:$0xff]  ;;  %v2145_v25 = vld [vmem:[#allocation12_spill] sm:$0xff] }
 0x19a   :  { %948 = vst [vmem:[%s2095_s4 + $0x28] sm:$0xff] %v884_v15  ;;  %v831_v24 = vadd.f32 %v1703_v3, %v764_v9  ;;  %v767_v35 = vmul.f32 %v1701_v37, %v1390_v40  ;;  %v832_v39 = vadd.f32 %v1703_v3, %v765_v28  ;;  %v892_v41 = vmax.f32 %v828_v18, 0.0  ;;  %v2144_v15 = vld [vmem:[#allocation7_spill] sm:$0xff]  ;;  %v2146_v9 = vld [vmem:[#allocation14_spill] sm:$0xff]  ;;  %v2147_v28 = vld [vmem:[#allocation16_spill] sm:$0xff] }
 0x19b   :  { %949 = vst [vmem:[%s2095_s4 + $0x30] sm:$0xff] %v885_v7  ;;  %v768_v38 = vmul.f32 %v1701_v37, %v1402_v45  ;;  %v833_v43 = vadd.f32 %v1703_v3, %v766_v31  ;;  %v893_v23 = vmax.f32 %v829_v14, 0.0  ;;  %v769_v40 = vmul.f32 %v1701_v37, %v1408_v48 }
 0x19c   :  { %950 = vst [vmem:[%s2095_s4 + $0x38] sm:$0xff] %v886_v13  ;;  %v834_v44 = vadd.f32 %v1703_v3, %v767_v35  ;;  %v894_v11 = vmax.f32 %v830_v30, 0.0  ;;  %v770_v45 = vmul.f32 %v1701_v37, %v1414_v51  ;;  %v895_v57 = vmax.f32 %v831_v24, 0.0 }
 0x19d   :  { %951 = vst [vmem:[%s2095_s4 + $0x40] sm:$0xff] %v887_v20  ;;  %v835_v32 = vadd.f32 %v1703_v3, %v768_v38  ;;  %v771_v48 = vmul.f32 %v1701_v37, %v1422_v55  ;;  %v836_v47 = vadd.f32 %v1703_v3, %v769_v40  ;;  %v896_v27 = vmax.f32 %v832_v39, 0.0  ;;  %v2148_v40 = vld [vmem:[#allocation2_spill] sm:$0xff] }
 0x19e   :  { %952 = vst [vmem:[%s2095_s4 + $0x48] sm:$0xff] %v888_v22  ;;  %v772_v51 = vmul.f32 %v1701_v37, %v2142_v19  ;;  %v837_v50 = vadd.f32 %v1703_v3, %v770_v45  ;;  %v897_v53 = vmax.f32 %v833_v43, 0.0  ;;  %v773_v55 = vmul.f32 %v1701_v37, %v2143_v5  ;;  %v2149_v45 = vld [vmem:[#allocation3_spill] sm:$0xff] }
 0x19f   :  { %953 = vst [vmem:[%s2095_s4 + $0x50] sm:$0xff] %v889_v17  ;;  %v838_v60 = vadd.f32 %v1703_v3, %v771_v48  ;;  %v898_v0 = vmax.f32 %v834_v44, 0.0  ;;  %v774_v56 = vmul.f32 %v1701_v37, %v2144_v15  ;;  %v899_v7 = vmax.f32 %v835_v32, 0.0  ;;  %v2151_v15 = vld [vmem:[#allocation10_spill] sm:$0xff] }
 0x1a0   :  { %954 = vst [vmem:[%s2095_s4 + $0x58] sm:$0xff] %v890_v34  ;;  %v839_v59 = vadd.f32 %v1703_v3, %v772_v51  ;;  %v775_v63 = vmul.f32 %v1701_v37, %v1488_v4  ;;  %v840_v6 = vadd.f32 %v1703_v3, %v773_v55  ;;  %v900_v13 = vmax.f32 %v836_v47, 0.0  ;;  %v2150_v55 = vld [vmem:[#allocation8_spill] sm:$0xff] }
 0x1a1   :  { %955 = vst [vmem:[%s2095_s4 + $0x60] sm:$0xff] %v891_v36  ;;  %v776_v10 = vmul.f32 %v1701_v37, %v1511_v29  ;;  %v841_v12 = vadd.f32 %v1703_v3, %v774_v56  ;;  %v901_v20 = vmax.f32 %v837_v50, 0.0  ;;  %v777_v4 = vmul.f32 %v1701_v37, %v2145_v25 }
 0x1a2   :  { %956 = vst [vmem:[%s2095_s4 + $0x68] sm:$0xff] %v892_v41  ;;  %v842_v18 = vadd.f32 %v1703_v3, %v775_v63  ;;  %v902_v22 = vmax.f32 %v838_v60, 0.0  ;;  %v778_v29 = vmul.f32 %v1701_v37, %v2146_v9  ;;  %v903_v17 = vmax.f32 %v839_v59, 0.0 }
 0x1a3   :  { %957 = vst [vmem:[%s2095_s4 + $0x70] sm:$0xff] %v893_v23  ;;  %v843_v14 = vadd.f32 %v1703_v3, %v776_v10  ;;  %v779_v30 = vmul.f32 %v1701_v37, %v2147_v28  ;;  %v844_v34 = vadd.f32 %v1703_v3, %v777_v4  ;;  %v904_v31 = vmax.f32 %v840_v6, 0.0 }
 0x1a4   :  { %958 = vst [vmem:[%s2095_s4 + $0x78] sm:$0xff] %v894_v11  ;;  %v780_v24 = vmul.f32 %v1701_v37, %v1394_v42  ;;  %v845_v36 = vadd.f32 %v1703_v3, %v778_v29  ;;  %v905_v35 = vmax.f32 %v841_v12, 0.0  ;;  %v781_v39 = vmul.f32 %v1701_v37, %v1404_v46 }
 0x1a5   :  { %959 = vst [vmem:[%s2095_s4 + $0x80] sm:$0xff] %v895_v57  ;;  %v846_v41 = vadd.f32 %v1703_v3, %v779_v30  ;;  %v906_v38 = vmax.f32 %v842_v18, 0.0  ;;  %v782_v42 = vmul.f32 %v1701_v37, %v1410_v49  ;;  %v907_v23 = vmax.f32 %v843_v14, 0.0  ;;  %v2153_v14 = vld [vmem:[#allocation21_spill] sm:$0xff] }
 0x1a6   :  { %960 = vst [vmem:[%s2095_s4 + $0x88] sm:$0xff] %v896_v27  ;;  %v847_v43 = vadd.f32 %v1703_v3, %v780_v24  ;;  %v783_v46 = vmul.f32 %v1701_v37, %v2148_v40  ;;  %v848_v44 = vadd.f32 %v1703_v3, %v781_v39  ;;  %v908_v11 = vmax.f32 %v844_v34, 0.0 }
 0x1a7   :  { %961 = vst [vmem:[%s2095_s4 + $0x90] sm:$0xff] %v897_v53  ;;  %v784_v49 = vmul.f32 %v1701_v37, %v2149_v45  ;;  %v849_v32 = vadd.f32 %v1703_v3, %v782_v42  ;;  %v909_v57 = vmax.f32 %v845_v36, 0.0  ;;  %v785_v48 = vmul.f32 %v1701_v37, %v1434_v61 }
 0x1a8   :  { %962 = vst [vmem:[%s2095_s4 + $0x98] sm:$0xff] %v898_v0  ;;  %v850_v47 = vadd.f32 %v1703_v3, %v783_v46  ;;  %v910_v27 = vmax.f32 %v846_v41, 0.0  ;;  %v786_v19 = vmul.f32 %v1701_v37, %v1444_v2  ;;  %v911_v50 = vmax.f32 %v847_v43, 0.0  ;;  %v2155_v46 = vld [vmem:[#allocation9_spill] sm:$0xff] }
 0x1a9   :  { %963 = vst [vmem:[%s2095_s4 + $0xa0] sm:$0xff] %v899_v7  ;;  %v851_v51 = vadd.f32 %v1703_v3, %v784_v49  ;;  %v787_v61 = vmul.f32 %v1701_v37, %v1470_v21  ;;  %v852_v53 = vadd.f32 %v1703_v3, %v785_v48  ;;  %v912_v5 = vmax.f32 %v848_v44, 0.0  ;;  %v2156_v49 = vld [vmem:[#allocation11_spill] sm:$0xff]  ;;  %v2157_v48 = vld [vmem:[#allocation13_spill] sm:$0xff] }
 0x1aa   :  { %964 = vst [vmem:[%s2095_s4 + $0xa8] sm:$0xff] %v900_v13  ;;  %v788_v2 = vmul.f32 %v1701_v37, %v2150_v55  ;;  %v853_v60 = vadd.f32 %v1703_v3, %v786_v19  ;;  %v913_v0 = vmax.f32 %v849_v32, 0.0  ;;  %v789_v21 = vmul.f32 %v1701_v37, %v2151_v15 }
 0x1ab   :  { %965 = vst [vmem:[%s2095_s4 + $0xb0] sm:$0xff] %v901_v20  ;;  %v854_v56 = vadd.f32 %v1703_v3, %v787_v61  ;;  %v914_v59 = vmax.f32 %v850_v47, 0.0  ;;  %v790_v7 = vmul.f32 %v1701_v37, %v1537_v33  ;;  %v915_v6 = vmax.f32 %v851_v51, 0.0  ;;  %v2158_v51 = vld [vmem:[#allocation15_spill] sm:$0xff] }
 0x1ac   :  { %966 = vst [vmem:[%s2095_s4 + $0xb8] sm:$0xff] %v902_v22  ;;  %v855_v63 = vadd.f32 %v1703_v3, %v788_v2  ;;  %v791_v13 = vmul.f32 %v1701_v37, %v1558_v1  ;;  %v856_v10 = vadd.f32 %v1703_v3, %v789_v21  ;;  %v916_v12 = vmax.f32 %v852_v53, 0.0  ;;  %v2152_v22 = vld [vmem:[#allocation19_spill] sm:$0xff] }
 0x1ad   :  { %967 = vst [vmem:[%s2095_s4 + $0xc0] sm:$0xff] %v903_v17  ;;  %v792_v33 = vmul.f32 %v1701_v37, %v1579_v8  ;;  %v857_v20 = vadd.f32 %v1703_v3, %v790_v7  ;;  %v917_v25 = vmax.f32 %v853_v60, 0.0  ;;  %v793_v1 = vmul.f32 %v1701_v37, %v1598_v16 }
 0x1ae   :  { %968 = vst [vmem:[%s2095_s4 + $0xc8] sm:$0xff] %v904_v31  ;;  %v858_v4 = vadd.f32 %v1703_v3, %v791_v13  ;;  %v918_v18 = vmax.f32 %v854_v56, 0.0  ;;  %v794_v8 = vmul.f32 %v1701_v37, %v2152_v22  ;;  %v919_v29 = vmax.f32 %v855_v63, 0.0  ;;  %v2162_v13 = vld [vmem:[#allocation22_spill] sm:$0xff] }
 0x1af   :  { %969 = vst [vmem:[%s2095_s4 + $0xd0] sm:$0xff] %v905_v35  ;;  %v859_v9 = vadd.f32 %v1703_v3, %v792_v33  ;;  %v795_v16 = vmul.f32 %v1701_v37, %v2153_v14  ;;  %v860_v17 = vadd.f32 %v1703_v3, %v793_v1  ;;  %v920_v28 = vmax.f32 %v856_v10, 0.0 }
 0x1b0   :  { %970 = vst [vmem:[%s2095_s4 + $0xd8] sm:$0xff] %v906_v38  ;;  %v796_v30 = vmul.f32 %v1701_v37, %v1420_v54  ;;  %v861_v34 = vadd.f32 %v1703_v3, %v794_v8  ;;  %v921_v31 = vmax.f32 %v857_v20, 0.0  ;;  %v797_v24 = vmul.f32 %v1701_v37, %v1428_v58  ;;  %v2154_v38 = vld [vmem:[#allocation6_spill] sm:$0xff]  ;;  %v2163_v20 = vld [vmem:[#allocation23_spill] sm:$0xff] }
 0x1b1   :  { %971 = vst [vmem:[%s2095_s4 + $0xe0] sm:$0xff] %v907_v23  ;;  %v862_v36 = vadd.f32 %v1703_v3, %v795_v16  ;;  %v922_v35 = vmax.f32 %v858_v4, 0.0  ;;  %v798_v54 = vmul.f32 %v1701_v37, %v1436_v62  ;;  %v923_v41 = vmax.f32 %v859_v9, 0.0 }
 0x1b2   :  { %972 = vst [vmem:[%s2095_s4 + $0xe8] sm:$0xff] %v908_v11  ;;  %v863_v39 = vadd.f32 %v1703_v3, %v796_v30  ;;  %v799_v58 = vmul.f32 %v1701_v37, %v2154_v38  ;;  %v864_v42 = vadd.f32 %v1703_v3, %v797_v24  ;;  %v924_v43 = vmax.f32 %v860_v17, 0.0 }
 0x1b3   :  { %973 = vst [vmem:[%s2095_s4 + $0xf0] sm:$0xff] %v909_v57  ;;  %v800_v62 = vmul.f32 %v1701_v37, %v1477_v26  ;;  %v865_v23 = vadd.f32 %v1703_v3, %v798_v54  ;;  %v925_v40 = vmax.f32 %v861_v34, 0.0  ;;  %v801_v44 = vmul.f32 %v1701_v37, %v2155_v46 }
 0x1b4   :  { %974 = vst [vmem:[%s2095_s4 + $0xf8] sm:$0xff] %v910_v27  ;;  %v866_v11 = vadd.f32 %v1703_v3, %v799_v58  ;;  %v926_v45 = vmax.f32 %v862_v36, 0.0  ;;  %v802_v26 = vmul.f32 %v1701_v37, %v2156_v49  ;;  %v927_v57 = vmax.f32 %v863_v39, 0.0 }
 0x1b5   :  { %975 = vst [vmem:[%s2095_s4 + $0x100] sm:$0xff] %v911_v50  ;;  %v867_v32 = vadd.f32 %v1703_v3, %v800_v62  ;;  %v803_v47 = vmul.f32 %v1701_v37, %v2157_v48  ;;  %v868_v27 = vadd.f32 %v1703_v3, %v801_v44  ;;  %v928_v19 = vmax.f32 %v864_v42, 0.0 }
 0x1b6   :  { %976 = vst [vmem:[%s2095_s4 + $0x108] sm:$0xff] %v912_v5  ;;  %v804_v50 = vmul.f32 %v1701_v37, %v2158_v51  ;;  %v869_v61 = vadd.f32 %v1703_v3, %v802_v26  ;;  %v929_v53 = vmax.f32 %v865_v23, 0.0  ;;  %v2159_v5 = vld [vmem:[#allocation17_spill] sm:$0xff]  ;;  %v930_v60 = vmax.f32 %v866_v11, 0.0 }
 0x1b7   :  { %977 = vst [vmem:[%s2095_s4 + $0x110] sm:$0xff] %v913_v0  ;;  %v805_v55 = vmul.f32 %v1701_v37, %v2159_v5  ;;  %v870_v2 = vadd.f32 %v1703_v3, %v803_v47  ;;  %v2160_v0 = vld [vmem:[#allocation18_spill] sm:$0xff]  ;;  %v931_v56 = vmax.f32 %v867_v32, 0.0  ;;  %v808_v10 = vmul.f32 %v1701_v37, %v2162_v13 }
 0x1b8   :  { %978 = vst [vmem:[%s2095_s4 + $0x118] sm:$0xff] %v914_v59  ;;  %v806_v15 = vmul.f32 %v1701_v37, %v2160_v0  ;;  %v871_v21 = vadd.f32 %v1703_v3, %v804_v50  ;;  %v2161_v59 = vld [vmem:[#allocation20_spill] sm:$0xff]  ;;  %v933_v33 = vmax.f32 %v869_v61, 0.0  ;;  %v942_v34 = vmax.f32 %v1731_v52, 0.0 }
 0x1b9   :  { %979 = vst [vmem:[%s2095_s4 + $0x120] sm:$0xff] %v915_v6  ;;  %v807_v7 = vmul.f32 %v1701_v37, %v2161_v59  ;;  %v872_v63 = vadd.f32 %v1703_v3, %v805_v55  ;;  %v932_v6 = vmax.f32 %v868_v27, 0.0  ;;  %v934_v4 = vmax.f32 %v870_v2, 0.0 }
 0x1ba   :  { %980 = vst [vmem:[%s2095_s4 + $0x128] sm:$0xff] %v916_v12  ;;  %v873_v12 = vadd.f32 %v1703_v3, %v806_v15  ;;  %v875_v8 = vadd.f32 %v1703_v3, %v808_v10  ;;  %v935_v9 = vmax.f32 %v871_v21, 0.0 }
 0x1bb   :  { %981 = vst [vmem:[%s2095_s4 + $0x130] sm:$0xff] %v917_v25  ;;  %v809_v25 = vmul.f32 %v1701_v37, %v2163_v20  ;;  %v874_v1 = vadd.f32 %v1703_v3, %v807_v7  ;;  %v936_v14 = vmax.f32 %v872_v63, 0.0 }
 0x1bc   :  { %982 = vst [vmem:[%s2095_s4 + $0x138] sm:$0xff] %v918_v18  ;;  %v2164_v18 = vld [vmem:[#allocation24_spill] sm:$0xff]  ;;  %v937_v17 = vmax.f32 %v873_v12, 0.0 }
 0x1bd   :  { %983 = vst [vmem:[%s2095_s4 + $0x140] sm:$0xff] %v919_v29  ;;  %v810_v22 = vmul.f32 %v1701_v37, %v2164_v18  ;;  %v876_v29 = vadd.f32 %v1703_v3, %v809_v25  ;;  %v938_v37 = vmax.f32 %v874_v1, 0.0 }
 0x1be   :  { %984 = vst [vmem:[%s2095_s4 + $0x148] sm:$0xff] %v920_v28  ;;  %v939_v28 = vmax.f32 %v875_v8, 0.0 }
 0x1bf   :  { %985 = vst [vmem:[%s2095_s4 + $0x150] sm:$0xff] %v921_v31  ;;  %v877_v16 = vadd.f32 %v1703_v3, %v810_v22  ;;  %v940_v30 = vmax.f32 %v876_v29, 0.0 }
 0x1c0   :  { %986 = vst [vmem:[%s2095_s4 + $0x158] sm:$0xff] %v922_v35 }
 0x1c1   :  { %987 = vst [vmem:[%s2095_s4 + $0x160] sm:$0xff] %v923_v41  ;;  %v941_v3 = vmax.f32 %v877_v16, 0.0 }
 0x1c2   :  { %988 = vst [vmem:[%s2095_s4 + $0x168] sm:$0xff] %v924_v43 }
 0x1c3   :  { %989 = vst [vmem:[%s2095_s4 + $0x170] sm:$0xff] %v925_v40 }
 0x1c4   :  { %990 = vst [vmem:[%s2095_s4 + $0x178] sm:$0xff] %v926_v45 }
 0x1c5   :  { %991 = vst [vmem:[%s2095_s4 + $0x180] sm:$0xff] %v927_v57 }
 0x1c6   :  { %992 = vst [vmem:[%s2095_s4 + $0x188] sm:$0xff] %v928_v19 }
 0x1c7   :  { %993 = vst [vmem:[%s2095_s4 + $0x190] sm:$0xff] %v929_v53 }
 0x1c8   :  { %994 = vst [vmem:[%s2095_s4 + $0x198] sm:$0xff] %v930_v60 }
 0x1c9   :  { %995 = vst [vmem:[%s2095_s4 + $0x1a0] sm:$0xff] %v931_v56 }
 0x1ca   :  { %996 = vst [vmem:[%s2095_s4 + $0x1a8] sm:$0xff] %v932_v6 }
 0x1cb   :  { %997 = vst [vmem:[%s2095_s4 + $0x1b0] sm:$0xff] %v933_v33 }
 0x1cc   :  { %998 = vst [vmem:[%s2095_s4 + $0x1b8] sm:$0xff] %v934_v4 }
 0x1cd   :  { %999 = vst [vmem:[%s2095_s4 + $0x1c0] sm:$0xff] %v935_v9 }
 0x1ce   :  { %1000 = vst [vmem:[%s2095_s4 + $0x1c8] sm:$0xff] %v936_v14 }
 0x1cf   :  { %1001 = vst [vmem:[%s2095_s4 + $0x1d0] sm:$0xff] %v937_v17 }
 0x1d0   :  { %1002 = vst [vmem:[%s2095_s4 + $0x1d8] sm:$0xff] %v938_v37 }
 0x1d1   :  { %1003 = vst [vmem:[%s2095_s4 + $0x1e0] sm:$0xff] %v939_v28 }
 0x1d2   :  { %1004 = vst [vmem:[%s2095_s4 + $0x1e8] sm:$0xff] %v940_v30 }
 0x1d3   :  { %1005 = vst [vmem:[%s2095_s4 + $0x1f0] sm:$0xff] %v941_v3 }
 0x1d4   :  { %1006 = vst [vmem:[%s2095_s4 + $0x1f8] sm:$0xff] %v942_v34 }

// kernel: forward.5
= control target key start
LH: loop header
LB: loop body
LE: loop exit
PB: predicated region body
PF: predicated region fallthrough
CT: control target
= control target key end

     0   :  { %vm160_vm0 = vcmask 261120   ;;  %s1240_s1 = inlined_call_operand.vmem [shape: bf16[32,128], index: 1, kind: input, shape index: {}]   ;;  %s1241_s0 = inlined_call_operand.vmem [shape: bf16[288,32], index: 0, kind: input, shape index: {}]   ;;  %s1242_s2 = inlined_call_operand.vmem [shape: f32[1,128], index: 2, kind: input, shape index: {}]   ;;  %s1243_s3 = inlined_call_operand.vmem [shape: f32[1,128], index: 3, kind: input, shape index: {}]   ;;  %s1244_s4 = inlined_call_operand.vmem [shape: f32[288,128], index: 4, kind: output, shape index: {}]  }
   0x1   :  { %v722_v0 = vld [vmem:[%s1240_s1 + $0x8] sm:$0xff]  ;;  %v721_v1 = vld [vmem:[%s1240_s1] sm:$0xff]  ;;  %v713_v4 = vld [vmem:[%s1241_s0 + $0x50] sm:$0xff] }
   0x2   :  { %221 = vmatpush.bf16.msra.mxu0 %v722_v0  ;;  %723 = vmatpush.bf16.msra.mxu1 %v722_v0  ;;  %v703_v2 = vld [vmem:[%s1241_s0] sm:$0xff]  ;;  %v708_v3 = vld [vmem:[%s1241_s0 + $0x28] sm:$0xff]  ;;  %v709_v6 = vld [vmem:[%s1241_s0 + $0x30] sm:$0xff] }
   0x3   :  { %724 = vmatpush.bf16.msra.mxu2 %v722_v0  ;;  %725 = vmatpush.bf16.msra.mxu3 %v722_v0  ;;  %v704_v5 = vld [vmem:[%s1241_s0 + $0x8] sm:$0xff]  ;;  %v714_v7 = vld [vmem:[%s1241_s0 + $0x58] sm:$0xff]  ;;  %v705_v8 = vld [vmem:[%s1241_s0 + $0x10] sm:$0xff] }
   0x4   :  { %v710_v9 = vld [vmem:[%s1241_s0 + $0x38] sm:$0xff]  ;;  %v715_v10 = vld [vmem:[%s1241_s0 + $0x60] sm:$0xff]  ;;  %v716_v14 = vld [vmem:[%s1241_s0 + $0x68] sm:$0xff] }
   0x5   :  { %v718_v11 = vld [vmem:[%s1241_s0 + $0x78] sm:$0xff]  ;;  %v711_v13 = vld [vmem:[%s1241_s0 + $0x40] sm:$0xff]  ;;  %v712_v17 = vld [vmem:[%s1241_s0 + $0x48] sm:$0xff] }
   0x6   :  { %222 = vmatpush.bf16.msra.mxu0 %v721_v1  ;;  %726 = vmatpush.bf16.msra.mxu1 %v721_v1  ;;  %v706_v12 = vld [vmem:[%s1241_s0 + $0x18] sm:$0xff]  ;;  %v719_v15 = vld [vmem:[%s1241_s0 + $0x80] sm:$0xff]  ;;  %v717_v18 = vld [vmem:[%s1241_s0 + $0x70] sm:$0xff] }
   0x7   :  { %727 = vmatpush.bf16.msra.mxu2 %v721_v1  ;;  %728 = vmatpush.bf16.msra.mxu3 %v721_v1  ;;  %v707_v16 = vld [vmem:[%s1241_s0 + $0x20] sm:$0xff]  ;;  %v720_v19 = vld [vmem:[%s1241_s0 + $0x88] sm:$0xff] }
   0x9   :  { %685 = vmatmul.msk.bf16.vlgmr.msra.gmra.mxu0 %vm160_vm0, %v703_v2  ;;  %690 = vmatmul.msk.bf16.vlgmr.msra.gmra.mxu1 %vm160_vm0, %v708_v3 }
   0xa   :  { %695 = vmatmul.msk.bf16.vlgmr.msra.gmra.mxu2 %vm160_vm0, %v713_v4  ;;  %700 = vmatmul.msk.bf16.vlgmr.msra.gmra.mxu3 %vm160_vm0, %v718_v11 }
  0x19   :  { %686 = vmatmul.msk.bf16.gmra.mxu0 %vm160_vm0, %v704_v5  ;;  %691 = vmatmul.msk.bf16.gmra.mxu1 %vm160_vm0, %v709_v6 }
  0x1a   :  { %696 = vmatmul.msk.bf16.gmra.mxu2 %vm160_vm0, %v714_v7  ;;  %701 = vmatmul.msk.bf16.gmra.mxu3 %vm160_vm0, %v719_v15 }
  0x29   :  { %687 = vmatmul.msk.bf16.gmra.mxu0 %vm160_vm0, %v705_v8  ;;  %692 = vmatmul.msk.bf16.gmra.mxu1 %vm160_vm0, %v710_v9 }
  0x2a   :  { %697 = vmatmul.msk.bf16.gmra.mxu2 %vm160_vm0, %v715_v10  ;;  %702 = vmatmul.msk.bf16.gmra.mxu3 %vm160_vm0, %v720_v19 }
  0x39   :  { %688 = vmatmul.msk.bf16.gmra.mxu0 %vm160_vm0, %v706_v12  ;;  %693 = vmatmul.msk.bf16.gmra.mxu1 %vm160_vm0, %v711_v13 }
  0x3a   :  { %698 = vmatmul.msk.bf16.gmra.mxu2 %vm160_vm0, %v716_v14 }
  0x49   :  { %689 = vmatmul.msk.bf16.gmra.mxu0 %vm160_vm0, %v707_v16  ;;  %694 = vmatmul.msk.bf16.gmra.mxu1 %vm160_vm0, %v712_v17 }
  0x4a   :  { %699 = vmatmul.msk.bf16.gmra.mxu2 %vm160_vm0, %v717_v18 }
  0x86   :  { %v834_v20 = vpop.f32.mrf.mxu0  ;;  %v836_v21 = vpop.f32.mrf.mxu1 }
  0x87   :  { %v356_v39 = vmul.f32 %v834_v20, %v834_v20  ;;  %v366_v8 = vmul.f32 %v836_v21, %v836_v21 }
  0x8d   :  { %v844_v25 = vpop.f32.mrf.mxu2  ;;  %v909_v4 = vpop.f32.mrf.mxu3 }
  0x8e   :  { %v838_v22 = vpop.f32.mrf.mxu0  ;;  %v840_v23 = vpop.f32.mrf.mxu1 }
  0x8f   :  { %v357_v37 = vmul.f32 %v838_v22, %v838_v22  ;;  %v314_v40 = vadd.f32 %v838_v22, %v834_v20  ;;  %v367_v11 = vmul.f32 %v840_v23, %v840_v23 }
  0x91   :  { %v392_v42 = vadd.f32 %v357_v37, %v356_v39 }
  0x95   :  { %v850_v28 = vpop.f32.mrf.mxu2 }
  0x96   :  { %v842_v24 = vpop.f32.mrf.mxu0  ;;  %v846_v26 = vpop.f32.mrf.mxu1 }
  0x97   :  { %v358_v41 = vmul.f32 %v842_v24, %v842_v24  ;;  %v315_v43 = vadd.f32 %v314_v40, %v842_v24  ;;  %v368_v14 = vmul.f32 %v846_v26, %v846_v26  ;;  %v930_v40 = vpop.f32.mrf.mxu3 }
  0x99   :  { %v393_v47 = vadd.f32 %v392_v42, %v358_v41 }
  0x9d   :  { %v856_v31 = vpop.f32.mrf.mxu2 }
  0x9e   :  { %v848_v27 = vpop.f32.mrf.mxu0  ;;  %v852_v29 = vpop.f32.mrf.mxu1 }
  0x9f   :  { %v359_v44 = vmul.f32 %v848_v27, %v848_v27  ;;  %v316_v48 = vadd.f32 %v315_v43, %v848_v27  ;;  %v369_v19 = vmul.f32 %v852_v29, %v852_v29 }
  0xa1   :  { %v394_v50 = vadd.f32 %v393_v47, %v359_v44 }
  0xa5   :  { %v866_v36 = vpop.f32.mrf.mxu2 }
  0xa6   :  { %v854_v30 = vpop.f32.mrf.mxu0  ;;  %v860_v33 = vpop.f32.mrf.mxu1 }
  0xa7   :  { %v360_v49 = vmul.f32 %v854_v30, %v854_v30  ;;  %v317_v51 = vadd.f32 %v316_v48, %v854_v30  ;;  %v370_v41 = vmul.f32 %v860_v33, %v860_v33 }
  0xa9   :  { %v395_v54 = vadd.f32 %v394_v50, %v360_v49 }
  0xad   :  { %v883_v46 = vpop.f32.mrf.mxu2 }
  0xae   :  { %v858_v32 = vpop.f32.mrf.mxu0  ;;  %v864_v35 = vpop.f32.mrf.mxu1 }
  0xaf   :  { %v361_v52 = vmul.f32 %v858_v32, %v858_v32  ;;  %v318_v55 = vadd.f32 %v317_v51, %v858_v32  ;;  %v371_v44 = vmul.f32 %v864_v35, %v864_v35 }
  0xb1   :  { %v396_v57 = vadd.f32 %v395_v54, %v361_v52 }
  0xb5   :  { %v904_v0 = vpop.f32.mrf.mxu2 }
  0xb6   :  { %v862_v34 = vpop.f32.mrf.mxu0  ;;  %v881_v45 = vpop.f32.mrf.mxu1 }
  0xb7   :  { %v362_v56 = vmul.f32 %v862_v34, %v862_v34  ;;  %v319_v58 = vadd.f32 %v318_v55, %v862_v34  ;;  %v372_v49 = vmul.f32 %v881_v45, %v881_v45 }
  0xb9   :  { %v397_v60 = vadd.f32 %v396_v57, %v362_v56 }
  0xbd   :  { %v925_v18 = vpop.f32.mrf.mxu2 }
  0xbe   :  { %v870_v38 = vpop.f32.mrf.mxu0  ;;  %v902_v63 = vpop.f32.mrf.mxu1 }
  0xbf   :  { %v363_v59 = vmul.f32 %v870_v38, %v870_v38  ;;  %v320_v61 = vadd.f32 %v319_v58, %v870_v38  ;;  %v373_v52 = vmul.f32 %v902_v63, %v902_v63 }
  0xc1   :  { %v398_v1 = vadd.f32 %v397_v60, %v363_v59 }
  0xc5   :  { %v946_v57 = vpop.f32.mrf.mxu2 }
  0xc6   :  { %v891_v53 = vpop.f32.mrf.mxu0  ;;  %v923_v17 = vpop.f32.mrf.mxu1 }
  0xc7   :  { %v364_v62 = vmul.f32 %v891_v53, %v891_v53  ;;  %v321_v2 = vadd.f32 %v320_v61, %v891_v53  ;;  %v374_v59 = vmul.f32 %v923_v17, %v923_v17  ;;  %v951_v61 = vpop.f32.mrf.mxu3 }
  0xc9   :  { %v399_v5 = vadd.f32 %v398_v1, %v364_v62 }
  0xce   :  { %v907_v3 = vpop.f32.mrf.mxu0  ;;  %v944_v56 = vpop.f32.mrf.mxu1 }
  0xcf   :  { %v322_v6 = vadd.f32 %v321_v2, %v907_v3  ;;  %v365_v7 = vmul.f32 %v907_v3, %v907_v3  ;;  %v375_v2 = vmul.f32 %v944_v56, %v944_v56 }
  0xd1   :  { %v323_v9 = vadd.f32 %v322_v6, %v836_v21  ;;  %v400_v10 = vadd.f32 %v399_v5, %v365_v7  ;;  %v376_v5 = vmul.f32 %v844_v25, %v844_v25 }
  0xd3   :  { %v324_v12 = vadd.f32 %v323_v9, %v840_v23  ;;  %v401_v13 = vadd.f32 %v400_v10, %v366_v8  ;;  %v377_v8 = vmul.f32 %v850_v28, %v850_v28 }
  0xd5   :  { %v325_v15 = vadd.f32 %v324_v12, %v846_v26  ;;  %v402_v16 = vadd.f32 %v401_v13, %v367_v11  ;;  %v378_v11 = vmul.f32 %v856_v31, %v856_v31 }
  0xd7   :  { %v326_v37 = vadd.f32 %v325_v15, %v852_v29  ;;  %v403_v39 = vadd.f32 %v402_v16, %v368_v14  ;;  %v965_v14 = vpop.f32.mrf.mxu2  ;;  %v379_v15 = vmul.f32 %v866_v36, %v866_v36 }
  0xd9   :  { %v404_v42 = vadd.f32 %v403_v39, %v369_v19  ;;  %v327_v43 = vadd.f32 %v326_v37, %v860_v33  ;;  %v970_v37 = vpop.f32.mrf.mxu3  ;;  %v380_v39 = vmul.f32 %v883_v46, %v883_v46 }
  0xdb   :  { %v328_v47 = vadd.f32 %v327_v43, %v864_v35  ;;  %v405_v48 = vadd.f32 %v404_v42, %v370_v41  ;;  %v381_v43 = vmul.f32 %v904_v0, %v904_v0 }
  0xdd   :  { %v329_v50 = vadd.f32 %v328_v47, %v881_v45  ;;  %v406_v51 = vadd.f32 %v405_v48, %v371_v44  ;;  %v382_v48 = vmul.f32 %v925_v18, %v925_v18 }
  0xdf   :  { %v330_v54 = vadd.f32 %v329_v50, %v902_v63  ;;  %v407_v55 = vadd.f32 %v406_v51, %v372_v49 }
  0xe1   :  { %v331_v58 = vadd.f32 %v330_v54, %v923_v17  ;;  %v408_v60 = vadd.f32 %v407_v55, %v373_v52  ;;  %v383_v52 = vmul.f32 %v946_v57, %v946_v57  ;;  %v984_v55 = vpop.f32.mrf.mxu2 }
  0xe3   :  { %v409_v62 = vadd.f32 %v408_v60, %v374_v59  ;;  %v332_v1 = vadd.f32 %v331_v58, %v944_v56  ;;  %v384_v60 = vmul.f32 %v965_v14, %v965_v14 }
  0xe5   :  { %v333_v6 = vadd.f32 %v332_v1, %v844_v25  ;;  %v410_v7 = vadd.f32 %v409_v62, %v375_v2  ;;  %v989_v62 = vpop.f32.mrf.mxu3 }
  0xe7   :  { %v334_v9 = vadd.f32 %v333_v6, %v850_v28  ;;  %v411_v10 = vadd.f32 %v410_v7, %v376_v5  ;;  %v385_v5 = vmul.f32 %v984_v55, %v984_v55  ;;  %v386_v6 = vmul.f32 %v909_v4, %v909_v4 }
  0xe9   :  { %v335_v12 = vadd.f32 %v334_v9, %v856_v31  ;;  %v412_v13 = vadd.f32 %v411_v10, %v377_v8  ;;  %v387_v9 = vmul.f32 %v930_v40, %v930_v40 }
  0xeb   :  { %v336_v16 = vadd.f32 %v335_v12, %v866_v36  ;;  %v413_v19 = vadd.f32 %v412_v13, %v378_v11  ;;  %v388_v12 = vmul.f32 %v951_v61, %v951_v61 }
  0xed   :  { %v414_v41 = vadd.f32 %v413_v19, %v379_v15  ;;  %v337_v42 = vadd.f32 %v336_v16, %v883_v46  ;;  %v389_v16 = vmul.f32 %v970_v37, %v970_v37 }
  0xef   :  { %v338_v44 = vadd.f32 %v337_v42, %v904_v0  ;;  %v415_v47 = vadd.f32 %v414_v41, %v380_v39  ;;  %v1006_v41 = vpop.f32.mrf.mxu3 }
  0xf1   :  { %v339_v49 = vadd.f32 %v338_v44, %v925_v18  ;;  %v416_v50 = vadd.f32 %v415_v47, %v381_v43  ;;  %v390_v43 = vmul.f32 %v989_v62, %v989_v62 }
  0xf3   :  { %v340_v51 = vadd.f32 %v339_v49, %v946_v57  ;;  %v417_v54 = vadd.f32 %v416_v50, %v382_v48  ;;  %v391_v49 = vmul.f32 %v1006_v41, %v1006_v41 }
  0xf5   :  { %v418_v58 = vadd.f32 %v417_v54, %v383_v52  ;;  %v341_v59 = vadd.f32 %v340_v51, %v965_v14 }
  0xf7   :  { %v419_v1 = vadd.f32 %v418_v58, %v384_v60  ;;  %v342_v2 = vadd.f32 %v341_v59, %v984_v55 }
  0xf9   :  { %v343_v7 = vadd.f32 %v342_v2, %v909_v4  ;;  %v420_v8 = vadd.f32 %v419_v1, %v385_v5 }
  0xfb   :  { %v344_v10 = vadd.f32 %v343_v7, %v930_v40  ;;  %v421_v11 = vadd.f32 %v420_v8, %v386_v6 }
  0xfd   :  { %v422_v13 = vadd.f32 %v421_v11, %v387_v9  ;;  %v345_v15 = vadd.f32 %v344_v10, %v951_v61 }
  0xff   :  { %v346_v19 = vadd.f32 %v345_v15, %v970_v37  ;;  %v423_v39 = vadd.f32 %v422_v13, %v388_v12 }
 0x101   :  { %v347_v42 = vadd.f32 %v346_v19, %v989_v62  ;;  %v424_v44 = vadd.f32 %v423_v39, %v389_v16 }
 0x103   :  { %v425_v47 = vadd.f32 %v424_v44, %v390_v43  ;;  %v348_v48 = vadd.f32 %v347_v42, %v1006_v41 }
 0x105   :  { %v349_v50 = vrot.slane %v348_v48, 4  ;;  %v426_v51 = vadd.f32 %v425_v47, %v391_v49 }
 0x107   :  { %v350_v52 = vadd.f32 %v349_v50, %v348_v48  ;;  %v427_v54 = vrot.slane %v426_v51, 4  ;;  %v448_v48 = vld [vmem:[%s1242_s2] sm:$0x1] }
 0x109   :  { %v351_v58 = vrot.slane %v350_v52, 2  ;;  %v428_v59 = vadd.f32 %v427_v54, %v426_v51  ;;  %v450_v51 = vld [vmem:[%s1243_s3] sm:$0x1] }
 0x10b   :  { %v352_v60 = vadd.f32 %v351_v58, %v350_v52  ;;  %v429_v1 = vrot.slane %v428_v59, 2 }
 0x10d   :  { %v353_v2 = vrot.slane %v352_v60, 1  ;;  %v430_v5 = vadd.f32 %v429_v1, %v428_v59 }
 0x10f   :  { %v354_v6 = vadd.f32 %v353_v2, %v352_v60  ;;  %v431_v7 = vrot.slane %v430_v5, 1 }
 0x111   :  { %v355_v8 = vmul.f32 0.0034722222, %v354_v6  ;;  %v432_v9 = vadd.f32 %v431_v7, %v430_v5 }
 0x113   :  { %v433_v10 = vmul.f32 0.0034722222, %v432_v9  ;;  %v434_v11 = vmul.f32 %v355_v8, %v355_v8 }
 0x115   :  { %v435_v12 = vsub.f32 %v433_v10, %v434_v11 }
 0x117   :  { %v436_v13 = vmax.f32 %v435_v12, 0.0 }
 0x119   :  { %v437_v15 = vadd.f32 1e-05, %v436_v13 }
 0x11b   :  { %729 = vrsqrt.f32 %v437_v15  ;;  %vm444_vm2 = vweird.f32 %v437_v15 }
 0x121   :  { %v730_v16 = vpop.eup %729 }
 0x122   :  { %v439_v19 = vmul.f32 %v730_v16, %v437_v15  ;;  %vm445_vm1 = vweird.f32 %v730_v16 }
 0x123   :  { %vm446_vm3 = vmor %vm444_vm2, %vm445_vm1 }
 0x124   :  { %v440_v39 = vmul.f32 %v730_v16, %v439_v19 }
 0x126   :  { %v441_v42 = vmul.f32 0.5, %v440_v39 }
 0x128   :  { %v442_v43 = vsub.f32 1.5, %v441_v42 }
 0x12a   :  { %v443_v44 = vmul.f32 %v730_v16, %v442_v43 }
 0x12c   :  { %v447_v47 = vsel %vm446_vm3, %v730_v16, %v443_v44 }
 0x12d   :  { %v449_v49 = vmul.f32 %v448_v48, %v447_v47 }
 0x12f   :  { %v451_v50 = vmul.f32 %v449_v49, %v355_v8  ;;  %v1020_v54 = vperm.slane %v449_v49, 0 }
 0x131   :  { %v452_v52 = vsub.f32 %v450_v51, %v451_v50  ;;  %v454_v59 = vmul.f32 %v1020_v54, %v834_v20  ;;  %v455_v60 = vmul.f32 %v1020_v54, %v838_v22  ;;  %v456_v1 = vmul.f32 %v1020_v54, %v842_v24 }
 0x132   :  { %v457_v2 = vmul.f32 %v1020_v54, %v848_v27  ;;  %v458_v5 = vmul.f32 %v1020_v54, %v854_v30  ;;  %v459_v20 = vmul.f32 %v1020_v54, %v858_v32  ;;  %v460_v24 = vmul.f32 %v1020_v54, %v862_v34 }
 0x133   :  { %v1022_v58 = vperm.slane %v452_v52, 0  ;;  %v461_v27 = vmul.f32 %v1020_v54, %v870_v38  ;;  %v462_v30 = vmul.f32 %v1020_v54, %v891_v53  ;;  %v463_v15 = vmul.f32 %v1020_v54, %v907_v3 }
 0x134   :  { %v464_v19 = vmul.f32 %v1020_v54, %v836_v21  ;;  %v465_v53 = vmul.f32 %v1020_v54, %v840_v23  ;;  %v466_v21 = vmul.f32 %v1020_v54, %v846_v26  ;;  %v467_v23 = vmul.f32 %v1020_v54, %v852_v29 }
 0x135   :  { %v493_v6 = vadd.f32 %v1022_v58, %v454_v59  ;;  %v494_v7 = vadd.f32 %v1022_v58, %v455_v60  ;;  %v495_v8 = vadd.f32 %v1022_v58, %v456_v1  ;;  %v496_v22 = vadd.f32 %v1022_v58, %v457_v2 }
 0x136   :  { %v497_v9 = vadd.f32 %v1022_v58, %v458_v5  ;;  %v498_v10 = vadd.f32 %v1022_v58, %v459_v20  ;;  %v499_v11 = vadd.f32 %v1022_v58, %v460_v24  ;;  %v500_v34 = vadd.f32 %v1022_v58, %v461_v27 }
 0x137   :  { %v529_v12 = vmax.f32 %v493_v6, 0.0  ;;  %v530_v13 = vmax.f32 %v494_v7, 0.0  ;;  %v531_v32 = vmax.f32 %v495_v8, 0.0  ;;  %v532_v16 = vmax.f32 %v496_v22, 0.0 }
 0x138   :  { %v501_v38 = vadd.f32 %v1022_v58, %v462_v30  ;;  %v533_v39 = vmax.f32 %v497_v9, 0.0  ;;  %v502_v42 = vadd.f32 %v1022_v58, %v463_v15  ;;  %v534_v43 = vmax.f32 %v498_v10, 0.0 }
 0x139   :  { %565 = vst [vmem:[%s1244_s4] sm:$0xff] %v529_v12  ;;  %v503_v3 = vadd.f32 %v1022_v58, %v464_v19  ;;  %v535_v44 = vmax.f32 %v499_v11, 0.0  ;;  %v504_v47 = vadd.f32 %v1022_v58, %v465_v53  ;;  %v536_v48 = vmax.f32 %v500_v34, 0.0 }
 0x13a   :  { %566 = vst [vmem:[%s1244_s4 + $0x8] sm:$0xff] %v530_v13  ;;  %v468_v26 = vmul.f32 %v1020_v54, %v860_v33  ;;  %v505_v49 = vadd.f32 %v1022_v58, %v466_v21  ;;  %v537_v50 = vmax.f32 %v501_v38, 0.0  ;;  %v469_v29 = vmul.f32 %v1020_v54, %v864_v35 }
 0x13b   :  { %567 = vst [vmem:[%s1244_s4 + $0x10] sm:$0xff] %v531_v32  ;;  %v506_v51 = vadd.f32 %v1022_v58, %v467_v23  ;;  %v538_v52 = vmax.f32 %v502_v42, 0.0  ;;  %v470_v33 = vmul.f32 %v1020_v54, %v881_v45  ;;  %v539_v60 = vmax.f32 %v503_v3, 0.0 }
 0x13c   :  { %568 = vst [vmem:[%s1244_s4 + $0x18] sm:$0xff] %v532_v16  ;;  %v507_v59 = vadd.f32 %v1022_v58, %v468_v26  ;;  %v471_v35 = vmul.f32 %v1020_v54, %v902_v63  ;;  %v508_v1 = vadd.f32 %v1022_v58, %v469_v29  ;;  %v540_v2 = vmax.f32 %v504_v47, 0.0 }
 0x13d   :  { %569 = vst [vmem:[%s1244_s4 + $0x20] sm:$0xff] %v533_v39  ;;  %v472_v45 = vmul.f32 %v1020_v54, %v923_v17  ;;  %v509_v5 = vadd.f32 %v1022_v58, %v470_v33  ;;  %v541_v6 = vmax.f32 %v505_v49, 0.0  ;;  %v473_v63 = vmul.f32 %v1020_v54, %v944_v56 }
 0x13e   :  { %570 = vst [vmem:[%s1244_s4 + $0x28] sm:$0xff] %v534_v43  ;;  %v510_v7 = vadd.f32 %v1022_v58, %v471_v35  ;;  %v542_v8 = vmax.f32 %v506_v51, 0.0  ;;  %v474_v17 = vmul.f32 %v1020_v54, %v844_v25  ;;  %v543_v22 = vmax.f32 %v507_v59, 0.0 }
 0x13f   :  { %571 = vst [vmem:[%s1244_s4 + $0x30] sm:$0xff] %v535_v44  ;;  %v511_v20 = vadd.f32 %v1022_v58, %v472_v45  ;;  %v475_v56 = vmul.f32 %v1020_v54, %v850_v28  ;;  %v512_v24 = vadd.f32 %v1022_v58, %v473_v63  ;;  %v544_v9 = vmax.f32 %v508_v1, 0.0 }
 0x140   :  { %572 = vst [vmem:[%s1244_s4 + $0x38] sm:$0xff] %v536_v48  ;;  %v476_v25 = vmul.f32 %v1020_v54, %v856_v31  ;;  %v513_v27 = vadd.f32 %v1022_v58, %v474_v17  ;;  %v545_v30 = vmax.f32 %v509_v5, 0.0  ;;  %v477_v28 = vmul.f32 %v1020_v54, %v866_v36 }
 0x141   :  { %573 = vst [vmem:[%s1244_s4 + $0x40] sm:$0xff] %v537_v50  ;;  %v514_v10 = vadd.f32 %v1022_v58, %v475_v56  ;;  %v546_v11 = vmax.f32 %v510_v7, 0.0  ;;  %v478_v31 = vmul.f32 %v1020_v54, %v883_v46  ;;  %v547_v13 = vmax.f32 %v511_v20, 0.0 }
 0x142   :  { %574 = vst [vmem:[%s1244_s4 + $0x48] sm:$0xff] %v538_v52  ;;  %v515_v12 = vadd.f32 %v1022_v58, %v476_v25  ;;  %v479_v36 = vmul.f32 %v1020_v54, %v904_v0  ;;  %v516_v32 = vadd.f32 %v1022_v58, %v477_v28  ;;  %v548_v15 = vmax.f32 %v512_v24, 0.0 }
 0x143   :  { %575 = vst [vmem:[%s1244_s4 + $0x50] sm:$0xff] %v539_v60  ;;  %v480_v46 = vmul.f32 %v1020_v54, %v925_v18  ;;  %v517_v34 = vadd.f32 %v1022_v58, %v478_v31  ;;  %v549_v16 = vmax.f32 %v513_v27, 0.0  ;;  %v481_v0 = vmul.f32 %v1020_v54, %v946_v57 }
 0x144   :  { %576 = vst [vmem:[%s1244_s4 + $0x58] sm:$0xff] %v540_v2  ;;  %v518_v19 = vadd.f32 %v1022_v58, %v479_v36  ;;  %v550_v38 = vmax.f32 %v514_v10, 0.0  ;;  %v482_v18 = vmul.f32 %v1020_v54, %v965_v14  ;;  %v551_v53 = vmax.f32 %v515_v12, 0.0 }
 0x145   :  { %577 = vst [vmem:[%s1244_s4 + $0x60] sm:$0xff] %v541_v6  ;;  %v519_v39 = vadd.f32 %v1022_v58, %v480_v46  ;;  %v483_v57 = vmul.f32 %v1020_v54, %v984_v55  ;;  %v520_v42 = vadd.f32 %v1022_v58, %v481_v0  ;;  %v552_v43 = vmax.f32 %v516_v32, 0.0 }
 0x146   :  { %578 = vst [vmem:[%s1244_s4 + $0x68] sm:$0xff] %v542_v8  ;;  %v484_v14 = vmul.f32 %v1020_v54, %v909_v4  ;;  %v521_v21 = vadd.f32 %v1022_v58, %v482_v18  ;;  %v553_v3 = vmax.f32 %v517_v34, 0.0  ;;  %v485_v55 = vmul.f32 %v1020_v54, %v930_v40 }
 0x147   :  { %579 = vst [vmem:[%s1244_s4 + $0x70] sm:$0xff] %v543_v22  ;;  %v522_v44 = vadd.f32 %v1022_v58, %v483_v57  ;;  %v554_v23 = vmax.f32 %v518_v19, 0.0  ;;  %v486_v4 = vmul.f32 %v1020_v54, %v951_v61  ;;  %v555_v48 = vmax.f32 %v519_v39, 0.0 }
 0x148   :  { %580 = vst [vmem:[%s1244_s4 + $0x78] sm:$0xff] %v544_v9  ;;  %v523_v47 = vadd.f32 %v1022_v58, %v484_v14  ;;  %v487_v40 = vmul.f32 %v1020_v54, %v970_v37  ;;  %v524_v26 = vadd.f32 %v1022_v58, %v485_v55  ;;  %v556_v49 = vmax.f32 %v520_v42, 0.0 }
 0x149   :  { %581 = vst [vmem:[%s1244_s4 + $0x80] sm:$0xff] %v545_v30  ;;  %v488_v61 = vmul.f32 %v1020_v54, %v989_v62  ;;  %v525_v50 = vadd.f32 %v1022_v58, %v486_v4  ;;  %v557_v29 = vmax.f32 %v521_v21, 0.0  ;;  %v489_v37 = vmul.f32 %v1020_v54, %v1006_v41 }
 0x14a   :  { %582 = vst [vmem:[%s1244_s4 + $0x88] sm:$0xff] %v546_v11  ;;  %v526_v51 = vadd.f32 %v1022_v58, %v487_v40  ;;  %v558_v52 = vmax.f32 %v522_v44, 0.0  ;;  %v559_v62 = vmax.f32 %v523_v47, 0.0  ;;  %v560_v60 = vmax.f32 %v524_v26, 0.0 }
 0x14b   :  { %583 = vst [vmem:[%s1244_s4 + $0x90] sm:$0xff] %v547_v13  ;;  %v527_v33 = vadd.f32 %v1022_v58, %v488_v61  ;;  %v528_v59 = vadd.f32 %v1022_v58, %v489_v37  ;;  %v561_v41 = vmax.f32 %v525_v50, 0.0 }
 0x14c   :  { %584 = vst [vmem:[%s1244_s4 + $0x98] sm:$0xff] %v548_v15  ;;  %v562_v54 = vmax.f32 %v526_v51, 0.0 }
 0x14d   :  { %585 = vst [vmem:[%s1244_s4 + $0xa0] sm:$0xff] %v549_v16  ;;  %v563_v35 = vmax.f32 %v527_v33, 0.0  ;;  %v564_v58 = vmax.f32 %v528_v59, 0.0 }
 0x14e   :  { %586 = vst [vmem:[%s1244_s4 + $0xa8] sm:$0xff] %v550_v38 }
 0x14f   :  { %587 = vst [vmem:[%s1244_s4 + $0xb0] sm:$0xff] %v551_v53 }
 0x150   :  { %588 = vst [vmem:[%s1244_s4 + $0xb8] sm:$0xff] %v552_v43 }
 0x151   :  { %589 = vst [vmem:[%s1244_s4 + $0xc0] sm:$0xff] %v553_v3 }
 0x152   :  { %590 = vst [vmem:[%s1244_s4 + $0xc8] sm:$0xff] %v554_v23 }
 0x153   :  { %591 = vst [vmem:[%s1244_s4 + $0xd0] sm:$0xff] %v555_v48 }
 0x154   :  { %592 = vst [vmem:[%s1244_s4 + $0xd8] sm:$0xff] %v556_v49 }
 0x155   :  { %593 = vst [vmem:[%s1244_s4 + $0xe0] sm:$0xff] %v557_v29 }
 0x156   :  { %594 = vst [vmem:[%s1244_s4 + $0xe8] sm:$0xff] %v558_v52 }
 0x157   :  { %595 = vst [vmem:[%s1244_s4 + $0xf0] sm:$0xff] %v559_v62 }
 0x158   :  { %596 = vst [vmem:[%s1244_s4 + $0xf8] sm:$0xff] %v560_v60 }
 0x159   :  { %597 = vst [vmem:[%s1244_s4 + $0x100] sm:$0xff] %v561_v41 }
 0x15a   :  { %598 = vst [vmem:[%s1244_s4 + $0x108] sm:$0xff] %v562_v54 }
 0x15b   :  { %599 = vst [vmem:[%s1244_s4 + $0x110] sm:$0xff] %v563_v35 }
 0x15c   :  { %600 = vst [vmem:[%s1244_s4 + $0x118] sm:$0xff] %v564_v58 }

// kernel: reverse.2
= control target key start
LH: loop header
LB: loop body
LE: loop exit
PB: predicated region body
PF: predicated region fallthrough
CT: control target
= control target key end

     0   :  { %s344_s0 = inlined_call_operand.vmem [shape: f32[2,16,16,7], index: 0, kind: input, shape index: {}]   ;;  %s345_s1 = inlined_call_operand.vmem [shape: f32[2,16,16,7], index: 1, kind: output, shape index: {}]  }
   0x1   :  { %v112_v0 = vld [vmem:[%s344_s0 + $0x60] sm:$0xff]  ;;  %v113_v1 = vld [vmem:[%s344_s0 + $0xd0] sm:$0xff]  ;;  %v138_v14 = vld [vmem:[%s344_s0 + $0x68] sm:$0xff] }
   0x2   :  { %v115_v2 = vld [vmem:[%s344_s0 + $0x50] sm:$0xff]  ;;  %4 = vst [vmem:[%s345_s1] sm:$0xff] %v112_v0  ;;  %v117_v3 = vld [vmem:[%s344_s0 + $0xc0] sm:$0xff]  ;;  %v140_v15 = vld [vmem:[%s344_s0 + $0xd8] sm:$0xff] }
   0x3   :  { %114 = vst [vmem:[%s345_s1 + $0x70] sm:$0xff] %v113_v1  ;;  %v119_v4 = vld [vmem:[%s344_s0 + $0x40] sm:$0xff]  ;;  %v121_v5 = vld [vmem:[%s344_s0 + $0xb0] sm:$0xff]  ;;  %v142_v16 = vld [vmem:[%s344_s0 + $0x58] sm:$0xff] }
   0x4   :  { %116 = vst [vmem:[%s345_s1 + $0x10] sm:$0xff] %v115_v2  ;;  %v123_v6 = vld [vmem:[%s344_s0 + $0x30] sm:$0xff]  ;;  %v125_v7 = vld [vmem:[%s344_s0 + $0xa0] sm:$0xff]  ;;  %v144_v17 = vld [vmem:[%s344_s0 + $0xc8] sm:$0xff] }
   0x5   :  { %118 = vst [vmem:[%s345_s1 + $0x80] sm:$0xff] %v117_v3  ;;  %v127_v8 = vld [vmem:[%s344_s0 + $0x20] sm:$0xff]  ;;  %v129_v9 = vld [vmem:[%s344_s0 + $0x90] sm:$0xff]  ;;  %v146_v18 = vld [vmem:[%s344_s0 + $0x48] sm:$0xff] }
   0x6   :  { %120 = vst [vmem:[%s345_s1 + $0x20] sm:$0xff] %v119_v4  ;;  %v131_v10 = vld [vmem:[%s344_s0 + $0x10] sm:$0xff]  ;;  %v133_v11 = vld [vmem:[%s344_s0 + $0x80] sm:$0xff]  ;;  %v148_v19 = vld [vmem:[%s344_s0 + $0xb8] sm:$0xff] }
   0x7   :  { %122 = vst [vmem:[%s345_s1 + $0x90] sm:$0xff] %v121_v5  ;;  %v49_v12 = vld [vmem:[%s344_s0] sm:$0xff]  ;;  %v136_v13 = vld [vmem:[%s344_s0 + $0x70] sm:$0xff]  ;;  %v150_v20 = vld [vmem:[%s344_s0 + $0x38] sm:$0xff] }
   0x8   :  { %124 = vst [vmem:[%s345_s1 + $0x30] sm:$0xff] %v123_v6  ;;  %v152_v21 = vld [vmem:[%s344_s0 + $0xa8] sm:$0xff]  ;;  %v156_v23 = vld [vmem:[%s344_s0 + $0x98] sm:$0xff] }
   0x9   :  { %126 = vst [vmem:[%s345_s1 + $0xa0] sm:$0xff] %v125_v7  ;;  %v154_v22 = vld [vmem:[%s344_s0 + $0x28] sm:$0xff]  ;;  %v158_v24 = vld [vmem:[%s344_s0 + $0x18] sm:$0xff] }
   0xa   :  { %128 = vst [vmem:[%s345_s1 + $0x40] sm:$0xff] %v127_v8  ;;  %v160_v25 = vld [vmem:[%s344_s0 + $0x88] sm:$0xff]  ;;  %v164_v27 = vld [vmem:[%s344_s0 + $0x78] sm:$0xff] }
   0xb   :  { %130 = vst [vmem:[%s345_s1 + $0xb0] sm:$0xff] %v129_v9  ;;  %v162_v26 = vld [vmem:[%s344_s0 + $0x8] sm:$0xff] }
   0xc   :  { %132 = vst [vmem:[%s345_s1 + $0x50] sm:$0xff] %v131_v10 }
   0xd   :  { %134 = vst [vmem:[%s345_s1 + $0xc0] sm:$0xff] %v133_v11 }
   0xe   :  { %135 = vst [vmem:[%s345_s1 + $0x60] sm:$0xff] %v49_v12 }
   0xf   :  { %137 = vst [vmem:[%s345_s1 + $0xd0] sm:$0xff] %v136_v13 }
  0x10   :  { %139 = vst [vmem:[%s345_s1 + $0x8] sm:$0xff] %v138_v14 }
  0x11   :  { %141 = vst [vmem:[%s345_s1 + $0x78] sm:$0xff] %v140_v15 }
  0x12   :  { %143 = vst [vmem:[%s345_s1 + $0x18] sm:$0xff] %v142_v16 }
  0x13   :  { %145 = vst [vmem:[%s345_s1 + $0x88] sm:$0xff] %v144_v17 }
  0x14   :  { %147 = vst [vmem:[%s345_s1 + $0x28] sm:$0xff] %v146_v18 }
  0x15   :  { %149 = vst [vmem:[%s345_s1 + $0x98] sm:$0xff] %v148_v19 }
  0x16   :  { %151 = vst [vmem:[%s345_s1 + $0x38] sm:$0xff] %v150_v20 }
  0x17   :  { %153 = vst [vmem:[%s345_s1 + $0xa8] sm:$0xff] %v152_v21 }
  0x18   :  { %155 = vst [vmem:[%s345_s1 + $0x48] sm:$0xff] %v154_v22 }
  0x19   :  { %157 = vst [vmem:[%s345_s1 + $0xb8] sm:$0xff] %v156_v23 }
  0x1a   :  { %159 = vst [vmem:[%s345_s1 + $0x58] sm:$0xff] %v158_v24 }
  0x1b   :  { %161 = vst [vmem:[%s345_s1 + $0xc8] sm:$0xff] %v160_v25 }
  0x1c   :  { %163 = vst [vmem:[%s345_s1 + $0x68] sm:$0xff] %v162_v26 }
  0x1d   :  { %165 = vst [vmem:[%s345_s1 + $0xd8] sm:$0xff] %v164_v27 }

// kernel: reverse.3
= control target key start
LH: loop header
LB: loop body
LE: loop exit
PB: predicated region body
PF: predicated region fallthrough
CT: control target
= control target key end

     0   :  { %s80_s0 = inlined_call_operand.vmem [shape: f32[2,16,8,3], index: 0, kind: input, shape index: {}]   ;;  %s81_s1 = inlined_call_operand.vmem [shape: f32[2,16,8,3], index: 1, kind: output, shape index: {}]  }
   0x1   :  { %v24_v0 = vld [vmem:[%s80_s0 + $0x10] sm:$0xff]  ;;  %v25_v1 = vld [vmem:[%s80_s0 + $0x28] sm:$0xff]  ;;  %v29_v3 = vld [vmem:[%s80_s0 + $0x20] sm:$0xff] }
   0x2   :  { %v27_v2 = vld [vmem:[%s80_s0 + $0x8] sm:$0xff]  ;;  %4 = vst [vmem:[%s81_s1] sm:$0xff] %v24_v0  ;;  %v17_v4 = vld [vmem:[%s80_s0] sm:$0xff]  ;;  %v32_v5 = vld [vmem:[%s80_s0 + $0x18] sm:$0xff] }
   0x3   :  { %26 = vst [vmem:[%s81_s1 + $0x18] sm:$0xff] %v25_v1 }
   0x4   :  { %28 = vst [vmem:[%s81_s1 + $0x8] sm:$0xff] %v27_v2 }
   0x5   :  { %30 = vst [vmem:[%s81_s1 + $0x20] sm:$0xff] %v29_v3 }
   0x6   :  { %31 = vst [vmem:[%s81_s1 + $0x10] sm:$0xff] %v17_v4 }
   0x7   :  { %33 = vst [vmem:[%s81_s1 + $0x28] sm:$0xff] %v32_v5 }

// kernel: forward.6
= control target key start
LH: loop header
LB: loop body
LE: loop exit
PB: predicated region body
PF: predicated region fallthrough
CT: control target
= control target key end

     0   :  { %vm69_vm0 = vcmask 261120   ;;  %s412_s1 = inlined_call_operand.vmem [shape: bf16[32,128], index: 1, kind: input, shape index: {}]   ;;  %s413_s0 = inlined_call_operand.vmem [shape: bf16[80,32], index: 0, kind: input, shape index: {}]   ;;  %s414_s2 = inlined_call_operand.vmem [shape: f32[1,128], index: 2, kind: input, shape index: {}]   ;;  %s415_s3 = inlined_call_operand.vmem [shape: f32[1,128], index: 3, kind: input, shape index: {}]   ;;  %s416_s4 = inlined_call_operand.vmem [shape: f32[80,128], index: 4, kind: output, shape index: {}]  }
   0x1   :  { %v267_v0 = vld [vmem:[%s412_s1 + $0x8] sm:$0xff]  ;;  %v266_v1 = vld [vmem:[%s412_s1] sm:$0xff]  ;;  %v263_v3 = vld [vmem:[%s413_s0 + $0x10] sm:$0xff] }
   0x2   :  { %91 = vmatpush.bf16.msra.mxu0 %v267_v0  ;;  %269 = vmatpush.bf16.msra.mxu2 %v267_v0  ;;  %v261_v2 = vld [vmem:[%s413_s0] sm:$0xff]  ;;  %v262_v4 = vld [vmem:[%s413_s0 + $0x8] sm:$0xff]  ;;  %v264_v6 = vld [vmem:[%s413_s0 + $0x18] sm:$0xff] }
   0x3   :  { %268 = vmatpush.bf16.msra.mxu1 %v267_v0  ;;  %270 = vmatpush.bf16.msra.mxu3 %v267_v0  ;;  %v265_v5 = vld [vmem:[%s413_s0 + $0x20] sm:$0xff] }
   0x6   :  { %92 = vmatpush.bf16.msra.mxu0 %v266_v1  ;;  %272 = vmatpush.bf16.msra.mxu2 %v266_v1 }
   0x7   :  { %271 = vmatpush.bf16.msra.mxu1 %v266_v1  ;;  %273 = vmatpush.bf16.msra.mxu3 %v266_v1 }
   0x9   :  { %256 = vmatmul.msk.bf16.vlgmr.msra.gmra.mxu0 %vm69_vm0, %v261_v2  ;;  %258 = vmatmul.msk.bf16.vlgmr.msra.gmra.mxu2 %vm69_vm0, %v263_v3 }
   0xa   :  { %257 = vmatmul.msk.bf16.vlgmr.msra.gmra.mxu1 %vm69_vm0, %v262_v4  ;;  %260 = vmatmul.msk.bf16.vlgmr.msra.gmra.mxu3 %vm69_vm0, %v265_v5  ;;  %v175_v5 = vld [vmem:[%s414_s2] sm:$0x1] }
  0x19   :  { %259 = vmatmul.msk.bf16.gmra.mxu2 %vm69_vm0, %v264_v6 }
  0x86   :  { %v322_v7 = vpop.f32.mrf.mxu0 }
  0x87   :  { %v324_v8 = vpop.f32.mrf.mxu1  ;;  %v135_v11 = vmul.f32 %v322_v7, %v322_v7 }
  0x88   :  { %v137_v14 = vmul.f32 %v324_v8, %v324_v8 }
  0x8c   :  { %v326_v9 = vpop.f32.mrf.mxu2 }
  0x8d   :  { %v346_v23 = vpop.f32.mrf.mxu3  ;;  %v139_v25 = vmul.f32 %v326_v9, %v326_v9 }
  0x8e   :  { %v328_v10 = vpop.f32.mrf.mxu0  ;;  %v143_v38 = vmul.f32 %v346_v23, %v346_v23 }
  0x8f   :  { %v136_v12 = vmul.f32 %v328_v10, %v328_v10  ;;  %v119_v13 = vadd.f32 %v328_v10, %v322_v7  ;;  %v338_v16 = vpop.f32.mrf.mxu1 }
  0x90   :  { %v138_v19 = vmul.f32 %v338_v16, %v338_v16 }
  0x91   :  { %v145_v15 = vadd.f32 %v136_v12, %v135_v11  ;;  %v120_v18 = vadd.f32 %v119_v13, %v324_v8  ;;  %v177_v12 = vld [vmem:[%s415_s3] sm:$0x1] }
  0x93   :  { %v146_v20 = vadd.f32 %v145_v15, %v137_v14  ;;  %v121_v21 = vadd.f32 %v120_v18, %v338_v16 }
  0x94   :  { %v340_v17 = vpop.f32.mrf.mxu2 }
  0x95   :  { %v147_v22 = vadd.f32 %v146_v20, %v138_v19  ;;  %v122_v26 = vadd.f32 %v121_v21, %v326_v9  ;;  %v140_v29 = vmul.f32 %v340_v17, %v340_v17  ;;  %v359_v37 = vpop.f32.mrf.mxu3 }
  0x96   :  { %v144_v41 = vmul.f32 %v359_v37, %v359_v37 }
  0x97   :  { %v148_v27 = vadd.f32 %v147_v22, %v139_v25  ;;  %v123_v28 = vadd.f32 %v122_v26, %v340_v17 }
  0x99   :  { %v149_v31 = vadd.f32 %v148_v27, %v140_v29 }
  0x9c   :  { %v348_v24 = vpop.f32.mrf.mxu2 }
  0x9d   :  { %v141_v30 = vmul.f32 %v348_v24, %v348_v24  ;;  %v124_v32 = vadd.f32 %v123_v28, %v348_v24 }
  0x9f   :  { %v150_v34 = vadd.f32 %v149_v31, %v141_v30 }
  0xa4   :  { %v111_v33 = vpop.f32.mrf.mxu2 }
  0xa5   :  { %v125_v35 = vadd.f32 %v124_v32, %v111_v33  ;;  %v142_v36 = vmul.f32 %v111_v33, %v111_v33 }
  0xa7   :  { %v126_v39 = vadd.f32 %v125_v35, %v346_v23  ;;  %v151_v40 = vadd.f32 %v150_v34, %v142_v36 }
  0xa9   :  { %v127_v42 = vadd.f32 %v126_v39, %v359_v37  ;;  %v152_v43 = vadd.f32 %v151_v40, %v143_v38 }
  0xab   :  { %v128_v44 = vrot.slane %v127_v42, 4  ;;  %v153_v45 = vadd.f32 %v152_v43, %v144_v41 }
  0xad   :  { %v129_v46 = vadd.f32 %v128_v44, %v127_v42  ;;  %v154_v47 = vrot.slane %v153_v45, 4 }
  0xaf   :  { %v130_v48 = vrot.slane %v129_v46, 2  ;;  %v155_v49 = vadd.f32 %v154_v47, %v153_v45 }
  0xb1   :  { %v131_v50 = vadd.f32 %v130_v48, %v129_v46  ;;  %v156_v51 = vrot.slane %v155_v49, 2 }
  0xb3   :  { %v132_v52 = vrot.slane %v131_v50, 1  ;;  %v157_v53 = vadd.f32 %v156_v51, %v155_v49 }
  0xb5   :  { %v133_v54 = vadd.f32 %v132_v52, %v131_v50  ;;  %v158_v55 = vrot.slane %v157_v53, 1 }
  0xb7   :  { %v134_v56 = vmul.f32 0.0125, %v133_v54  ;;  %v159_v57 = vadd.f32 %v158_v55, %v157_v53 }
  0xb9   :  { %v160_v58 = vmul.f32 0.0125, %v159_v57  ;;  %v161_v59 = vmul.f32 %v134_v56, %v134_v56 }
  0xbb   :  { %v162_v60 = vsub.f32 %v160_v58, %v161_v59 }
  0xbd   :  { %v163_v61 = vmax.f32 %v162_v60, 0.0 }
  0xbf   :  { %v164_v62 = vadd.f32 1e-05, %v163_v61 }
  0xc1   :  { %274 = vrsqrt.f32 %v164_v62  ;;  %vm171_vm2 = vweird.f32 %v164_v62 }
  0xc7   :  { %v275_v63 = vpop.eup %274 }
  0xc8   :  { %v166_v0 = vmul.f32 %v275_v63, %v164_v62  ;;  %vm172_vm1 = vweird.f32 %v275_v63 }
  0xc9   :  { %vm173_vm3 = vmor %vm171_vm2, %vm172_vm1 }
  0xca   :  { %v167_v1 = vmul.f32 %v275_v63, %v166_v0 }
  0xcc   :  { %v168_v2 = vmul.f32 0.5, %v167_v1 }
  0xce   :  { %v169_v3 = vsub.f32 1.5, %v168_v2 }
  0xd0   :  { %v170_v4 = vmul.f32 %v275_v63, %v169_v3 }
  0xd2   :  { %v174_v6 = vsel %vm173_vm3, %v275_v63, %v170_v4 }
  0xd3   :  { %v176_v11 = vmul.f32 %v175_v5, %v174_v6 }
  0xd5   :  { %v178_v13 = vmul.f32 %v176_v11, %v134_v56  ;;  %v180_v14 = vperm.slane %v176_v11, 0 }
  0xd7   :  { %v179_v15 = vsub.f32 %v177_v12, %v178_v13  ;;  %v181_v18 = vmul.f32 %v180_v14, %v322_v7  ;;  %v182_v19 = vmul.f32 %v180_v14, %v328_v10  ;;  %v183_v20 = vmul.f32 %v180_v14, %v324_v8 }
  0xd8   :  { %v184_v21 = vmul.f32 %v180_v14, %v338_v16  ;;  %v185_v25 = vmul.f32 %v180_v14, %v326_v9  ;;  %v186_v26 = vmul.f32 %v180_v14, %v340_v17  ;;  %v187_v27 = vmul.f32 %v180_v14, %v348_v24 }
  0xd9   :  { %v192_v22 = vperm.slane %v179_v15, 0  ;;  %v188_v32 = vmul.f32 %v180_v14, %v111_v33  ;;  %v189_v10 = vmul.f32 %v180_v14, %v346_v23  ;;  %v190_v16 = vmul.f32 %v180_v14, %v359_v37 }
  0xdb   :  { %v194_v28 = vadd.f32 %v192_v22, %v181_v18  ;;  %v195_v29 = vadd.f32 %v192_v22, %v182_v19  ;;  %v196_v30 = vadd.f32 %v192_v22, %v183_v20  ;;  %v197_v31 = vadd.f32 %v192_v22, %v184_v21 }
  0xdc   :  { %v198_v34 = vadd.f32 %v192_v22, %v185_v25  ;;  %v199_v7 = vadd.f32 %v192_v22, %v186_v26  ;;  %v200_v35 = vadd.f32 %v192_v22, %v187_v27  ;;  %v201_v38 = vadd.f32 %v192_v22, %v188_v32 }
  0xdd   :  { %v204_v8 = vmax.f32 %v194_v28, 0.0  ;;  %v205_v36 = vmax.f32 %v195_v29, 0.0  ;;  %v206_v9 = vmax.f32 %v196_v30, 0.0  ;;  %v207_v39 = vmax.f32 %v197_v31, 0.0 }
  0xde   :  { %v202_v17 = vadd.f32 %v192_v22, %v189_v10  ;;  %v208_v40 = vmax.f32 %v198_v34, 0.0  ;;  %v203_v24 = vadd.f32 %v192_v22, %v190_v16  ;;  %v209_v33 = vmax.f32 %v199_v7, 0.0 }
  0xdf   :  { %214 = vst [vmem:[%s416_s4] sm:$0xff] %v204_v8  ;;  %v210_v23 = vmax.f32 %v200_v35, 0.0  ;;  %v211_v37 = vmax.f32 %v201_v38, 0.0 }
  0xe0   :  { %215 = vst [vmem:[%s416_s4 + $0x8] sm:$0xff] %v205_v36  ;;  %v212_v41 = vmax.f32 %v202_v17, 0.0  ;;  %v213_v42 = vmax.f32 %v203_v24, 0.0 }
  0xe1   :  { %216 = vst [vmem:[%s416_s4 + $0x10] sm:$0xff] %v206_v9 }
  0xe2   :  { %217 = vst [vmem:[%s416_s4 + $0x18] sm:$0xff] %v207_v39 }
  0xe3   :  { %218 = vst [vmem:[%s416_s4 + $0x20] sm:$0xff] %v208_v40 }
  0xe4   :  { %219 = vst [vmem:[%s416_s4 + $0x28] sm:$0xff] %v209_v33 }
  0xe5   :  { %220 = vst [vmem:[%s416_s4 + $0x30] sm:$0xff] %v210_v23 }
  0xe6   :  { %221 = vst [vmem:[%s416_s4 + $0x38] sm:$0xff] %v211_v37 }
  0xe7   :  { %222 = vst [vmem:[%s416_s4 + $0x40] sm:$0xff] %v212_v41 }
  0xe8   :  { %223 = vst [vmem:[%s416_s4 + $0x48] sm:$0xff] %v213_v42 }

// kernel: forward.7
= control target key start
LH: loop header
LB: loop body
LE: loop exit
PB: predicated region body
PF: predicated region fallthrough
CT: control target
= control target key end

     0   :  { %vm643_vm0 = vcmask 130048   ;;  %vm330_vm1 = vcmask 523264   ;;  %s9031_s1 = inlined_call_operand.vmem [shape: bf16[576,128], index: 1, kind: input, shape index: {}]   ;;  %s9032_s3 = inlined_call_operand.vmem [shape: bf16[16,128], index: 3, kind: input, shape index: {}]   ;;  %s9033_s2 = inlined_call_operand.vmem [shape: bf16[512,16], index: 2, kind: input, shape index: {}]   ;;  %s9034_s0 = inlined_call_operand.vmem [shape: bf16[576,192], index: 0, kind: input, shape index: {}]   ;;  %s9035_s4 = inlined_call_operand.vmem [shape: f32[1,128], index: 4, kind: input, shape index: {}]   ;;  %s9036_s5 = inlined_call_operand.vmem [shape: f32[1,128], index: 5, kind: input, shape index: {}]   ;;  %s9037_s6 = inlined_call_operand.vmem [shape: f32[512,128], index: 6, kind: output, shape index: {}]  }
   0x1   :  { %v5661_v0 = vld [vmem:[%s9031_s1 + $0x38] sm:$0xff]  ;;  %v5621_v2 = vld [vmem:[%s9032_s3] sm:$0xff]  ;;  %v5660_v5 = vld [vmem:[%s9031_s1 + $0x30] sm:$0xff] }
   0x2   :  { %v5952_v1 = vld [vmem:[%s9031_s1 + $0x58] sm:$0xff]  ;;  %379 = vmatpush.bf16.msra.mxu0 %v5661_v0  ;;  %v5605_v4 = vld [vmem:[%s9033_s2] sm:$0xff]  ;;  %699 = vmatpush.bf16.msra.mxu2 %v5621_v2  ;;  %v5664_v6 = vld [vmem:[%s9031_s1 + $0x50] sm:$0xff] }
   0x3   :  { %v5709_v3 = vld [vmem:[%s9031_s1 + $0xb8] sm:$0xff]  ;;  %5903 = vmatpush.bf16.msra.mxu1 %v5952_v1  ;;  %5907 = vmatpush.bf16.msra.mxu3 %v5621_v2  ;;  %v5614_v7 = vld [vmem:[%s9033_s2 + $0x48] sm:$0xff]  ;;  %v5704_v11 = vld [vmem:[%s9031_s1 + $0x90] sm:$0xff] }
   0x4   :  { %v5705_v8 = vld [vmem:[%s9031_s1 + $0x98] sm:$0xff]  ;;  %v5659_v9 = vld [vmem:[%s9031_s1 + $0x28] sm:$0xff]  ;;  %v5708_v12 = vld [vmem:[%s9031_s1 + $0xb0] sm:$0xff] }
   0x5   :  { %4545 = vmatmul.msk.bf16.vlgmr.msra.gmra.mxu2 %vm643_vm0, %v5605_v4  ;;  %v5663_v10 = vld [vmem:[%s9031_s1 + $0x48] sm:$0xff]  ;;  %v5658_v13 = vld [vmem:[%s9031_s1 + $0x20] sm:$0xff]  ;;  %v5636_v15 = vld [vmem:[%s9034_s0 + $0x74] sm:$0xf] }
   0x6   :  { %1194 = vmatpush.bf16.msrb.mxu2 %v5709_v3  ;;  %380 = vmatpush.bf16.msra.mxu0 %v5660_v5  ;;  %v5662_v14 = vld [vmem:[%s9031_s1 + $0x40] sm:$0xff]  ;;  %v4345_v16 = vld [vmem:[%s9034_s0 + $0x78] sm:$0xf0]  ;;  %v5703_v18 = vld [vmem:[%s9031_s1 + $0x88] sm:$0xff] }
   0x7   :  { %5904 = vmatpush.bf16.msra.mxu1 %v5664_v6  ;;  %4554 = vmatmul.msk.bf16.vlgmr.msra.gmra.mxu3 %vm643_vm0, %v5614_v7  ;;  %v5749_v17 = vld [vmem:[%s9031_s1 + $0xf8] sm:$0xff]  ;;  %v4348_v19 = vor.u32 %v5636_v15, %v4345_v16  ;;  %v5748_v21 = vld [vmem:[%s9031_s1 + $0xf0] sm:$0xff]  ;;  %v5606_v22 = vld [vmem:[%s9033_s2 + $0x8] sm:$0xff] }
   0x8   :  { %1101 = vmatpush.bf16.msrb.mxu3 %v5705_v8  ;;  %v5657_v20 = vld [vmem:[%s9031_s1 + $0x18] sm:$0xff]  ;;  %v5656_v23 = vld [vmem:[%s9031_s1 + $0x10] sm:$0xff]  ;;  %v5655_v25 = vld [vmem:[%s9031_s1 + $0x8] sm:$0xff] }
   0x9   :  { %v5615_v24 = vld [vmem:[%s9033_s2 + $0x50] sm:$0xff]  ;;  %v5702_v26 = vld [vmem:[%s9031_s1 + $0x80] sm:$0xff]  ;;  %v5747_v27 = vld [vmem:[%s9031_s1 + $0xe8] sm:$0xff] }
   0xa   :  { %381 = vmatpush.bf16.msra.mxu0 %v5659_v9  ;;  %1195 = vmatpush.bf16.msrb.mxu2 %v5708_v12  ;;  %v5654_v28 = vld [vmem:[%s9031_s1] sm:$0xff]  ;;  %v5623_v30 = vld [vmem:[%s9034_s0 + $0x4] sm:$0xf0]  ;;  %v4353_v32 = vld [vmem:[%s9034_s0 + $0x88] sm:$0xf0] }
   0xb   :  { %5905 = vmatpush.bf16.msra.mxu1 %v5663_v10  ;;  %v4287_v29 = vld [vmem:[%s9034_s0] sm:$0xf]  ;;  %v5638_v31 = vld [vmem:[%s9034_s0 + $0x84] sm:$0xf]  ;;  %v5607_v35 = vld [vmem:[%s9033_s2 + $0x10] sm:$0xff] }
   0xc   :  { %1102 = vmatpush.bf16.msrb.mxu3 %v5704_v11  ;;  %v4288_v33 = vor.u32 %v5623_v30, %v4287_v29  ;;  %v4356_v34 = vor.u32 %v5638_v31, %v4353_v32  ;;  %v5616_v36 = vld [vmem:[%s9033_s2 + $0x58] sm:$0xff]  ;;  %v5707_v38 = vld [vmem:[%s9031_s1 + $0xa8] sm:$0xff]  ;;  %v4295_v39 = vld [vmem:[%s9034_s0 + $0x10] sm:$0xf] }
   0xd   :  { %v5701_v37 = vld [vmem:[%s9031_s1 + $0x78] sm:$0xff]  ;;  %v5640_v41 = vld [vmem:[%s9034_s0 + $0x94] sm:$0xf]  ;;  %v5746_v46 = vld [vmem:[%s9031_s1 + $0xe0] sm:$0xff] }
   0xe   :  { %382 = vmatpush.bf16.msra.mxu0 %v5658_v13  ;;  %1196 = vmatpush.bf16.msrb.mxu2 %v5707_v38  ;;  %v5625_v40 = vld [vmem:[%s9034_s0 + $0x14] sm:$0xf0]  ;;  %v4361_v42 = vld [vmem:[%s9034_s0 + $0x98] sm:$0xf0]  ;;  %v5617_v47 = vld [vmem:[%s9033_s2 + $0x60] sm:$0xff] }
   0xf   :  { %5906 = vmatpush.bf16.msra.mxu1 %v5662_v14  ;;  %v4296_v43 = vor.u32 %v5625_v40, %v4295_v39  ;;  %v4364_v44 = vor.u32 %v5640_v41, %v4361_v42  ;;  %v5608_v45 = vld [vmem:[%s9033_s2 + $0x18] sm:$0xff]  ;;  %v5700_v48 = vld [vmem:[%s9031_s1 + $0x70] sm:$0xff]  ;;  %v4303_v49 = vld [vmem:[%s9034_s0 + $0x20] sm:$0xf] }
  0x10   :  { %1103 = vmatpush.bf16.msrb.mxu3 %v5703_v18  ;;  %v5627_v50 = vld [vmem:[%s9034_s0 + $0x24] sm:$0xf0]  ;;  %v5642_v51 = vld [vmem:[%s9034_s0 + $0xa4] sm:$0xf]  ;;  %v4369_v52 = vld [vmem:[%s9034_s0 + $0xa8] sm:$0xf0] }
  0x11   :  { %v4304_v53 = vor.u32 %v5627_v50, %v4303_v49  ;;  %v4372_v54 = vor.u32 %v5642_v51, %v4369_v52  ;;  %v5609_v55 = vld [vmem:[%s9033_s2 + $0x20] sm:$0xff]  ;;  %v5745_v56 = vld [vmem:[%s9031_s1 + $0xd8] sm:$0xff]  ;;  %v5618_v57 = vld [vmem:[%s9033_s2 + $0x68] sm:$0xff] }
  0x12   :  { %4468 = vmatmul.msk.bf16.vlgmr.msra.gmra.mxu1 %vm330_vm1, %v4348_v19  ;;  %383 = vmatpush.bf16.msra.mxu0 %v5657_v20  ;;  %v5699_v58 = vld [vmem:[%s9031_s1 + $0x68] sm:$0xff]  ;;  %v4311_v59 = vld [vmem:[%s9034_s0 + $0x30] sm:$0xf]  ;;  %v5629_v60 = vld [vmem:[%s9034_s0 + $0x34] sm:$0xf0] }
  0x13   :  { %1631 = vmatpush.bf16.msrb.mxu1 %v5749_v17  ;;  %v5644_v61 = vld [vmem:[%s9034_s0 + $0xb4] sm:$0xf]  ;;  %v4377_v62 = vld [vmem:[%s9034_s0 + $0xb8] sm:$0xf0]  ;;  %v4312_v63 = vor.u32 %v5629_v60, %v4311_v59  ;;  %v5706_v2 = vld [vmem:[%s9031_s1 + $0xa0] sm:$0xff] }
  0x14   :  { %1104 = vmatpush.bf16.msrb.mxu3 %v5702_v26  ;;  %v4380_v0 = vor.u32 %v5644_v61, %v4377_v62  ;;  %v5619_v3 = vld [vmem:[%s9033_s2 + $0x70] sm:$0xff]  ;;  %1197 = vmatpush.bf16.msrb.mxu2 %v5706_v2  ;;  %v5698_v4 = vld [vmem:[%s9031_s1 + $0x60] sm:$0xff]  ;;  %v5631_v7 = vld [vmem:[%s9034_s0 + $0x44] sm:$0xf0] }
  0x15   :  { %4546 = vmatmul.msk.bf16.gmra.mxu2 %vm643_vm0, %v5606_v22  ;;  %v5744_v5 = vld [vmem:[%s9031_s1 + $0xd0] sm:$0xff]  ;;  %v5646_v8 = vld [vmem:[%s9034_s0 + $0xc4] sm:$0xf]  ;;  %v4385_v9 = vld [vmem:[%s9034_s0 + $0xc8] sm:$0xf0] }
  0x16   :  { %384 = vmatpush.bf16.msra.mxu0 %v5656_v23  ;;  %v4388_v11 = vor.u32 %v5646_v8, %v4385_v9  ;;  %v5611_v12 = vld [vmem:[%s9033_s2 + $0x30] sm:$0xff]  ;;  %v5810_v13 = vld [vmem:[%s9031_s1 + $0x38] sm:$0xff]  ;;  %v5743_v15 = vld [vmem:[%s9031_s1 + $0xc8] sm:$0xff] }
  0x17   :  { %1632 = vmatpush.bf16.msrb.mxu1 %v5748_v21  ;;  %4555 = vmatmul.msk.bf16.gmra.mxu3 %vm643_vm0, %v5615_v24  ;;  %v4327_v16 = vld [vmem:[%s9034_s0 + $0x50] sm:$0xf]  ;;  %v5633_v17 = vld [vmem:[%s9034_s0 + $0x54] sm:$0xf0]  ;;  %v5648_v18 = vld [vmem:[%s9034_s0 + $0xd4] sm:$0xf] }
  0x18   :  { %1105 = vmatpush.bf16.msrb.mxu3 %v5701_v37  ;;  %v4393_v19 = vld [vmem:[%s9034_s0 + $0xd8] sm:$0xf0]  ;;  %v4328_v20 = vor.u32 %v5633_v17, %v4327_v16  ;;  %v4563_v22 = vld [vmem:[%s9034_s0 + $0x10] sm:$0xf]  ;;  %v5667_v23 = vld [vmem:[%s9034_s0 + $0x14] sm:$0xf0] }
  0x19   :  { %v4396_v21 = vor.u32 %v5648_v18, %v4393_v19  ;;  %v5612_v24 = vld [vmem:[%s9033_s2 + $0x38] sm:$0xff]  ;;  %v5635_v29 = vld [vmem:[%s9034_s0 + $0x64] sm:$0xf0]  ;;  %v5650_v30 = vld [vmem:[%s9034_s0 + $0xe4] sm:$0xf] }
  0x1a   :  { %385 = vmatpush.bf16.msra.mxu0 %v5655_v25  ;;  %v4564_v25 = vor.u32 %v5667_v23, %v4563_v22  ;;  %v5814_v26 = vld [vmem:[%s9031_s1 + $0x58] sm:$0xff]  ;;  %v4401_v31 = vld [vmem:[%s9034_s0 + $0xe8] sm:$0xf0]  ;;  %v5809_v37 = vld [vmem:[%s9031_s1 + $0x30] sm:$0xff] }
  0x1b   :  { %1633 = vmatpush.bf16.msrb.mxu1 %v5747_v27  ;;  %2428 = vmatpush.bf16.msra.mxu2 %v5814_v26  ;;  %v5742_v27 = vld [vmem:[%s9031_s1 + $0xc0] sm:$0xff]  ;;  %v4343_v42 = vld [vmem:[%s9034_s0 + $0x70] sm:$0xf]  ;;  %v5666_v49 = vld [vmem:[%s9034_s0 + $0x14] sm:$0xf] }
  0x1c   :  { %1106 = vmatpush.bf16.msrb.mxu3 %v5700_v48  ;;  %v6237_v40 = vld [vmem:[%s9032_s3] sm:$0xff]  ;;  %v4565_v50 = vld [vmem:[%s9034_s0 + $0x18] sm:$0xf0]  ;;  %v4579_v51 = vld [vmem:[%s9034_s0 + $0x30] sm:$0xf] }
  0x1d   :  { %v5671_v52 = vld [vmem:[%s9034_s0 + $0x34] sm:$0xf0]  ;;  %v4351_v60 = vld [vmem:[%s9034_s0 + $0x80] sm:$0xf]  ;;  %v5639_v61 = vld [vmem:[%s9034_s0 + $0x84] sm:$0xf0] }
  0x1e   :  { %386 = vmatpush.bf16.msra.mxu0 %v5654_v28  ;;  %v4335_v28 = vld [vmem:[%s9034_s0 + $0x60] sm:$0xf]  ;;  %v4359_v17 = vld [vmem:[%s9034_s0 + $0x90] sm:$0xf]  ;;  %v5641_v18 = vld [vmem:[%s9034_s0 + $0x94] sm:$0xf0] }
  0x1f   :  { %1634 = vmatpush.bf16.msrb.mxu1 %v5746_v46  ;;  %v4336_v32 = vor.u32 %v5635_v29, %v4335_v28  ;;  %v4755_v62 = vld [vmem:[%s9034_s0 + $0x20] sm:$0xf]  ;;  %v4763_v19 = vld [vmem:[%s9034_s0 + $0x30] sm:$0xf]  ;;  %v4581_v26 = vld [vmem:[%s9034_s0 + $0x38] sm:$0xf0] }
  0x20   :  { %1107 = vmatpush.bf16.msrb.mxu3 %v5699_v58  ;;  %v5675_v28 = vld [vmem:[%s9034_s0 + $0x54] sm:$0xf0] }
  0x21   :  { %387 = vmatmul.bf16.vlgmr.msra.gmra.mxu0 %v4288_v33  ;;  %v4404_v33 = vor.u32 %v5650_v30, %v4401_v31 }
  0x22   :  { %472 = vmatpush.bf16.msrb.mxu0 %v5952_v1  ;;  %4469 = vmatmul.msk.bf16.gmra.mxu1 %vm330_vm1, %v4356_v34  ;;  %v5610_v1 = vld [vmem:[%s9033_s2 + $0x28] sm:$0xff]  ;;  %v4571_v34 = vld [vmem:[%s9034_s0 + $0x20] sm:$0xf] }
  0x23   :  { %1635 = vmatpush.bf16.msrb.mxu1 %v5745_v56  ;;  %v4580_v56 = vor.u32 %v5671_v52, %v4579_v51  ;;  %v4589_v51 = vld [vmem:[%s9034_s0 + $0x48] sm:$0xf0]  ;;  %v4603_v52 = vld [vmem:[%s9034_s0 + $0x60] sm:$0xf] }
  0x24   :  { %1108 = vmatpush.bf16.msrb.mxu3 %v5698_v4  ;;  %v5668_v4 = vld [vmem:[%s9034_s0 + $0x24] sm:$0xf] }
  0x25   :  { %4547 = vmatmul.msk.bf16.gmra.mxu2 %vm643_vm0, %v5607_v35  ;;  %v5669_v35 = vld [vmem:[%s9034_s0 + $0x24] sm:$0xf0] }
  0x26   :  { %473 = vmatpush.bf16.msrb.mxu0 %v5664_v6  ;;  %v4319_v6 = vld [vmem:[%s9034_s0 + $0x40] sm:$0xf]  ;;  %v4572_v38 = vor.u32 %v5669_v35, %v4571_v34  ;;  %v5813_v34 = vld [vmem:[%s9031_s1 + $0x50] sm:$0xff] }
  0x27   :  { %4556 = vmatmul.msk.bf16.gmra.mxu3 %vm643_vm0, %v5616_v36  ;;  %1636 = vmatpush.bf16.msrb.mxu1 %v5744_v5  ;;  %v5613_v36 = vld [vmem:[%s9033_s2 + $0x40] sm:$0xff]  ;;  %v4573_v5 = vld [vmem:[%s9034_s0 + $0x28] sm:$0xf0] }
  0x28   :  { %2335 = vmatpush.bf16.msra.mxu3 %v5810_v13  ;;  %v4576_v9 = vor.u32 %v5668_v4, %v4573_v5  ;;  %2429 = vmatpush.bf16.msra.mxu2 %v5813_v34 }
  0x2a   :  { %474 = vmatpush.bf16.msrb.mxu0 %v5663_v10  ;;  %v4320_v10 = vor.u32 %v5631_v7, %v4319_v6  ;;  %v4587_v6 = vld [vmem:[%s9034_s0 + $0x40] sm:$0xf]  ;;  %v5673_v7 = vld [vmem:[%s9034_s0 + $0x44] sm:$0xf0] }
  0x2b   :  { %1637 = vmatpush.bf16.msrb.mxu1 %v5743_v15 }
  0x2c   :  { %2336 = vmatpush.bf16.msra.mxu3 %v5809_v37 }
  0x2e   :  { %475 = vmatpush.bf16.msrb.mxu0 %v5662_v14  ;;  %v5620_v14 = vld [vmem:[%s9033_s2 + $0x78] sm:$0xff] }
  0x2f   :  { %1638 = vmatpush.bf16.msrb.mxu1 %v5742_v27  ;;  %v4595_v27 = vld [vmem:[%s9034_s0 + $0x50] sm:$0xf] }
  0x31   :  { %392 = vmatmul.bf16.gmra.mxu0 %v4296_v43  ;;  %v5637_v43 = vld [vmem:[%s9034_s0 + $0x74] sm:$0xf0] }
  0x32   :  { %4470 = vmatmul.msk.bf16.gmra.mxu1 %vm330_vm1, %v4364_v44  ;;  %v5652_v44 = vld [vmem:[%s9034_s0 + $0xf4] sm:$0xf]  ;;  %v4344_v46 = vor.u32 %v5637_v43, %v4343_v42  ;;  %v5643_v42 = vld [vmem:[%s9034_s0 + $0xa4] sm:$0xf0]  ;;  %v4771_v43 = vld [vmem:[%s9034_s0 + $0x40] sm:$0xf] }
  0x33   :  { %2654 = vmatpush.bf16.msra.mxu1 %v6237_v40 }
  0x35   :  { %4548 = vmatmul.msk.bf16.gmra.mxu2 %vm643_vm0, %v5608_v45  ;;  %v4409_v45 = vld [vmem:[%s9034_s0 + $0xf8] sm:$0xf0] }
  0x37   :  { %4557 = vmatmul.msk.bf16.gmra.mxu3 %vm643_vm0, %v5617_v47  ;;  %v4412_v47 = vor.u32 %v5652_v44, %v4409_v45  ;;  %v5715_v44 = vld [vmem:[%s9034_s0 + $0x44] sm:$0xf0] }
  0x41   :  { %397 = vmatmul.bf16.gmra.mxu0 %v4304_v53 }
  0x42   :  { %4471 = vmatmul.msk.bf16.gmra.mxu1 %vm330_vm1, %v4372_v54  ;;  %v4568_v54 = vor.u32 %v5666_v49, %v4565_v50  ;;  %v5672_v50 = vld [vmem:[%s9034_s0 + $0x44] sm:$0xf] }
  0x45   :  { %4549 = vmatmul.msk.bf16.gmra.mxu2 %vm643_vm0, %v5609_v55 }
  0x47   :  { %4558 = vmatmul.msk.bf16.gmra.mxu3 %vm643_vm0, %v5618_v57 }
  0x51   :  { %402 = vmatmul.bf16.gmra.mxu0 %v4312_v63  ;;  %v5711_v63 = vld [vmem:[%s9034_s0 + $0x24] sm:$0xf0] }
  0x52   :  { %4472 = vmatmul.msk.bf16.gmra.mxu1 %vm330_vm1, %v4380_v0  ;;  %v4352_v0 = vor.u32 %v5639_v61, %v4351_v60  ;;  %v4756_v2 = vor.u32 %v5711_v63, %v4755_v62  ;;  %v4592_v60 = vor.u32 %v5672_v50, %v4589_v51  ;;  %v5807_v62 = vld [vmem:[%s9031_s1 + $0x20] sm:$0xff] }
  0x55   :  { %4550 = vmatmul.msk.bf16.gmra.mxu2 %vm643_vm0, %v5610_v1 }
  0x57   :  { %4559 = vmatmul.msk.bf16.gmra.mxu3 %vm643_vm0, %v5619_v3 }
  0x61   :  { %407 = vmatmul.bf16.gmra.mxu0 %v4320_v10 }
  0x62   :  { %4473 = vmatmul.msk.bf16.gmra.mxu1 %vm330_vm1, %v4388_v11  ;;  %v5808_v11 = vld [vmem:[%s9031_s1 + $0x28] sm:$0xff] }
  0x63   :  { %2337 = vmatpush.bf16.msra.mxu3 %v5808_v11  ;;  %v5717_v11 = vld [vmem:[%s9034_s0 + $0x54] sm:$0xf0] }
  0x65   :  { %4551 = vmatmul.msk.bf16.gmra.mxu2 %vm643_vm0, %v5611_v12  ;;  %v4588_v12 = vor.u32 %v5673_v7, %v4587_v6  ;;  %v4375_v6 = vld [vmem:[%s9034_s0 + $0xb0] sm:$0xf]  ;;  %v5645_v7 = vld [vmem:[%s9034_s0 + $0xb4] sm:$0xf0] }
  0x67   :  { %4560 = vmatmul.msk.bf16.gmra.mxu3 %vm643_vm0, %v5620_v14 }
  0x68   :  { %2338 = vmatpush.bf16.msra.mxu3 %v5807_v62  ;;  %v4605_v62 = vld [vmem:[%s9034_s0 + $0x68] sm:$0xf0] }
  0x71   :  { %412 = vmatmul.bf16.gmra.mxu0 %v4328_v20  ;;  %v5713_v20 = vld [vmem:[%s9034_s0 + $0x34] sm:$0xf0] }
  0x72   :  { %4474 = vmatmul.msk.bf16.gmra.mxu1 %vm330_vm1, %v4396_v21  ;;  %v4360_v21 = vor.u32 %v5641_v18, %v4359_v17  ;;  %v4764_v23 = vor.u32 %v5713_v20, %v4763_v19  ;;  %v5674_v20 = vld [vmem:[%s9034_s0 + $0x54] sm:$0xf] }
  0x75   :  { %4552 = vmatmul.msk.bf16.gmra.mxu2 %vm643_vm0, %v5612_v24 }
  0x77   :  { %1109 = vmatmul.bf16.vlgmr.msrb.gmra.mxu3 %v4564_v25  ;;  %v5670_v25 = vld [vmem:[%s9034_s0 + $0x34] sm:$0xf] }
  0x78   :  { %v4584_v30 = vor.u32 %v5670_v25, %v4581_v26  ;;  %v5679_v25 = vld [vmem:[%s9034_s0 + $0x74] sm:$0xf0] }
  0x81   :  { %417 = vmatmul.bf16.gmra.mxu0 %v4336_v32  ;;  %v4596_v32 = vor.u32 %v5675_v28, %v4595_v27 }
  0x82   :  { %4475 = vmatmul.msk.bf16.gmra.mxu1 %vm330_vm1, %v4404_v33 }
  0x85   :  { %4553 = vmatmul.msk.bf16.gmra.mxu2 %vm643_vm0, %v5613_v36 }
  0x87   :  { %1114 = vmatmul.bf16.gmra.mxu3 %v4572_v38  ;;  %v4367_v38 = vld [vmem:[%s9034_s0 + $0xa0] sm:$0xf] }
  0x88   :  { %v6232_v39 = vpop.f32.mrf.mxu2  ;;  %v4368_v45 = vor.u32 %v5643_v42, %v4367_v38 }
  0x8a   :  { %v6239_v41 = vpop.f32.mrf.mxu3 }
  0x8f   :  { %v6254_v48 = vpop.f32.mrf.mxu1 }
  0x90   :  { %v6268_v53 = vpop.f32.mrf.mxu2 }
  0x91   :  { %422 = vmatmul.bf16.gmra.mxu0 %v4344_v46 }
  0x92   :  { %4476 = vmatmul.msk.bf16.gmra.mxu1 %vm330_vm1, %v4412_v47  ;;  %v6271_v55 = vpop.f32.mrf.mxu3  ;;  %v4772_v47 = vor.u32 %v5715_v44, %v4771_v43  ;;  %v4383_v43 = vld [vmem:[%s9034_s0 + $0xc0] sm:$0xf]  ;;  %v5647_v44 = vld [vmem:[%s9034_s0 + $0xc4] sm:$0xf0] }
  0x93   :  { %v4384_v50 = vor.u32 %v5647_v44, %v4383_v43  ;;  %v4795_v43 = vld [vmem:[%s9034_s0 + $0x70] sm:$0xf]  ;;  %v5721_v44 = vld [vmem:[%s9034_s0 + $0x74] sm:$0xf0] }
  0x95   :  { %4737 = vmatmul.msk.bf16.vlgmr.msrb.gmra.mxu2 %vm330_vm1, %v4568_v54  ;;  %v5677_v54 = vld [vmem:[%s9034_s0 + $0x64] sm:$0xf0] }
  0x96   :  { %v4604_v63 = vor.u32 %v5677_v54, %v4603_v52 }
  0x97   :  { %v6274_v57 = vpop.f32.mrf.mxu1  ;;  %1119 = vmatmul.bf16.gmra.mxu3 %v4580_v56 }
  0x98   :  { %v6276_v58 = vpop.f32.mrf.mxu2 }
  0x9a   :  { %v6278_v59 = vpop.f32.mrf.mxu3 }
  0x9e   :  { %v6292_v1 = vpop.f32.mrf.mxu0 }
  0x9f   :  { %v6294_v3 = vpop.f32.mrf.mxu1 }
  0xa0   :  { %v6308_v8 = vpop.f32.mrf.mxu2 }
  0xa1   :  { %427 = vmatmul.bf16.gmra.mxu0 %v4352_v0 }
  0xa2   :  { %1639 = vmatmul.bf16.vlgmr.msrb.gmra.mxu1 %v4756_v2  ;;  %v6310_v10 = vpop.f32.mrf.mxu3 }
  0xa5   :  { %4738 = vmatmul.msk.bf16.gmra.mxu2 %vm330_vm1, %v4576_v9  ;;  %v4779_v9 = vld [vmem:[%s9034_s0 + $0x50] sm:$0xf] }
  0xa6   :  { %v6316_v13 = vpop.f32.mrf.mxu0  ;;  %v4780_v18 = vor.u32 %v5717_v11, %v4779_v9 }
  0xa7   :  { %v6318_v14 = vpop.f32.mrf.mxu1  ;;  %1124 = vmatmul.bf16.gmra.mxu3 %v4588_v12  ;;  %v4376_v12 = vor.u32 %v5645_v7, %v4375_v6  ;;  %v5681_v6 = vld [vmem:[%s9034_s0 + $0x84] sm:$0xf0] }
  0xa8   :  { %v6320_v15 = vpop.f32.mrf.mxu2 }
  0xaa   :  { %v6322_v16 = vpop.f32.mrf.mxu3 }
  0xae   :  { %v6336_v22 = vpop.f32.mrf.mxu0 }
  0xaf   :  { %v6338_v24 = vpop.f32.mrf.mxu1 }
  0xb0   :  { %v6352_v29 = vpop.f32.mrf.mxu2 }
  0xb1   :  { %432 = vmatmul.bf16.gmra.mxu0 %v4360_v21  ;;  %v4597_v21 = vld [vmem:[%s9034_s0 + $0x58] sm:$0xf0] }
  0xb2   :  { %1644 = vmatmul.bf16.gmra.mxu1 %v4764_v23  ;;  %v6354_v31 = vpop.f32.mrf.mxu3  ;;  %v4611_v23 = vld [vmem:[%s9034_s0 + $0x70] sm:$0xf]  ;;  %v4600_v27 = vor.u32 %v5674_v20, %v4597_v21 }
  0xb5   :  { %4739 = vmatmul.msk.bf16.gmra.mxu2 %vm330_vm1, %v4584_v30  ;;  %v4612_v30 = vor.u32 %v5679_v25, %v4611_v23 }
  0xb6   :  { %v6357_v33 = vpop.f32.mrf.mxu0 }
  0xb7   :  { %v6362_v35 = vpop.f32.mrf.mxu1  ;;  %1129 = vmatmul.bf16.gmra.mxu3 %v4596_v32 }
  0xb8   :  { %v6364_v36 = vpop.f32.mrf.mxu2 }
  0xba   :  { %v6366_v37 = vpop.f32.mrf.mxu3 }
  0xbb   :  { %9089 = vst [vmem:[#allocation2_spill] sm:$0xff] %v6366_v37 }
  0xbe   :  { %v6380_v46 = vpop.f32.mrf.mxu0 }
  0xbf   :  { %v6382_v49 = vpop.f32.mrf.mxu1 }
  0xc0   :  { %v6396_v56 = vpop.f32.mrf.mxu2 }
  0xc1   :  { %9090 = vst [vmem:[#allocation3_spill] sm:$0xff] %v6396_v56  ;;  %437 = vmatmul.bf16.gmra.mxu0 %v4368_v45  ;;  %v4787_v45 = vld [vmem:[%s9034_s0 + $0x60] sm:$0xf] }
  0xc2   :  { %1649 = vmatmul.bf16.gmra.mxu1 %v4772_v47  ;;  %v6398_v61 = vpop.f32.mrf.mxu3  ;;  %v5719_v47 = vld [vmem:[%s9034_s0 + $0x64] sm:$0xf0] }
  0xc3   :  { %9091 = vst [vmem:[#allocation4_spill] sm:$0xff] %v6398_v61  ;;  %v4788_v52 = vor.u32 %v5719_v47, %v4787_v45 }
  0xc5   :  { %4740 = vmatmul.msk.bf16.gmra.mxu2 %vm330_vm1, %v4592_v60  ;;  %v5676_v60 = vld [vmem:[%s9034_s0 + $0x64] sm:$0xf] }
  0xc6   :  { %v6404_v0 = vpop.f32.mrf.mxu0  ;;  %v4608_v9 = vor.u32 %v5676_v60, %v4605_v62  ;;  %v5678_v60 = vld [vmem:[%s9034_s0 + $0x74] sm:$0xf]  ;;  %v4613_v62 = vld [vmem:[%s9034_s0 + $0x78] sm:$0xf0] }
  0xc7   :  { %v6406_v2 = vpop.f32.mrf.mxu1  ;;  %1134 = vmatmul.bf16.gmra.mxu3 %v4604_v63  ;;  %v4619_v63 = vld [vmem:[%s9034_s0 + $0x80] sm:$0xf] }
  0xc8   :  { %v6408_v4 = vpop.f32.mrf.mxu2 }
  0xc9   :  { %9092 = vst [vmem:[#allocation5_spill] sm:$0xff] %v6408_v4 }
  0xca   :  { %v6410_v5 = vpop.f32.mrf.mxu3 }
  0xcb   :  { %9093 = vst [vmem:[#allocation6_spill] sm:$0xff] %v6410_v5 }
  0xce   :  { %v6424_v17 = vpop.f32.mrf.mxu0 }
  0xcf   :  { %v6426_v19 = vpop.f32.mrf.mxu1 }
  0xd0   :  { %v6440_v26 = vpop.f32.mrf.mxu2 }
  0xd1   :  { %9094 = vst [vmem:[#allocation7_spill] sm:$0xff] %v6440_v26  ;;  %442 = vmatmul.bf16.gmra.mxu0 %v4376_v12  ;;  %v5806_v12 = vld [vmem:[%s9031_s1 + $0x18] sm:$0xff] }
  0xd2   :  { %1654 = vmatmul.bf16.gmra.mxu1 %v4780_v18  ;;  %v6442_v28 = vpop.f32.mrf.mxu3  ;;  %v4620_v18 = vor.u32 %v5681_v6, %v4619_v63  ;;  %2339 = vmatpush.bf16.msra.mxu3 %v5806_v12  ;;  %v4627_v63 = vld [vmem:[%s9034_s0 + $0x90] sm:$0xf]  ;;  %v5683_v6 = vld [vmem:[%s9034_s0 + $0x94] sm:$0xf0]  ;;  %v4616_v12 = vor.u32 %v5678_v60, %v4613_v62  ;;  %v4803_v60 = vld [vmem:[%s9034_s0 + $0x80] sm:$0xf] }
  0xd3   :  { %9095 = vst [vmem:[#allocation8_spill] sm:$0xff] %v6442_v28  ;;  %v5723_v62 = vld [vmem:[%s9034_s0 + $0x84] sm:$0xf0]  ;;  %v4629_v28 = vld [vmem:[%s9034_s0 + $0x98] sm:$0xf0] }
  0xd5   :  { %4741 = vmatmul.msk.bf16.gmra.mxu2 %vm330_vm1, %v4600_v27  ;;  %v4391_v27 = vld [vmem:[%s9034_s0 + $0xd0] sm:$0xf] }
  0xd6   :  { %v6445_v32 = vpop.f32.mrf.mxu0 }
  0xd7   :  { %9096 = vst [vmem:[#allocation9_spill] sm:$0xff] %v6445_v32  ;;  %v6447_v34 = vpop.f32.mrf.mxu1  ;;  %1139 = vmatmul.bf16.gmra.mxu3 %v4612_v30  ;;  %v5649_v30 = vld [vmem:[%s9034_s0 + $0xd4] sm:$0xf0] }
  0xd8   :  { %v6449_v38 = vpop.f32.mrf.mxu2  ;;  %v4392_v45 = vor.u32 %v5649_v30, %v4391_v27  ;;  %v4628_v27 = vor.u32 %v5683_v6, %v4627_v63 }
  0xd9   :  { %9097 = vst [vmem:[#allocation10_spill] sm:$0xff] %v6449_v38  ;;  %v4643_v38 = vld [vmem:[%s9034_s0 + $0xb0] sm:$0xf] }
  0xda   :  { %v6451_v42 = vpop.f32.mrf.mxu3 }
  0xdb   :  { %9098 = vst [vmem:[#allocation11_spill] sm:$0xff] %v6451_v42 }
  0xde   :  { %v6465_v51 = vpop.f32.mrf.mxu0 }
  0xdf   :  { %9099 = vst [vmem:[#allocation12_spill] sm:$0xff] %v6465_v51  ;;  %v6467_v54 = vpop.f32.mrf.mxu1 }
  0xe0   :  { %9100 = vst [vmem:[#allocation13_spill] sm:$0xff] %v6467_v54  ;;  %v6481_v7 = vpop.f32.mrf.mxu2 }
  0xe1   :  { %9101 = vst [vmem:[#allocation14_spill] sm:$0xff] %v6481_v7  ;;  %447 = vmatmul.bf16.gmra.mxu0 %v4384_v50  ;;  %v4796_v50 = vor.u32 %v5721_v44, %v4795_v43  ;;  %v5812_v43 = vld [vmem:[%s9031_s1 + $0x48] sm:$0xff] }
  0xe2   :  { %1659 = vmatmul.bf16.gmra.mxu1 %v4788_v52  ;;  %v6483_v11 = vpop.f32.mrf.mxu3  ;;  %2430 = vmatpush.bf16.msra.mxu2 %v5812_v43  ;;  %v5680_v43 = vld [vmem:[%s9034_s0 + $0x84] sm:$0xf] }
  0xe3   :  { %9102 = vst [vmem:[#allocation15_spill] sm:$0xff] %v6483_v11  ;;  %v4635_v11 = vld [vmem:[%s9034_s0 + $0xa0] sm:$0xf] }
  0xe5   :  { %4742 = vmatmul.msk.bf16.gmra.mxu2 %vm330_vm1, %v4608_v9 }
  0xe6   :  { %v6489_v20 = vpop.f32.mrf.mxu0 }
  0xe7   :  { %9103 = vst [vmem:[#allocation16_spill] sm:$0xff] %v6489_v20  ;;  %v6491_v21 = vpop.f32.mrf.mxu1  ;;  %1144 = vmatmul.bf16.gmra.mxu3 %v4620_v18  ;;  %v5803_v20 = vld [vmem:[%s9031_s1] sm:$0xff] }
  0xe8   :  { %9104 = vst [vmem:[#allocation17_spill] sm:$0xff] %v6491_v21  ;;  %v6493_v23 = vpop.f32.mrf.mxu2 }
  0xe9   :  { %9105 = vst [vmem:[#allocation18_spill] sm:$0xff] %v6493_v23  ;;  %v5805_v23 = vld [vmem:[%s9031_s1 + $0x10] sm:$0xff] }
  0xea   :  { %v6495_v25 = vpop.f32.mrf.mxu3  ;;  %2340 = vmatpush.bf16.msra.mxu3 %v5805_v23  ;;  %v4811_v23 = vld [vmem:[%s9034_s0 + $0x90] sm:$0xf] }
  0xeb   :  { %9106 = vst [vmem:[#allocation19_spill] sm:$0xff] %v6495_v25 }
  0xee   :  { %v6509_v47 = vpop.f32.mrf.mxu0 }
  0xef   :  { %9107 = vst [vmem:[#allocation20_spill] sm:$0xff] %v6509_v47  ;;  %v6511_v52 = vpop.f32.mrf.mxu1 }
  0xf0   :  { %9108 = vst [vmem:[#allocation21_spill] sm:$0xff] %v6511_v52  ;;  %v6525_v9 = vpop.f32.mrf.mxu2 }
  0xf1   :  { %9109 = vst [vmem:[#allocation22_spill] sm:$0xff] %v6525_v9  ;;  %452 = vmatmul.bf16.gmra.mxu0 %v4392_v45  ;;  %v4399_v45 = vld [vmem:[%s9034_s0 + $0xe0] sm:$0xf] }
  0xf2   :  { %1664 = vmatmul.bf16.gmra.mxu1 %v4796_v50  ;;  %v6527_v18 = vpop.f32.mrf.mxu3  ;;  %v5651_v50 = vld [vmem:[%s9034_s0 + $0xe4] sm:$0xf0] }
  0xf3   :  { %9110 = vst [vmem:[#allocation23_spill] sm:$0xff] %v6527_v18  ;;  %v4400_v63 = vor.u32 %v5651_v50, %v4399_v45  ;;  %v4621_v18 = vld [vmem:[%s9034_s0 + $0x88] sm:$0xf0]  ;;  %v5685_v45 = vld [vmem:[%s9034_s0 + $0xa4] sm:$0xf0] }
  0xf5   :  { %4743 = vmatmul.msk.bf16.gmra.mxu2 %vm330_vm1, %v4616_v12  ;;  %v4804_v12 = vor.u32 %v5723_v62, %v4803_v60  ;;  %v4624_v60 = vor.u32 %v5680_v43, %v4621_v18  ;;  %v4407_v18 = vld [vmem:[%s9034_s0 + $0xf0] sm:$0xf] }
  0xf6   :  { %v6530_v30 = vpop.f32.mrf.mxu0 }
  0xf7   :  { %9111 = vst [vmem:[#allocation24_spill] sm:$0xff] %v6530_v30  ;;  %v6535_v44 = vpop.f32.mrf.mxu1  ;;  %1149 = vmatmul.bf16.gmra.mxu3 %v4628_v27 }
  0xf8   :  { %9112 = vst [vmem:[#allocation25_spill] sm:$0xff] %v6535_v44  ;;  %v736_v25 = vpop.f32.mrf.mxu2 }
  0xfa   :  { %v1110_v9 = vpop.f32.mrf.mxu3 }
  0xfe   :  { %v6549_v6 = vpop.f32.mrf.mxu0 }
  0xff   :  { %9113 = vst [vmem:[#allocation26_spill] sm:$0xff] %v6549_v6  ;;  %v6551_v27 = vpop.f32.mrf.mxu1  ;;  %v4636_v6 = vor.u32 %v5685_v45, %v4635_v11  ;;  %v5753_v11 = vld [vmem:[%s9031_s1 + $0x118] sm:$0xff] }
 0x100   :  { %9114 = vst [vmem:[#allocation27_spill] sm:$0xff] %v6551_v27  ;;  %v738_v50 = vpop.f32.mrf.mxu2  ;;  %1724 = vmatpush.bf16.msra.mxu0 %v5753_v11 }
 0x101   :  { %457 = vmatmul.bf16.gmra.mxu0 %v4400_v63  ;;  %v5653_v63 = vld [vmem:[%s9034_s0 + $0xf4] sm:$0xf0] }
 0x102   :  { %1669 = vmatmul.bf16.gmra.mxu1 %v4804_v12  ;;  %v1112_v62 = vpop.f32.mrf.mxu3  ;;  %v4408_v12 = vor.u32 %v5653_v63, %v4407_v18  ;;  %v5687_v18 = vld [vmem:[%s9034_s0 + $0xb4] sm:$0xf0] }
 0x105   :  { %4744 = vmatmul.msk.bf16.gmra.mxu2 %vm330_vm1, %v4624_v60 }
 0x106   :  { %v6569_v42 = vpop.f32.mrf.mxu0 }
 0x107   :  { %9115 = vst [vmem:[#allocation28_spill] sm:$0xff] %v6569_v42  ;;  %v6571_v7 = vpop.f32.mrf.mxu1  ;;  %1154 = vmatmul.bf16.gmra.mxu3 %v4636_v6  ;;  %v5725_v6 = vld [vmem:[%s9034_s0 + $0x94] sm:$0xf0] }
 0x108   :  { %9116 = vst [vmem:[#allocation29_spill] sm:$0xff] %v6571_v7  ;;  %v741_v30 = vpop.f32.mrf.mxu2  ;;  %v4812_v45 = vor.u32 %v5725_v6, %v4811_v23  ;;  %v5682_v7 = vld [vmem:[%s9034_s0 + $0x94] sm:$0xf]  ;;  %v4644_v6 = vor.u32 %v5687_v18, %v4643_v38  ;;  %v4289_v38 = vld [vmem:[%s9034_s0 + $0x8] sm:$0xf0] }
 0x109   :  { %v4632_v11 = vor.u32 %v5682_v7, %v4629_v28  ;;  %v5622_v28 = vld [vmem:[%s9034_s0 + $0x4] sm:$0xf]  ;;  %v4651_v18 = vld [vmem:[%s9034_s0 + $0xc0] sm:$0xf] }
 0x10a   :  { %v6573_v27 = vpop.f32.mrf.mxu3  ;;  %v4292_v7 = vor.u32 %v5622_v28, %v4289_v38 }
 0x10e   :  { %v423_v43 = vpop.f32.mrf.mxu0 }
 0x10f   :  { %v513_v60 = vadd.f32 %v6254_v48, %v423_v43  ;;  %v6591_v42 = vpop.f32.mrf.mxu1 }
 0x110   :  { %9117 = vst [vmem:[#allocation30_spill] sm:$0xff] %v6591_v42  ;;  %v743_v48 = vpop.f32.mrf.mxu2 }
 0x111   :  { %v6605_v63 = vadd.f32 %v736_v25, %v513_v60  ;;  %462 = vmatmul.bf16.gmra.mxu0 %v4408_v12  ;;  %v4637_v60 = vld [vmem:[%s9034_s0 + $0xa8] sm:$0xf0] }
 0x112   :  { %1674 = vmatmul.bf16.gmra.mxu1 %v4812_v45  ;;  %v1117_v23 = vpop.f32.mrf.mxu3  ;;  %v5684_v45 = vld [vmem:[%s9034_s0 + $0xa4] sm:$0xf] }
 0x113   :  { %v4640_v28 = vor.u32 %v5684_v45, %v4637_v60 }
 0x115   :  { %4745 = vmatmul.msk.bf16.gmra.mxu2 %vm330_vm1, %v4632_v11  ;;  %v5689_v11 = vld [vmem:[%s9034_s0 + $0xc4] sm:$0xf0] }
 0x116   :  { %v425_v43 = vpop.f32.mrf.mxu0 }
 0x117   :  { %v515_v42 = vadd.f32 %v6274_v57, %v425_v43  ;;  %v6609_v47 = vpop.f32.mrf.mxu1  ;;  %1159 = vmatmul.bf16.gmra.mxu3 %v4644_v6  ;;  %v4819_v57 = vld [vmem:[%s9034_s0 + $0xa0] sm:$0xf] }
 0x118   :  { %9118 = vst [vmem:[#allocation31_spill] sm:$0xff] %v6609_v47  ;;  %v1199_v5 = vpop.f32.mrf.mxu2 }
 0x119   :  { %v6611_v44 = vadd.f32 %v738_v50, %v515_v42  ;;  %v6613_v26 = vadd.f32 %v1199_v5, %v1110_v9  ;;  %v5727_v42 = vld [vmem:[%s9034_s0 + $0xa4] sm:$0xf0] }
 0x11a   :  { %v1120_v25 = vpop.f32.mrf.mxu3  ;;  %v4820_v9 = vor.u32 %v5727_v42, %v4819_v57  ;;  %v5804_v57 = vld [vmem:[%s9031_s1 + $0x8] sm:$0xff]  ;;  %v4652_v42 = vor.u32 %v5689_v11, %v4651_v18  ;;  %v5624_v18 = vld [vmem:[%s9034_s0 + $0x14] sm:$0xf]  ;;  %v4297_v11 = vld [vmem:[%s9034_s0 + $0x18] sm:$0xf0] }
 0x11b   :  { %2341 = vmatpush.bf16.msra.mxu3 %v5804_v57 }
 0x11e   :  { %v428_v5 = vpop.f32.mrf.mxu0 }
 0x11f   :  { %v518_v50 = vadd.f32 %v6294_v3, %v428_v5  ;;  %v6628_v12 = vpop.f32.mrf.mxu1  ;;  %2342 = vmatpush.bf16.msra.mxu3 %v5803_v20  ;;  %v4313_v20 = vld [vmem:[%s9034_s0 + $0x38] sm:$0xf0] }
 0x120   :  { %9119 = vst [vmem:[#allocation32_spill] sm:$0xff] %v6628_v12  ;;  %v1201_v3 = vpop.f32.mrf.mxu2 }
 0x121   :  { %v6642_v6 = vadd.f32 %v741_v30, %v518_v50  ;;  %4461 = vmatmul.msk.bf16.vlgmr.msrb.gmra.mxu0 %vm330_vm1, %v4292_v7  ;;  %v6645_v43 = vadd.f32 %v1201_v3, %v1112_v62  ;;  %v5752_v30 = vld [vmem:[%s9031_s1 + $0x110] sm:$0xff]  ;;  %v4300_v3 = vor.u32 %v5624_v18, %v4297_v11 }
 0x122   :  { %1679 = vmatmul.bf16.gmra.mxu1 %v4820_v9  ;;  %v1122_v38 = vpop.f32.mrf.mxu3  ;;  %1725 = vmatpush.bf16.msra.mxu0 %v5752_v30  ;;  %v4659_v30 = vld [vmem:[%s9034_s0 + $0xd0] sm:$0xf] }
 0x123   :  { %5908 = vmatpush.bf16.msrb.mxu3 %v6237_v40  ;;  %v4843_v40 = vld [vmem:[%s9034_s0 + $0xd0] sm:$0xf] }
 0x125   :  { %4746 = vmatmul.msk.bf16.gmra.mxu2 %vm330_vm1, %v4640_v28 }
 0x126   :  { %v430_v5 = vpop.f32.mrf.mxu0 }
 0x127   :  { %v520_v7 = vadd.f32 %v6318_v14, %v430_v5  ;;  %v6655_v62 = vpop.f32.mrf.mxu1  ;;  %1164 = vmatmul.bf16.gmra.mxu3 %v4652_v42  ;;  %v4827_v14 = vld [vmem:[%s9034_s0 + $0xb0] sm:$0xf]  ;;  %v5686_v42 = vld [vmem:[%s9034_s0 + $0xb4] sm:$0xf]  ;;  %v4645_v5 = vld [vmem:[%s9034_s0 + $0xb8] sm:$0xf0] }
 0x128   :  { %9120 = vst [vmem:[#allocation33_spill] sm:$0xff] %v6655_v62  ;;  %v1204_v50 = vpop.f32.mrf.mxu2  ;;  %v4648_v11 = vor.u32 %v5686_v42, %v4645_v5  ;;  %v5811_v62 = vld [vmem:[%s9031_s1 + $0x40] sm:$0xff]  ;;  %v4305_v42 = vld [vmem:[%s9034_s0 + $0x28] sm:$0xf0] }
 0x129   :  { %v6657_v9 = vadd.f32 %v743_v48, %v520_v7  ;;  %v6660_v45 = vadd.f32 %v1204_v50, %v6573_v27  ;;  %v5729_v48 = vld [vmem:[%s9034_s0 + $0xb4] sm:$0xf0]  ;;  %2431 = vmatpush.bf16.msra.mxu2 %v5811_v62  ;;  %v4835_v5 = vld [vmem:[%s9034_s0 + $0xc0] sm:$0xf]  ;;  %v5731_v62 = vld [vmem:[%s9034_s0 + $0xc4] sm:$0xf0] }
 0x12a   :  { %v1125_v60 = vpop.f32.mrf.mxu3  ;;  %v4828_v28 = vor.u32 %v5729_v48, %v4827_v14  ;;  %v5691_v7 = vld [vmem:[%s9034_s0 + $0xd4] sm:$0xf0] }
 0x12b   :  { %v4660_v48 = vor.u32 %v5691_v7, %v4659_v30 }
 0x12e   :  { %v6674_v27 = vpop.f32.mrf.mxu0 }
 0x12f   :  { %v6676_v57 = vpop.f32.mrf.mxu1 }
 0x130   :  { %9121 = vst [vmem:[#allocation34_spill] sm:$0xff] %v6676_v57  ;;  %v1206_v50 = vpop.f32.mrf.mxu2 }
 0x131   :  { %4462 = vmatmul.msk.bf16.gmra.mxu0 %vm330_vm1, %v4300_v3  ;;  %v6691_v18 = vadd.f32 %v1206_v50, %v1117_v23  ;;  %v5688_v50 = vld [vmem:[%s9034_s0 + $0xc4] sm:$0xf] }
 0x132   :  { %1684 = vmatmul.bf16.gmra.mxu1 %v4828_v28  ;;  %v1127_v14 = vpop.f32.mrf.mxu3  ;;  %v5626_v28 = vld [vmem:[%s9034_s0 + $0x24] sm:$0xf] }
 0x133   :  { %v4308_v30 = vor.u32 %v5626_v28, %v4305_v42  ;;  %v5693_v28 = vld [vmem:[%s9034_s0 + $0xe4] sm:$0xf0] }
 0x135   :  { %4747 = vmatmul.msk.bf16.gmra.mxu2 %vm330_vm1, %v4648_v11  ;;  %v4653_v11 = vld [vmem:[%s9034_s0 + $0xc8] sm:$0xf0] }
 0x136   :  { %v6694_v57 = vpop.f32.mrf.mxu0 }
 0x137   :  { %v6699_v12 = vpop.f32.mrf.mxu1  ;;  %1169 = vmatmul.bf16.gmra.mxu3 %v4660_v48  ;;  %v4667_v48 = vld [vmem:[%s9034_s0 + $0xe0] sm:$0xf] }
 0x138   :  { %9122 = vst [vmem:[#allocation35_spill] sm:$0xff] %v6699_v12  ;;  %v1209_v47 = vpop.f32.mrf.mxu2  ;;  %v5751_v12 = vld [vmem:[%s9031_s1 + $0x108] sm:$0xff]  ;;  %v4668_v52 = vor.u32 %v5693_v28, %v4667_v48 }
 0x139   :  { %v6701_v3 = vadd.f32 %v1209_v47, %v1120_v25  ;;  %v4836_v25 = vor.u32 %v5731_v62, %v4835_v5  ;;  %v4656_v62 = vor.u32 %v5688_v50, %v4653_v11  ;;  %1726 = vmatpush.bf16.msra.mxu0 %v5751_v12 }
 0x13a   :  { %v1130_v23 = vpop.f32.mrf.mxu3 }
 0x13e   :  { %v6715_v47 = vpop.f32.mrf.mxu0 }
 0x13f   :  { %v6717_v7 = vpop.f32.mrf.mxu1 }
 0x140   :  { %9123 = vst [vmem:[#allocation36_spill] sm:$0xff] %v6717_v7  ;;  %v1211_v42 = vpop.f32.mrf.mxu2 }
 0x141   :  { %4463 = vmatmul.msk.bf16.gmra.mxu0 %vm330_vm1, %v4308_v30  ;;  %v6732_v5 = vadd.f32 %v1211_v42, %v1122_v38  ;;  %v5628_v42 = vld [vmem:[%s9034_s0 + $0x34] sm:$0xf] }
 0x142   :  { %1689 = vmatmul.bf16.gmra.mxu1 %v4836_v25  ;;  %v1132_v7 = vpop.f32.mrf.mxu3  ;;  %v4316_v12 = vor.u32 %v5628_v42, %v4313_v20  ;;  %v5695_v42 = vld [vmem:[%s9034_s0 + $0xf4] sm:$0xf0] }
 0x145   :  { %4748 = vmatmul.msk.bf16.gmra.mxu2 %vm330_vm1, %v4656_v62  ;;  %v5690_v62 = vld [vmem:[%s9034_s0 + $0xd4] sm:$0xf] }
 0x146   :  { %v6742_v38 = vpop.f32.mrf.mxu0 }
 0x147   :  { %v6744_v30 = vpop.f32.mrf.mxu1  ;;  %1174 = vmatmul.bf16.gmra.mxu3 %v4668_v52  ;;  %v5733_v52 = vld [vmem:[%s9034_s0 + $0xd4] sm:$0xf0] }
 0x148   :  { %9124 = vst [vmem:[#allocation37_spill] sm:$0xff] %v6744_v30  ;;  %v1214_v25 = vpop.f32.mrf.mxu2  ;;  %v4844_v48 = vor.u32 %v5733_v52, %v4843_v40  ;;  %v4675_v30 = vld [vmem:[%s9034_s0 + $0xf0] sm:$0xf] }
 0x149   :  { %v6746_v50 = vadd.f32 %v1214_v25, %v1125_v60  ;;  %v4661_v25 = vld [vmem:[%s9034_s0 + $0xd8] sm:$0xf0]  ;;  %v4676_v61 = vor.u32 %v5695_v42, %v4675_v30  ;;  %v5750_v30 = vld [vmem:[%s9031_s1 + $0x100] sm:$0xff] }
 0x14a   :  { %v1135_v11 = vpop.f32.mrf.mxu3  ;;  %v4664_v52 = vor.u32 %v5690_v62, %v4661_v25  ;;  %1727 = vmatpush.bf16.msra.mxu0 %v5750_v30  ;;  %v5692_v42 = vld [vmem:[%s9034_s0 + $0xe4] sm:$0xf] }
 0x14e   :  { %v6760_v60 = vpop.f32.mrf.mxu0 }
 0x14f   :  { %v6762_v28 = vpop.f32.mrf.mxu1 }
 0x150   :  { %9125 = vst [vmem:[#allocation38_spill] sm:$0xff] %v6762_v28  ;;  %v1216_v20 = vpop.f32.mrf.mxu2 }
 0x151   :  { %4464 = vmatmul.msk.bf16.gmra.mxu0 %vm330_vm1, %v4316_v12  ;;  %v6777_v40 = vadd.f32 %v1216_v20, %v1127_v14  ;;  %v5630_v14 = vld [vmem:[%s9034_s0 + $0x44] sm:$0xf]  ;;  %v4321_v12 = vld [vmem:[%s9034_s0 + $0x48] sm:$0xf0] }
 0x152   :  { %1694 = vmatmul.bf16.gmra.mxu1 %v4844_v48  ;;  %v1137_v28 = vpop.f32.mrf.mxu3  ;;  %v4669_v20 = vld [vmem:[%s9034_s0 + $0xe8] sm:$0xf0] }
 0x153   :  { %9126 = vst [vmem:[#allocation39_spill] sm:$0xff] %v6777_v40 }
 0x155   :  { %4749 = vmatmul.msk.bf16.gmra.mxu2 %vm330_vm1, %v4664_v52  ;;  %v4683_v52 = vld [vmem:[%s9034_s0 + $0x100] sm:$0xf] }
 0x156   :  { %v6780_v4 = vpop.f32.mrf.mxu0 }
 0x157   :  { %v6782_v51 = vpop.f32.mrf.mxu1  ;;  %1179 = vmatmul.bf16.gmra.mxu3 %v4676_v61  ;;  %v4851_v61 = vld [vmem:[%s9034_s0 + $0xe0] sm:$0xf] }
 0x158   :  { %9127 = vst [vmem:[#allocation40_spill] sm:$0xff] %v6782_v51  ;;  %v1219_v21 = vpop.f32.mrf.mxu2 }
 0x159   :  { %v6784_v37 = vadd.f32 %v1219_v21, %v1130_v23  ;;  %v5735_v21 = vld [vmem:[%s9034_s0 + $0xe4] sm:$0xf0]  ;;  %v4324_v23 = vor.u32 %v5630_v14, %v4321_v12 }
 0x15a   :  { %v1140_v56 = vpop.f32.mrf.mxu3  ;;  %v4852_v62 = vor.u32 %v5735_v21, %v4851_v61  ;;  %v5697_v14 = vld [vmem:[%s9034_s0 + $0x104] sm:$0xf0]  ;;  %v4672_v61 = vor.u32 %v5692_v42, %v4669_v20 }
 0x15b   :  { %9128 = vst [vmem:[#allocation41_spill] sm:$0xff] %v6784_v37 }
 0x15e   :  { %v6801_v48 = vpop.f32.mrf.mxu0 }
 0x15f   :  { %v6803_v25 = vpop.f32.mrf.mxu1 }
 0x160   :  { %9129 = vst [vmem:[#allocation42_spill] sm:$0xff] %v6803_v25  ;;  %v1221_v12 = vpop.f32.mrf.mxu2  ;;  %v4684_v25 = vor.u32 %v5697_v14, %v4683_v52  ;;  %v5694_v52 = vld [vmem:[%s9034_s0 + $0xf4] sm:$0xf]  ;;  %v4677_v14 = vld [vmem:[%s9034_s0 + $0xf8] sm:$0xf0] }
 0x161   :  { %4465 = vmatmul.msk.bf16.gmra.mxu0 %vm330_vm1, %v4324_v23  ;;  %v6818_v30 = vadd.f32 %v1221_v12, %v1132_v7  ;;  %v5632_v7 = vld [vmem:[%s9034_s0 + $0x54] sm:$0xf]  ;;  %v4329_v23 = vld [vmem:[%s9034_s0 + $0x58] sm:$0xf0]  ;;  %v4947_v12 = vld [vmem:[%s9034_s0 + $0x120] sm:$0xf] }
 0x162   :  { %1699 = vmatmul.bf16.gmra.mxu1 %v4852_v62  ;;  %v1142_v21 = vpop.f32.mrf.mxu3  ;;  %v4859_v62 = vld [vmem:[%s9034_s0 + $0xf0] sm:$0xf]  ;;  %v4332_v42 = vor.u32 %v5632_v7, %v4329_v23 }
 0x163   :  { %9130 = vst [vmem:[#allocation43_spill] sm:$0xff] %v6818_v30 }
 0x165   :  { %4750 = vmatmul.msk.bf16.gmra.mxu2 %vm330_vm1, %v4672_v61  ;;  %v5772_v61 = vld [vmem:[%s9034_s0 + $0x124] sm:$0xf0] }
 0x166   :  { %v6821_v51 = vpop.f32.mrf.mxu0 }
 0x167   :  { %9131 = vst [vmem:[#allocation44_spill] sm:$0xff] %v6821_v51  ;;  %v6823_v37 = vpop.f32.mrf.mxu1  ;;  %1184 = vmatmul.bf16.gmra.mxu3 %v4684_v25  ;;  %v5737_v25 = vld [vmem:[%s9034_s0 + $0xf4] sm:$0xf0] }
 0x168   :  { %9132 = vst [vmem:[#allocation45_spill] sm:$0xff] %v6823_v37  ;;  %v1224_v40 = vpop.f32.mrf.mxu2 }
 0x169   :  { %v6825_v32 = vadd.f32 %v1224_v40, %v1135_v11  ;;  %v4860_v40 = vor.u32 %v5737_v25, %v4859_v62  ;;  %v4680_v62 = vor.u32 %v5694_v52, %v4677_v14  ;;  %v4337_v52 = vld [vmem:[%s9034_s0 + $0x68] sm:$0xf0]  ;;  %v4867_v14 = vld [vmem:[%s9034_s0 + $0x100] sm:$0xf] }
 0x16a   :  { %v1145_v54 = vpop.f32.mrf.mxu3 }
 0x16b   :  { %9133 = vst [vmem:[#allocation46_spill] sm:$0xff] %v6825_v32  ;;  %v5898_v32 = vld [vmem:[%s9031_s1 + $0xf8] sm:$0xff] }
 0x16c   :  { %3586 = vmatpush.bf16.msrb.mxu2 %v5898_v32  ;;  %v5739_v32 = vld [vmem:[%s9034_s0 + $0x104] sm:$0xf0] }
 0x16e   :  { %v6839_v11 = vpop.f32.mrf.mxu0 }
 0x16f   :  { %9134 = vst [vmem:[#allocation47_spill] sm:$0xff] %v6839_v11  ;;  %v6841_v20 = vpop.f32.mrf.mxu1 }
 0x170   :  { %9135 = vst [vmem:[#allocation48_spill] sm:$0xff] %v6841_v20  ;;  %v1226_v7 = vpop.f32.mrf.mxu2  ;;  %v4948_v20 = vor.u32 %v5772_v61, %v4947_v12  ;;  %v4868_v12 = vor.u32 %v5739_v32, %v4867_v14 }
 0x171   :  { %4466 = vmatmul.msk.bf16.gmra.mxu0 %vm330_vm1, %v4332_v42  ;;  %v6856_v23 = vadd.f32 %v1226_v7, %v1137_v28  ;;  %v5696_v7 = vld [vmem:[%s9034_s0 + $0x104] sm:$0xf] }
 0x172   :  { %1704 = vmatmul.bf16.gmra.mxu1 %v4860_v40  ;;  %v1147_v25 = vpop.f32.mrf.mxu3  ;;  %v5634_v40 = vld [vmem:[%s9034_s0 + $0x64] sm:$0xf] }
 0x173   :  { %9136 = vst [vmem:[#allocation49_spill] sm:$0xff] %v6856_v23 }
 0x175   :  { %4751 = vmatmul.msk.bf16.gmra.mxu2 %vm330_vm1, %v4680_v62  ;;  %v4685_v62 = vld [vmem:[%s9034_s0 + $0x108] sm:$0xf0] }
 0x176   :  { %v6859_v37 = vpop.f32.mrf.mxu0  ;;  %v4688_v32 = vor.u32 %v5696_v7, %v4685_v62 }
 0x177   :  { %9137 = vst [vmem:[#allocation50_spill] sm:$0xff] %v6859_v37  ;;  %v6864_v30 = vpop.f32.mrf.mxu1  ;;  %2343 = vmatmul.bf16.vlgmr.msra.gmra.mxu3 %v4948_v20 }
 0x178   :  { %9138 = vst [vmem:[#allocation51_spill] sm:$0xff] %v6864_v30  ;;  %v1229_v11 = vpop.f32.mrf.mxu2  ;;  %v4955_v30 = vld [vmem:[%s9034_s0 + $0x130] sm:$0xf] }
 0x179   :  { %v6866_v42 = vadd.f32 %v1229_v11, %v1140_v56  ;;  %v5854_v56 = vld [vmem:[%s9031_s1 + $0x98] sm:$0xff]  ;;  %v4340_v11 = vor.u32 %v5634_v40, %v4337_v52 }
 0x17a   :  { %v1150_v28 = vpop.f32.mrf.mxu3  ;;  %3056 = vmatpush.bf16.msrb.mxu0 %v5854_v56  ;;  %v5774_v40 = vld [vmem:[%s9034_s0 + $0x134] sm:$0xf0] }
 0x17b   :  { %9139 = vst [vmem:[#allocation52_spill] sm:$0xff] %v6866_v42 }
 0x17e   :  { %v6883_v20 = vpop.f32.mrf.mxu0 }
 0x17f   :  { %9140 = vst [vmem:[#allocation53_spill] sm:$0xff] %v6883_v20  ;;  %v6885_v61 = vpop.f32.mrf.mxu1 }
 0x180   :  { %9141 = vst [vmem:[#allocation54_spill] sm:$0xff] %v6885_v61  ;;  %v1231_v52 = vpop.f32.mrf.mxu2  ;;  %v4956_v61 = vor.u32 %v5774_v40, %v4955_v30  ;;  %v4875_v30 = vld [vmem:[%s9034_s0 + $0x110] sm:$0xf] }
 0x181   :  { %4467 = vmatmul.msk.bf16.gmra.mxu0 %vm330_vm1, %v4340_v11  ;;  %v6900_v14 = vadd.f32 %v1231_v52, %v1142_v21  ;;  %v5710_v21 = vld [vmem:[%s9034_s0 + $0x24] sm:$0xf]  ;;  %v4757_v11 = vld [vmem:[%s9034_s0 + $0x28] sm:$0xf0] }
 0x182   :  { %1709 = vmatmul.bf16.gmra.mxu1 %v4868_v12  ;;  %v1152_v56 = vpop.f32.mrf.mxu3  ;;  %v5741_v12 = vld [vmem:[%s9034_s0 + $0x114] sm:$0xf0]  ;;  %v5771_v52 = vld [vmem:[%s9034_s0 + $0x124] sm:$0xf] }
 0x183   :  { %9142 = vst [vmem:[#allocation55_spill] sm:$0xff] %v6900_v14  ;;  %v4876_v62 = vor.u32 %v5741_v12, %v4875_v30 }
 0x185   :  { %4752 = vmatmul.msk.bf16.gmra.mxu2 %vm330_vm1, %v4688_v32  ;;  %v5776_v32 = vld [vmem:[%s9034_s0 + $0x144] sm:$0xf0] }
 0x186   :  { %v6903_v42 = vpop.f32.mrf.mxu0 }
 0x187   :  { %v6905_v23 = vpop.f32.mrf.mxu1  ;;  %2348 = vmatmul.bf16.gmra.mxu3 %v4956_v61  ;;  %v4760_v61 = vor.u32 %v5710_v21, %v4757_v11 }
 0x188   :  { %9143 = vst [vmem:[#allocation56_spill] sm:$0xff] %v6905_v23  ;;  %v1234_v20 = vpop.f32.mrf.mxu2  ;;  %v5897_v23 = vld [vmem:[%s9031_s1 + $0xf0] sm:$0xff] }
 0x189   :  { %v1235_v37 = vadd.f32 %v1234_v20, %v1145_v54  ;;  %v5902_v20 = vld [vmem:[%s9031_s1 + $0x118] sm:$0xff]  ;;  %3587 = vmatpush.bf16.msrb.mxu2 %v5897_v23 }
 0x18a   :  { %v6907_v51 = vpop.f32.mrf.mxu3  ;;  %3679 = vmatpush.bf16.msrb.mxu1 %v5902_v20 }
 0x18b   :  { %v6922_v54 = vadd.f32 %v1235_v37, %v6605_v63  ;;  %v4949_v37 = vld [vmem:[%s9034_s0 + $0x128] sm:$0xf0]  ;;  %v4963_v63 = vld [vmem:[%s9034_s0 + $0x140] sm:$0xf] }
 0x18c   :  { %v4952_v30 = vor.u32 %v5771_v52, %v4949_v37  ;;  %v4964_v20 = vor.u32 %v5776_v32, %v4963_v63  ;;  %v4765_v52 = vld [vmem:[%s9034_s0 + $0x38] sm:$0xf0]  ;;  %v5853_v63 = vld [vmem:[%s9031_s1 + $0x90] sm:$0xff] }
 0x18d   :  { %9144 = vst [vmem:[#allocation57_spill] sm:$0xff] %v6922_v54  ;;  %3057 = vmatpush.bf16.msrb.mxu0 %v5853_v63 }
 0x18e   :  { %v6927_v7 = vpop.f32.mrf.mxu0 }
 0x18f   :  { %v6929_v40 = vpop.f32.mrf.mxu1 }
 0x190   :  { %9145 = vst [vmem:[#allocation58_spill] sm:$0xff] %v6929_v40  ;;  %v1236_v21 = vpop.f32.mrf.mxu2 }
 0x191   :  { %4929 = vmatmul.msk.bf16.vlgmr.msra.gmra.mxu0 %vm330_vm1, %v4760_v61  ;;  %v1237_v11 = vadd.f32 %v1236_v21, %v1147_v25 }
 0x192   :  { %1714 = vmatmul.bf16.gmra.mxu1 %v4876_v62  ;;  %v6944_v12 = vpop.f32.mrf.mxu3 }
 0x193   :  { %v6947_v54 = vadd.f32 %v1237_v11, %v6611_v44  ;;  %v5712_v44 = vld [vmem:[%s9034_s0 + $0x34] sm:$0xf] }
 0x194   :  { %v4768_v23 = vor.u32 %v5712_v44, %v4765_v52 }
 0x195   :  { %9146 = vst [vmem:[#allocation59_spill] sm:$0xff] %v6947_v54  ;;  %5121 = vmatmul.msk.bf16.vlgmr.msra.gmra.mxu2 %vm330_vm1, %v4952_v30  ;;  %v4957_v30 = vld [vmem:[%s9034_s0 + $0x138] sm:$0xf0]  ;;  %v523_v54 = vadd.f32 %v6338_v24, %v6674_v27  ;;  %v5714_v24 = vld [vmem:[%s9034_s0 + $0x44] sm:$0xf] }
 0x196   :  { %v6950_v40 = vpop.f32.mrf.mxu0 }
 0x197   :  { %v6955_v14 = vpop.f32.mrf.mxu1  ;;  %2353 = vmatmul.bf16.gmra.mxu3 %v4964_v20  ;;  %v4971_v20 = vld [vmem:[%s9034_s0 + $0x150] sm:$0xf] }
 0x198   :  { %v1239_v25 = vpop.f32.mrf.mxu2 }
 0x199   :  { %v1240_v61 = vadd.f32 %v1239_v25, %v1150_v28  ;;  %v5754_v28 = vld [vmem:[%s9033_s2 + $0x80] sm:$0xff]  ;;  %v5778_v25 = vld [vmem:[%s9034_s0 + $0x154] sm:$0xf0] }
 0x19a   :  { %v6957_v62 = vpop.f32.mrf.mxu3 }
 0x19b   :  { %v6966_v37 = vadd.f32 %v1240_v61, %v6642_v6  ;;  %v5773_v6 = vld [vmem:[%s9034_s0 + $0x134] sm:$0xf] }
 0x19c   :  { %v4960_v52 = vor.u32 %v5773_v6, %v4957_v30 }
 0x19d   :  { %9147 = vst [vmem:[#allocation60_spill] sm:$0xff] %v6966_v37 }
 0x19e   :  { %v477_v32 = vpop.f32.mrf.mxu0 }
 0x19f   :  { %v478_v21 = vadd.f32 %v477_v32, %v6292_v1  ;;  %v6975_v11 = vpop.f32.mrf.mxu1  ;;  %v4972_v32 = vor.u32 %v5778_v25, %v4971_v20 }
 0x1a0   :  { %9148 = vst [vmem:[#allocation61_spill] sm:$0xff] %v6975_v11  ;;  %v1241_v61 = vpop.f32.mrf.mxu2 }
 0x1a1   :  { %v702_v1 = vadd.f32 %v6232_v39, %v478_v21  ;;  %4930 = vmatmul.msk.bf16.gmra.mxu0 %vm330_vm1, %v4768_v23  ;;  %v1242_v44 = vadd.f32 %v1241_v61, %v1152_v56 }
 0x1a2   :  { %5205 = vmatmul.msk.bf16.vlgmr.msra.gmra.mxu1 %vm643_vm0, %v5754_v28  ;;  %v6992_v63 = vpop.f32.mrf.mxu3 }
 0x1a3   :  { %v6995_v37 = vadd.f32 %v6613_v26, %v702_v1  ;;  %v6998_v11 = vadd.f32 %v1242_v44, %v6657_v9  ;;  %v747_v26 = vadd.f32 %v6239_v41, %v523_v54  ;;  %v525_v41 = vadd.f32 %v6362_v35, %v6694_v57  ;;  %v5755_v54 = vld [vmem:[%s9033_s2 + $0x88] sm:$0xff]  ;;  %v4979_v35 = vld [vmem:[%s9034_s0 + $0x160] sm:$0xf] }
 0x1a4   :  { %v4965_v1 = vld [vmem:[%s9034_s0 + $0x148] sm:$0xf0]  ;;  %v5780_v57 = vld [vmem:[%s9034_s0 + $0x164] sm:$0xf0] }
 0x1a5   :  { %5122 = vmatmul.msk.bf16.gmra.mxu2 %vm330_vm1, %v4960_v52  ;;  %v749_v44 = vadd.f32 %v6271_v55, %v525_v41  ;;  %v5896_v55 = vld [vmem:[%s9031_s1 + $0xe8] sm:$0xff] }
 0x1a6   :  { %v479_v39 = vpop.f32.mrf.mxu0  ;;  %3588 = vmatpush.bf16.msrb.mxu2 %v5896_v55 }
 0x1a7   :  { %v480_v56 = vadd.f32 %v479_v39, %v6316_v13  ;;  %v7004_v23 = vpop.f32.mrf.mxu1  ;;  %2358 = vmatmul.bf16.gmra.mxu3 %v4972_v32  ;;  %v4773_v13 = vld [vmem:[%s9034_s0 + $0x48] sm:$0xf0] }
 0x1a8   :  { %v1244_v21 = vpop.f32.mrf.mxu2 }
 0x1a9   :  { %v704_v28 = vadd.f32 %v6268_v53, %v480_v56  ;;  %v1245_v6 = vadd.f32 %v1244_v21, %v6907_v51  ;;  %v4776_v53 = vor.u32 %v5714_v24, %v4773_v13  ;;  %v4980_v56 = vor.u32 %v5780_v57, %v4979_v35  ;;  %v4973_v35 = vld [vmem:[%s9034_s0 + $0x158] sm:$0xf0] }
 0x1aa   :  { %v7009_v9 = vpop.f32.mrf.mxu3 }
 0x1ab   :  { %v7018_v27 = vadd.f32 %v6645_v43, %v704_v28  ;;  %v7020_v30 = vadd.f32 %v1245_v6, %v747_v26  ;;  %v5775_v43 = vld [vmem:[%s9034_s0 + $0x144] sm:$0xf] }
 0x1ac   :  { %v4968_v32 = vor.u32 %v5775_v43, %v4965_v1  ;;  %v5777_v1 = vld [vmem:[%s9034_s0 + $0x154] sm:$0xf] }
 0x1ae   :  { %v482_v51 = vpop.f32.mrf.mxu0 }
 0x1af   :  { %v483_v20 = vadd.f32 %v482_v51, %v6336_v22  ;;  %v7028_v25 = vpop.f32.mrf.mxu1 }
 0x1b0   :  { %v1246_v61 = vpop.f32.mrf.mxu2 }
 0x1b1   :  { %v707_v22 = vadd.f32 %v6276_v58, %v483_v20  ;;  %4931 = vmatmul.msk.bf16.gmra.mxu0 %vm330_vm1, %v4776_v53  ;;  %v1247_v52 = vadd.f32 %v1246_v61, %v6944_v12  ;;  %v528_v58 = vadd.f32 %v6382_v49, %v6715_v47  ;;  %v5716_v53 = vld [vmem:[%s9034_s0 + $0x54] sm:$0xf] }
 0x1b2   :  { %5206 = vmatmul.msk.bf16.gmra.mxu1 %vm643_vm0, %v5755_v54  ;;  %v7047_v39 = vpop.f32.mrf.mxu3  ;;  %v5756_v20 = vld [vmem:[%s9033_s2 + $0x90] sm:$0xff] }
 0x1b3   :  { %v7050_v28 = vadd.f32 %v6660_v45, %v707_v22  ;;  %v7052_v21 = vadd.f32 %v1247_v52, %v749_v44  ;;  %v752_v13 = vadd.f32 %v6278_v59, %v528_v58  ;;  %v5852_v59 = vld [vmem:[%s9031_s1 + $0x88] sm:$0xff]  ;;  %v4976_v44 = vor.u32 %v5777_v1, %v4973_v35 }
 0x1b4   :  { %3058 = vmatpush.bf16.msrb.mxu0 %v5852_v59 }
 0x1b5   :  { %5123 = vmatmul.msk.bf16.gmra.mxu2 %vm330_vm1, %v4968_v32 }
 0x1b6   :  { %v484_v26 = vpop.f32.mrf.mxu0 }
 0x1b7   :  { %v485_v12 = vadd.f32 %v484_v26, %v6357_v33  ;;  %v7061_v6 = vpop.f32.mrf.mxu1  ;;  %2363 = vmatmul.bf16.gmra.mxu3 %v4980_v56  ;;  %v4781_v33 = vld [vmem:[%s9034_s0 + $0x58] sm:$0xf0] }
 0x1b8   :  { %v1249_v24 = vpop.f32.mrf.mxu2 }
 0x1b9   :  { %v709_v45 = vadd.f32 %v6308_v8, %v485_v12  ;;  %v1250_v49 = vadd.f32 %v1249_v24, %v6957_v62  ;;  %v4784_v8 = vor.u32 %v5716_v53, %v4781_v33  ;;  %v530_v62 = vadd.f32 %v6406_v2, %v6742_v38  ;;  %v4987_v2 = vld [vmem:[%s9034_s0 + $0x170] sm:$0xf]  ;;  %v5782_v38 = vld [vmem:[%s9034_s0 + $0x174] sm:$0xf0] }
 0x1ba   :  { %v7066_v47 = vpop.f32.mrf.mxu3  ;;  %v4988_v32 = vor.u32 %v5782_v38, %v4987_v2  ;;  %v5757_v53 = vld [vmem:[%s9033_s2 + $0x98] sm:$0xff] }
 0x1bb   :  { %v7075_v41 = vadd.f32 %v6691_v18, %v709_v45  ;;  %v7077_v51 = vadd.f32 %v1250_v49, %v752_v13  ;;  %v754_v22 = vadd.f32 %v6310_v10, %v530_v62 }
 0x1be   :  { %v487_v54 = vpop.f32.mrf.mxu0 }
 0x1bf   :  { %v488_v43 = vadd.f32 %v487_v54, %v6380_v46  ;;  %v7088_v18 = vpop.f32.mrf.mxu1 }
 0x1c0   :  { %v1251_v57 = vpop.f32.mrf.mxu2 }
 0x1c1   :  { %v712_v46 = vadd.f32 %v6320_v15, %v488_v43  ;;  %4932 = vmatmul.msk.bf16.gmra.mxu0 %vm330_vm1, %v4784_v8  ;;  %v1252_v61 = vadd.f32 %v1251_v57, %v6992_v63  ;;  %v533_v15 = vadd.f32 %v6426_v19, %v6760_v60  ;;  %v4789_v60 = vld [vmem:[%s9034_s0 + $0x68] sm:$0xf0] }
 0x1c2   :  { %5207 = vmatmul.msk.bf16.gmra.mxu1 %vm643_vm0, %v5756_v20  ;;  %v7107_v52 = vpop.f32.mrf.mxu3  ;;  %v4981_v8 = vld [vmem:[%s9034_s0 + $0x168] sm:$0xf0] }
 0x1c3   :  { %v7110_v56 = vadd.f32 %v6701_v3, %v712_v46  ;;  %v7112_v58 = vadd.f32 %v1252_v61, %v754_v22  ;;  %v5901_v3 = vld [vmem:[%s9031_s1 + $0x110] sm:$0xff]  ;;  %v757_v45 = vadd.f32 %v6322_v16, %v533_v15  ;;  %v535_v16 = vadd.f32 %v6447_v34, %v6780_v4  ;;  %v4995_v4 = vld [vmem:[%s9034_s0 + $0x180] sm:$0xf]  ;;  %v5784_v34 = vld [vmem:[%s9034_s0 + $0x184] sm:$0xf0] }
 0x1c4   :  { %3680 = vmatpush.bf16.msrb.mxu1 %v5901_v3  ;;  %v4996_v35 = vor.u32 %v5784_v34, %v4995_v4  ;;  %v9152_v15 = vld [vmem:[#allocation2_spill] sm:$0xff]  ;;  %v9153_v3 = vld [vmem:[#allocation39_spill] sm:$0xff]  ;;  %v5781_v4 = vld [vmem:[%s9034_s0 + $0x174] sm:$0xf] }
 0x1c5   :  { %5124 = vmatmul.msk.bf16.gmra.mxu2 %vm330_vm1, %v4976_v44  ;;  %v759_v54 = vadd.f32 %v6354_v31, %v535_v16  ;;  %v5895_v31 = vld [vmem:[%s9031_s1 + $0xe0] sm:$0xff]  ;;  %v4989_v34 = vld [vmem:[%s9034_s0 + $0x178] sm:$0xf0] }
 0x1c6   :  { %v489_v26 = vpop.f32.mrf.mxu0  ;;  %3589 = vmatpush.bf16.msrb.mxu2 %v5895_v31 }
 0x1c7   :  { %v490_v10 = vadd.f32 %v489_v26, %v6404_v0  ;;  %v7118_v63 = vpop.f32.mrf.mxu1  ;;  %2368 = vmatmul.bf16.gmra.mxu3 %v4988_v32  ;;  %v5718_v0 = vld [vmem:[%s9034_s0 + $0x64] sm:$0xf] }
 0x1c8   :  { %v1254_v12 = vpop.f32.mrf.mxu2  ;;  %v4792_v49 = vor.u32 %v5718_v0, %v4789_v60  ;;  %v5851_v0 = vld [vmem:[%s9031_s1 + $0x80] sm:$0xff]  ;;  %v9154_v60 = vld [vmem:[#allocation44_spill] sm:$0xff] }
 0x1c9   :  { %v714_v55 = vadd.f32 %v6352_v29, %v490_v10  ;;  %v1255_v24 = vadd.f32 %v1254_v12, %v7009_v9  ;;  %v4797_v12 = vld [vmem:[%s9034_s0 + $0x78] sm:$0xf0]  ;;  %3059 = vmatpush.bf16.msrb.mxu0 %v5851_v0 }
 0x1ca   :  { %v7126_v19 = vpop.f32.mrf.mxu3 }
 0x1cb   :  { %v7135_v29 = vadd.f32 %v6732_v5, %v714_v55  ;;  %v7137_v13 = vadd.f32 %v1255_v24, %v757_v45  ;;  %v5779_v5 = vld [vmem:[%s9034_s0 + $0x164] sm:$0xf]  ;;  %v5720_v55 = vld [vmem:[%s9034_s0 + $0x74] sm:$0xf] }
 0x1cc   :  { %v4984_v43 = vor.u32 %v5779_v5, %v4981_v8 }
 0x1ce   :  { %v492_v9 = vpop.f32.mrf.mxu0 }
 0x1cf   :  { %v493_v33 = vadd.f32 %v492_v9, %v6424_v17  ;;  %v7145_v59 = vpop.f32.mrf.mxu1 }
 0x1d0   :  { %v1256_v62 = vpop.f32.mrf.mxu2 }
 0x1d1   :  { %v717_v17 = vadd.f32 %v6364_v36, %v493_v33  ;;  %4933 = vmatmul.msk.bf16.gmra.mxu0 %vm330_vm1, %v4792_v49  ;;  %v1257_v20 = vadd.f32 %v1256_v62, %v7047_v39  ;;  %v9149_v36 = vld [vmem:[#allocation13_spill] sm:$0xff]  ;;  %v9156_v33 = vld [vmem:[#allocation12_spill] sm:$0xff] }
 0x1d2   :  { %5208 = vmatmul.msk.bf16.gmra.mxu1 %vm643_vm0, %v5757_v53  ;;  %v7164_v1 = vpop.f32.mrf.mxu3  ;;  %v538_v46 = vadd.f32 %v9149_v36, %v6801_v48  ;;  %v9150_v39 = vld [vmem:[#allocation9_spill] sm:$0xff]  ;;  %v5758_v53 = vld [vmem:[%s9033_s2 + $0xa0] sm:$0xff] }
 0x1d3   :  { %v7167_v2 = vadd.f32 %v6746_v50, %v717_v17  ;;  %v7169_v38 = vadd.f32 %v1257_v20, %v759_v54  ;;  %v9151_v50 = vld [vmem:[#allocation3_spill] sm:$0xff]  ;;  %v9155_v49 = vld [vmem:[#allocation17_spill] sm:$0xff]  ;;  %v5003_v17 = vld [vmem:[%s9034_s0 + $0x190] sm:$0xf] }
 0x1d4   :  { %v762_v26 = vadd.f32 %v9152_v15, %v538_v46  ;;  %v540_v16 = vadd.f32 %v9155_v49, %v9154_v60  ;;  %v5786_v62 = vld [vmem:[%s9034_s0 + $0x194] sm:$0xf0]  ;;  %v9164_v60 = vld [vmem:[#allocation6_spill] sm:$0xff] }
 0x1d5   :  { %5125 = vmatmul.msk.bf16.gmra.mxu2 %vm330_vm1, %v4984_v43  ;;  %v9157_v54 = vld [vmem:[#allocation5_spill] sm:$0xff] }
 0x1d6   :  { %v494_v57 = vpop.f32.mrf.mxu0  ;;  %v9161_v15 = vld [vmem:[#allocation21_spill] sm:$0xff] }
 0x1d7   :  { %v495_v22 = vadd.f32 %v494_v57, %v9150_v39  ;;  %v7178_v61 = vpop.f32.mrf.mxu1  ;;  %2373 = vmatmul.bf16.gmra.mxu3 %v4996_v35  ;;  %v9158_v35 = vld [vmem:[#allocation4_spill] sm:$0xff]  ;;  %v4992_v57 = vor.u32 %v5781_v4, %v4989_v34  ;;  %v5004_v39 = vor.u32 %v5786_v62, %v5003_v17  ;;  %v9166_v62 = vld [vmem:[#allocation50_spill] sm:$0xff] }
 0x1d8   :  { %v1259_v32 = vpop.f32.mrf.mxu2  ;;  %v764_v36 = vadd.f32 %v9158_v35, %v540_v16  ;;  %v9168_v35 = vld [vmem:[#allocation20_spill] sm:$0xff] }
 0x1d9   :  { %v719_v44 = vadd.f32 %v9151_v50, %v495_v22  ;;  %v1260_v48 = vadd.f32 %v1259_v32, %v7066_v47  ;;  %v4800_v47 = vor.u32 %v5720_v55, %v4797_v12  ;;  %v9159_v22 = vld [vmem:[#allocation41_spill] sm:$0xff]  ;;  %v9160_v32 = vld [vmem:[#allocation47_spill] sm:$0xff]  ;;  %v9162_v55 = vld [vmem:[#allocation16_spill] sm:$0xff] }
 0x1da   :  { %v7183_v10 = vpop.f32.mrf.mxu3 }
 0x1db   :  { %v7192_v45 = vadd.f32 %v9153_v3, %v719_v44  ;;  %v7194_v24 = vadd.f32 %v1260_v48, %v762_v26  ;;  %v543_v26 = vadd.f32 %v9161_v15, %v9160_v32  ;;  %v9163_v3 = vld [vmem:[#allocation7_spill] sm:$0xff]  ;;  %v9169_v15 = vld [vmem:[#allocation10_spill] sm:$0xff] }
 0x1dc   :  { %v5788_v32 = vld [vmem:[%s9034_s0 + $0x1a4] sm:$0xf0] }
 0x1dd   :  { %v767_v49 = vadd.f32 %v9164_v60, %v543_v26 }
 0x1de   :  { %v497_v9 = vpop.f32.mrf.mxu0 }
 0x1df   :  { %v498_v5 = vadd.f32 %v497_v9, %v9156_v33  ;;  %v7205_v8 = vpop.f32.mrf.mxu1  ;;  %v4805_v33 = vld [vmem:[%s9034_s0 + $0x88] sm:$0xf0] }
 0x1e0   :  { %v1261_v43 = vpop.f32.mrf.mxu2 }
 0x1e1   :  { %v722_v20 = vadd.f32 %v9157_v54, %v498_v5  ;;  %4934 = vmatmul.msk.bf16.gmra.mxu0 %vm330_vm1, %v4800_v47  ;;  %v1262_v46 = vadd.f32 %v1261_v43, %v7107_v52  ;;  %v9165_v5 = vld [vmem:[#allocation43_spill] sm:$0xff]  ;;  %v9167_v54 = vld [vmem:[#allocation25_spill] sm:$0xff] }
 0x1e2   :  { %5209 = vmatmul.msk.bf16.gmra.mxu1 %vm643_vm0, %v5758_v53  ;;  %v7224_v31 = vpop.f32.mrf.mxu3  ;;  %v5722_v53 = vld [vmem:[%s9034_s0 + $0x84] sm:$0xf]  ;;  %v5759_v43 = vld [vmem:[%s9033_s2 + $0xa8] sm:$0xff] }
 0x1e3   :  { %v7227_v50 = vadd.f32 %v9159_v22, %v722_v20  ;;  %v7229_v44 = vadd.f32 %v1262_v46, %v764_v36  ;;  %v4808_v17 = vor.u32 %v5722_v53, %v4805_v33  ;;  %v545_v20 = vadd.f32 %v9167_v54, %v9166_v62  ;;  %v5011_v22 = vld [vmem:[%s9034_s0 + $0x1a0] sm:$0xf]  ;;  %v9172_v33 = vld [vmem:[#allocation53_spill] sm:$0xff]  ;;  %v9174_v54 = vld [vmem:[#allocation24_spill] sm:$0xff] }
 0x1e4   :  { %v5012_v60 = vor.u32 %v5788_v32, %v5011_v22 }
 0x1e5   :  { %5126 = vmatmul.msk.bf16.gmra.mxu2 %vm330_vm1, %v4992_v57  ;;  %v5783_v57 = vld [vmem:[%s9034_s0 + $0x184] sm:$0xf] }
 0x1e6   :  { %v499_v48 = vpop.f32.mrf.mxu0 }
 0x1e7   :  { %v500_v12 = vadd.f32 %v499_v48, %v9162_v55  ;;  %v7235_v52 = vpop.f32.mrf.mxu1  ;;  %2378 = vmatmul.bf16.gmra.mxu3 %v5004_v39  ;;  %v4997_v39 = vld [vmem:[%s9034_s0 + $0x188] sm:$0xf0]  ;;  %v9170_v55 = vld [vmem:[#allocation8_spill] sm:$0xff] }
 0x1e8   :  { %v1264_v47 = vpop.f32.mrf.mxu2 }
 0x1e9   :  { %v724_v0 = vadd.f32 %v9163_v3, %v500_v12  ;;  %v1265_v16 = vadd.f32 %v1264_v47, %v7126_v19  ;;  %v769_v12 = vadd.f32 %v9170_v55, %v545_v20 }
 0x1ea   :  { %v7240_v9 = vpop.f32.mrf.mxu3 }
 0x1eb   :  { %v7249_v4 = vadd.f32 %v9165_v5, %v724_v0  ;;  %v7251_v34 = vadd.f32 %v1265_v16, %v767_v49  ;;  %v5000_v0 = vor.u32 %v5783_v57, %v4997_v39  ;;  %v9171_v49 = vld [vmem:[#allocation46_spill] sm:$0xff]  ;;  %v9173_v5 = vld [vmem:[#allocation27_spill] sm:$0xff] }
 0x1ec   :  { %v548_v62 = vadd.f32 %v9173_v5, %v9172_v33  ;;  %v9176_v57 = vld [vmem:[#allocation11_spill] sm:$0xff]  ;;  %v5760_v33 = vld [vmem:[%s9033_s2 + $0xb0] sm:$0xff]  ;;  %v9179_v5 = vld [vmem:[#allocation26_spill] sm:$0xff] }
 0x1ee   :  { %v502_v19 = vpop.f32.mrf.mxu0  ;;  %v772_v39 = vadd.f32 %v9176_v57, %v548_v62  ;;  %v9181_v57 = vld [vmem:[#allocation15_spill] sm:$0xff] }
 0x1ef   :  { %v503_v36 = vadd.f32 %v502_v19, %v9168_v35  ;;  %v7259_v46 = vpop.f32.mrf.mxu1 }
 0x1f0   :  { %v1266_v48 = vpop.f32.mrf.mxu2 }
 0x1f1   :  { %v727_v26 = vadd.f32 %v9169_v15, %v503_v36  ;;  %4935 = vmatmul.msk.bf16.gmra.mxu0 %vm330_vm1, %v4808_v17  ;;  %v1267_v3 = vadd.f32 %v1266_v48, %v7164_v1  ;;  %v5894_v1 = vld [vmem:[%s9031_s1 + $0xd8] sm:$0xff]  ;;  %v5724_v15 = vld [vmem:[%s9034_s0 + $0x94] sm:$0xf] }
 0x1f2   :  { %5210 = vmatmul.msk.bf16.gmra.mxu1 %vm643_vm0, %v5759_v43  ;;  %v7278_v47 = vpop.f32.mrf.mxu3  ;;  %3590 = vmatpush.bf16.msrb.mxu2 %v5894_v1  ;;  %v9175_v43 = vld [vmem:[#allocation14_spill] sm:$0xff]  ;;  %v9177_v48 = vld [vmem:[#allocation49_spill] sm:$0xff]  ;;  %v5785_v1 = vld [vmem:[%s9034_s0 + $0x194] sm:$0xf] }
 0x1f3   :  { %v7281_v16 = vadd.f32 %v9171_v49, %v727_v26  ;;  %v7283_v53 = vadd.f32 %v1267_v3, %v769_v12  ;;  %v4813_v26 = vld [vmem:[%s9034_s0 + $0x98] sm:$0xf0] }
 0x1f4   :  { %v4816_v3 = vor.u32 %v5724_v15, %v4813_v26 }
 0x1f5   :  { %5127 = vmatmul.msk.bf16.gmra.mxu2 %vm330_vm1, %v5000_v0  ;;  %v9178_v0 = vld [vmem:[#allocation29_spill] sm:$0xff] }
 0x1f6   :  { %v504_v17 = vpop.f32.mrf.mxu0 }
 0x1f7   :  { %v505_v20 = vadd.f32 %v504_v17, %v9174_v54  ;;  %v7292_v19 = vpop.f32.mrf.mxu1  ;;  %2383 = vmatmul.bf16.gmra.mxu3 %v5012_v60  ;;  %v550_v60 = vadd.f32 %v9178_v0, %v6903_v42  ;;  %v5005_v54 = vld [vmem:[%s9034_s0 + $0x198] sm:$0xf0]  ;;  %v5019_v42 = vld [vmem:[%s9034_s0 + $0x1b0] sm:$0xf] }
 0x1f8   :  { %v1269_v36 = vpop.f32.mrf.mxu2  ;;  %v5008_v15 = vor.u32 %v5785_v1, %v5005_v54  ;;  %v9185_v54 = vld [vmem:[#allocation22_spill] sm:$0xff] }
 0x1f9   :  { %v729_v35 = vadd.f32 %v9175_v43, %v505_v20  ;;  %v1270_v22 = vadd.f32 %v1269_v36, %v7183_v10  ;;  %v5850_v10 = vld [vmem:[%s9031_s1 + $0x78] sm:$0xff]  ;;  %v9180_v43 = vld [vmem:[#allocation18_spill] sm:$0xff] }
 0x1fa   :  { %v7297_v32 = vpop.f32.mrf.mxu3  ;;  %3060 = vmatpush.bf16.msrb.mxu0 %v5850_v10  ;;  %v5790_v20 = vld [vmem:[%s9034_s0 + $0x1b4] sm:$0xf0]  ;;  %v9182_v10 = vld [vmem:[#allocation52_spill] sm:$0xff] }
 0x1fb   :  { %v7306_v55 = vadd.f32 %v9177_v48, %v729_v35  ;;  %v7308_v12 = vadd.f32 %v1270_v22, %v772_v39  ;;  %v774_v39 = vadd.f32 %v9181_v57, %v550_v60  ;;  %v5020_v48 = vor.u32 %v5790_v20, %v5019_v42 }
 0x1fe   :  { %v507_v49 = vpop.f32.mrf.mxu0 }
 0x1ff   :  { %v508_v62 = vadd.f32 %v507_v49, %v9179_v5  ;;  %v7319_v17 = vpop.f32.mrf.mxu1  ;;  %v5900_v5 = vld [vmem:[%s9031_s1 + $0x108] sm:$0xff] }
 0x200   :  { %v1271_v36 = vpop.f32.mrf.mxu2  ;;  %3681 = vmatpush.bf16.msrb.mxu1 %v5900_v5  ;;  %v9189_v5 = vld [vmem:[#allocation31_spill] sm:$0xff] }
 0x201   :  { %v732_v35 = vadd.f32 %v9180_v43, %v508_v62  ;;  %4936 = vmatmul.msk.bf16.gmra.mxu0 %vm330_vm1, %v4816_v3  ;;  %v1272_v22 = vadd.f32 %v1271_v36, %v7224_v31  ;;  %v9183_v3 = vld [vmem:[#allocation30_spill] sm:$0xff]  ;;  %v9186_v43 = vld [vmem:[#allocation19_spill] sm:$0xff] }
 0x202   :  { %5211 = vmatmul.msk.bf16.gmra.mxu1 %vm643_vm0, %v5760_v33  ;;  %v7338_v26 = vpop.f32.mrf.mxu3  ;;  %v553_v60 = vadd.f32 %v9183_v3, %v6927_v7  ;;  %v9184_v33 = vld [vmem:[#allocation28_spill] sm:$0xff]  ;;  %v5726_v7 = vld [vmem:[%s9034_s0 + $0xa4] sm:$0xf]  ;;  %v555_v3 = vadd.f32 %v9189_v5, %v6950_v40  ;;  %v5027_v40 = vld [vmem:[%s9034_s0 + $0x1c0] sm:$0xf] }
 0x203   :  { %v7341_v0 = vadd.f32 %v9182_v10, %v732_v35  ;;  %v7343_v49 = vadd.f32 %v1272_v22, %v774_v39  ;;  %v4821_v39 = vld [vmem:[%s9034_s0 + $0xa8] sm:$0xf0] }
 0x204   :  { %v777_v35 = vadd.f32 %v9186_v43, %v553_v60  ;;  %v9187_v22 = vld [vmem:[#allocation55_spill] sm:$0xff]  ;;  %v4824_v10 = vor.u32 %v5726_v7, %v4821_v39  ;;  %v5761_v60 = vld [vmem:[%s9033_s2 + $0xb8] sm:$0xff] }
 0x205   :  { %5128 = vmatmul.msk.bf16.gmra.mxu2 %vm330_vm1, %v5008_v15 }
 0x206   :  { %v509_v31 = vpop.f32.mrf.mxu0 }
 0x207   :  { %v510_v62 = vadd.f32 %v509_v31, %v9184_v33  ;;  %v7352_v1 = vpop.f32.mrf.mxu1  ;;  %2388 = vmatmul.bf16.gmra.mxu3 %v5020_v48  ;;  %v9190_v33 = vld [vmem:[#allocation32_spill] sm:$0xff] }
 0x208   :  { %v1274_v20 = vpop.f32.mrf.mxu2 }
 0x209   :  { %v734_v42 = vadd.f32 %v9185_v54, %v510_v62  ;;  %v1275_v36 = vadd.f32 %v1274_v20, %v7240_v9  ;;  %v5787_v54 = vld [vmem:[%s9034_s0 + $0x1a4] sm:$0xf]  ;;  %v5792_v20 = vld [vmem:[%s9034_s0 + $0x1c4] sm:$0xf0] }
 0x20a   :  { %v7357_v57 = vpop.f32.mrf.mxu3 }
 0x20b   :  { %v7366_v15 = vadd.f32 %v9187_v22, %v734_v42  ;;  %v7368_v48 = vadd.f32 %v1275_v36, %v777_v35  ;;  %v5013_v42 = vld [vmem:[%s9034_s0 + $0x1a8] sm:$0xf0] }
 0x20c   :  { %v9192_v36 = vld [vmem:[#allocation23_spill] sm:$0xff]  ;;  %v5016_v22 = vor.u32 %v5787_v54, %v5013_v42 }
 0x20d   :  { %9188 = vst [vmem:[#allocation13_spill] sm:$0xff] %v7368_v48  ;;  %v779_v7 = vadd.f32 %v9192_v36, %v555_v3  ;;  %v9195_v36 = vld [vmem:[#allocation34_spill] sm:$0xff] }
 0x20e   :  { %v1729_v9 = vpop.f32.mrf.mxu0 }
 0x20f   :  { %v7375_v31 = vpop.f32.mrf.mxu1  ;;  %v1730_v62 = vadd.f32 %v1729_v9, %v9190_v33  ;;  %v5028_v9 = vor.u32 %v5792_v20, %v5027_v40  ;;  %v5728_v40 = vld [vmem:[%s9034_s0 + $0xb4] sm:$0xf]  ;;  %v4829_v20 = vld [vmem:[%s9034_s0 + $0xb8] sm:$0xf0] }
 0x210   :  { %v1276_v35 = vpop.f32.mrf.mxu2 }
 0x211   :  { %v7391_v43 = vadd.f32 %v1730_v62, %v6995_v37  ;;  %4937 = vmatmul.msk.bf16.gmra.mxu0 %vm330_vm1, %v4824_v10  ;;  %v1277_v39 = vadd.f32 %v1276_v35, %v7278_v47  ;;  %v5893_v37 = vld [vmem:[%s9031_s1 + $0xd0] sm:$0xff]  ;;  %v9193_v10 = vld [vmem:[#allocation33_spill] sm:$0xff]  ;;  %v4832_v35 = vor.u32 %v5728_v40, %v4829_v20 }
 0x212   :  { %5212 = vmatmul.msk.bf16.gmra.mxu1 %vm643_vm0, %v5761_v60  ;;  %v2351_v5 = vpop.f32.mrf.mxu3  ;;  %3591 = vmatpush.bf16.msrb.mxu2 %v5893_v37 }
 0x213   :  { %9191 = vst [vmem:[#allocation9_spill] sm:$0xff] %v7391_v43  ;;  %v7397_v33 = vadd.f32 %v1277_v39, %v779_v7 }
 0x215   :  { %5129 = vmatmul.msk.bf16.gmra.mxu2 %vm330_vm1, %v5016_v22  ;;  %v5789_v22 = vld [vmem:[%s9034_s0 + $0x1b4] sm:$0xf] }
 0x216   :  { %v1731_v48 = vpop.f32.mrf.mxu0 }
 0x217   :  { %v7403_v62 = vpop.f32.mrf.mxu1  ;;  %v1732_v3 = vadd.f32 %v1731_v48, %v9193_v10  ;;  %2393 = vmatmul.bf16.gmra.mxu3 %v5028_v9  ;;  %v5849_v48 = vld [vmem:[%s9031_s1 + $0x70] sm:$0xff]  ;;  %v5021_v9 = vld [vmem:[%s9034_s0 + $0x1b8] sm:$0xf0] }
 0x218   :  { %v2433_v60 = vpop.f32.mrf.mxu2  ;;  %3061 = vmatpush.bf16.msrb.mxu0 %v5849_v48  ;;  %v5035_v10 = vld [vmem:[%s9034_s0 + $0x1d0] sm:$0xf] }
 0x219   :  { %v7407_v47 = vadd.f32 %v1732_v3, %v7018_v27  ;;  %v2434_v54 = vadd.f32 %v2433_v60, %v7297_v32  ;;  %v5762_v32 = vld [vmem:[%s9033_s2 + $0xc0] sm:$0xff]  ;;  %v5794_v3 = vld [vmem:[%s9034_s0 + $0x1d4] sm:$0xf0] }
 0x21a   :  { %v7410_v42 = vpop.f32.mrf.mxu3 }
 0x21b   :  { %9194 = vst [vmem:[#allocation3_spill] sm:$0xff] %v7407_v47 }
 0x21e   :  { %v1734_v27 = vpop.f32.mrf.mxu0 }
 0x21f   :  { %v1735_v7 = vadd.f32 %v1734_v27, %v9195_v36  ;;  %v2656_v39 = vpop.f32.mrf.mxu1  ;;  %v5036_v27 = vor.u32 %v5794_v3, %v5035_v10 }
 0x220   :  { %v7431_v37 = vadd.f32 %v2656_v39, %v2434_v54  ;;  %v2435_v40 = vpop.f32.mrf.mxu2  ;;  %v5024_v54 = vor.u32 %v5789_v22, %v5021_v9  ;;  %v9198_v39 = vld [vmem:[#allocation35_spill] sm:$0xff] }
 0x221   :  { %v7440_v60 = vadd.f32 %v1735_v7, %v7050_v28  ;;  %4938 = vmatmul.msk.bf16.gmra.mxu0 %vm330_vm1, %v4832_v35  ;;  %v2436_v20 = vadd.f32 %v2435_v40, %v7338_v26  ;;  %v4837_v22 = vld [vmem:[%s9034_s0 + $0xc8] sm:$0xf0] }
 0x222   :  { %9196 = vst [vmem:[#allocation2_spill] sm:$0xff] %v7431_v37  ;;  %5213 = vmatmul.msk.bf16.gmra.mxu1 %vm643_vm0, %v5762_v32  ;;  %v2356_v48 = vpop.f32.mrf.mxu3  ;;  %v5730_v32 = vld [vmem:[%s9034_s0 + $0xc4] sm:$0xf]  ;;  %v5029_v40 = vld [vmem:[%s9034_s0 + $0x1c8] sm:$0xf0] }
 0x223   :  { %9197 = vst [vmem:[#allocation39_spill] sm:$0xff] %v7440_v60  ;;  %v4840_v9 = vor.u32 %v5730_v32, %v4837_v22 }
 0x225   :  { %5130 = vmatmul.msk.bf16.gmra.mxu2 %vm330_vm1, %v5024_v54  ;;  %v5043_v54 = vld [vmem:[%s9034_s0 + $0x1e0] sm:$0xf] }
 0x226   :  { %v1736_v36 = vpop.f32.mrf.mxu0 }
 0x227   :  { %v1737_v43 = vadd.f32 %v1736_v36, %v9198_v39  ;;  %v2658_v47 = vpop.f32.mrf.mxu1  ;;  %2398 = vmatmul.bf16.gmra.mxu3 %v5036_v27  ;;  %v5796_v27 = vld [vmem:[%s9034_s0 + $0x1e4] sm:$0xf0] }
 0x228   :  { %v7447_v37 = vadd.f32 %v2658_v47, %v2436_v20  ;;  %v2438_v35 = vpop.f32.mrf.mxu2  ;;  %v5044_v22 = vor.u32 %v5796_v27, %v5043_v54  ;;  %v4845_v54 = vld [vmem:[%s9034_s0 + $0xd8] sm:$0xf0] }
 0x229   :  { %v7450_v28 = vadd.f32 %v1737_v43, %v7075_v41  ;;  %v2439_v26 = vadd.f32 %v2438_v35, %v7357_v57  ;;  %v5763_v41 = vld [vmem:[%s9033_s2 + $0xc8] sm:$0xff]  ;;  %v9200_v43 = vld [vmem:[#allocation36_spill] sm:$0xff]  ;;  %v5791_v57 = vld [vmem:[%s9034_s0 + $0x1c4] sm:$0xf] }
 0x22a   :  { %v7453_v7 = vpop.f32.mrf.mxu3  ;;  %v5032_v32 = vor.u32 %v5791_v57, %v5029_v40  ;;  %v5732_v40 = vld [vmem:[%s9034_s0 + $0xd4] sm:$0xf] }
 0x22b   :  { %9199 = vst [vmem:[#allocation44_spill] sm:$0xff] %v7450_v28  ;;  %v4848_v27 = vor.u32 %v5732_v40, %v4845_v54 }
 0x22e   :  { %v1739_v10 = vpop.f32.mrf.mxu0 }
 0x22f   :  { %v1740_v47 = vadd.f32 %v1739_v10, %v9200_v43  ;;  %v2661_v3 = vpop.f32.mrf.mxu1  ;;  %v5892_v43 = vld [vmem:[%s9031_s1 + $0xc8] sm:$0xff] }
 0x230   :  { %v7471_v20 = vadd.f32 %v2661_v3, %v2439_v26  ;;  %v2440_v39 = vpop.f32.mrf.mxu2  ;;  %v9202_v3 = vld [vmem:[#allocation37_spill] sm:$0xff]  ;;  %3592 = vmatpush.bf16.msrb.mxu2 %v5892_v43 }
 0x231   :  { %v7480_v36 = vadd.f32 %v1740_v47, %v7110_v56  ;;  %4939 = vmatmul.msk.bf16.gmra.mxu0 %vm330_vm1, %v4840_v9  ;;  %v2441_v35 = vadd.f32 %v2440_v39, %v2351_v5  ;;  %v5848_v39 = vld [vmem:[%s9031_s1 + $0x68] sm:$0xff]  ;;  %v5037_v43 = vld [vmem:[%s9034_s0 + $0x1d8] sm:$0xf0] }
 0x232   :  { %5214 = vmatmul.msk.bf16.gmra.mxu1 %vm643_vm0, %v5763_v41  ;;  %v7484_v26 = vpop.f32.mrf.mxu3  ;;  %3062 = vmatpush.bf16.msrb.mxu0 %v5848_v39 }
 0x233   :  { %9201 = vst [vmem:[#allocation17_spill] sm:$0xff] %v7480_v36 }
 0x235   :  { %5131 = vmatmul.msk.bf16.gmra.mxu2 %vm330_vm1, %v5032_v32 }
 0x236   :  { %v1741_v10 = vpop.f32.mrf.mxu0 }
 0x237   :  { %v1742_v56 = vadd.f32 %v1741_v10, %v9202_v3  ;;  %v2663_v47 = vpop.f32.mrf.mxu1  ;;  %2403 = vmatmul.bf16.gmra.mxu3 %v5044_v22  ;;  %v5793_v10 = vld [vmem:[%s9034_s0 + $0x1d4] sm:$0xf] }
 0x238   :  { %v7491_v36 = vadd.f32 %v2663_v47, %v2441_v35  ;;  %v2443_v9 = vpop.f32.mrf.mxu2  ;;  %v9204_v35 = vld [vmem:[#allocation38_spill] sm:$0xff]  ;;  %v5798_v47 = vld [vmem:[%s9034_s0 + $0x1f4] sm:$0xf0]  ;;  %v5040_v39 = vor.u32 %v5793_v10, %v5037_v43 }
 0x239   :  { %v7494_v5 = vadd.f32 %v1742_v56, %v7135_v29  ;;  %v2444_v41 = vadd.f32 %v2443_v9, %v7410_v42  ;;  %v5764_v42 = vld [vmem:[%s9033_s2 + $0xd0] sm:$0xff] }
 0x23a   :  { %v7497_v57 = vpop.f32.mrf.mxu3  ;;  %v5051_v56 = vld [vmem:[%s9034_s0 + $0x1f0] sm:$0xf] }
 0x23b   :  { %9203 = vst [vmem:[#allocation12_spill] sm:$0xff] %v7494_v5  ;;  %v9206_v5 = vld [vmem:[#allocation40_spill] sm:$0xff] }
 0x23e   :  { %v1744_v29 = vpop.f32.mrf.mxu0 }
 0x23f   :  { %v1745_v32 = vadd.f32 %v1744_v29, %v9204_v35  ;;  %v2666_v22 = vpop.f32.mrf.mxu1  ;;  %v5052_v29 = vor.u32 %v5798_v47, %v5051_v56  ;;  %v5899_v35 = vld [vmem:[%s9031_s1 + $0x100] sm:$0xff] }
 0x240   :  { %v7518_v3 = vadd.f32 %v2666_v22, %v2444_v41  ;;  %v2445_v40 = vpop.f32.mrf.mxu2  ;;  %3682 = vmatpush.bf16.msrb.mxu1 %v5899_v35  ;;  %v5734_v56 = vld [vmem:[%s9034_s0 + $0xe4] sm:$0xf]  ;;  %v5045_v35 = vld [vmem:[%s9034_s0 + $0x1e8] sm:$0xf0] }
 0x241   :  { %v7527_v9 = vadd.f32 %v1745_v32, %v7167_v2  ;;  %4940 = vmatmul.msk.bf16.gmra.mxu0 %vm330_vm1, %v4848_v27  ;;  %v2446_v54 = vadd.f32 %v2445_v40, %v2356_v48 }
 0x242   :  { %5215 = vmatmul.msk.bf16.gmra.mxu1 %vm643_vm0, %v5764_v42  ;;  %v7531_v41 = vpop.f32.mrf.mxu3 }
 0x243   :  { %9205 = vst [vmem:[#allocation5_spill] sm:$0xff] %v7527_v9 }
 0x245   :  { %5132 = vmatmul.msk.bf16.gmra.mxu2 %vm330_vm1, %v5040_v39 }
 0x246   :  { %v1746_v22 = vpop.f32.mrf.mxu0 }
 0x247   :  { %v1747_v2 = vadd.f32 %v1746_v22, %v9206_v5  ;;  %v2668_v32 = vpop.f32.mrf.mxu1  ;;  %2408 = vmatmul.bf16.gmra.mxu3 %v5052_v29  ;;  %v4853_v5 = vld [vmem:[%s9034_s0 + $0xe8] sm:$0xf0] }
 0x248   :  { %v7538_v27 = vadd.f32 %v2668_v32, %v2446_v54  ;;  %v2448_v42 = vpop.f32.mrf.mxu2  ;;  %v4856_v47 = vor.u32 %v5734_v56, %v4853_v5  ;;  %v9208_v54 = vld [vmem:[#allocation42_spill] sm:$0xff]  ;;  %v5800_v32 = vld [vmem:[%s9034_s0 + $0x204] sm:$0xf0] }
 0x249   :  { %v7541_v48 = vadd.f32 %v1747_v2, %v7192_v45  ;;  %v2449_v10 = vadd.f32 %v2448_v42, %v7453_v7  ;;  %v5765_v45 = vld [vmem:[%s9033_s2 + $0xd8] sm:$0xff]  ;;  %v5795_v7 = vld [vmem:[%s9034_s0 + $0x1e4] sm:$0xf]  ;;  %v5059_v2 = vld [vmem:[%s9034_s0 + $0x200] sm:$0xf] }
 0x24a   :  { %v7544_v43 = vpop.f32.mrf.mxu3 }
 0x24b   :  { %9207 = vst [vmem:[#allocation4_spill] sm:$0xff] %v7541_v48  ;;  %v5891_v48 = vld [vmem:[%s9031_s1 + $0xc0] sm:$0xff] }
 0x24c   :  { %3593 = vmatpush.bf16.msrb.mxu2 %v5891_v48  ;;  %v5858_v48 = vld [vmem:[%s9031_s1 + $0xb8] sm:$0xff] }
 0x24d   :  { %3149 = vmatpush.bf16.msra.mxu3 %v5858_v48 }
 0x24e   :  { %v1749_v40 = vpop.f32.mrf.mxu0 }
 0x24f   :  { %v1750_v39 = vadd.f32 %v1749_v40, %v9208_v54  ;;  %v2671_v29 = vpop.f32.mrf.mxu1  ;;  %v5060_v54 = vor.u32 %v5800_v32, %v5059_v2  ;;  %v5736_v2 = vld [vmem:[%s9034_s0 + $0xf4] sm:$0xf]  ;;  %v4861_v32 = vld [vmem:[%s9034_s0 + $0xf8] sm:$0xf0] }
 0x250   :  { %v7562_v22 = vadd.f32 %v2671_v29, %v2449_v10  ;;  %v2450_v56 = vpop.f32.mrf.mxu2  ;;  %v5048_v10 = vor.u32 %v5795_v7, %v5045_v35 }
 0x251   :  { %v7571_v42 = vadd.f32 %v1750_v39, %v7227_v50  ;;  %4941 = vmatmul.msk.bf16.gmra.mxu0 %vm330_vm1, %v4856_v47  ;;  %v2451_v5 = vadd.f32 %v2450_v56, %v7484_v26  ;;  %v9210_v50 = vld [vmem:[#allocation45_spill] sm:$0xff]  ;;  %v5766_v56 = vld [vmem:[%s9033_s2 + $0xe0] sm:$0xff] }
 0x252   :  { %5216 = vmatmul.msk.bf16.gmra.mxu1 %vm643_vm0, %v5765_v45  ;;  %v7576_v40 = vpop.f32.mrf.mxu3 }
 0x253   :  { %9209 = vst [vmem:[#allocation41_spill] sm:$0xff] %v7571_v42 }
 0x255   :  { %5133 = vmatmul.msk.bf16.gmra.mxu2 %vm330_vm1, %v5048_v10 }
 0x256   :  { %v1751_v29 = vpop.f32.mrf.mxu0 }
 0x257   :  { %v1752_v39 = vadd.f32 %v1751_v29, %v9210_v50  ;;  %v2673_v42 = vpop.f32.mrf.mxu1  ;;  %2413 = vmatmul.bf16.gmra.mxu3 %v5060_v54  ;;  %v5797_v29 = vld [vmem:[%s9034_s0 + $0x1f4] sm:$0xf]  ;;  %v5053_v50 = vld [vmem:[%s9034_s0 + $0x1f8] sm:$0xf0] }
 0x258   :  { %v7583_v47 = vadd.f32 %v2673_v42, %v2451_v5  ;;  %v2453_v45 = vpop.f32.mrf.mxu2  ;;  %v4864_v42 = vor.u32 %v5736_v2, %v4861_v32  ;;  %v9212_v5 = vld [vmem:[#allocation48_spill] sm:$0xff]  ;;  %v5802_v32 = vld [vmem:[%s9034_s0 + $0x214] sm:$0xf0] }
 0x259   :  { %v7586_v26 = vadd.f32 %v1752_v39, %v7249_v4  ;;  %v2454_v7 = vadd.f32 %v2453_v45, %v7497_v57  ;;  %v5847_v4 = vld [vmem:[%s9031_s1 + $0x60] sm:$0xff]  ;;  %v5857_v39 = vld [vmem:[%s9031_s1 + $0xb0] sm:$0xff] }
 0x25a   :  { %v7589_v35 = vpop.f32.mrf.mxu3  ;;  %3063 = vmatpush.bf16.msrb.mxu0 %v5847_v4  ;;  %v5067_v2 = vld [vmem:[%s9034_s0 + $0x210] sm:$0xf]  ;;  %3150 = vmatpush.bf16.msra.mxu3 %v5857_v39  ;;  %v5738_v39 = vld [vmem:[%s9034_s0 + $0x104] sm:$0xf] }
 0x25b   :  { %9211 = vst [vmem:[#allocation47_spill] sm:$0xff] %v7586_v26  ;;  %v5856_v26 = vld [vmem:[%s9031_s1 + $0xa8] sm:$0xff] }
 0x25e   :  { %v1754_v57 = vpop.f32.mrf.mxu0  ;;  %3151 = vmatpush.bf16.msra.mxu3 %v5856_v26 }
 0x25f   :  { %v1755_v10 = vadd.f32 %v1754_v57, %v9212_v5  ;;  %v2676_v54 = vpop.f32.mrf.mxu1 }
 0x260   :  { %v7616_v45 = vadd.f32 %v2676_v54, %v2454_v7  ;;  %v2455_v57 = vpop.f32.mrf.mxu2  ;;  %v5056_v7 = vor.u32 %v5797_v29, %v5053_v50  ;;  %v5068_v54 = vor.u32 %v5802_v32, %v5067_v2  ;;  %v4869_v2 = vld [vmem:[%s9034_s0 + $0x108] sm:$0xf0] }
 0x261   :  { %v7625_v48 = vadd.f32 %v1755_v10, %v7281_v16  ;;  %4942 = vmatmul.msk.bf16.gmra.mxu0 %vm330_vm1, %v4864_v42  ;;  %v2456_v4 = vadd.f32 %v2455_v57, %v7531_v41  ;;  %v9214_v10 = vld [vmem:[#allocation51_spill] sm:$0xff]  ;;  %v5855_v41 = vld [vmem:[%s9031_s1 + $0xa0] sm:$0xff]  ;;  %v4872_v32 = vor.u32 %v5738_v39, %v4869_v2  ;;  %v5769_v2 = vld [vmem:[%s9033_s2 + $0xf8] sm:$0xff] }
 0x262   :  { %5217 = vmatmul.msk.bf16.gmra.mxu1 %vm643_vm0, %v5766_v56  ;;  %v2376_v5 = vpop.f32.mrf.mxu3  ;;  %3152 = vmatpush.bf16.msra.mxu3 %v5855_v41 }
 0x263   :  { %9213 = vst [vmem:[#allocation21_spill] sm:$0xff] %v7625_v48 }
 0x265   :  { %5134 = vmatmul.msk.bf16.gmra.mxu2 %vm330_vm1, %v5056_v7  ;;  %v5061_v7 = vld [vmem:[%s9034_s0 + $0x208] sm:$0xf0] }
 0x266   :  { %v1756_v16 = vpop.f32.mrf.mxu0 }
 0x267   :  { %v1757_v48 = vadd.f32 %v1756_v16, %v9214_v10  ;;  %v2678_v9 = vpop.f32.mrf.mxu1  ;;  %2418 = vmatmul.bf16.gmra.mxu3 %v5068_v54 }
 0x268   :  { %v7638_v42 = vadd.f32 %v2678_v9, %v2456_v4  ;;  %v2458_v29 = vpop.f32.mrf.mxu2  ;;  %v9216_v9 = vld [vmem:[#allocation54_spill] sm:$0xff] }
 0x269   :  { %v7641_v56 = vadd.f32 %v1757_v48, %v7306_v55  ;;  %v2459_v26 = vadd.f32 %v2458_v29, %v7544_v43  ;;  %v5767_v55 = vld [vmem:[%s9033_s2 + $0xe8] sm:$0xff]  ;;  %v5799_v43 = vld [vmem:[%s9034_s0 + $0x204] sm:$0xf] }
 0x26a   :  { %v2379_v50 = vpop.f32.mrf.mxu3  ;;  %v5064_v29 = vor.u32 %v5799_v43, %v5061_v7  ;;  %v5740_v43 = vld [vmem:[%s9034_s0 + $0x114] sm:$0xf]  ;;  %v4877_v7 = vld [vmem:[%s9034_s0 + $0x118] sm:$0xf0] }
 0x26b   :  { %9215 = vst [vmem:[#allocation16_spill] sm:$0xff] %v7641_v56 }
 0x26e   :  { %v1759_v57 = vpop.f32.mrf.mxu0 }
 0x26f   :  { %v1760_v48 = vadd.f32 %v1759_v57, %v9216_v9  ;;  %v2681_v4 = vpop.f32.mrf.mxu1  ;;  %v9218_v57 = vld [vmem:[#allocation56_spill] sm:$0xff] }
 0x270   :  { %v7660_v54 = vadd.f32 %v2681_v4, %v2459_v26  ;;  %v2460_v10 = vpop.f32.mrf.mxu2 }
 0x271   :  { %v7663_v16 = vadd.f32 %v1760_v48, %v7341_v0  ;;  %4943 = vmatmul.msk.bf16.gmra.mxu0 %vm330_vm1, %v4872_v32  ;;  %v2461_v41 = vadd.f32 %v2460_v10, %v7576_v40  ;;  %v4880_v10 = vor.u32 %v5740_v43, %v4877_v7  ;;  %v9221_v43 = vld [vmem:[#allocation57_spill] sm:$0xff] }
 0x272   :  { %5218 = vmatmul.msk.bf16.gmra.mxu1 %vm643_vm0, %v5767_v55  ;;  %v2381_v39 = vpop.f32.mrf.mxu3 }
 0x273   :  { %9217 = vst [vmem:[#allocation7_spill] sm:$0xff] %v7663_v16 }
 0x275   :  { %5135 = vmatmul.msk.bf16.gmra.mxu2 %vm330_vm1, %v5064_v29 }
 0x276   :  { %v1761_v26 = vpop.f32.mrf.mxu0 }
 0x277   :  { %v1762_v9 = vadd.f32 %v1761_v26, %v9218_v57  ;;  %v2683_v0 = vpop.f32.mrf.mxu1  ;;  %5220 = vmatmul.msk.bf16.vlgmr.msrb.gmra.mxu3 %vm643_vm0, %v5769_v2  ;;  %v5069_v57 = vld [vmem:[%s9034_s0 + $0x218] sm:$0xf0] }
 0x278   :  { %v7674_v48 = vadd.f32 %v2683_v0, %v2461_v41  ;;  %v2463_v32 = vpop.f32.mrf.mxu2  ;;  %v5768_v41 = vld [vmem:[%s9033_s2 + $0xf0] sm:$0xff] }
 0x279   :  { %v7677_v40 = vadd.f32 %v1762_v9, %v7366_v15  ;;  %v2464_v55 = vadd.f32 %v2463_v32, %v7589_v35  ;;  %v9220_v15 = vld [vmem:[#allocation58_spill] sm:$0xff]  ;;  %v5801_v35 = vld [vmem:[%s9034_s0 + $0x214] sm:$0xf]  ;;  %v5225_v32 = vld [vmem:[%s9034_s0 + $0x138] sm:$0xf0] }
 0x27a   :  { %v2384_v4 = vpop.f32.mrf.mxu3  ;;  %v5815_v0 = vld [vmem:[%s9034_s0 + $0x134] sm:$0xf] }
 0x27b   :  { %9219 = vst [vmem:[#allocation6_spill] sm:$0xff] %v7677_v40  ;;  %v5072_v40 = vor.u32 %v5801_v35, %v5069_v57  ;;  %v9225_v35 = vld [vmem:[#allocation61_spill] sm:$0xff] }
 0x27e   :  { %v1764_v29 = vpop.f32.mrf.mxu0 }
 0x27f   :  { %v1765_v2 = vadd.f32 %v1764_v29, %v9220_v15  ;;  %v2686_v26 = vpop.f32.mrf.mxu1 }
 0x280   :  { %v7696_v9 = vadd.f32 %v2686_v26, %v2464_v55  ;;  %v2465_v29 = vpop.f32.mrf.mxu2  ;;  %v5228_v26 = vor.u32 %v5815_v0, %v5225_v32  ;;  %v5415_v32 = vld [vmem:[%s9034_s0 + $0x140] sm:$0xf] }
 0x281   :  { %v7705_v7 = vadd.f32 %v1765_v2, %v9221_v43  ;;  %4944 = vmatmul.msk.bf16.gmra.mxu0 %vm330_vm1, %v4880_v10  ;;  %v2466_v15 = vadd.f32 %v2465_v29, %v2376_v5  ;;  %v9223_v2 = vld [vmem:[#allocation59_spill] sm:$0xff] }
 0x282   :  { %5219 = vmatmul.msk.bf16.gmra.mxu1 %vm643_vm0, %v5768_v41  ;;  %v2386_v55 = vpop.f32.mrf.mxu3  ;;  %v5223_v41 = vld [vmem:[%s9034_s0 + $0x130] sm:$0xf] }
 0x283   :  { %9222 = vst [vmem:[#allocation43_spill] sm:$0xff] %v7705_v7 }
 0x285   :  { %5136 = vmatmul.msk.bf16.gmra.mxu2 %vm330_vm1, %v5072_v40 }
 0x286   :  { %v1766_v16 = vpop.f32.mrf.mxu0 }
 0x287   :  { %v1767_v56 = vadd.f32 %v1766_v16, %v6955_v14  ;;  %v2688_v28 = vpop.f32.mrf.mxu1  ;;  %5397 = vmatmul.msk.bf16.vlgmr.msra.gmra.mxu3 %vm330_vm1, %v5228_v26  ;;  %v5816_v14 = vld [vmem:[%s9034_s0 + $0x134] sm:$0xf0] }
 0x288   :  { %v7712_v60 = vadd.f32 %v2688_v28, %v2466_v15  ;;  %v2468_v10 = vpop.f32.mrf.mxu2  ;;  %v5859_v28 = vld [vmem:[%s9034_s0 + $0x144] sm:$0xf]  ;;  %v5224_v16 = vor.u32 %v5816_v14, %v5223_v41  ;;  %v5860_v15 = vld [vmem:[%s9034_s0 + $0x144] sm:$0xf0]  ;;  %v9227_v41 = vld [vmem:[#allocation60_spill] sm:$0xff] }
 0x289   :  { %v7715_v43 = vadd.f32 %v1767_v56, %v9223_v2  ;;  %v2469_v5 = vadd.f32 %v2468_v10, %v2379_v50  ;;  %v5417_v56 = vld [vmem:[%s9034_s0 + $0x148] sm:$0xf0]  ;;  %v5817_v2 = vld [vmem:[%s9034_s0 + $0x144] sm:$0xf] }
 0x28a   :  { %v7717_v29 = vpop.f32.mrf.mxu3  ;;  %v5420_v40 = vor.u32 %v5859_v28, %v5417_v56  ;;  %v5233_v10 = vld [vmem:[%s9034_s0 + $0x148] sm:$0xf0] }
 0x28b   :  { %9224 = vst [vmem:[#allocation50_spill] sm:$0xff] %v7715_v43 }
 0x28e   :  { %v1769_v50 = vpop.f32.mrf.mxu0 }
 0x28f   :  { %v1770_v57 = vadd.f32 %v1769_v50, %v9225_v35  ;;  %v2691_v0 = vpop.f32.mrf.mxu1  ;;  %v5416_v50 = vor.u32 %v5860_v15, %v5415_v32 }
 0x290   :  { %v7738_v26 = vadd.f32 %v2691_v0, %v2469_v5  ;;  %v2470_v28 = vpop.f32.mrf.mxu2  ;;  %v5236_v5 = vor.u32 %v5817_v2, %v5233_v10  ;;  %v5423_v10 = vld [vmem:[%s9034_s0 + $0x150] sm:$0xf] }
 0x291   :  { %v7747_v14 = vadd.f32 %v1770_v57, %v9227_v41  ;;  %3064 = vmatmul.bf16.vlgmr.msrb.gmra.mxu0 %v5224_v16  ;;  %v2471_v56 = vadd.f32 %v2470_v28, %v2381_v39  ;;  %v5862_v28 = vld [vmem:[%s9034_s0 + $0x154] sm:$0xf0] }
 0x292   :  { %9226 = vst [vmem:[#allocation25_spill] sm:$0xff] %v7738_v26  ;;  %5589 = vmatmul.msk.bf16.vlgmr.msrb.gmra.mxu1 %vm330_vm1, %v5420_v40  ;;  %v2391_v35 = vpop.f32.mrf.mxu3  ;;  %v5231_v40 = vld [vmem:[%s9034_s0 + $0x140] sm:$0xf] }
 0x295   :  { %3594 = vmatmul.bf16.vlgmr.msrb.gmra.mxu2 %v5416_v50  ;;  %v5819_v50 = vld [vmem:[%s9034_s0 + $0x154] sm:$0xf] }
 0x296   :  { %v1771_v0 = vpop.f32.mrf.mxu0 }
 0x297   :  { %v1772_v43 = vadd.f32 %v1771_v0, %v7004_v23  ;;  %v2693_v7 = vpop.f32.mrf.mxu1  ;;  %5398 = vmatmul.msk.bf16.gmra.mxu3 %vm330_vm1, %v5236_v5  ;;  %v5818_v23 = vld [vmem:[%s9034_s0 + $0x144] sm:$0xf0]  ;;  %v5241_v5 = vld [vmem:[%s9034_s0 + $0x158] sm:$0xf0] }
 0x298   :  { %v7752_v26 = vadd.f32 %v2693_v7, %v2471_v56  ;;  %v2473_v41 = vpop.f32.mrf.mxu2  ;;  %v5861_v7 = vld [vmem:[%s9034_s0 + $0x154] sm:$0xf] }
 0x299   :  { %v7755_v57 = vadd.f32 %v1772_v43, %v6998_v11  ;;  %v2474_v16 = vadd.f32 %v2473_v41, %v2384_v4  ;;  %v5425_v11 = vld [vmem:[%s9034_s0 + $0x158] sm:$0xf0]  ;;  %v5232_v43 = vor.u32 %v5818_v23, %v5231_v40  ;;  %v5424_v40 = vor.u32 %v5862_v28, %v5423_v10  ;;  %v5863_v10 = vld [vmem:[%s9034_s0 + $0x164] sm:$0xf] }
 0x29a   :  { %v7757_v39 = vpop.f32.mrf.mxu3  ;;  %v5428_v32 = vor.u32 %v5861_v7, %v5425_v11 }
 0x29e   :  { %v1774_v4 = vpop.f32.mrf.mxu0 }
 0x29f   :  { %v1775_v15 = vadd.f32 %v1774_v4, %v7028_v25  ;;  %v2696_v2 = vpop.f32.mrf.mxu1 }
 0x2a0   :  { %v7778_v56 = vadd.f32 %v2696_v2, %v2474_v16  ;;  %v2475_v0 = vpop.f32.mrf.mxu2  ;;  %v5244_v16 = vor.u32 %v5819_v50, %v5241_v5 }
 0x2a1   :  { %v7787_v25 = vadd.f32 %v1775_v15, %v7020_v30  ;;  %3069 = vmatmul.bf16.gmra.mxu0 %v5232_v43  ;;  %v2476_v41 = vadd.f32 %v2475_v0, %v2386_v55 }
 0x2a2   :  { %5590 = vmatmul.msk.bf16.gmra.mxu1 %vm330_vm1, %v5428_v32  ;;  %v2396_v23 = vpop.f32.mrf.mxu3  ;;  %v5239_v32 = vld [vmem:[%s9034_s0 + $0x150] sm:$0xf] }
 0x2a5   :  { %3599 = vmatmul.bf16.gmra.mxu2 %v5424_v40  ;;  %v5864_v40 = vld [vmem:[%s9034_s0 + $0x164] sm:$0xf0] }
 0x2a6   :  { %v1776_v7 = vpop.f32.mrf.mxu0 }
 0x2a7   :  { %v1777_v11 = vadd.f32 %v1776_v7, %v7061_v6  ;;  %v2698_v4 = vpop.f32.mrf.mxu1  ;;  %5399 = vmatmul.msk.bf16.gmra.mxu3 %vm330_vm1, %v5244_v16  ;;  %v5820_v6 = vld [vmem:[%s9034_s0 + $0x154] sm:$0xf0]  ;;  %v5821_v7 = vld [vmem:[%s9034_s0 + $0x164] sm:$0xf] }
 0x2a8   :  { %v7792_v2 = vadd.f32 %v2698_v4, %v2476_v41  ;;  %v2478_v15 = vpop.f32.mrf.mxu2  ;;  %v5240_v28 = vor.u32 %v5820_v6, %v5239_v32  ;;  %v5431_v41 = vld [vmem:[%s9034_s0 + $0x160] sm:$0xf] }
 0x2a9   :  { %v7795_v30 = vadd.f32 %v1777_v11, %v7052_v21  ;;  %v2479_v55 = vadd.f32 %v2478_v15, %v7717_v29  ;;  %v5433_v21 = vld [vmem:[%s9034_s0 + $0x168] sm:$0xf0]  ;;  %v5432_v32 = vor.u32 %v5864_v40, %v5431_v41  ;;  %v5865_v41 = vld [vmem:[%s9034_s0 + $0x174] sm:$0xf] }
 0x2aa   :  { %v7798_v43 = vpop.f32.mrf.mxu3  ;;  %v5436_v50 = vor.u32 %v5863_v10, %v5433_v21  ;;  %v5249_v11 = vld [vmem:[%s9034_s0 + $0x168] sm:$0xf0] }
 0x2ae   :  { %v1779_v29 = vpop.f32.mrf.mxu0 }
 0x2af   :  { %v1780_v5 = vadd.f32 %v1779_v29, %v7088_v18  ;;  %v2701_v0 = vpop.f32.mrf.mxu1 }
 0x2b0   :  { %v7819_v16 = vadd.f32 %v2701_v0, %v2479_v55  ;;  %v2480_v4 = vpop.f32.mrf.mxu2  ;;  %v5252_v55 = vor.u32 %v5821_v7, %v5249_v11 }
 0x2b1   :  { %v7828_v18 = vadd.f32 %v1780_v5, %v7077_v51  ;;  %3074 = vmatmul.bf16.gmra.mxu0 %v5240_v28  ;;  %v2481_v15 = vadd.f32 %v2480_v4, %v2391_v35 }
 0x2b2   :  { %5591 = vmatmul.msk.bf16.gmra.mxu1 %vm330_vm1, %v5436_v50  ;;  %v2401_v6 = vpop.f32.mrf.mxu3  ;;  %v5247_v50 = vld [vmem:[%s9034_s0 + $0x160] sm:$0xf] }
 0x2b5   :  { %3604 = vmatmul.bf16.gmra.mxu2 %v5432_v32  ;;  %v5866_v32 = vld [vmem:[%s9034_s0 + $0x174] sm:$0xf0] }
 0x2b6   :  { %v1781_v10 = vpop.f32.mrf.mxu0 }
 0x2b7   :  { %v1782_v21 = vadd.f32 %v1781_v10, %v7118_v63  ;;  %v2703_v29 = vpop.f32.mrf.mxu1  ;;  %5400 = vmatmul.msk.bf16.gmra.mxu3 %vm330_vm1, %v5252_v55  ;;  %v5822_v63 = vld [vmem:[%s9034_s0 + $0x164] sm:$0xf0]  ;;  %v5823_v10 = vld [vmem:[%s9034_s0 + $0x174] sm:$0xf] }
 0x2b8   :  { %v7833_v0 = vadd.f32 %v2703_v29, %v2481_v15  ;;  %v2483_v5 = vpop.f32.mrf.mxu2  ;;  %v5248_v40 = vor.u32 %v5822_v63, %v5247_v50  ;;  %v5439_v15 = vld [vmem:[%s9034_s0 + $0x170] sm:$0xf] }
 0x2b9   :  { %v7836_v51 = vadd.f32 %v1782_v21, %v7112_v58  ;;  %v2484_v35 = vadd.f32 %v2483_v5, %v7757_v39  ;;  %v5441_v58 = vld [vmem:[%s9034_s0 + $0x178] sm:$0xf0]  ;;  %v5440_v50 = vor.u32 %v5866_v32, %v5439_v15  ;;  %v5867_v15 = vld [vmem:[%s9034_s0 + $0x184] sm:$0xf] }
 0x2ba   :  { %v7839_v28 = vpop.f32.mrf.mxu3  ;;  %v5444_v7 = vor.u32 %v5865_v41, %v5441_v58  ;;  %v5257_v21 = vld [vmem:[%s9034_s0 + $0x178] sm:$0xf0] }
 0x2be   :  { %v1784_v39 = vpop.f32.mrf.mxu0 }
 0x2bf   :  { %v1785_v11 = vadd.f32 %v1784_v39, %v7145_v59  ;;  %v2706_v4 = vpop.f32.mrf.mxu1 }
 0x2c0   :  { %v7860_v55 = vadd.f32 %v2706_v4, %v2484_v35  ;;  %v2485_v29 = vpop.f32.mrf.mxu2  ;;  %v5260_v35 = vor.u32 %v5823_v10, %v5257_v21 }
 0x2c1   :  { %v7869_v59 = vadd.f32 %v1785_v11, %v7137_v13  ;;  %3079 = vmatmul.bf16.gmra.mxu0 %v5248_v40  ;;  %v2486_v5 = vadd.f32 %v2485_v29, %v2396_v23 }
 0x2c2   :  { %5592 = vmatmul.msk.bf16.gmra.mxu1 %vm330_vm1, %v5444_v7  ;;  %v2406_v63 = vpop.f32.mrf.mxu3  ;;  %v5255_v7 = vld [vmem:[%s9034_s0 + $0x170] sm:$0xf] }
 0x2c5   :  { %3609 = vmatmul.bf16.gmra.mxu2 %v5440_v50  ;;  %v5868_v50 = vld [vmem:[%s9034_s0 + $0x184] sm:$0xf0] }
 0x2c6   :  { %v1786_v41 = vpop.f32.mrf.mxu0 }
 0x2c7   :  { %v1787_v58 = vadd.f32 %v1786_v41, %v7178_v61  ;;  %v2708_v39 = vpop.f32.mrf.mxu1  ;;  %5401 = vmatmul.msk.bf16.gmra.mxu3 %vm330_vm1, %v5260_v35  ;;  %v5824_v61 = vld [vmem:[%s9034_s0 + $0x174] sm:$0xf0]  ;;  %v5825_v41 = vld [vmem:[%s9034_s0 + $0x184] sm:$0xf] }
 0x2c8   :  { %v7874_v4 = vadd.f32 %v2708_v39, %v2486_v5  ;;  %v2488_v11 = vpop.f32.mrf.mxu2  ;;  %v5256_v32 = vor.u32 %v5824_v61, %v5255_v7  ;;  %v5447_v5 = vld [vmem:[%s9034_s0 + $0x180] sm:$0xf] }
 0x2c9   :  { %v7877_v13 = vadd.f32 %v1787_v58, %v7169_v38  ;;  %v2489_v23 = vadd.f32 %v2488_v11, %v7798_v43  ;;  %v5449_v38 = vld [vmem:[%s9034_s0 + $0x188] sm:$0xf0]  ;;  %v5448_v7 = vor.u32 %v5868_v50, %v5447_v5  ;;  %v5869_v5 = vld [vmem:[%s9034_s0 + $0x194] sm:$0xf] }
 0x2ca   :  { %v7880_v40 = vpop.f32.mrf.mxu3  ;;  %v5452_v10 = vor.u32 %v5867_v15, %v5449_v38  ;;  %v5265_v58 = vld [vmem:[%s9034_s0 + $0x188] sm:$0xf0] }
 0x2ce   :  { %v1789_v43 = vpop.f32.mrf.mxu0 }
 0x2cf   :  { %v1790_v21 = vadd.f32 %v1789_v43, %v7205_v8  ;;  %v2711_v29 = vpop.f32.mrf.mxu1 }
 0x2d0   :  { %v7901_v35 = vadd.f32 %v2711_v29, %v2489_v23  ;;  %v2490_v39 = vpop.f32.mrf.mxu2  ;;  %v5268_v23 = vor.u32 %v5825_v41, %v5265_v58 }
 0x2d1   :  { %v7910_v8 = vadd.f32 %v1790_v21, %v7194_v24  ;;  %3084 = vmatmul.bf16.gmra.mxu0 %v5256_v32  ;;  %v2491_v11 = vadd.f32 %v2490_v39, %v2401_v6 }
 0x2d2   :  { %9228 = vst [vmem:[#allocation20_spill] sm:$0xff] %v7901_v35  ;;  %5593 = vmatmul.msk.bf16.gmra.mxu1 %vm330_vm1, %v5452_v10  ;;  %v2411_v61 = vpop.f32.mrf.mxu3  ;;  %v5263_v10 = vld [vmem:[%s9034_s0 + $0x180] sm:$0xf] }
 0x2d3   :  { %v9283_v35 = vld [vmem:[#allocation6_spill] sm:$0xff] }
 0x2d5   :  { %3614 = vmatmul.bf16.gmra.mxu2 %v5448_v7  ;;  %v5870_v7 = vld [vmem:[%s9034_s0 + $0x194] sm:$0xf0] }
 0x2d6   :  { %v1791_v15 = vpop.f32.mrf.mxu0 }
 0x2d7   :  { %v1792_v38 = vadd.f32 %v1791_v15, %v7235_v52  ;;  %v2713_v43 = vpop.f32.mrf.mxu1  ;;  %5402 = vmatmul.msk.bf16.gmra.mxu3 %vm330_vm1, %v5268_v23  ;;  %v5826_v52 = vld [vmem:[%s9034_s0 + $0x184] sm:$0xf0]  ;;  %v5827_v15 = vld [vmem:[%s9034_s0 + $0x194] sm:$0xf] }
 0x2d8   :  { %v7915_v29 = vadd.f32 %v2713_v43, %v2491_v11  ;;  %v2493_v21 = vpop.f32.mrf.mxu2  ;;  %v5264_v50 = vor.u32 %v5826_v52, %v5263_v10  ;;  %v5455_v11 = vld [vmem:[%s9034_s0 + $0x190] sm:$0xf] }
 0x2d9   :  { %v7918_v24 = vadd.f32 %v1792_v38, %v7229_v44  ;;  %v2494_v6 = vadd.f32 %v2493_v21, %v7839_v28  ;;  %v5457_v44 = vld [vmem:[%s9034_s0 + $0x198] sm:$0xf0]  ;;  %v5456_v10 = vor.u32 %v5870_v7, %v5455_v11  ;;  %v5871_v11 = vld [vmem:[%s9034_s0 + $0x1a4] sm:$0xf] }
 0x2da   :  { %9229 = vst [vmem:[#allocation10_spill] sm:$0xff] %v7915_v29  ;;  %v7921_v32 = vpop.f32.mrf.mxu3  ;;  %v5460_v41 = vor.u32 %v5869_v5, %v5457_v44  ;;  %v5273_v38 = vld [vmem:[%s9034_s0 + $0x198] sm:$0xf0] }
 0x2db   :  { %v9270_v29 = vld [vmem:[#allocation5_spill] sm:$0xff] }
 0x2de   :  { %v1794_v28 = vpop.f32.mrf.mxu0 }
 0x2df   :  { %v1795_v58 = vadd.f32 %v1794_v28, %v7259_v46  ;;  %v2716_v39 = vpop.f32.mrf.mxu1 }
 0x2e0   :  { %v7942_v23 = vadd.f32 %v2716_v39, %v2494_v6  ;;  %v2495_v43 = vpop.f32.mrf.mxu2  ;;  %v5276_v6 = vor.u32 %v5827_v15, %v5273_v38 }
 0x2e1   :  { %v7951_v46 = vadd.f32 %v1795_v58, %v7251_v34  ;;  %3089 = vmatmul.bf16.gmra.mxu0 %v5264_v50  ;;  %v2496_v21 = vadd.f32 %v2495_v43, %v2406_v63 }
 0x2e2   :  { %9230 = vst [vmem:[#allocation8_spill] sm:$0xff] %v7942_v23  ;;  %5594 = vmatmul.msk.bf16.gmra.mxu1 %vm330_vm1, %v5460_v41  ;;  %v2416_v52 = vpop.f32.mrf.mxu3  ;;  %v5271_v41 = vld [vmem:[%s9034_s0 + $0x190] sm:$0xf] }
 0x2e5   :  { %3619 = vmatmul.bf16.gmra.mxu2 %v5456_v10  ;;  %v5872_v10 = vld [vmem:[%s9034_s0 + $0x1a4] sm:$0xf0] }
 0x2e6   :  { %v1796_v5 = vpop.f32.mrf.mxu0 }
 0x2e7   :  { %v1797_v44 = vadd.f32 %v1796_v5, %v7292_v19  ;;  %v2718_v28 = vpop.f32.mrf.mxu1  ;;  %5403 = vmatmul.msk.bf16.gmra.mxu3 %vm330_vm1, %v5276_v6  ;;  %v5828_v19 = vld [vmem:[%s9034_s0 + $0x194] sm:$0xf0]  ;;  %v5829_v5 = vld [vmem:[%s9034_s0 + $0x1a4] sm:$0xf] }
 0x2e8   :  { %v7956_v39 = vadd.f32 %v2718_v28, %v2496_v21  ;;  %v2498_v58 = vpop.f32.mrf.mxu2  ;;  %v5272_v7 = vor.u32 %v5828_v19, %v5271_v41  ;;  %v5463_v21 = vld [vmem:[%s9034_s0 + $0x1a0] sm:$0xf] }
 0x2e9   :  { %v7959_v34 = vadd.f32 %v1797_v44, %v7283_v53  ;;  %v2499_v63 = vadd.f32 %v2498_v58, %v7880_v40  ;;  %v5465_v53 = vld [vmem:[%s9034_s0 + $0x1a8] sm:$0xf0]  ;;  %v5464_v41 = vor.u32 %v5872_v10, %v5463_v21  ;;  %v5873_v21 = vld [vmem:[%s9034_s0 + $0x1b4] sm:$0xf] }
 0x2ea   :  { %9231 = vst [vmem:[#allocation46_spill] sm:$0xff] %v7956_v39  ;;  %v7962_v50 = vpop.f32.mrf.mxu3  ;;  %v5468_v15 = vor.u32 %v5871_v11, %v5465_v53  ;;  %v5281_v44 = vld [vmem:[%s9034_s0 + $0x1a8] sm:$0xf0] }
 0x2ee   :  { %v1799_v40 = vpop.f32.mrf.mxu0 }
 0x2ef   :  { %v1800_v38 = vadd.f32 %v1799_v40, %v7319_v17  ;;  %v2721_v43 = vpop.f32.mrf.mxu1 }
 0x2f0   :  { %v7983_v6 = vadd.f32 %v2721_v43, %v2499_v63  ;;  %v2500_v28 = vpop.f32.mrf.mxu2  ;;  %v5284_v63 = vor.u32 %v5829_v5, %v5281_v44 }
 0x2f1   :  { %v7992_v17 = vadd.f32 %v1800_v38, %v7308_v12  ;;  %3094 = vmatmul.bf16.gmra.mxu0 %v5272_v7  ;;  %v2501_v58 = vadd.f32 %v2500_v28, %v2411_v61 }
 0x2f2   :  { %9232 = vst [vmem:[#allocation53_spill] sm:$0xff] %v7983_v6  ;;  %5595 = vmatmul.msk.bf16.gmra.mxu1 %vm330_vm1, %v5468_v15  ;;  %v2421_v19 = vpop.f32.mrf.mxu3  ;;  %v5279_v15 = vld [vmem:[%s9034_s0 + $0x1a0] sm:$0xf] }
 0x2f3   :  { %9233 = vst [vmem:[#allocation27_spill] sm:$0xff] %v7992_v17 }
 0x2f5   :  { %3624 = vmatmul.bf16.gmra.mxu2 %v5464_v41  ;;  %v5874_v41 = vld [vmem:[%s9034_s0 + $0x1b4] sm:$0xf0] }
 0x2f6   :  { %v1801_v11 = vpop.f32.mrf.mxu0 }
 0x2f7   :  { %v1802_v53 = vadd.f32 %v1801_v11, %v7352_v1  ;;  %v2723_v40 = vpop.f32.mrf.mxu1  ;;  %5404 = vmatmul.msk.bf16.gmra.mxu3 %vm330_vm1, %v5284_v63  ;;  %v5830_v1 = vld [vmem:[%s9034_s0 + $0x1a4] sm:$0xf0]  ;;  %v5831_v11 = vld [vmem:[%s9034_s0 + $0x1b4] sm:$0xf] }
 0x2f8   :  { %v7997_v43 = vadd.f32 %v2723_v40, %v2501_v58  ;;  %v2503_v38 = vpop.f32.mrf.mxu2  ;;  %v5280_v10 = vor.u32 %v5830_v1, %v5279_v15  ;;  %v5471_v58 = vld [vmem:[%s9034_s0 + $0x1b0] sm:$0xf] }
 0x2f9   :  { %v8000_v12 = vadd.f32 %v1802_v53, %v7343_v49  ;;  %v2504_v61 = vadd.f32 %v2503_v38, %v7921_v32  ;;  %v5473_v49 = vld [vmem:[%s9034_s0 + $0x1b8] sm:$0xf0]  ;;  %v5472_v1 = vor.u32 %v5874_v41, %v5471_v58  ;;  %v5875_v58 = vld [vmem:[%s9034_s0 + $0x1c4] sm:$0xf] }
 0x2fa   :  { %9234 = vst [vmem:[#allocation24_spill] sm:$0xff] %v7997_v43  ;;  %v2731_v7 = vpop.f32.mrf.mxu3  ;;  %v5476_v32 = vor.u32 %v5873_v21, %v5473_v49  ;;  %v5289_v53 = vld [vmem:[%s9034_s0 + $0x1b8] sm:$0xf0] }
 0x2fb   :  { %9235 = vst [vmem:[#allocation14_spill] sm:$0xff] %v8000_v12  ;;  %v9267_v43 = vld [vmem:[#allocation17_spill] sm:$0xff] }
 0x2fc   :  { %v1915_v6 = vmul.f32 %v9267_v43, %v9267_v43 }
 0x2fe   :  { %v1804_v5 = vpop.f32.mrf.mxu0 }
 0x2ff   :  { %v1805_v44 = vadd.f32 %v1804_v5, %v7375_v31  ;;  %v2726_v28 = vpop.f32.mrf.mxu1  ;;  %v9237_v31 = vld [vmem:[#allocation13_spill] sm:$0xff] }
 0x300   :  { %v8022_v63 = vadd.f32 %v2726_v28, %v2504_v61  ;;  %v2505_v38 = vpop.f32.mrf.mxu2  ;;  %v5292_v61 = vor.u32 %v5831_v11, %v5289_v53 }
 0x301   :  { %v8031_v40 = vadd.f32 %v1805_v44, %v9237_v31  ;;  %3099 = vmatmul.bf16.gmra.mxu0 %v5280_v10  ;;  %v2506_v15 = vadd.f32 %v2505_v38, %v2416_v52 }
 0x302   :  { %9236 = vst [vmem:[#allocation11_spill] sm:$0xff] %v8022_v63  ;;  %5596 = vmatmul.msk.bf16.gmra.mxu1 %vm330_vm1, %v5476_v32  ;;  %v2733_v21 = vpop.f32.mrf.mxu3  ;;  %v5287_v32 = vld [vmem:[%s9034_s0 + $0x1b0] sm:$0xf] }
 0x303   :  { %9238 = vst [vmem:[#allocation49_spill] sm:$0xff] %v8031_v40 }
 0x305   :  { %3629 = vmatmul.bf16.gmra.mxu2 %v5472_v1  ;;  %v5479_v1 = vld [vmem:[%s9034_s0 + $0x1c0] sm:$0xf] }
 0x306   :  { %v1806_v49 = vpop.f32.mrf.mxu0 }
 0x307   :  { %v1807_v5 = vadd.f32 %v1806_v49, %v7403_v62  ;;  %v2728_v28 = vpop.f32.mrf.mxu1  ;;  %5405 = vmatmul.msk.bf16.gmra.mxu3 %vm330_vm1, %v5292_v61  ;;  %v5832_v62 = vld [vmem:[%s9034_s0 + $0x1b4] sm:$0xf0]  ;;  %v5876_v61 = vld [vmem:[%s9034_s0 + $0x1c4] sm:$0xf0]  ;;  %v5833_v49 = vld [vmem:[%s9034_s0 + $0x1c4] sm:$0xf] }
 0x308   :  { %v8036_v63 = vadd.f32 %v2728_v28, %v2506_v15  ;;  %v2508_v31 = vpop.f32.mrf.mxu2 }
 0x309   :  { %v8039_v44 = vadd.f32 %v1807_v5, %v7397_v33  ;;  %v2509_v52 = vadd.f32 %v2508_v31, %v7962_v50  ;;  %v5481_v33 = vld [vmem:[%s9034_s0 + $0x1c8] sm:$0xf0]  ;;  %v5288_v50 = vor.u32 %v5832_v62, %v5287_v32  ;;  %v9242_v5 = vld [vmem:[#allocation2_spill] sm:$0xff] }
 0x30a   :  { %9239 = vst [vmem:[#allocation29_spill] sm:$0xff] %v8036_v63  ;;  %v3154_v10 = vpop.f32.mrf.mxu3  ;;  %v5484_v53 = vor.u32 %v5875_v58, %v5481_v33 }
 0x30b   :  { %9240 = vst [vmem:[#allocation26_spill] sm:$0xff] %v8039_v44  ;;  %v8054_v41 = vadd.f32 %v2731_v7, %v2509_v52  ;;  %v5297_v7 = vld [vmem:[%s9034_s0 + $0x1c8] sm:$0xf0] }
 0x30c   :  { %v5300_v62 = vor.u32 %v5833_v49, %v5297_v7  ;;  %v5487_v7 = vld [vmem:[%s9034_s0 + $0x1d0] sm:$0xf] }
 0x30d   :  { %9241 = vst [vmem:[#allocation18_spill] sm:$0xff] %v8054_v41 }
 0x30e   :  { %v3065_v11 = vpop.f32.mrf.mxu0 }
 0x30f   :  { %v3155_v38 = vadd.f32 %v3154_v10, %v3065_v11  ;;  %v3684_v15 = vpop.f32.mrf.mxu1  ;;  %v5480_v10 = vor.u32 %v5876_v61, %v5479_v1 }
 0x310   :  { %v2510_v31 = vpop.f32.mrf.mxu2 }
 0x311   :  { %v3234_v28 = vadd.f32 %v3155_v38, %v9242_v5  ;;  %3104 = vmatmul.bf16.gmra.mxu0 %v5288_v50  ;;  %v2511_v52 = vadd.f32 %v2510_v31, %v2421_v19  ;;  %v5295_v19 = vld [vmem:[%s9034_s0 + $0x1c0] sm:$0xf]  ;;  %v5877_v50 = vld [vmem:[%s9034_s0 + $0x1d4] sm:$0xf]  ;;  %v5878_v31 = vld [vmem:[%s9034_s0 + $0x1d4] sm:$0xf0] }
 0x312   :  { %5597 = vmatmul.msk.bf16.gmra.mxu1 %vm330_vm1, %v5484_v53  ;;  %v3156_v32 = vpop.f32.mrf.mxu3  ;;  %v5489_v53 = vld [vmem:[%s9034_s0 + $0x1d8] sm:$0xf0] }
 0x313   :  { %v8070_v58 = vadd.f32 %v2733_v21, %v2511_v52  ;;  %v5834_v21 = vld [vmem:[%s9034_s0 + $0x1c4] sm:$0xf0]  ;;  %v5492_v1 = vor.u32 %v5877_v50, %v5489_v53  ;;  %v5835_v52 = vld [vmem:[%s9034_s0 + $0x1d4] sm:$0xf] }
 0x315   :  { %9243 = vst [vmem:[#allocation15_spill] sm:$0xff] %v8070_v58  ;;  %3634 = vmatmul.bf16.gmra.mxu2 %v5480_v10 }
 0x316   :  { %v3067_v33 = vpop.f32.mrf.mxu0 }
 0x317   :  { %v3157_v11 = vadd.f32 %v3156_v32, %v3067_v33  ;;  %v3686_v41 = vpop.f32.mrf.mxu1  ;;  %5406 = vmatmul.msk.bf16.gmra.mxu3 %vm330_vm1, %v5300_v62  ;;  %v5488_v33 = vor.u32 %v5878_v31, %v5487_v7 }
 0x318   :  { %v3595_v44 = vpop.f32.mrf.mxu2 }
 0x319   :  { %v3235_v63 = vadd.f32 %v3157_v11, %v7447_v37  ;;  %v3685_v38 = vadd.f32 %v3684_v15, %v3595_v44  ;;  %v5296_v44 = vor.u32 %v5834_v21, %v5295_v19 }
 0x31a   :  { %v3159_v5 = vpop.f32.mrf.mxu3 }
 0x31b   :  { %v8086_v37 = vadd.f32 %v3685_v38, %v3234_v28  ;;  %v5305_v28 = vld [vmem:[%s9034_s0 + $0x1d8] sm:$0xf0] }
 0x31c   :  { %v5308_v38 = vor.u32 %v5835_v52, %v5305_v28 }
 0x31d   :  { %9244 = vst [vmem:[#allocation52_spill] sm:$0xff] %v8086_v37 }
 0x31e   :  { %v3070_v15 = vpop.f32.mrf.mxu0 }
 0x31f   :  { %v3160_v61 = vadd.f32 %v3159_v5, %v3070_v15  ;;  %v3689_v49 = vpop.f32.mrf.mxu1 }
 0x320   :  { %v3597_v32 = vpop.f32.mrf.mxu2 }
 0x321   :  { %v3236_v10 = vadd.f32 %v3160_v61, %v7471_v20  ;;  %3109 = vmatmul.bf16.gmra.mxu0 %v5296_v44  ;;  %v3687_v62 = vadd.f32 %v3686_v41, %v3597_v32  ;;  %v5303_v41 = vld [vmem:[%s9034_s0 + $0x1d0] sm:$0xf]  ;;  %v5879_v44 = vld [vmem:[%s9034_s0 + $0x1e4] sm:$0xf]  ;;  %v5495_v32 = vld [vmem:[%s9034_s0 + $0x1e0] sm:$0xf] }
 0x322   :  { %5598 = vmatmul.msk.bf16.gmra.mxu1 %vm330_vm1, %v5492_v1  ;;  %v3161_v11 = vpop.f32.mrf.mxu3  ;;  %v5497_v1 = vld [vmem:[%s9034_s0 + $0x1e8] sm:$0xf0] }
 0x323   :  { %v8102_v5 = vadd.f32 %v3687_v62, %v3235_v63  ;;  %v5836_v63 = vld [vmem:[%s9034_s0 + $0x1d4] sm:$0xf0]  ;;  %v5500_v31 = vor.u32 %v5879_v44, %v5497_v1  ;;  %v5880_v62 = vld [vmem:[%s9034_s0 + $0x1e4] sm:$0xf0] }
 0x325   :  { %9245 = vst [vmem:[#allocation30_spill] sm:$0xff] %v8102_v5  ;;  %3639 = vmatmul.bf16.gmra.mxu2 %v5488_v33  ;;  %v5837_v33 = vld [vmem:[%s9034_s0 + $0x1e4] sm:$0xf] }
 0x326   :  { %v3072_v19 = vpop.f32.mrf.mxu0 }
 0x327   :  { %v3162_v21 = vadd.f32 %v3161_v11, %v3072_v19  ;;  %v3691_v50 = vpop.f32.mrf.mxu1  ;;  %5407 = vmatmul.msk.bf16.gmra.mxu3 %vm330_vm1, %v5308_v38 }
 0x328   :  { %v3600_v15 = vpop.f32.mrf.mxu2 }
 0x329   :  { %v3237_v53 = vadd.f32 %v3162_v21, %v7491_v36  ;;  %v3690_v20 = vadd.f32 %v3689_v49, %v3600_v15  ;;  %v5304_v49 = vor.u32 %v5836_v63, %v5303_v41  ;;  %v5496_v21 = vor.u32 %v5880_v62, %v5495_v32 }
 0x32a   :  { %v3164_v61 = vpop.f32.mrf.mxu3 }
 0x32b   :  { %v8118_v36 = vadd.f32 %v3690_v20, %v3236_v10  ;;  %v5313_v10 = vld [vmem:[%s9034_s0 + $0x1e8] sm:$0xf0] }
 0x32c   :  { %v5316_v20 = vor.u32 %v5837_v33, %v5313_v10 }
 0x32d   :  { %9246 = vst [vmem:[#allocation28_spill] sm:$0xff] %v8118_v36 }
 0x32e   :  { %v3075_v7 = vpop.f32.mrf.mxu0 }
 0x32f   :  { %v3165_v52 = vadd.f32 %v3164_v61, %v3075_v7  ;;  %v3694_v28 = vpop.f32.mrf.mxu1 }
 0x330   :  { %v3602_v38 = vpop.f32.mrf.mxu2 }
 0x331   :  { %v3238_v11 = vadd.f32 %v3165_v52, %v7518_v3  ;;  %3114 = vmatmul.bf16.gmra.mxu0 %v5304_v49  ;;  %v3692_v19 = vadd.f32 %v3691_v50, %v3602_v38  ;;  %v5311_v50 = vld [vmem:[%s9034_s0 + $0x1e0] sm:$0xf]  ;;  %v5881_v49 = vld [vmem:[%s9034_s0 + $0x1f4] sm:$0xf]  ;;  %v5503_v38 = vld [vmem:[%s9034_s0 + $0x1f0] sm:$0xf] }
 0x332   :  { %5599 = vmatmul.msk.bf16.gmra.mxu1 %vm330_vm1, %v5500_v31  ;;  %v3166_v15 = vpop.f32.mrf.mxu3  ;;  %v5505_v31 = vld [vmem:[%s9034_s0 + $0x1f8] sm:$0xf0] }
 0x333   :  { %v8134_v61 = vadd.f32 %v3692_v19, %v3237_v53  ;;  %v5838_v53 = vld [vmem:[%s9034_s0 + $0x1e4] sm:$0xf0]  ;;  %v5508_v62 = vor.u32 %v5881_v49, %v5505_v31  ;;  %v5882_v19 = vld [vmem:[%s9034_s0 + $0x1f4] sm:$0xf0] }
 0x335   :  { %9247 = vst [vmem:[#allocation22_spill] sm:$0xff] %v8134_v61  ;;  %3644 = vmatmul.bf16.gmra.mxu2 %v5496_v21  ;;  %v5839_v21 = vld [vmem:[%s9034_s0 + $0x1f4] sm:$0xf] }
 0x336   :  { %v3077_v41 = vpop.f32.mrf.mxu0 }
 0x337   :  { %v3167_v63 = vadd.f32 %v3166_v15, %v3077_v41  ;;  %v3696_v44 = vpop.f32.mrf.mxu1  ;;  %5408 = vmatmul.msk.bf16.gmra.mxu3 %vm330_vm1, %v5316_v20 }
 0x338   :  { %v3605_v7 = vpop.f32.mrf.mxu2 }
 0x339   :  { %v3239_v1 = vadd.f32 %v3167_v63, %v7538_v27  ;;  %v3695_v3 = vadd.f32 %v3694_v28, %v3605_v7  ;;  %v5312_v28 = vor.u32 %v5838_v53, %v5311_v50  ;;  %v5504_v63 = vor.u32 %v5882_v19, %v5503_v38 }
 0x33a   :  { %v3169_v52 = vpop.f32.mrf.mxu3 }
 0x33b   :  { %v8150_v27 = vadd.f32 %v3695_v3, %v3238_v11  ;;  %v5321_v11 = vld [vmem:[%s9034_s0 + $0x1f8] sm:$0xf0] }
 0x33c   :  { %v5324_v3 = vor.u32 %v5839_v21, %v5321_v11 }
 0x33d   :  { %9248 = vst [vmem:[#allocation19_spill] sm:$0xff] %v8150_v27 }
 0x33e   :  { %v3080_v32 = vpop.f32.mrf.mxu0 }
 0x33f   :  { %v3170_v33 = vadd.f32 %v3169_v52, %v3080_v32  ;;  %v3699_v10 = vpop.f32.mrf.mxu1 }
 0x340   :  { %v3607_v20 = vpop.f32.mrf.mxu2 }
 0x341   :  { %v3240_v15 = vadd.f32 %v3170_v33, %v7562_v22  ;;  %3119 = vmatmul.bf16.gmra.mxu0 %v5312_v28  ;;  %v3697_v41 = vadd.f32 %v3696_v44, %v3607_v20  ;;  %v5319_v44 = vld [vmem:[%s9034_s0 + $0x1f0] sm:$0xf]  ;;  %v5883_v28 = vld [vmem:[%s9034_s0 + $0x204] sm:$0xf]  ;;  %v5511_v20 = vld [vmem:[%s9034_s0 + $0x200] sm:$0xf] }
 0x342   :  { %5600 = vmatmul.msk.bf16.gmra.mxu1 %vm330_vm1, %v5508_v62  ;;  %v3171_v7 = vpop.f32.mrf.mxu3  ;;  %v5513_v62 = vld [vmem:[%s9034_s0 + $0x208] sm:$0xf0] }
 0x343   :  { %v8166_v52 = vadd.f32 %v3697_v41, %v3239_v1  ;;  %v5840_v1 = vld [vmem:[%s9034_s0 + $0x1f4] sm:$0xf0]  ;;  %v5516_v19 = vor.u32 %v5883_v28, %v5513_v62  ;;  %v5884_v41 = vld [vmem:[%s9034_s0 + $0x204] sm:$0xf0] }
 0x345   :  { %9249 = vst [vmem:[#allocation55_spill] sm:$0xff] %v8166_v52  ;;  %3649 = vmatmul.bf16.gmra.mxu2 %v5504_v63  ;;  %v5841_v63 = vld [vmem:[%s9034_s0 + $0x204] sm:$0xf] }
 0x346   :  { %v3082_v50 = vpop.f32.mrf.mxu0 }
 0x347   :  { %v3172_v53 = vadd.f32 %v3171_v7, %v3082_v50  ;;  %v3701_v49 = vpop.f32.mrf.mxu1  ;;  %5409 = vmatmul.msk.bf16.gmra.mxu3 %vm330_vm1, %v5324_v3 }
 0x348   :  { %v3610_v32 = vpop.f32.mrf.mxu2 }
 0x349   :  { %v3241_v31 = vadd.f32 %v3172_v53, %v7583_v47  ;;  %v3700_v22 = vadd.f32 %v3699_v10, %v3610_v32  ;;  %v5320_v10 = vor.u32 %v5840_v1, %v5319_v44  ;;  %v5512_v53 = vor.u32 %v5884_v41, %v5511_v20 }
 0x34a   :  { %v3174_v33 = vpop.f32.mrf.mxu3 }
 0x34b   :  { %v8182_v47 = vadd.f32 %v3700_v22, %v3240_v15  ;;  %v5329_v15 = vld [vmem:[%s9034_s0 + $0x208] sm:$0xf0] }
 0x34c   :  { %v5332_v22 = vor.u32 %v5841_v63, %v5329_v15 }
 0x34e   :  { %v3085_v38 = vpop.f32.mrf.mxu0 }
 0x34f   :  { %v3175_v21 = vadd.f32 %v3174_v33, %v3085_v38  ;;  %v3704_v11 = vpop.f32.mrf.mxu1 }
 0x350   :  { %v3612_v3 = vpop.f32.mrf.mxu2 }
 0x351   :  { %v3242_v7 = vadd.f32 %v3175_v21, %v7616_v45  ;;  %3124 = vmatmul.bf16.gmra.mxu0 %v5320_v10  ;;  %v3702_v50 = vadd.f32 %v3701_v49, %v3612_v3  ;;  %v5327_v49 = vld [vmem:[%s9034_s0 + $0x200] sm:$0xf]  ;;  %v5885_v10 = vld [vmem:[%s9034_s0 + $0x214] sm:$0xf]  ;;  %v5519_v3 = vld [vmem:[%s9034_s0 + $0x210] sm:$0xf] }
 0x352   :  { %5601 = vmatmul.msk.bf16.gmra.mxu1 %vm330_vm1, %v5516_v19  ;;  %v3176_v32 = vpop.f32.mrf.mxu3  ;;  %v5521_v19 = vld [vmem:[%s9034_s0 + $0x218] sm:$0xf0] }
 0x353   :  { %v8198_v33 = vadd.f32 %v3702_v50, %v3241_v31  ;;  %v5842_v31 = vld [vmem:[%s9034_s0 + $0x204] sm:$0xf0]  ;;  %v5524_v41 = vor.u32 %v5885_v10, %v5521_v19  ;;  %v5886_v50 = vld [vmem:[%s9034_s0 + $0x214] sm:$0xf0] }
 0x355   :  { %9250 = vst [vmem:[#allocation31_spill] sm:$0xff] %v8198_v33  ;;  %3654 = vmatmul.bf16.gmra.mxu2 %v5512_v53  ;;  %v5843_v53 = vld [vmem:[%s9034_s0 + $0x214] sm:$0xf] }
 0x356   :  { %v3087_v44 = vpop.f32.mrf.mxu0 }
 0x357   :  { %v3177_v1 = vadd.f32 %v3176_v32, %v3087_v44  ;;  %v3706_v28 = vpop.f32.mrf.mxu1  ;;  %5410 = vmatmul.msk.bf16.gmra.mxu3 %vm330_vm1, %v5332_v22 }
 0x358   :  { %v3615_v38 = vpop.f32.mrf.mxu2 }
 0x359   :  { %v3243_v62 = vadd.f32 %v3177_v1, %v7638_v42  ;;  %v3705_v45 = vadd.f32 %v3704_v11, %v3615_v38  ;;  %v5328_v11 = vor.u32 %v5842_v31, %v5327_v49  ;;  %v5520_v1 = vor.u32 %v5886_v50, %v5519_v3 }
 0x35a   :  { %v3179_v21 = vpop.f32.mrf.mxu3 }
 0x35b   :  { %v8214_v42 = vadd.f32 %v3705_v45, %v3242_v7  ;;  %v5337_v7 = vld [vmem:[%s9034_s0 + $0x218] sm:$0xf0] }
 0x35c   :  { %v5340_v45 = vor.u32 %v5843_v53, %v5337_v7 }
 0x35e   :  { %v3090_v20 = vpop.f32.mrf.mxu0 }
 0x35f   :  { %v3180_v63 = vadd.f32 %v3179_v21, %v3090_v20  ;;  %v3709_v15 = vpop.f32.mrf.mxu1 }
 0x360   :  { %v3617_v22 = vpop.f32.mrf.mxu2 }
 0x361   :  { %v3244_v32 = vadd.f32 %v3180_v63, %v7660_v54  ;;  %3129 = vmatmul.bf16.gmra.mxu0 %v5328_v11  ;;  %v3707_v44 = vadd.f32 %v3706_v28, %v3617_v22  ;;  %v5335_v28 = vld [vmem:[%s9034_s0 + $0x210] sm:$0xf]  ;;  %v5887_v11 = vld [vmem:[%s9034_s0 + $0x224] sm:$0xf]  ;;  %v5527_v22 = vld [vmem:[%s9034_s0 + $0x220] sm:$0xf] }
 0x362   :  { %5602 = vmatmul.msk.bf16.gmra.mxu1 %vm330_vm1, %v5524_v41  ;;  %v3181_v38 = vpop.f32.mrf.mxu3  ;;  %v5529_v41 = vld [vmem:[%s9034_s0 + $0x228] sm:$0xf0] }
 0x363   :  { %v8230_v21 = vadd.f32 %v3707_v44, %v3243_v62  ;;  %v5844_v62 = vld [vmem:[%s9034_s0 + $0x214] sm:$0xf0]  ;;  %v5532_v50 = vor.u32 %v5887_v11, %v5529_v41  ;;  %v5888_v44 = vld [vmem:[%s9034_s0 + $0x224] sm:$0xf0] }
 0x365   :  { %9251 = vst [vmem:[#allocation32_spill] sm:$0xff] %v8230_v21  ;;  %3659 = vmatmul.bf16.gmra.mxu2 %v5520_v1  ;;  %v5845_v1 = vld [vmem:[%s9034_s0 + $0x224] sm:$0xf] }
 0x366   :  { %v3092_v49 = vpop.f32.mrf.mxu0 }
 0x367   :  { %v3182_v31 = vadd.f32 %v3181_v38, %v3092_v49  ;;  %v3711_v10 = vpop.f32.mrf.mxu1  ;;  %5411 = vmatmul.msk.bf16.gmra.mxu3 %vm330_vm1, %v5340_v45 }
 0x368   :  { %v3620_v20 = vpop.f32.mrf.mxu2 }
 0x369   :  { %v3245_v19 = vadd.f32 %v3182_v31, %v7674_v48  ;;  %v3710_v54 = vadd.f32 %v3709_v15, %v3620_v20  ;;  %v5336_v15 = vor.u32 %v5844_v62, %v5335_v28  ;;  %v5528_v31 = vor.u32 %v5888_v44, %v5527_v22 }
 0x36a   :  { %v3184_v63 = vpop.f32.mrf.mxu3 }
 0x36b   :  { %v8246_v48 = vadd.f32 %v3710_v54, %v3244_v32  ;;  %v5345_v32 = vld [vmem:[%s9034_s0 + $0x228] sm:$0xf0] }
 0x36c   :  { %v5348_v54 = vor.u32 %v5845_v1, %v5345_v32 }
 0x36d   :  { %9252 = vst [vmem:[#allocation23_spill] sm:$0xff] %v8246_v48 }
 0x36e   :  { %v3095_v3 = vpop.f32.mrf.mxu0 }
 0x36f   :  { %v3185_v53 = vadd.f32 %v3184_v63, %v3095_v3  ;;  %v3714_v7 = vpop.f32.mrf.mxu1 }
 0x370   :  { %v3622_v45 = vpop.f32.mrf.mxu2 }
 0x371   :  { %v3246_v38 = vadd.f32 %v3185_v53, %v7696_v9  ;;  %3134 = vmatmul.bf16.gmra.mxu0 %v5336_v15  ;;  %v3712_v49 = vadd.f32 %v3711_v10, %v3622_v45  ;;  %v5343_v10 = vld [vmem:[%s9034_s0 + $0x220] sm:$0xf]  ;;  %v5889_v15 = vld [vmem:[%s9034_s0 + $0x234] sm:$0xf]  ;;  %v5535_v45 = vld [vmem:[%s9034_s0 + $0x230] sm:$0xf] }
 0x372   :  { %5603 = vmatmul.msk.bf16.gmra.mxu1 %vm330_vm1, %v5532_v50  ;;  %v3186_v20 = vpop.f32.mrf.mxu3  ;;  %v5537_v50 = vld [vmem:[%s9034_s0 + $0x238] sm:$0xf0] }
 0x373   :  { %v8262_v63 = vadd.f32 %v3712_v49, %v3245_v19  ;;  %v5846_v19 = vld [vmem:[%s9034_s0 + $0x224] sm:$0xf0]  ;;  %v5540_v44 = vor.u32 %v5889_v15, %v5537_v50  ;;  %v5890_v49 = vld [vmem:[%s9034_s0 + $0x234] sm:$0xf0] }
 0x375   :  { %9253 = vst [vmem:[#allocation33_spill] sm:$0xff] %v8262_v63  ;;  %3664 = vmatmul.bf16.gmra.mxu2 %v5528_v31  ;;  %v9255_v31 = vld [vmem:[#allocation25_spill] sm:$0xff] }
 0x376   :  { %v3097_v28 = vpop.f32.mrf.mxu0 }
 0x377   :  { %v3187_v62 = vadd.f32 %v3186_v20, %v3097_v28  ;;  %v3716_v11 = vpop.f32.mrf.mxu1  ;;  %5412 = vmatmul.msk.bf16.gmra.mxu3 %vm330_vm1, %v5348_v54 }
 0x378   :  { %v3625_v3 = vpop.f32.mrf.mxu2 }
 0x379   :  { %v3247_v41 = vadd.f32 %v3187_v62, %v7712_v60  ;;  %v3715_v9 = vadd.f32 %v3714_v7, %v3625_v3  ;;  %v5344_v7 = vor.u32 %v5846_v19, %v5343_v10 }
 0x37a   :  { %v3189_v53 = vpop.f32.mrf.mxu3 }
 0x37b   :  { %v8278_v60 = vadd.f32 %v3715_v9, %v3246_v38  ;;  %v5536_v38 = vor.u32 %v5890_v49, %v5535_v45 }
 0x37d   :  { %9254 = vst [vmem:[#allocation34_spill] sm:$0xff] %v8278_v60 }
 0x37e   :  { %v3100_v22 = vpop.f32.mrf.mxu0 }
 0x37f   :  { %v3190_v1 = vadd.f32 %v3189_v53, %v3100_v22  ;;  %v3719_v32 = vpop.f32.mrf.mxu1 }
 0x380   :  { %v3627_v54 = vpop.f32.mrf.mxu2 }
 0x381   :  { %v3248_v20 = vadd.f32 %v3190_v1, %v9255_v31  ;;  %3139 = vmatmul.bf16.gmra.mxu0 %v5344_v7  ;;  %v3717_v28 = vadd.f32 %v3716_v11, %v3627_v54 }
 0x382   :  { %5604 = vmatmul.msk.bf16.gmra.mxu1 %vm330_vm1, %v5540_v44  ;;  %v3191_v62 = vpop.f32.mrf.mxu3 }
 0x383   :  { %v8288_v3 = vadd.f32 %v3717_v28, %v3247_v41 }
 0x385   :  { %9256 = vst [vmem:[#allocation35_spill] sm:$0xff] %v8288_v3  ;;  %3669 = vmatmul.bf16.gmra.mxu2 %v5536_v38 }
 0x386   :  { %v3102_v9 = vpop.f32.mrf.mxu0 }
 0x387   :  { %v3192_v53 = vadd.f32 %v3191_v62, %v3102_v9  ;;  %v3721_v10 = vpop.f32.mrf.mxu1 }
 0x388   :  { %v3630_v15 = vpop.f32.mrf.mxu2 }
 0x389   :  { %v3249_v19 = vadd.f32 %v3192_v53, %v7752_v26  ;;  %v3720_v50 = vadd.f32 %v3719_v32, %v3630_v15 }
 0x38a   :  { %v3194_v22 = vpop.f32.mrf.mxu3 }
 0x38b   :  { %v8291_v58 = vadd.f32 %v3720_v50, %v3248_v20 }
 0x38d   :  { %9257 = vst [vmem:[#allocation36_spill] sm:$0xff] %v8291_v58 }
 0x38e   :  { %v3105_v1 = vpop.f32.mrf.mxu0 }
 0x38f   :  { %v3195_v7 = vadd.f32 %v3194_v22, %v3105_v1  ;;  %v3724_v11 = vpop.f32.mrf.mxu1 }
 0x390   :  { %v3632_v45 = vpop.f32.mrf.mxu2 }
 0x391   :  { %v3250_v44 = vadd.f32 %v3195_v7, %v7778_v56  ;;  %v3722_v49 = vadd.f32 %v3721_v10, %v3632_v45 }
 0x392   :  { %v3196_v41 = vpop.f32.mrf.mxu3 }
 0x393   :  { %v8294_v31 = vadd.f32 %v3722_v49, %v3249_v19 }
 0x395   :  { %9258 = vst [vmem:[#allocation37_spill] sm:$0xff] %v8294_v31 }
 0x396   :  { %v3107_v54 = vpop.f32.mrf.mxu0 }
 0x397   :  { %v3197_v28 = vadd.f32 %v3196_v41, %v3107_v54  ;;  %v3726_v38 = vpop.f32.mrf.mxu1 }
 0x398   :  { %v3635_v62 = vpop.f32.mrf.mxu2 }
 0x399   :  { %v3251_v26 = vadd.f32 %v3197_v28, %v7792_v2  ;;  %v3725_v32 = vadd.f32 %v3724_v11, %v3635_v62 }
 0x39a   :  { %v3199_v9 = vpop.f32.mrf.mxu3 }
 0x39b   :  { %v8297_v20 = vadd.f32 %v3725_v32, %v3250_v44 }
 0x39d   :  { %9259 = vst [vmem:[#allocation38_spill] sm:$0xff] %v8297_v20 }
 0x39e   :  { %v3110_v53 = vpop.f32.mrf.mxu0 }
 0x39f   :  { %v3200_v15 = vadd.f32 %v3199_v9, %v3110_v53  ;;  %v3729_v50 = vpop.f32.mrf.mxu1 }
 0x3a0   :  { %v3637_v22 = vpop.f32.mrf.mxu2 }
 0x3a1   :  { %v3252_v56 = vadd.f32 %v3200_v15, %v7819_v16  ;;  %v3727_v10 = vadd.f32 %v3726_v38, %v3637_v22 }
 0x3a2   :  { %v3201_v1 = vpop.f32.mrf.mxu3 }
 0x3a3   :  { %v8300_v19 = vadd.f32 %v3727_v10, %v3251_v26 }
 0x3a5   :  { %9260 = vst [vmem:[#allocation40_spill] sm:$0xff] %v8300_v19 }
 0x3a6   :  { %v3112_v7 = vpop.f32.mrf.mxu0 }
 0x3a7   :  { %v3202_v45 = vadd.f32 %v3201_v1, %v3112_v7  ;;  %v3731_v49 = vpop.f32.mrf.mxu1 }
 0x3a8   :  { %v3640_v41 = vpop.f32.mrf.mxu2 }
 0x3a9   :  { %v3253_v2 = vadd.f32 %v3202_v45, %v7833_v0  ;;  %v3730_v11 = vadd.f32 %v3729_v50, %v3640_v41  ;;  %v9262_v45 = vld [vmem:[#allocation3_spill] sm:$0xff]  ;;  %v9263_v41 = vld [vmem:[#allocation9_spill] sm:$0xff] }
 0x3aa   :  { %v3204_v54 = vpop.f32.mrf.mxu3 }
 0x3ab   :  { %v8303_v44 = vadd.f32 %v3730_v11, %v3252_v56  ;;  %v1911_v11 = vmul.f32 %v9263_v41, %v9263_v41 }
 0x3ae   :  { %v3115_v28 = vpop.f32.mrf.mxu0 }
 0x3af   :  { %v3205_v62 = vadd.f32 %v3204_v54, %v3115_v28  ;;  %v3734_v32 = vpop.f32.mrf.mxu1  ;;  %v9264_v54 = vld [vmem:[#allocation39_spill] sm:$0xff] }
 0x3b0   :  { %v3642_v9 = vpop.f32.mrf.mxu2  ;;  %v1913_v28 = vmul.f32 %v9264_v54, %v9264_v54 }
 0x3b1   :  { %v3254_v16 = vadd.f32 %v3205_v62, %v7860_v55  ;;  %v3732_v38 = vadd.f32 %v3731_v49, %v3642_v9  ;;  %v1912_v49 = vmul.f32 %v9262_v45, %v9262_v45  ;;  %v1873_v62 = vadd.f32 %v9262_v45, %v9263_v41  ;;  %v9268_v45 = vld [vmem:[#allocation12_spill] sm:$0xff] }
 0x3b2   :  { %v8306_v53 = vpop.f32.mrf.mxu3 }
 0x3b3   :  { %v8308_v26 = vadd.f32 %v3732_v38, %v3253_v2 }
 0x3b6   :  { %v8310_v15 = vpop.f32.mrf.mxu0 }
 0x3b7   :  { %v8312_v22 = vpop.f32.mrf.mxu1 }
 0x3b8   :  { %v3645_v0 = vpop.f32.mrf.mxu2 }
 0x3b9   :  { %v3735_v50 = vadd.f32 %v3734_v32, %v3645_v0  ;;  %v1943_v32 = vadd.f32 %v1912_v49, %v1911_v11  ;;  %v1916_v49 = vmul.f32 %v9268_v45, %v9268_v45 }
 0x3ba   :  { %v8314_v10 = vpop.f32.mrf.mxu3 }
 0x3bb   :  { %v8316_v56 = vadd.f32 %v3735_v50, %v3254_v16  ;;  %v9265_v16 = vld [vmem:[#allocation44_spill] sm:$0xff]  ;;  %v1874_v50 = vadd.f32 %v1873_v62, %v9264_v54  ;;  %v1944_v40 = vadd.f32 %v1943_v32, %v1913_v28  ;;  %v1917_v62 = vmul.f32 %v9270_v29, %v9270_v29 }
 0x3bc   :  { %v1914_v9 = vmul.f32 %v9265_v16, %v9265_v16  ;;  %v9271_v54 = vld [vmem:[#allocation4_spill] sm:$0xff] }
 0x3bd   :  { %9261 = vst [vmem:[#allocation42_spill] sm:$0xff] %v8316_v56  ;;  %v1875_v12 = vadd.f32 %v1874_v50, %v9265_v16  ;;  %v1918_v56 = vmul.f32 %v9271_v54, %v9271_v54  ;;  %v9274_v16 = vld [vmem:[#allocation41_spill] sm:$0xff] }
 0x3be   :  { %v8318_v1 = vpop.f32.mrf.mxu0  ;;  %v1945_v23 = vadd.f32 %v1944_v40, %v1914_v9 }
 0x3bf   :  { %v8320_v7 = vpop.f32.mrf.mxu1  ;;  %v1876_v41 = vadd.f32 %v1875_v12, %v9267_v43  ;;  %v1919_v12 = vmul.f32 %v9274_v16, %v9274_v16 }
 0x3c0   :  { %v8322_v55 = vpop.f32.mrf.mxu2  ;;  %v1946_v17 = vadd.f32 %v1945_v23, %v1915_v6 }
 0x3c1   :  { %v1877_v28 = vadd.f32 %v1876_v41, %v9268_v45  ;;  %v9276_v41 = vld [vmem:[#allocation47_spill] sm:$0xff] }
 0x3c2   :  { %v8326_v2 = vpop.f32.mrf.mxu3  ;;  %v1947_v32 = vadd.f32 %v1946_v17, %v1916_v49  ;;  %v1920_v17 = vmul.f32 %v9276_v41, %v9276_v41 }
 0x3c3   :  { %v1878_v9 = vadd.f32 %v1877_v28, %v9270_v29 }
 0x3c4   :  { %v1948_v50 = vadd.f32 %v1947_v32, %v1917_v62  ;;  %v3867_v62 = vmul.f32 %v8102_v5, %v8102_v5 }
 0x3c5   :  { %v1879_v6 = vadd.f32 %v1878_v9, %v9271_v54  ;;  %v9282_v54 = vld [vmem:[#allocation7_spill] sm:$0xff] }
 0x3c6   :  { %v8336_v38 = vpop.f32.mrf.mxu0  ;;  %v1949_v43 = vadd.f32 %v1948_v50, %v1918_v56  ;;  %v3866_v50 = vmul.f32 %v8086_v37, %v8086_v37 }
 0x3c7   :  { %v8338_v0 = vpop.f32.mrf.mxu1  ;;  %v1880_v45 = vadd.f32 %v1879_v6, %v9274_v16 }
 0x3c8   :  { %9266 = vst [vmem:[#allocation45_spill] sm:$0xff] %v8338_v0  ;;  %v8343_v39 = vpop.f32.mrf.mxu2 }
 0x3c9   :  { %v1881_v32 = vadd.f32 %v1880_v45, %v9276_v41  ;;  %v1923_v45 = vmul.f32 %v9282_v54, %v9282_v54  ;;  %v3869_v41 = vmul.f32 %v8134_v61, %v8134_v61 }
 0x3ca   :  { %v8348_v11 = vpop.f32.mrf.mxu3 }
 0x3cb   :  { %9269 = vst [vmem:[#allocation48_spill] sm:$0xff] %v8348_v11  ;;  %v1950_v11 = vadd.f32 %v1949_v43, %v1919_v12  ;;  %v3868_v43 = vmul.f32 %v8118_v36, %v8118_v36 }
 0x3cd   :  { %v1951_v29 = vadd.f32 %v1950_v11, %v1920_v17  ;;  %v3828_v11 = vadd.f32 %v8102_v5, %v8086_v37  ;;  %v3898_v17 = vadd.f32 %v3867_v62, %v3866_v50  ;;  %v3870_v5 = vmul.f32 %v8150_v27, %v8150_v27  ;;  %v9285_v37 = vld [vmem:[#allocation43_spill] sm:$0xff] }
 0x3ce   :  { %v8356_v0 = vpop.f32.mrf.mxu0 }
 0x3cf   :  { %9272 = vst [vmem:[#allocation51_spill] sm:$0xff] %v8356_v0  ;;  %v8358_v40 = vpop.f32.mrf.mxu1  ;;  %v9279_v0 = vld [vmem:[#allocation16_spill] sm:$0xff] }
 0x3d0   :  { %9273 = vst [vmem:[#allocation54_spill] sm:$0xff] %v8358_v40  ;;  %v8363_v23 = vpop.f32.mrf.mxu2  ;;  %v9278_v40 = vld [vmem:[#allocation21_spill] sm:$0xff]  ;;  %v1922_v56 = vmul.f32 %v9279_v0, %v9279_v0 }
 0x3d1   :  { %9275 = vst [vmem:[#allocation56_spill] sm:$0xff] %v8363_v23  ;;  %v1921_v28 = vmul.f32 %v9278_v40, %v9278_v40  ;;  %v1882_v6 = vadd.f32 %v1881_v32, %v9278_v40  ;;  %v1925_v40 = vmul.f32 %v9285_v37, %v9285_v37 }
 0x3d2   :  { %v8368_v49 = vpop.f32.mrf.mxu3 }
 0x3d3   :  { %9277 = vst [vmem:[#allocation58_spill] sm:$0xff] %v8368_v49  ;;  %v1952_v16 = vadd.f32 %v1951_v29, %v1921_v28  ;;  %v3829_v29 = vadd.f32 %v3828_v11, %v8118_v36  ;;  %v3899_v28 = vadd.f32 %v3898_v17, %v3868_v43  ;;  %v9286_v11 = vld [vmem:[#allocation50_spill] sm:$0xff] }
 0x3d4   :  { %v1926_v43 = vmul.f32 %v9286_v11, %v9286_v11 }
 0x3d5   :  { %v1953_v23 = vadd.f32 %v1952_v16, %v1922_v56  ;;  %v3900_v16 = vadd.f32 %v3899_v28, %v3869_v41  ;;  %v3871_v56 = vmul.f32 %v8166_v52, %v8166_v52  ;;  %v1927_v28 = vmul.f32 %v7747_v14, %v7747_v14 }
 0x3d6   :  { %v8378_v9 = vpop.f32.mrf.mxu0 }
 0x3d7   :  { %9280 = vst [vmem:[#allocation57_spill] sm:$0xff] %v8378_v9  ;;  %v8384_v12 = vpop.f32.mrf.mxu1  ;;  %v1883_v9 = vadd.f32 %v1882_v6, %v9279_v0  ;;  %v1954_v50 = vadd.f32 %v1953_v23, %v1923_v45  ;;  %v3830_v6 = vadd.f32 %v3829_v29, %v8134_v61  ;;  %v3901_v23 = vadd.f32 %v3900_v16, %v3870_v5 }
 0x3d8   :  { %9281 = vst [vmem:[#allocation59_spill] sm:$0xff] %v8384_v12  ;;  %v8393_v49 = vpop.f32.mrf.mxu2  ;;  %v1924_v12 = vmul.f32 %v9283_v35, %v9283_v35  ;;  %v3872_v45 = vmul.f32 %v8182_v47, %v8182_v47  ;;  %v1928_v16 = vmul.f32 %v7755_v57, %v7755_v57 }
 0x3d9   :  { %v1884_v62 = vadd.f32 %v1883_v9, %v9282_v54  ;;  %v3831_v9 = vadd.f32 %v3830_v6, %v8150_v27 }
 0x3da   :  { %v8398_v32 = vpop.f32.mrf.mxu3 }
 0x3db   :  { %9284 = vst [vmem:[#allocation61_spill] sm:$0xff] %v8398_v32  ;;  %v1885_v0 = vadd.f32 %v1884_v62, %v9283_v35  ;;  %v1955_v32 = vadd.f32 %v1954_v50, %v1924_v12  ;;  %v3832_v12 = vadd.f32 %v3831_v9, %v8166_v52  ;;  %v3902_v62 = vadd.f32 %v3901_v23, %v3871_v56 }
 0x3dc   :  { %v3873_v50 = vmul.f32 %v8198_v33, %v8198_v33  ;;  %v1929_v23 = vmul.f32 %v7787_v25, %v7787_v25 }
 0x3dd   :  { %v1886_v41 = vadd.f32 %v1885_v0, %v9285_v37  ;;  %v1956_v29 = vadd.f32 %v1955_v32, %v1925_v40  ;;  %v3833_v0 = vadd.f32 %v3832_v12, %v8182_v47  ;;  %v3903_v40 = vadd.f32 %v3902_v62, %v3872_v45 }
 0x3de   :  { %v8412_v17 = vpop.f32.mrf.mxu0  ;;  %v3874_v32 = vmul.f32 %v8214_v42, %v8214_v42  ;;  %v1930_v45 = vmul.f32 %v7795_v30, %v7795_v30 }
 0x3df   :  { %v8417_v36 = vpop.f32.mrf.mxu1  ;;  %v1887_v5 = vadd.f32 %v1886_v41, %v9286_v11  ;;  %v1957_v6 = vadd.f32 %v1956_v29, %v1926_v43  ;;  %v3834_v41 = vadd.f32 %v3833_v0, %v8198_v33  ;;  %v3904_v43 = vadd.f32 %v3903_v40, %v3873_v50 }
 0x3e0   :  { %v8425_v61 = vpop.f32.mrf.mxu2  ;;  %v3875_v29 = vmul.f32 %v8230_v21, %v8230_v21  ;;  %v1931_v0 = vmul.f32 %v7828_v18, %v7828_v18 }
 0x3e1   :  { %v1888_v56 = vadd.f32 %v1887_v5, %v7747_v14  ;;  %v1958_v9 = vadd.f32 %v1957_v6, %v1927_v28  ;;  %v3835_v62 = vadd.f32 %v3834_v41, %v8214_v42  ;;  %v3905_v28 = vadd.f32 %v3904_v43, %v3874_v32 }
 0x3e2   :  { %v8430_v27 = vpop.f32.mrf.mxu3  ;;  %v3876_v5 = vmul.f32 %v8246_v48, %v8246_v48  ;;  %v3878_v43 = vmul.f32 %v8278_v60, %v8278_v60 }
 0x3e3   :  { %v1889_v52 = vadd.f32 %v1888_v56, %v7755_v57  ;;  %v1959_v11 = vadd.f32 %v1958_v9, %v1928_v16  ;;  %v3836_v40 = vadd.f32 %v3835_v62, %v8230_v21  ;;  %v3906_v16 = vadd.f32 %v3905_v28, %v3875_v29 }
 0x3e4   :  { %v3877_v56 = vmul.f32 %v8262_v63, %v8262_v63  ;;  %v1933_v28 = vmul.f32 %v7869_v59, %v7869_v59 }
 0x3e5   :  { %v1890_v6 = vadd.f32 %v1889_v52, %v7787_v25  ;;  %v1960_v50 = vadd.f32 %v1959_v11, %v1929_v23  ;;  %v1932_v52 = vmul.f32 %v7836_v51, %v7836_v51  ;;  %v3837_v11 = vadd.f32 %v3836_v40, %v8246_v48 }
 0x3e6   :  { %v8444_v12 = vpop.f32.mrf.mxu0  ;;  %v3907_v23 = vadd.f32 %v3906_v16, %v3876_v5  ;;  %v1934_v16 = vmul.f32 %v7877_v13, %v7877_v13 }
 0x3e7   :  { %v8457_v33 = vpop.f32.mrf.mxu1  ;;  %v1891_v32 = vadd.f32 %v1890_v6, %v7795_v30  ;;  %v1961_v41 = vadd.f32 %v1960_v50, %v1930_v45  ;;  %v3838_v6 = vadd.f32 %v3837_v11, %v8262_v63  ;;  %v3879_v50 = vmul.f32 %v8288_v3, %v8288_v3 }
 0x3e8   :  { %v8455_v9 = vpop.f32.mrf.mxu2  ;;  %v3908_v45 = vadd.f32 %v3907_v23, %v3877_v56  ;;  %v1935_v23 = vmul.f32 %v7910_v8, %v7910_v8 }
 0x3e9   :  { %v1892_v29 = vadd.f32 %v1891_v32, %v7828_v18  ;;  %v1962_v62 = vadd.f32 %v1961_v41, %v1931_v0  ;;  %v3839_v0 = vadd.f32 %v3838_v6, %v8278_v60  ;;  %v3880_v41 = vmul.f32 %v8291_v58, %v8291_v58 }
 0x3ea   :  { %v8468_v21 = vpop.f32.mrf.mxu3  ;;  %v3909_v32 = vadd.f32 %v3908_v45, %v3878_v43  ;;  %v1936_v45 = vmul.f32 %v7918_v24, %v7918_v24 }
 0x3eb   :  { %v1893_v40 = vadd.f32 %v1892_v29, %v7836_v51  ;;  %v1963_v5 = vadd.f32 %v1962_v62, %v1932_v52  ;;  %v3840_v29 = vadd.f32 %v3839_v0, %v8288_v3  ;;  %v3881_v62 = vmul.f32 %v8294_v31, %v8294_v31 }
 0x3ec   :  { %v3910_v52 = vadd.f32 %v3909_v32, %v3879_v50  ;;  %v3207_v0 = vadd.f32 %v8306_v53, %v8310_v15  ;;  %v1937_v53 = vmul.f32 %v7951_v46, %v7951_v46 }
 0x3ed   :  { %v1894_v11 = vadd.f32 %v1893_v40, %v7869_v59  ;;  %v1964_v56 = vadd.f32 %v1963_v5, %v1933_v28  ;;  %v3841_v40 = vadd.f32 %v3840_v29, %v8291_v58  ;;  %v3882_v5 = vmul.f32 %v8297_v20, %v8297_v20 }
 0x3ee   :  { %v8476_v48 = vpop.f32.mrf.mxu0  ;;  %v3911_v28 = vadd.f32 %v3910_v52, %v3880_v41  ;;  %v3210_v41 = vadd.f32 %v8314_v10, %v8318_v1  ;;  %v3737_v52 = vadd.f32 %v8312_v22, %v8322_v55  ;;  %v3212_v10 = vadd.f32 %v8326_v2, %v8336_v38  ;;  %v9288_v2 = vld [vmem:[#allocation56_spill] sm:$0xff]  ;;  %v9289_v38 = vld [vmem:[#allocation45_spill] sm:$0xff] }
 0x3ef   :  { %v1895_v6 = vadd.f32 %v1894_v11, %v7877_v13  ;;  %v1965_v43 = vadd.f32 %v1964_v56, %v1934_v16  ;;  %v8495_v60 = vpop.f32.mrf.mxu1  ;;  %v3842_v11 = vadd.f32 %v3841_v40, %v8294_v31  ;;  %v3883_v56 = vmul.f32 %v8300_v19, %v8300_v19  ;;  %v9293_v31 = vld [vmem:[#allocation10_spill] sm:$0xff] }
 0x3f0   :  { %v8487_v63 = vpop.f32.mrf.mxu2  ;;  %v3912_v16 = vadd.f32 %v3911_v28, %v3881_v62  ;;  %v3255_v40 = vadd.f32 %v3207_v0, %v7874_v4  ;;  %v3740_v22 = vadd.f32 %v8320_v7, %v8343_v39  ;;  %v1938_v55 = vmul.f32 %v7959_v34, %v7959_v34 }
 0x3f1   :  { %v1896_v50 = vadd.f32 %v1895_v6, %v7910_v8  ;;  %v1966_v32 = vadd.f32 %v1965_v43, %v1935_v23  ;;  %v3843_v15 = vadd.f32 %v3842_v11, %v8297_v20  ;;  %v3884_v43 = vmul.f32 %v8303_v44, %v8303_v44  ;;  %v9291_v20 = vld [vmem:[#allocation48_spill] sm:$0xff] }
 0x3f2   :  { %v8508_v58 = vpop.f32.mrf.mxu3  ;;  %v3913_v23 = vadd.f32 %v3912_v16, %v3882_v5  ;;  %v8529_v0 = vadd.f32 %v3737_v52, %v3255_v40  ;;  %v3742_v11 = vadd.f32 %v9289_v38, %v9288_v2  ;;  %v3257_v3 = vadd.f32 %v3212_v10, %v9293_v31  ;;  %v9294_v40 = vld [vmem:[#allocation27_spill] sm:$0xff] }
 0x3f3   :  { %v1897_v29 = vadd.f32 %v1896_v50, %v7918_v24  ;;  %v1967_v6 = vadd.f32 %v1966_v32, %v1936_v45  ;;  %v3844_v45 = vadd.f32 %v3843_v15, %v8300_v19  ;;  %v3885_v50 = vmul.f32 %v8308_v26, %v8308_v26  ;;  %v9287_v32 = vld [vmem:[#allocation20_spill] sm:$0xff] }
 0x3f4   :  { %v3914_v28 = vadd.f32 %v3913_v23, %v3883_v56  ;;  %v3256_v4 = vadd.f32 %v3210_v41, %v9287_v32  ;;  %v9292_v23 = vld [vmem:[#allocation42_spill] sm:$0xff]  ;;  %v1939_v32 = vmul.f32 %v9294_v40, %v9294_v40  ;;  %v8551_v31 = vadd.f32 %v3742_v11, %v3257_v3 }
 0x3f5   :  { %v1898_v1 = vadd.f32 %v1897_v29, %v7951_v46  ;;  %v1968_v39 = vadd.f32 %v1967_v6, %v1937_v53  ;;  %v3845_v16 = vadd.f32 %v3844_v45, %v8303_v44  ;;  %v9290_v29 = vld [vmem:[#allocation51_spill] sm:$0xff]  ;;  %v3886_v19 = vmul.f32 %v9292_v23, %v9292_v23  ;;  %v9295_v6 = vld [vmem:[#allocation57_spill] sm:$0xff]  ;;  %v9296_v53 = vld [vmem:[#allocation58_spill] sm:$0xff] }
 0x3f6   :  { %v8513_v62 = vpop.f32.mrf.mxu0  ;;  %v3215_v15 = vadd.f32 %v9291_v20, %v9290_v29  ;;  %v3915_v56 = vadd.f32 %v3914_v28, %v3884_v43  ;;  %v8540_v41 = vadd.f32 %v3740_v22, %v3256_v4  ;;  %v9297_v45 = vld [vmem:[#allocation54_spill] sm:$0xff]  ;;  %v3887_v28 = vmul.f32 %v8529_v0, %v8529_v0  ;;  %v9298_v22 = vld [vmem:[#allocation8_spill] sm:$0xff]  ;;  %v9299_v4 = vld [vmem:[#allocation61_spill] sm:$0xff] }
 0x3f7   :  { %v1899_v7 = vadd.f32 %v1898_v1, %v7959_v34  ;;  %v1969_v52 = vadd.f32 %v1968_v39, %v1938_v55  ;;  %v3217_v1 = vadd.f32 %v9296_v53, %v9295_v6  ;;  %v3745_v2 = vadd.f32 %v9297_v45, %v8393_v49  ;;  %v3756_v38 = vpop.f32.mrf.mxu1  ;;  %v9300_v29 = vld [vmem:[#allocation59_spill] sm:$0xff]  ;;  %v9301_v49 = vld [vmem:[#allocation14_spill] sm:$0xff] }
 0x3f8   :  { %v3665_v5 = vpop.f32.mrf.mxu2  ;;  %v3846_v20 = vadd.f32 %v3845_v16, %v8308_v26  ;;  %v3916_v43 = vadd.f32 %v3915_v56, %v3885_v50  ;;  %v3258_v55 = vadd.f32 %v3215_v15, %v9298_v22  ;;  %v3220_v39 = vadd.f32 %v9299_v4, %v8412_v17  ;;  %v9302_v56 = vld [vmem:[#allocation46_spill] sm:$0xff] }
 0x3f9   :  { %v1900_v10 = vadd.f32 %v1899_v7, %v9294_v40  ;;  %v3747_v6 = vadd.f32 %v9300_v29, %v8425_v61  ;;  %v1940_v53 = vmul.f32 %v9301_v49, %v9301_v49  ;;  %v3888_v3 = vmul.f32 %v8540_v41, %v8540_v41  ;;  %v9303_v29 = vld [vmem:[#allocation53_spill] sm:$0xff] }
 0x3fa   :  { %v3847_v50 = vadd.f32 %v3846_v20, %v9292_v23  ;;  %v3917_v16 = vadd.f32 %v3916_v43, %v3886_v19  ;;  %v3229_v11 = vpop.f32.mrf.mxu3  ;;  %v3259_v7 = vadd.f32 %v3217_v1, %v9302_v56  ;;  %v8565_v45 = vadd.f32 %v3745_v2, %v3258_v55 }
 0x3fb   :  { %v3222_v17 = vadd.f32 %v8430_v27, %v8444_v12  ;;  %v3750_v61 = vadd.f32 %v8417_v36, %v8455_v9  ;;  %v1970_v4 = vadd.f32 %v1969_v52, %v1939_v32  ;;  %v3889_v43 = vmul.f32 %v8551_v31, %v8551_v31 }
 0x3fc   :  { %v3848_v20 = vadd.f32 %v3847_v50, %v8529_v0  ;;  %v3918_v19 = vadd.f32 %v3917_v16, %v3887_v28  ;;  %v3260_v23 = vadd.f32 %v3220_v39, %v9303_v29  ;;  %v8575_v1 = vadd.f32 %v3747_v6, %v3259_v7  ;;  %v9304_v28 = vld [vmem:[#allocation24_spill] sm:$0xff]  ;;  %v9305_v50 = vld [vmem:[#allocation49_spill] sm:$0xff]  ;;  %v9306_v16 = vld [vmem:[#allocation11_spill] sm:$0xff] }
 0x3fd   :  { %v3225_v2 = vadd.f32 %v8468_v21, %v8476_v48  ;;  %v3752_v27 = vadd.f32 %v8457_v33, %v8487_v63  ;;  %v1901_v36 = vadd.f32 %v1900_v10, %v9301_v49  ;;  %v1971_v12 = vadd.f32 %v1970_v4, %v1940_v53 }
 0x3fe   :  { %v3140_v15 = vpop.f32.mrf.mxu0  ;;  %v3849_v9 = vadd.f32 %v3848_v20, %v8540_v41  ;;  %v3919_v52 = vadd.f32 %v3918_v19, %v3888_v3  ;;  %v3890_v32 = vmul.f32 %v8565_v45, %v8565_v45  ;;  %v3261_v55 = vadd.f32 %v3222_v17, %v9304_v28 }
 0x3ff   :  { %v8586_v39 = vadd.f32 %v3750_v61, %v3260_v23  ;;  %v3755_v6 = vadd.f32 %v8495_v60, %v3665_v5  ;;  %v1902_v21 = vadd.f32 %v1901_v36, %v9305_v50  ;;  %v1941_v33 = vmul.f32 %v9305_v50, %v9305_v50  ;;  %v3759_v56 = vpop.f32.mrf.mxu1  ;;  %v9307_v60 = vld [vmem:[#allocation26_spill] sm:$0xff] }
 0x400   :  { %v3667_v22 = vpop.f32.mrf.mxu2  ;;  %v3850_v48 = vadd.f32 %v3849_v9, %v8551_v31  ;;  %v3227_v63 = vadd.f32 %v8508_v58, %v8513_v62  ;;  %v3920_v10 = vadd.f32 %v3919_v52, %v3889_v43  ;;  %v3891_v53 = vmul.f32 %v8575_v1, %v8575_v1 }
 0x401   :  { %v3262_v3 = vadd.f32 %v3225_v2, %v9306_v16  ;;  %v8598_v23 = vadd.f32 %v3752_v27, %v3261_v55  ;;  %v1942_v5 = vmul.f32 %v9307_v60, %v9307_v60  ;;  %v3230_v17 = vadd.f32 %v3229_v11, %v3140_v15  ;;  %v9308_v2 = vld [vmem:[#allocation29_spill] sm:$0xff] }
 0x402   :  { %v3851_v7 = vadd.f32 %v3850_v48, %v8565_v45  ;;  %v3757_v61 = vadd.f32 %v3756_v38, %v3667_v22  ;;  %v1903_v4 = vadd.f32 %v1902_v21, %v9307_v60  ;;  %v3921_v20 = vadd.f32 %v3920_v10, %v3890_v32  ;;  %v3231_v15 = vpop.f32.mrf.mxu3  ;;  %v9309_v32 = vld [vmem:[#allocation18_spill] sm:$0xff] }
 0x403   :  { %v3892_v58 = vmul.f32 %v8586_v39, %v8586_v39  ;;  %v8606_v62 = vadd.f32 %v3755_v6, %v3262_v3  ;;  %v1972_v43 = vadd.f32 %v1971_v12, %v1941_v33  ;;  %v3263_v27 = vadd.f32 %v3227_v63, %v9308_v2 }
 0x404   :  { %v3852_v29 = vadd.f32 %v3851_v7, %v8575_v1  ;;  %v3922_v9 = vadd.f32 %v3921_v20, %v3891_v53  ;;  %v3893_v11 = vmul.f32 %v8598_v23, %v8598_v23  ;;  %v3264_v28 = vadd.f32 %v3230_v17, %v9309_v32  ;;  %v9310_v20 = vld [vmem:[#allocation15_spill] sm:$0xff] }
 0x405   :  { %v1973_v22 = vadd.f32 %v1972_v43, %v1942_v5  ;;  %v8614_v55 = vadd.f32 %v3757_v61, %v3263_v27  ;;  %v1904_v6 = vrot.slane %v1903_v4, 4  ;;  %v3894_v21 = vmul.f32 %v8606_v62, %v8606_v62 }
 0x406   :  { %v3142_v38 = vpop.f32.mrf.mxu0  ;;  %v3853_v52 = vadd.f32 %v3852_v29, %v8586_v39  ;;  %v3923_v12 = vadd.f32 %v3922_v9, %v3892_v58 }
 0x407   :  { %v3232_v48 = vadd.f32 %v3231_v15, %v3142_v38  ;;  %v1974_v53 = vrot.slane %v1973_v22, 4  ;;  %v3895_v3 = vmul.f32 %v8614_v55, %v8614_v55  ;;  %v3761_v7 = vpop.f32.mrf.mxu1 }
 0x408   :  { %v3670_v19 = vpop.f32.mrf.mxu2  ;;  %v3854_v33 = vadd.f32 %v3853_v52, %v8598_v23  ;;  %v3924_v10 = vadd.f32 %v3923_v12, %v3893_v11 }
 0x409   :  { %v3760_v36 = vadd.f32 %v3759_v56, %v3670_v19  ;;  %v1905_v56 = vadd.f32 %v1904_v6, %v1903_v4  ;;  %v3265_v58 = vadd.f32 %v3232_v48, %v9310_v20  ;;  %v1975_v29 = vadd.f32 %v1974_v53, %v1973_v22 }
 0x40a   :  { %v3855_v16 = vadd.f32 %v3854_v33, %v8606_v62  ;;  %v3925_v5 = vadd.f32 %v3924_v10, %v3894_v21 }
 0x40b   :  { %v8619_v63 = vadd.f32 %v3760_v36, %v3264_v28  ;;  %v1906_v9 = vrot.slane %v1905_v56, 2  ;;  %v1976_v15 = vrot.slane %v1975_v29, 2 }
 0x40c   :  { %v3856_v61 = vadd.f32 %v3855_v16, %v8614_v55  ;;  %v3926_v2 = vadd.f32 %v3925_v5, %v3895_v3 }
 0x40d   :  { %v3896_v19 = vmul.f32 %v8619_v63, %v8619_v63  ;;  %v1907_v28 = vadd.f32 %v1906_v9, %v1905_v56  ;;  %v1977_v21 = vadd.f32 %v1976_v15, %v1975_v29 }
 0x40e   :  { %v3857_v27 = vadd.f32 %v3856_v61, %v8619_v63 }
 0x40f   :  { %v3927_v11 = vadd.f32 %v3926_v2, %v3896_v19  ;;  %v1908_v48 = vrot.slane %v1907_v28, 1  ;;  %v1978_v16 = vrot.slane %v1977_v21, 1 }
 0x410   :  { %v3672_v17 = vpop.f32.mrf.mxu2 }
 0x411   :  { %v3762_v43 = vadd.f32 %v3761_v7, %v3672_v17  ;;  %v1909_v7 = vadd.f32 %v1908_v48, %v1907_v28  ;;  %v1979_v20 = vadd.f32 %v1978_v16, %v1977_v21  ;;  %v9311_v16 = vld [vmem:[#allocation9_spill] sm:$0xff] }
 0x413   :  { %v8629_v36 = vadd.f32 %v3762_v43, %v3265_v58 }
 0x415   :  { %v3858_v4 = vadd.f32 %v3857_v27, %v8629_v36  ;;  %v3897_v38 = vmul.f32 %v8629_v36, %v8629_v36 }
 0x417   :  { %v3859_v52 = vrot.slane %v3858_v4, 4  ;;  %v3928_v32 = vadd.f32 %v3927_v11, %v3897_v38 }
 0x419   :  { %v3860_v6 = vadd.f32 %v3859_v52, %v3858_v4  ;;  %v3929_v12 = vrot.slane %v3928_v32, 4 }
 0x41b   :  { %v3861_v22 = vrot.slane %v3860_v6, 2  ;;  %v3930_v33 = vadd.f32 %v3929_v12, %v3928_v32  ;;  %v3952_v12 = vld [vmem:[%s9035_s4] sm:$0x1] }
 0x41d   :  { %v3862_v10 = vadd.f32 %v3861_v22, %v3860_v6  ;;  %v3931_v53 = vrot.slane %v3930_v33, 2 }
 0x41f   :  { %v3863_v3 = vrot.slane %v3862_v10, 1  ;;  %v3932_v5 = vadd.f32 %v3931_v53, %v3930_v33  ;;  %v3954_v33 = vld [vmem:[%s9036_s5] sm:$0x1] }
 0x421   :  { %v3864_v17 = vadd.f32 %v3863_v3, %v3862_v10  ;;  %v3933_v61 = vrot.slane %v3932_v5, 1 }
 0x423   :  { %v3865_v58 = vadd.f32 %v3864_v17, %v1909_v7  ;;  %v3934_v19 = vadd.f32 %v3933_v61, %v3932_v5  ;;  %v9312_v5 = vld [vmem:[#allocation3_spill] sm:$0xff] }
 0x424   :  { %v9313_v17 = vld [vmem:[#allocation39_spill] sm:$0xff] }
 0x425   :  { %v3935_v43 = vadd.f32 %v3934_v19, %v1979_v20  ;;  %v3936_v2 = vmul.f32 0.001953125, %v3865_v58  ;;  %v9314_v20 = vld [vmem:[#allocation44_spill] sm:$0xff]  ;;  %v9315_v19 = vld [vmem:[#allocation17_spill] sm:$0xff] }
 0x427   :  { %v3937_v56 = vmul.f32 0.001953125, %v3935_v43  ;;  %v3938_v27 = vmul.f32 %v3936_v2, %v3936_v2 }
 0x429   :  { %v3939_v9 = vsub.f32 %v3937_v56, %v3938_v27 }
 0x42b   :  { %v3940_v29 = vmax.f32 %v3939_v9, 0.0  ;;  %v9316_v9 = vld [vmem:[#allocation12_spill] sm:$0xff] }
 0x42d   :  { %v3941_v11 = vadd.f32 1e-05, %v3940_v29 }
 0x42f   :  { %5909 = vrsqrt.f32 %v3941_v11  ;;  %vm3948_vm3 = vweird.f32 %v3941_v11 }
 0x435   :  { %v5910_v4 = vpop.eup %5909 }
 0x436   :  { %v3943_v38 = vmul.f32 %v5910_v4, %v3941_v11  ;;  %vm3949_vm2 = vweird.f32 %v5910_v4 }
 0x437   :  { %vm3950_vm4 = vmor %vm3948_vm3, %vm3949_vm2 }
 0x438   :  { %v3944_v15 = vmul.f32 %v5910_v4, %v3943_v38 }
 0x43a   :  { %v3945_v52 = vmul.f32 0.5, %v3944_v15 }
 0x43c   :  { %v3946_v32 = vsub.f32 1.5, %v3945_v52  ;;  %v9318_v52 = vld [vmem:[#allocation4_spill] sm:$0xff] }
 0x43e   :  { %v3947_v28 = vmul.f32 %v5910_v4, %v3946_v32 }
 0x440   :  { %v3951_v6 = vsel %vm3950_vm4, %v5910_v4, %v3947_v28  ;;  %v9317_v4 = vld [vmem:[#allocation5_spill] sm:$0xff] }
 0x441   :  { %v3953_v21 = vmul.f32 %v3952_v12, %v3951_v6  ;;  %v9319_v28 = vld [vmem:[#allocation41_spill] sm:$0xff] }
 0x443   :  { %v3955_v22 = vmul.f32 %v3953_v21, %v3936_v2  ;;  %v8640_v10 = vperm.slane %v3953_v21, 0 }
 0x445   :  { %v3956_v48 = vsub.f32 %v3954_v33, %v3955_v22  ;;  %v3990_v3 = vmul.f32 %v8640_v10, %v9311_v16  ;;  %v3991_v7 = vmul.f32 %v8640_v10, %v9312_v5  ;;  %v3992_v61 = vmul.f32 %v8640_v10, %v9313_v17  ;;  %v9320_v16 = vld [vmem:[#allocation47_spill] sm:$0xff]  ;;  %v9321_v17 = vld [vmem:[#allocation21_spill] sm:$0xff] }
 0x446   :  { %v3993_v58 = vmul.f32 %v8640_v10, %v9314_v20  ;;  %v3994_v43 = vmul.f32 %v8640_v10, %v9315_v19  ;;  %v3995_v29 = vmul.f32 %v8640_v10, %v9316_v9  ;;  %v3996_v38 = vmul.f32 %v8640_v10, %v9317_v4  ;;  %v9322_v19 = vld [vmem:[#allocation16_spill] sm:$0xff] }
 0x447   :  { %v8642_v53 = vperm.slane %v3956_v48, 0  ;;  %v3997_v32 = vmul.f32 %v8640_v10, %v9318_v52  ;;  %v3998_v6 = vmul.f32 %v8640_v10, %v9319_v28 }
 0x449   :  { %v4025_v2 = vadd.f32 %v8642_v53, %v3990_v3  ;;  %v4026_v56 = vadd.f32 %v8642_v53, %v3991_v7  ;;  %v4027_v27 = vadd.f32 %v8642_v53, %v3992_v61  ;;  %v4028_v11 = vadd.f32 %v8642_v53, %v3993_v58 }
 0x44a   :  { %v4029_v15 = vadd.f32 %v8642_v53, %v3994_v43  ;;  %v4030_v12 = vadd.f32 %v8642_v53, %v3995_v29  ;;  %v4031_v21 = vadd.f32 %v8642_v53, %v3996_v38  ;;  %v3999_v3 = vmul.f32 %v8640_v10, %v9320_v16 }
 0x44b   :  { %v4057_v22 = vmax.f32 %v4025_v2, 0.0  ;;  %v4058_v33 = vmax.f32 %v4026_v56, 0.0  ;;  %v4059_v48 = vmax.f32 %v4027_v27, 0.0  ;;  %v4032_v5 = vadd.f32 %v8642_v53, %v3997_v32  ;;  %v9323_v32 = vld [vmem:[#allocation50_spill] sm:$0xff] }
 0x44c   :  { %v4060_v7 = vmax.f32 %v4028_v11, 0.0  ;;  %v4000_v61 = vmul.f32 %v8640_v10, %v9321_v17  ;;  %v4033_v20 = vadd.f32 %v8642_v53, %v3998_v6  ;;  %v4061_v58 = vmax.f32 %v4029_v15, 0.0 }
 0x44d   :  { %4089 = vst [vmem:[%s9037_s6] sm:$0xff] %v4057_v22  ;;  %v4001_v43 = vmul.f32 %v8640_v10, %v9322_v19  ;;  %v4034_v2 = vadd.f32 %v8642_v53, %v3999_v3  ;;  %v4062_v56 = vmax.f32 %v4030_v12, 0.0  ;;  %v4002_v27 = vmul.f32 %v8640_v10, %v9282_v54 }
 0x44e   :  { %4090 = vst [vmem:[%s9037_s6 + $0x8] sm:$0xff] %v4058_v33  ;;  %v4035_v9 = vadd.f32 %v8642_v53, %v4000_v61  ;;  %v4063_v29 = vmax.f32 %v4031_v21, 0.0  ;;  %v4003_v11 = vmul.f32 %v8640_v10, %v9283_v35  ;;  %v4064_v38 = vmax.f32 %v4032_v5, 0.0 }
 0x44f   :  { %4091 = vst [vmem:[%s9037_s6 + $0x10] sm:$0xff] %v4059_v48  ;;  %v4036_v4 = vadd.f32 %v8642_v53, %v4001_v43  ;;  %v4004_v54 = vmul.f32 %v8640_v10, %v9285_v37  ;;  %v4037_v15 = vadd.f32 %v8642_v53, %v4002_v27  ;;  %v4065_v52 = vmax.f32 %v4033_v20, 0.0 }
 0x450   :  { %4092 = vst [vmem:[%s9037_s6 + $0x18] sm:$0xff] %v4060_v7  ;;  %v4005_v35 = vmul.f32 %v8640_v10, %v9323_v32  ;;  %v4038_v28 = vadd.f32 %v8642_v53, %v4003_v11  ;;  %v4066_v6 = vmax.f32 %v4034_v2, 0.0  ;;  %v4006_v37 = vmul.f32 %v8640_v10, %v7747_v14 }
 0x451   :  { %4093 = vst [vmem:[%s9037_s6 + $0x20] sm:$0xff] %v4061_v58  ;;  %v4039_v12 = vadd.f32 %v8642_v53, %v4004_v54  ;;  %v4067_v21 = vmax.f32 %v4035_v9, 0.0  ;;  %v4007_v22 = vmul.f32 %v8640_v10, %v7755_v57  ;;  %v4068_v48 = vmax.f32 %v4036_v4, 0.0 }
 0x452   :  { %4094 = vst [vmem:[%s9037_s6 + $0x28] sm:$0xff] %v4062_v56  ;;  %v4040_v33 = vadd.f32 %v8642_v53, %v4005_v35  ;;  %v4008_v14 = vmul.f32 %v8640_v10, %v7787_v25  ;;  %v4041_v16 = vadd.f32 %v8642_v53, %v4006_v37  ;;  %v4069_v3 = vmax.f32 %v4037_v15, 0.0 }
 0x453   :  { %4095 = vst [vmem:[%s9037_s6 + $0x30] sm:$0xff] %v4063_v29  ;;  %v4009_v57 = vmul.f32 %v8640_v10, %v7795_v30  ;;  %v4042_v5 = vadd.f32 %v8642_v53, %v4007_v22  ;;  %v4070_v7 = vmax.f32 %v4038_v28, 0.0  ;;  %v4010_v25 = vmul.f32 %v8640_v10, %v7828_v18 }
 0x454   :  { %4096 = vst [vmem:[%s9037_s6 + $0x38] sm:$0xff] %v4064_v38  ;;  %v4043_v17 = vadd.f32 %v8642_v53, %v4008_v14  ;;  %v4071_v61 = vmax.f32 %v4039_v12, 0.0  ;;  %v4011_v30 = vmul.f32 %v8640_v10, %v7836_v51  ;;  %v4072_v58 = vmax.f32 %v4040_v33, 0.0 }
 0x455   :  { %4097 = vst [vmem:[%s9037_s6 + $0x40] sm:$0xff] %v4065_v52  ;;  %v4044_v20 = vadd.f32 %v8642_v53, %v4009_v57  ;;  %v4012_v18 = vmul.f32 %v8640_v10, %v7869_v59  ;;  %v4045_v19 = vadd.f32 %v8642_v53, %v4010_v25  ;;  %v4073_v43 = vmax.f32 %v4041_v16, 0.0 }
 0x456   :  { %4098 = vst [vmem:[%s9037_s6 + $0x48] sm:$0xff] %v4066_v6  ;;  %v4013_v51 = vmul.f32 %v8640_v10, %v7877_v13  ;;  %v4046_v2 = vadd.f32 %v8642_v53, %v4011_v30  ;;  %v4074_v56 = vmax.f32 %v4042_v5, 0.0  ;;  %v4014_v59 = vmul.f32 %v8640_v10, %v7910_v8  ;;  %v9327_v30 = vld [vmem:[#allocation22_spill] sm:$0xff] }
 0x457   :  { %4099 = vst [vmem:[%s9037_s6 + $0x50] sm:$0xff] %v4067_v21  ;;  %v4047_v27 = vadd.f32 %v8642_v53, %v4012_v18  ;;  %v4075_v9 = vmax.f32 %v4043_v17, 0.0  ;;  %v4015_v13 = vmul.f32 %v8640_v10, %v7918_v24  ;;  %v4076_v11 = vmax.f32 %v4044_v20, 0.0 }
 0x458   :  { %4100 = vst [vmem:[%s9037_s6 + $0x58] sm:$0xff] %v4068_v48  ;;  %v4048_v29 = vadd.f32 %v8642_v53, %v4013_v51  ;;  %v4016_v8 = vmul.f32 %v8640_v10, %v7951_v46  ;;  %v4049_v4 = vadd.f32 %v8642_v53, %v4014_v59  ;;  %v4077_v38 = vmax.f32 %v4045_v19, 0.0  ;;  %v9324_v48 = vld [vmem:[#allocation52_spill] sm:$0xff]  ;;  %v9328_v19 = vld [vmem:[#allocation19_spill] sm:$0xff] }
 0x459   :  { %4101 = vst [vmem:[%s9037_s6 + $0x60] sm:$0xff] %v4069_v3  ;;  %v4017_v24 = vmul.f32 %v8640_v10, %v7959_v34  ;;  %v4050_v54 = vadd.f32 %v8642_v53, %v4015_v13  ;;  %v4078_v15 = vmax.f32 %v4046_v2, 0.0  ;;  %v4018_v46 = vmul.f32 %v8640_v10, %v9294_v40  ;;  %v9325_v3 = vld [vmem:[#allocation30_spill] sm:$0xff] }
 0x45a   :  { %4102 = vst [vmem:[%s9037_s6 + $0x68] sm:$0xff] %v4070_v7  ;;  %v4051_v52 = vadd.f32 %v8642_v53, %v4016_v8  ;;  %v4079_v32 = vmax.f32 %v4047_v27, 0.0  ;;  %v4019_v34 = vmul.f32 %v8640_v10, %v9301_v49  ;;  %v4080_v28 = vmax.f32 %v4048_v29, 0.0  ;;  %v9326_v7 = vld [vmem:[#allocation28_spill] sm:$0xff] }
 0x45b   :  { %4103 = vst [vmem:[%s9037_s6 + $0x70] sm:$0xff] %v4071_v61  ;;  %v4052_v35 = vadd.f32 %v8642_v53, %v4017_v24  ;;  %v4184_v40 = vmul.f32 %v8640_v10, %v8629_v36  ;;  %v4020_v6 = vmul.f32 %v8640_v10, %v9305_v50  ;;  %v4053_v37 = vadd.f32 %v8642_v53, %v4018_v46 }
 0x45c   :  { %4104 = vst [vmem:[%s9037_s6 + $0x78] sm:$0xff] %v4072_v58  ;;  %v4081_v12 = vmax.f32 %v4049_v4, 0.0  ;;  %v4021_v49 = vmul.f32 %v8640_v10, %v9307_v60  ;;  %v4054_v21 = vadd.f32 %v8642_v53, %v4019_v34  ;;  %v4082_v22 = vmax.f32 %v4050_v54, 0.0  ;;  %v9332_v34 = vld [vmem:[#allocation23_spill] sm:$0xff] }
 0x45d   :  { %4105 = vst [vmem:[%s9037_s6 + $0x80] sm:$0xff] %v4073_v43  ;;  %v8807_v36 = vadd.f32 %v4184_v40, %v8642_v53  ;;  %v4055_v50 = vadd.f32 %v8642_v53, %v4020_v6  ;;  %v4083_v33 = vmax.f32 %v4051_v52, 0.0  ;;  %v4153_v60 = vmul.f32 %v8640_v10, %v9324_v48 }
 0x45e   :  { %4106 = vst [vmem:[%s9037_s6 + $0x88] sm:$0xff] %v4074_v56  ;;  %v4056_v14 = vadd.f32 %v8642_v53, %v4021_v49  ;;  %v4084_v16 = vmax.f32 %v4052_v35, 0.0  ;;  %v4154_v57 = vmul.f32 %v8640_v10, %v9325_v3  ;;  %v4085_v5 = vmax.f32 %v4053_v37, 0.0  ;;  %v9329_v56 = vld [vmem:[#allocation55_spill] sm:$0xff]  ;;  %v9334_v49 = vld [vmem:[#allocation34_spill] sm:$0xff] }
 0x45f   :  { %4107 = vst [vmem:[%s9037_s6 + $0x90] sm:$0xff] %v4075_v9  ;;  %v4155_v25 = vmul.f32 %v8640_v10, %v9326_v7  ;;  %v4185_v17 = vadd.f32 %v4153_v60, %v8642_v53  ;;  %v4086_v61 = vmax.f32 %v4054_v21, 0.0  ;;  %v4156_v20 = vmul.f32 %v8640_v10, %v9327_v30  ;;  %v9337_v7 = vld [vmem:[#allocation37_spill] sm:$0xff]  ;;  %v9338_v30 = vld [vmem:[#allocation38_spill] sm:$0xff] }
 0x460   :  { %4108 = vst [vmem:[%s9037_s6 + $0x98] sm:$0xff] %v4076_v11  ;;  %v4186_v58 = vadd.f32 %v4154_v57, %v8642_v53  ;;  %v4087_v18 = vmax.f32 %v4055_v50, 0.0  ;;  %v4157_v43 = vmul.f32 %v8640_v10, %v9328_v19  ;;  %v4088_v2 = vmax.f32 %v4056_v14, 0.0  ;;  %v9330_v11 = vld [vmem:[#allocation31_spill] sm:$0xff]  ;;  %v9339_v19 = vld [vmem:[#allocation40_spill] sm:$0xff] }
 0x461   :  { %4109 = vst [vmem:[%s9037_s6 + $0xa0] sm:$0xff] %v4077_v38  ;;  %v4187_v51 = vadd.f32 %v4155_v25, %v8642_v53  ;;  %v4158_v59 = vmul.f32 %v8640_v10, %v9329_v56  ;;  %v4188_v27 = vadd.f32 %v4156_v20, %v8642_v53  ;;  %v4159_v9 = vmul.f32 %v8640_v10, %v8182_v47 }
 0x462   :  { %4110 = vst [vmem:[%s9037_s6 + $0xa8] sm:$0xff] %v4078_v15  ;;  %v4189_v13 = vadd.f32 %v4157_v43, %v8642_v53  ;;  %v4217_v29 = vmax.f32 %v4185_v17, 0.0  ;;  %v4160_v8 = vmul.f32 %v8640_v10, %v9330_v11  ;;  %v4218_v38 = vmax.f32 %v4186_v58, 0.0  ;;  %v9331_v15 = vld [vmem:[#allocation32_spill] sm:$0xff]  ;;  %v9340_v11 = vld [vmem:[#allocation42_spill] sm:$0xff] }
 0x463   :  { %4111 = vst [vmem:[%s9037_s6 + $0xb0] sm:$0xff] %v4079_v32  ;;  %v4190_v4 = vadd.f32 %v4158_v59, %v8642_v53  ;;  %v4161_v47 = vmul.f32 %v8640_v10, %v8214_v42  ;;  %v4191_v24 = vadd.f32 %v4159_v9, %v8642_v53  ;;  %v4219_v54 = vmax.f32 %v4187_v51, 0.0  ;;  %v9333_v42 = vld [vmem:[#allocation33_spill] sm:$0xff] }
 0x464   :  { %4112 = vst [vmem:[%s9037_s6 + $0xb8] sm:$0xff] %v4080_v28  ;;  %v4162_v46 = vmul.f32 %v8640_v10, %v9331_v15  ;;  %v4192_v52 = vadd.f32 %v4160_v8, %v8642_v53  ;;  %v4220_v32 = vmax.f32 %v4188_v27, 0.0  ;;  %v4163_v35 = vmul.f32 %v8640_v10, %v9332_v34 }
 0x465   :  { %4113 = vst [vmem:[%s9037_s6 + $0xc0] sm:$0xff] %v4081_v12  ;;  %v4193_v28 = vadd.f32 %v4161_v47, %v8642_v53  ;;  %v4221_v40 = vmax.f32 %v4189_v13, 0.0  ;;  %v4164_v6 = vmul.f32 %v8640_v10, %v9333_v42  ;;  %v4222_v12 = vmax.f32 %v4190_v4, 0.0 }
 0x466   :  { %4114 = vst [vmem:[%s9037_s6 + $0xc8] sm:$0xff] %v4082_v22  ;;  %v4194_v37 = vadd.f32 %v4162_v46, %v8642_v53  ;;  %v4165_v21 = vmul.f32 %v8640_v10, %v9334_v49  ;;  %v4195_v22 = vadd.f32 %v4163_v35, %v8642_v53  ;;  %v4223_v50 = vmax.f32 %v4191_v24, 0.0 }
 0x467   :  { %4115 = vst [vmem:[%s9037_s6 + $0xd0] sm:$0xff] %v4083_v33  ;;  %v9335_v33 = vld [vmem:[#allocation35_spill] sm:$0xff]  ;;  %v4196_v60 = vadd.f32 %v4164_v6, %v8642_v53  ;;  %v4224_v14 = vmax.f32 %v4192_v52, 0.0  ;;  %v4168_v25 = vmul.f32 %v8640_v10, %v9337_v7  ;;  %v4169_v20 = vmul.f32 %v8640_v10, %v9338_v30 }
 0x468   :  { %4116 = vst [vmem:[%s9037_s6 + $0xd8] sm:$0xff] %v4084_v16  ;;  %v4166_v48 = vmul.f32 %v8640_v10, %v9335_v33  ;;  %v9336_v16 = vld [vmem:[#allocation36_spill] sm:$0xff]  ;;  %v4197_v57 = vadd.f32 %v4165_v21, %v8642_v53  ;;  %v4170_v43 = vmul.f32 %v8640_v10, %v9339_v19  ;;  %v4171_v56 = vmul.f32 %v8640_v10, %v8303_v44 }
 0x469   :  { %4117 = vst [vmem:[%s9037_s6 + $0xe0] sm:$0xff] %v4085_v5  ;;  %v4167_v3 = vmul.f32 %v8640_v10, %v9336_v16  ;;  %v4225_v5 = vmax.f32 %v4193_v28, 0.0  ;;  %v4200_v51 = vadd.f32 %v4168_v25, %v8642_v53  ;;  %v4201_v59 = vadd.f32 %v4169_v20, %v8642_v53 }
 0x46a   :  { %4118 = vst [vmem:[%s9037_s6 + $0xe8] sm:$0xff] %v4086_v61  ;;  %v4198_v17 = vadd.f32 %v4166_v48, %v8642_v53  ;;  %v4226_v61 = vmax.f32 %v4194_v37, 0.0  ;;  %v4229_v27 = vmax.f32 %v4197_v57, 0.0  ;;  %v4172_v9 = vmul.f32 %v8640_v10, %v8308_v26 }
 0x46b   :  { %4119 = vst [vmem:[%s9037_s6 + $0xf0] sm:$0xff] %v4087_v18  ;;  %v4199_v58 = vadd.f32 %v4167_v3, %v8642_v53  ;;  %v4227_v18 = vmax.f32 %v4195_v22, 0.0  ;;  %v4202_v13 = vadd.f32 %v4170_v43, %v8642_v53  ;;  %v4173_v44 = vmul.f32 %v8640_v10, %v9340_v11 }
 0x46c   :  { %4120 = vst [vmem:[%s9037_s6 + $0xf8] sm:$0xff] %v4088_v2  ;;  %v4228_v2 = vmax.f32 %v4196_v60, 0.0  ;;  %v4203_v8 = vadd.f32 %v4171_v56, %v8642_v53  ;;  %v4174_v26 = vmul.f32 %v8640_v10, %v8529_v0  ;;  %v4232_v47 = vmax.f32 %v4200_v51, 0.0 }
 0x46d   :  { %4249 = vst [vmem:[%s9037_s6 + $0x100] sm:$0xff] %v4217_v29  ;;  %v4230_v29 = vmax.f32 %v4198_v17, 0.0  ;;  %v4231_v4 = vmax.f32 %v4199_v58, 0.0  ;;  %v4175_v24 = vmul.f32 %v8640_v10, %v8540_v41  ;;  %v4233_v15 = vmax.f32 %v4201_v59, 0.0 }
 0x46e   :  { %4250 = vst [vmem:[%s9037_s6 + $0x108] sm:$0xff] %v4218_v38  ;;  %v4204_v38 = vadd.f32 %v4172_v9, %v8642_v53  ;;  %v4176_v0 = vmul.f32 %v8640_v10, %v8551_v31  ;;  %v4206_v46 = vadd.f32 %v4174_v26, %v8642_v53  ;;  %v4234_v52 = vmax.f32 %v4202_v13, 0.0 }
 0x46f   :  { %4251 = vst [vmem:[%s9037_s6 + $0x110] sm:$0xff] %v4219_v54  ;;  %v4205_v54 = vadd.f32 %v4173_v44, %v8642_v53  ;;  %v4177_v41 = vmul.f32 %v8640_v10, %v8565_v45  ;;  %v4235_v34 = vmax.f32 %v4203_v8, 0.0  ;;  %v4178_v31 = vmul.f32 %v8640_v10, %v8575_v1 }
 0x470   :  { %4252 = vst [vmem:[%s9037_s6 + $0x118] sm:$0xff] %v4220_v32  ;;  %v4207_v32 = vadd.f32 %v4175_v24, %v8642_v53  ;;  %v4208_v35 = vadd.f32 %v4176_v0, %v8642_v53  ;;  %v4236_v28 = vmax.f32 %v4204_v38, 0.0  ;;  %v4179_v45 = vmul.f32 %v8640_v10, %v8586_v39 }
 0x471   :  { %4253 = vst [vmem:[%s9037_s6 + $0x120] sm:$0xff] %v4221_v40  ;;  %v4209_v40 = vadd.f32 %v4177_v41, %v8642_v53  ;;  %v4237_v42 = vmax.f32 %v4205_v54, 0.0  ;;  %v4180_v1 = vmul.f32 %v8640_v10, %v8598_v23  ;;  %v4210_v6 = vadd.f32 %v4178_v31, %v8642_v53 }
 0x472   :  { %4254 = vst [vmem:[%s9037_s6 + $0x128] sm:$0xff] %v4222_v12  ;;  %v4238_v37 = vmax.f32 %v4206_v46, 0.0  ;;  %v4181_v39 = vmul.f32 %v8640_v10, %v8606_v62  ;;  %v4211_v12 = vadd.f32 %v4179_v45, %v8642_v53  ;;  %v4239_v49 = vmax.f32 %v4207_v32, 0.0 }
 0x473   :  { %4255 = vst [vmem:[%s9037_s6 + $0x130] sm:$0xff] %v4223_v50  ;;  %v4182_v23 = vmul.f32 %v8640_v10, %v8614_v55  ;;  %v4212_v21 = vadd.f32 %v4180_v1, %v8642_v53  ;;  %v4240_v22 = vmax.f32 %v4208_v35, 0.0  ;;  %v4183_v62 = vmul.f32 %v8640_v10, %v8619_v63 }
 0x474   :  { %4256 = vst [vmem:[%s9037_s6 + $0x138] sm:$0xff] %v4224_v14  ;;  %v4213_v50 = vadd.f32 %v4181_v39, %v8642_v53  ;;  %v4241_v33 = vmax.f32 %v4209_v40, 0.0  ;;  %v4242_v55 = vmax.f32 %v4210_v6, 0.0  ;;  %v4243_v14 = vmax.f32 %v4211_v12, 0.0 }
 0x475   :  { %4257 = vst [vmem:[%s9037_s6 + $0x140] sm:$0xff] %v4225_v5  ;;  %v4214_v48 = vadd.f32 %v4182_v23, %v8642_v53  ;;  %v4215_v60 = vadd.f32 %v4183_v62, %v8642_v53  ;;  %v4244_v63 = vmax.f32 %v4212_v21, 0.0  ;;  %v4248_v3 = vmax.f32 %v8807_v36, 0.0 }
 0x476   :  { %4258 = vst [vmem:[%s9037_s6 + $0x148] sm:$0xff] %v4226_v61  ;;  %v4245_v10 = vmax.f32 %v4213_v50, 0.0 }
 0x477   :  { %4259 = vst [vmem:[%s9037_s6 + $0x150] sm:$0xff] %v4227_v18  ;;  %v4246_v16 = vmax.f32 %v4214_v48, 0.0  ;;  %v4247_v53 = vmax.f32 %v4215_v60, 0.0 }
 0x478   :  { %4260 = vst [vmem:[%s9037_s6 + $0x158] sm:$0xff] %v4228_v2 }
 0x479   :  { %4261 = vst [vmem:[%s9037_s6 + $0x160] sm:$0xff] %v4229_v27 }
 0x47a   :  { %4262 = vst [vmem:[%s9037_s6 + $0x168] sm:$0xff] %v4230_v29 }
 0x47b   :  { %4263 = vst [vmem:[%s9037_s6 + $0x170] sm:$0xff] %v4231_v4 }
 0x47c   :  { %4264 = vst [vmem:[%s9037_s6 + $0x178] sm:$0xff] %v4232_v47 }
 0x47d   :  { %4265 = vst [vmem:[%s9037_s6 + $0x180] sm:$0xff] %v4233_v15 }
 0x47e   :  { %4266 = vst [vmem:[%s9037_s6 + $0x188] sm:$0xff] %v4234_v52 }
 0x47f   :  { %4267 = vst [vmem:[%s9037_s6 + $0x190] sm:$0xff] %v4235_v34 }
 0x480   :  { %4268 = vst [vmem:[%s9037_s6 + $0x198] sm:$0xff] %v4236_v28 }
 0x481   :  { %4269 = vst [vmem:[%s9037_s6 + $0x1a0] sm:$0xff] %v4237_v42 }
 0x482   :  { %4270 = vst [vmem:[%s9037_s6 + $0x1a8] sm:$0xff] %v4238_v37 }
 0x483   :  { %4271 = vst [vmem:[%s9037_s6 + $0x1b0] sm:$0xff] %v4239_v49 }
 0x484   :  { %4272 = vst [vmem:[%s9037_s6 + $0x1b8] sm:$0xff] %v4240_v22 }
 0x485   :  { %4273 = vst [vmem:[%s9037_s6 + $0x1c0] sm:$0xff] %v4241_v33 }
 0x486   :  { %4274 = vst [vmem:[%s9037_s6 + $0x1c8] sm:$0xff] %v4242_v55 }
 0x487   :  { %4275 = vst [vmem:[%s9037_s6 + $0x1d0] sm:$0xff] %v4243_v14 }
 0x488   :  { %4276 = vst [vmem:[%s9037_s6 + $0x1d8] sm:$0xff] %v4244_v63 }
 0x489   :  { %4277 = vst [vmem:[%s9037_s6 + $0x1e0] sm:$0xff] %v4245_v10 }
 0x48a   :  { %4278 = vst [vmem:[%s9037_s6 + $0x1e8] sm:$0xff] %v4246_v16 }
 0x48b   :  { %4279 = vst [vmem:[%s9037_s6 + $0x1f0] sm:$0xff] %v4247_v53 }
 0x48c   :  { %4280 = vst [vmem:[%s9037_s6 + $0x1f8] sm:$0xff] %v4248_v3 }

</bundles_post_ra>
